<compile_context>
chip_gen: v6e
topology: v6e:2x2x1
jax: 0.10.0
libtpu: 0.0.40
codegen_flags: <defaults>
</compile_context>

<pallas_src>
import functools

import numpy as np
import jax
import jax.numpy as jnp
from jax.experimental import pallas as pl
from jax.experimental.pallas import tpu as pltpu

_EPS = 1e-5
_CONV1_OUT = 128   # fixed by the module: Conv1d(*, 128, kernel_size=1)
_CONV2_OUT = 32    # fixed by the module: Conv1d(128, 32, kernel_size=3, padding='same')
_K = 3
_LANE = 128
_TILE_N_TARGET = 1024          # lanes per tile (512-1024 sweet spot)
_VMEM_LIMIT = 32 * 1024 * 1024  # safe on v5e/v6e/v7x; working set is only a few MiB


def _round_up(a, b):
    return ((a + b - 1) // b) * b


def _pick_tile_n(batch, l_pad, target=_TILE_N_TARGET):
    # Tiles must contain whole (padded) length rows so the k=3 conv's rolled adds
    # never pull live data across a row/tile boundary (they land on zero padding).
    k = max(1, min(batch, target // l_pad))
    while batch % k:
        k -= 1
    return k * l_pad
    # TODO(synk): very long L (a single padded row exceeding the VMEM budget) would
    # need a halo-tiled variant along L.


def _bn_affine(gamma, beta, ch_sum, ch_sumsq, n):
    """Fold one-pass batch statistics into per-channel scale/shift (training-mode BN)."""
    mean = ch_sum / n
    var = jnp.maximum(ch_sumsq / n - mean * mean, 0.0)
    scale = gamma.reshape(-1, 1) * jax.lax.rsqrt(var + _EPS)
    shift = beta.reshape(-1, 1) - mean * scale
    return scale, shift


# ------------------------------- Pallas kernels -------------------------------
def _bn2_stats_kernel(x_ref, sc1_ref, sh1_ref, w1_ref, cb1_ref, mask_ref,
                      s_ref, ss_ref, *, mxu_dtype):
    """Pass 1: accumulate per-channel sum / sum-sq of y1 = conv1(relu(bn1(x)))."""
    @pl.when(pl.program_id(0) == 0)
    def _():
        s_ref[...] = jnp.zeros_like(s_ref)
        ss_ref[...] = jnp.zeros_like(ss_ref)

    h = jnp.maximum(x_ref[...] * sc1_ref[...] + sh1_ref[...], 0.0)
    y1 = jnp.dot(w1_ref[...].astype(mxu_dtype), h.astype(mxu_dtype),
                 preferred_element_type=jnp.float32) + cb1_ref[...]
    y1 = y1 * mask_ref[...]                      # zero out padded columns
    s_ref[...] += jnp.sum(y1, axis=1, keepdims=True)
    ss_ref[...] += jnp.sum(y1 * y1, axis=1, keepdims=True)


def _bottleneck_kernel(x_ref, sc1_ref, sh1_ref, w1_ref, cb1_ref,
                       sc2_ref, sh2_ref, w2_ref, cb2_ref, mask_ref,
                       out_ref, *, mxu_dtype):
    """Pass 2: BN1+ReLU -> 1x1 conv -> BN2+ReLU -> k=3 'same' conv (one MXU matmul)."""
    mask = mask_ref[...]
    h = jnp.maximum(x_ref[...] * sc1_ref[...] + sh1_ref[...], 0.0)
    y1 = jnp.dot(w1_ref[...].astype(mxu_dtype), h.astype(mxu_dtype),
                 preferred_element_type=jnp.float32) + cb1_ref[...]
    h2 = jnp.maximum(y1 * sc2_ref[...] + sh2_ref[...], 0.0) * mask

    # All three conv taps in a single (96,128)@(128,tile_n) matmul; the three
    # 32-row partials are shift-added on the SMALL (32, tile_n) outputs.
    p = jnp.dot(w2_ref[...].astype(mxu_dtype), h2.astype(mxu_dtype),
                preferred_element_type=jnp.float32)
    t = p.shape[1]
    tap0 = pltpu.roll(p[0:_CONV2_OUT, :], 1, axis=1)                        # h2[l-1]
    tap1 = p[_CONV2_OUT:2 * _CONV2_OUT, :]                                  # h2[l]
    tap2 = pltpu.roll(p[2 * _CONV2_OUT:3 * _CONV2_OUT, :], t - 1, axis=1)   # h2[l+1]
    out_ref[...] = (cb2_ref[...] + tap0 + tap1 + tap2) * mask


# --------------------------------- wrappers ---------------------------------
def _bottleneck_layer(acts, ch_sum, ch_sumsq, mask, params, c_in, n_valid,
                      tile_n, mxu_dtype):
    """One BottleneckLayer on the channel-major activation buffer. Returns (32, N_pad)."""
    g1, be1, w1, cb1, g2, be2, w2, cb2 = params
    _, n_pad = acts.shape
    num_tiles = n_pad // tile_n

    sc1, sh1 = _bn_affine(g1, be1, ch_sum[:c_in], ch_sumsq[:c_in], n_valid)
    cb1c = cb1.reshape(-1, 1)

    full = lambda j: (0, 0)
    tiled = lambda j: (0, j)

    # ---- pass 1: BN2 batch statistics (reduction over N tiles) ----
    s2, ss2 = pl.pallas_call(
        functools.partial(_bn2_stats_kernel, mxu_dtype=mxu_dtype),
        grid=(num_tiles,),
        in_specs=[
            pl.BlockSpec((c_in, tile_n), tiled),          # top c_in rows of acts
            pl.BlockSpec((c_in, 1), full),                # scale1
            pl.BlockSpec((c_in, 1), full),                # shift1
            pl.BlockSpec((_CONV1_OUT, c_in), full),       # W1
            pl.BlockSpec((_CONV1_OUT, 1), full),          # b1
            pl.BlockSpec((1, tile_n), tiled),             # valid-column mask
        ],
        out_specs=(pl.BlockSpec((_CONV1_OUT, 1), full),
                   pl.BlockSpec((_CONV1_OUT, 1), full)),
        out_shape=(jax.ShapeDtypeStruct((_CONV1_OUT, 1), jnp.float32),
                   jax.ShapeDtypeStruct((_CONV1_OUT, 1), jnp.float32)),
        compiler_params=pltpu.CompilerParams(
            dimension_semantics=("arbitrary",),
            vmem_limit_bytes=_VMEM_LIMIT),
    )(acts, sc1, sh1, w1, cb1c, mask)

    sc2, sh2 = _bn_affine(g2, be2, s2, ss2, n_valid)
    w2_flat = w2.reshape(_K * _CONV2_OUT, _CONV1_OUT)     # stacked taps (96, 128)

    # ---- pass 2: normalize + both convs, tiled & parallel over N ----
    out32 = pl.pallas_call(
        functools.partial(_bottleneck_kernel, mxu_dtype=mxu_dtype),
        grid=(num_tiles,),
        in_specs=[
            pl.BlockSpec((c_in, tile_n), tiled),
            pl.BlockSpec((c_in, 1), full),
            pl.BlockSpec((c_in, 1), full),
            pl.BlockSpec((_CONV1_OUT, c_in), full),
            pl.BlockSpec((_CONV1_OUT, 1), full),
            pl.BlockSpec((_CONV1_OUT, 1), full),          # scale2
            pl.BlockSpec((_CONV1_OUT, 1), full),          # shift2
            pl.BlockSpec((_K * _CONV2_OUT, _CONV1_OUT), full),
            pl.BlockSpec((_CONV2_OUT, 1), full),          # b2
            pl.BlockSpec((1, tile_n), tiled),
        ],
        out_specs=pl.BlockSpec((_CONV2_OUT, tile_n), tiled),
        out_shape=jax.ShapeDtypeStruct((_CONV2_OUT, n_pad), jnp.float32),
        compiler_params=pltpu.CompilerParams(
            dimension_semantics=("parallel",),            # megacore split on v7x
            vmem_limit_bytes=_VMEM_LIMIT),
    )(acts, sc1, sh1, w1, cb1c, sc2, sh2, w2_flat, cb2.reshape(-1, 1), mask)

    return out32


def dense_block(x, layer_params, mxu_dtype=jnp.float32):
    """DenseBlock.forward: x (B, C0, L) -> (B, C0 + 32*len(layer_params), L)."""
    batch, c0, length = x.shape
    nb = len(layer_params)
    c_total = c0 + _CONV2_OUT * nb
    # TODO(synk): pad the channel axis if hidden_dim is not a multiple of 8 (sublane).
    assert c0 % 8 == 0, "hidden_dim must be a multiple of 8"

    # >=1 zero column per batch row so the rolled conv taps see zeros at row edges.
    l_pad = _round_up(length + 1, _LANE)
    n_pad = batch * l_pad
    n_valid = float(batch * length)
    tile_n = _pick_tile_n(batch, l_pad)

    x_cm = jnp.transpose(x, (1, 0, 2)).astype(jnp.float32)             # (C0, B, L)
    x_cm = jnp.pad(x_cm, ((0, 0), (0, 0), (0, l_pad - length)))
    x_flat = x_cm.reshape(c0, n_pad)                                   # lane-dense

    acts = jnp.zeros((c_total, n_pad), jnp.float32).at[:c0].set(x_flat)
    ch_sum = jnp.zeros((c_total, 1), jnp.float32).at[:c0].set(
        jnp.sum(x_flat, axis=1, keepdims=True))
    ch_sumsq = jnp.zeros((c_total, 1), jnp.float32).at[:c0].set(
        jnp.sum(x_flat * x_flat, axis=1, keepdims=True))
    mask = (jnp.arange(n_pad) % l_pad < length).astype(jnp.float32).reshape(1, n_pad)

    for i, params in enumerate(layer_params):
        c_in = c0 + _CONV2_OUT * i
        out32 = _bottleneck_layer(acts, ch_sum, ch_sumsq, mask, params, c_in,
                                  n_valid, tile_n, mxu_dtype)
        acts = acts.at[c_in:c_in + _CONV2_OUT].set(out32)
        ch_sum = ch_sum.at[c_in:c_in + _CONV2_OUT].set(
            jnp.sum(out32, axis=1, keepdims=True))
        ch_sumsq = ch_sumsq.at[c_in:c_in + _CONV2_OUT].set(
            jnp.sum(out32 * out32, axis=1, keepdims=True))

    out = acts.reshape(c_total, batch, l_pad)[:, :, :length]
    return jnp.transpose(out, (1, 0, 2))


# ------------------------- pure-JAX reference (validation) -------------------------
def _ref_bn(z, g, b):
    m = jnp.mean(z, axis=(0, 2), keepdims=True)
    v = jnp.mean((z - m) ** 2, axis=(0, 2), keepdims=True)
    return (z - m) * jax.lax.rsqrt(v + _EPS) * g.reshape(1, -1, 1) + b.reshape(1, -1, 1)


def _ref_bottleneck(x, p):
    g1, be1, w1, cb1, g2, be2, w2, cb2 = p
    L = x.shape[2]
    h = jax.nn.relu(_ref_bn(x, g1, be1))
    y1 = jnp.einsum('oc,bcl->bol', w1, h) + cb1.reshape(1, -1, 1)
    h2 = jax.nn.relu(_ref_bn(y1, g2, be2))
    pad = jnp.pad(h2, ((0, 0), (0, 0), (1, 1)))
    y2 = sum(jnp.einsum('oc,bcl->bol', w2[k], pad[:, :, k:k + L]) for k in range(_K))
    return y2 + cb2.reshape(1, -1, 1)


def dense_block_ref(x, layer_params):
    layers_concat = [x]
    for p in layer_params:
        cur = jnp.concatenate(layers_concat, axis=1)
        cur = _ref_bottleneck(cur, p)
        layers_concat.append(cur)
    return jnp.concatenate(layers_concat, axis=1)


# ------------------------- deterministic parameter init -------------------------
def init_layer_params(key, c_in):
    ks = jax.random.split(key, 8)
    g1 = 1.0 + 0.1 * jax.random.normal(ks[0], (c_in,), jnp.float32)
    be1 = 0.1 * jax.random.normal(ks[1], (c_in,), jnp.float32)
    w1 = 0.1 * jax.random.normal(ks[2], (_CONV1_OUT, c_in), jnp.float32)
    cb1 = 0.1 * jax.random.normal(ks[3], (_CONV1_OUT,), jnp.float32)
    g2 = 1.0 + 0.1 * jax.random.normal(ks[4], (_CONV1_OUT,), jnp.float32)
    be2 = 0.1 * jax.random.normal(ks[5], (_CONV1_OUT,), jnp.float32)
    w2 = 0.1 * jax.random.normal(ks[6], (_K, _CONV2_OUT, _CONV1_OUT), jnp.float32)
    cb2 = 0.1 * jax.random.normal(ks[7], (_CONV2_OUT,), jnp.float32)
    return (g1, be1, w1, cb1, g2, be2, w2, cb2)


if __name__ == "__main__":
    B, hidden_dim, L = 2, 32, 16
    nb_layers = 3

    key = jax.random.PRNGKey(0)
    kx, kp = jax.random.split(key)
    x = jax.random.normal(kx, (B, hidden_dim, L), jnp.float32)

    layer_keys = jax.random.split(kp, nb_layers)
    params = [init_layer_params(layer_keys[i], hidden_dim + _CONV2_OUT * i)
              for i in range(nb_layers)]

    expected_channels = hidden_dim + _CONV2_OUT * nb_layers
    ref = dense_block_ref(x, params)

    # f32 MXU operands: tight numerical check.
    run_f32 = jax.jit(functools.partial(dense_block, mxu_dtype=jnp.float32))
    out_f32 = jax.block_until_ready(run_f32(x, params))
    assert out_f32.shape == (B, expected_channels, L), out_f32.shape
    np.testing.assert_allclose(np.asarray(out_f32), np.asarray(ref),
                               rtol=5e-4, atol=5e-4)

    # bf16 MXU operands (f32 accumulate) -- the v6e/v7x fast path; looser check.
    run_bf16 = jax.jit(functools.partial(dense_block, mxu_dtype=jnp.bfloat16))
    out_bf16 = jax.block_until_ready(run_bf16(x, params))
    assert out_bf16.shape == (B, expected_channels, L), out_bf16.shape
    np.testing.assert_allclose(np.asarray(out_bf16), np.asarray(ref),
                               rtol=1e-1, atol=1e-1)

    print("KERNEL_OK")
</pallas_src>

<mosaic_0001>
module attributes {stable_mosaic.version = 11 : i64} {
  func.func @_bn2_stats_kernel(%arg0: i32, %arg1: memref<32x256xf32, #tpu.memory_space<vmem>>, %arg2: memref<32x1xf32, #tpu.memory_space<vmem>>, %arg3: memref<32x1xf32, #tpu.memory_space<vmem>>, %arg4: memref<128x32xf32, #tpu.memory_space<vmem>>, %arg5: memref<128x1xf32, #tpu.memory_space<vmem>>, %arg6: memref<1x256xf32, #tpu.memory_space<vmem>>, %arg7: memref<128x1xf32, #tpu.memory_space<vmem>>, %arg8: memref<128x1xf32, #tpu.memory_space<vmem>>) attributes {dimension_semantics = [#tpu.dimension_semantics<arbitrary>], iteration_bounds = array<i64: 1>, scalar_prefetch = 0 : i64, scratch_operands = 0 : i64, tpu.core_type = #tpu.core_type<tc>, window_params = [{transform_indices = @transform_0, window_bounds = array<i64: 32, 256>}, {pipeline_mode = #tpu.pipeline_mode<synchronous>, transform_indices = @transform_1, window_bounds = array<i64: 32, 1>}, {pipeline_mode = #tpu.pipeline_mode<synchronous>, transform_indices = @transform_2, window_bounds = array<i64: 32, 1>}, {pipeline_mode = #tpu.pipeline_mode<synchronous>, transform_indices = @transform_3, window_bounds = array<i64: 128, 32>}, {pipeline_mode = #tpu.pipeline_mode<synchronous>, transform_indices = @transform_4, window_bounds = array<i64: 128, 1>}, {transform_indices = @transform_5, window_bounds = array<i64: 1, 256>}, {pipeline_mode = #tpu.pipeline_mode<synchronous>, transform_indices = @transform_6, window_bounds = array<i64: 128, 1>}, {pipeline_mode = #tpu.pipeline_mode<synchronous>, transform_indices = @transform_7, window_bounds = array<i64: 128, 1>}]} {
    %c0_i32 = arith.constant 0 : i32
    %0 = arith.cmpi eq, %arg0, %c0_i32 : i32
    %1 = arith.extui %0 : i1 to i32
    %c0_i32_0 = arith.constant 0 : i32
    %2 = arith.cmpi ne, %1, %c0_i32_0 : i32
    scf.if %2 {
      %cst_23 = arith.constant 0.000000e+00 : f32
      %31 = vector.broadcast %cst_23 : f32 to vector<128x1xf32>
      %c0_24 = arith.constant 0 : index
      %c0_25 = arith.constant 0 : index
      %32 = vector.load %arg7[%c0_24, %c0_25] : memref<128x1xf32, #tpu.memory_space<vmem>>, vector<128x1xf32>
      tpu.vector_store %arg7[%c0_24, %c0_25], %31 {strides = array<i32>} : memref<128x1xf32, #tpu.memory_space<vmem>>, vector<128x1xf32>,
      %cst_26 = arith.constant 0.000000e+00 : f32
      %33 = vector.broadcast %cst_26 : f32 to vector<128x1xf32>
      %c0_27 = arith.constant 0 : index
      %c0_28 = arith.constant 0 : index
      %34 = vector.load %arg8[%c0_27, %c0_28] : memref<128x1xf32, #tpu.memory_space<vmem>>, vector<128x1xf32>
      tpu.vector_store %arg8[%c0_27, %c0_28], %33 {strides = array<i32>} : memref<128x1xf32, #tpu.memory_space<vmem>>, vector<128x1xf32>,
    } else {
    }
    %c0 = arith.constant 0 : index
    %c0_1 = arith.constant 0 : index
    %3 = vector.load %arg1[%c0, %c0_1] : memref<32x256xf32, #tpu.memory_space<vmem>>, vector<32x256xf32>
    %c0_2 = arith.constant 0 : index
    %c0_3 = arith.constant 0 : index
    %4 = vector.load %arg2[%c0_2, %c0_3] : memref<32x1xf32, #tpu.memory_space<vmem>>, vector<32x1xf32>
    %5 = vector.broadcast %4 : vector<32x1xf32> to vector<32x256xf32>
    %6 = arith.mulf %3, %5 : vector<32x256xf32>
    %c0_4 = arith.constant 0 : index
    %c0_5 = arith.constant 0 : index
    %7 = vector.load %arg3[%c0_4, %c0_5] : memref<32x1xf32, #tpu.memory_space<vmem>>, vector<32x1xf32>
    %8 = vector.broadcast %7 : vector<32x1xf32> to vector<32x256xf32>
    %9 = arith.addf %6, %8 : vector<32x256xf32>
    %cst = arith.constant 0.000000e+00 : f32
    %10 = vector.broadcast %cst : f32 to vector<32x256xf32>
    %11 = arith.maximumf %9, %10 : vector<32x256xf32>
    %c0_6 = arith.constant 0 : index
    %c0_7 = arith.constant 0 : index
    %12 = vector.load %arg4[%c0_6, %c0_7] : memref<128x32xf32, #tpu.memory_space<vmem>>, vector<128x32xf32>
    %cst_8 = arith.constant dense<0.000000e+00> : vector<128x256xf32>
    %13 = tpu.matmul %12, %11, %cst_8 {dimension_numbers = #tpu.dot_dimension_numbers<[1], [0], [0], [1], [0, 0, 1, 1], [], []>} : vector<128x32xf32>, vector<32x256xf32>, vector<128x256xf32> -> vector<128x256xf32>
    %c0_9 = arith.constant 0 : index
    %c0_10 = arith.constant 0 : index
    %14 = vector.load %arg5[%c0_9, %c0_10] : memref<128x1xf32, #tpu.memory_space<vmem>>, vector<128x1xf32>
    %15 = vector.broadcast %14 : vector<128x1xf32> to vector<128x256xf32>
    %16 = arith.addf %13, %15 : vector<128x256xf32>
    %c0_11 = arith.constant 0 : index
    %c0_12 = arith.constant 0 : index
    %17 = vector.load %arg6[%c0_11, %c0_12] : memref<1x256xf32, #tpu.memory_space<vmem>>, vector<1x256xf32>
    %18 = vector.broadcast %17 : vector<1x256xf32> to vector<128x256xf32>
    %19 = arith.mulf %16, %18 : vector<128x256xf32>
    %c0_13 = arith.constant 0 : index
    %c0_14 = arith.constant 0 : index
    %20 = vector.load %arg7[%c0_13, %c0_14] : memref<128x1xf32, #tpu.memory_space<vmem>>, vector<128x1xf32>
    %cst_15 = arith.constant dense<0.000000e+00> : vector<128xf32>
    %21 = vector.multi_reduction <add>, %19, %cst_15 [1] : vector<128x256xf32> to vector<128xf32>
    %22 = vector.shape_cast %21 : vector<128xf32> to vector<128x1xf32>
    %23 = arith.addf %20, %22 : vector<128x1xf32>
    %c0_16 = arith.constant 0 : index
    %c0_17 = arith.constant 0 : index
    %24 = vector.load %arg7[%c0_16, %c0_17] : memref<128x1xf32, #tpu.memory_space<vmem>>, vector<128x1xf32>
    tpu.vector_store %arg7[%c0_16, %c0_17], %23 {strides = array<i32>} : memref<128x1xf32, #tpu.memory_space<vmem>>, vector<128x1xf32>,
    %c0_18 = arith.constant 0 : index
    %c0_19 = arith.constant 0 : index
    %25 = vector.load %arg8[%c0_18, %c0_19] : memref<128x1xf32, #tpu.memory_space<vmem>>, vector<128x1xf32>
    %26 = arith.mulf %19, %19 : vector<128x256xf32>
    %cst_20 = arith.constant dense<0.000000e+00> : vector<128xf32>
    %27 = vector.multi_reduction <add>, %26, %cst_20 [1] : vector<128x256xf32> to vector<128xf32>
    %28 = vector.shape_cast %27 : vector<128xf32> to vector<128x1xf32>
    %29 = arith.addf %25, %28 : vector<128x1xf32>
    %c0_21 = arith.constant 0 : index
    %c0_22 = arith.constant 0 : index
    %30 = vector.load %arg8[%c0_21, %c0_22] : memref<128x1xf32, #tpu.memory_space<vmem>>, vector<128x1xf32>
    tpu.vector_store %arg8[%c0_21, %c0_22], %29 {strides = array<i32>} : memref<128x1xf32, #tpu.memory_space<vmem>>, vector<128x1xf32>,
    return
  }
  func.func @transform_0(%arg0: i32) -> (i32, i32) {
    %c0_i32 = arith.constant 0 : i32
    %c0_i32_0 = arith.constant 0 : i32
    return %c0_i32, %arg0 : i32, i32
  }
  func.func @transform_1(%arg0: i32) -> (i32, i32) {
    %c0_i32 = arith.constant 0 : i32
    %c0_i32_0 = arith.constant 0 : i32
    %c0_i32_1 = arith.constant 0 : i32
    return %c0_i32, %c0_i32_0 : i32, i32
  }
  func.func @transform_2(%arg0: i32) -> (i32, i32) {
    %c0_i32 = arith.constant 0 : i32
    %c0_i32_0 = arith.constant 0 : i32
    %c0_i32_1 = arith.constant 0 : i32
    return %c0_i32, %c0_i32_0 : i32, i32
  }
  func.func @transform_3(%arg0: i32) -> (i32, i32) {
    %c0_i32 = arith.constant 0 : i32
    %c0_i32_0 = arith.constant 0 : i32
    %c0_i32_1 = arith.constant 0 : i32
    return %c0_i32, %c0_i32_0 : i32, i32
  }
  func.func @transform_4(%arg0: i32) -> (i32, i32) {
    %c0_i32 = arith.constant 0 : i32
    %c0_i32_0 = arith.constant 0 : i32
    %c0_i32_1 = arith.constant 0 : i32
    return %c0_i32, %c0_i32_0 : i32, i32
  }
  func.func @transform_5(%arg0: i32) -> (i32, i32) {
    %c0_i32 = arith.constant 0 : i32
    %c0_i32_0 = arith.constant 0 : i32
    return %c0_i32, %arg0 : i32, i32
  }
  func.func @transform_6(%arg0: i32) -> (i32, i32) {
    %c0_i32 = arith.constant 0 : i32
    %c0_i32_0 = arith.constant 0 : i32
    %c0_i32_1 = arith.constant 0 : i32
    return %c0_i32, %c0_i32_0 : i32, i32
  }
  func.func @transform_7(%arg0: i32) -> (i32, i32) {
    %c0_i32 = arith.constant 0 : i32
    %c0_i32_0 = arith.constant 0 : i32
    %c0_i32_1 = arith.constant 0 : i32
    return %c0_i32, %c0_i32_0 : i32, i32
  }
}

module attributes {stable_mosaic.version = 11 : i64} {
  func.func @_bottleneck_kernel(%arg0: i32, %arg1: memref<32x256xf32, #tpu.memory_space<vmem>>, %arg2: memref<32x1xf32, #tpu.memory_space<vmem>>, %arg3: memref<32x1xf32, #tpu.memory_space<vmem>>, %arg4: memref<128x32xf32, #tpu.memory_space<vmem>>, %arg5: memref<128x1xf32, #tpu.memory_space<vmem>>, %arg6: memref<128x1xf32, #tpu.memory_space<vmem>>, %arg7: memref<128x1xf32, #tpu.memory_space<vmem>>, %arg8: memref<96x128xf32, #tpu.memory_space<vmem>>, %arg9: memref<32x1xf32, #tpu.memory_space<vmem>>, %arg10: memref<1x256xf32, #tpu.memory_space<vmem>>, %arg11: memref<32x256xf32, #tpu.memory_space<vmem>>) attributes {dimension_semantics = [#tpu.dimension_semantics<parallel>], iteration_bounds = array<i64: 1>, scalar_prefetch = 0 : i64, scratch_operands = 0 : i64, tpu.core_type = #tpu.core_type<tc>, window_params = [{transform_indices = @transform_0, window_bounds = array<i64: 32, 256>}, {pipeline_mode = #tpu.pipeline_mode<synchronous>, transform_indices = @transform_1, window_bounds = array<i64: 32, 1>}, {pipeline_mode = #tpu.pipeline_mode<synchronous>, transform_indices = @transform_2, window_bounds = array<i64: 32, 1>}, {pipeline_mode = #tpu.pipeline_mode<synchronous>, transform_indices = @transform_3, window_bounds = array<i64: 128, 32>}, {pipeline_mode = #tpu.pipeline_mode<synchronous>, transform_indices = @transform_4, window_bounds = array<i64: 128, 1>}, {pipeline_mode = #tpu.pipeline_mode<synchronous>, transform_indices = @transform_5, window_bounds = array<i64: 128, 1>}, {pipeline_mode = #tpu.pipeline_mode<synchronous>, transform_indices = @transform_6, window_bounds = array<i64: 128, 1>}, {pipeline_mode = #tpu.pipeline_mode<synchronous>, transform_indices = @transform_7, window_bounds = array<i64: 96, 128>}, {pipeline_mode = #tpu.pipeline_mode<synchronous>, transform_indices = @transform_8, window_bounds = array<i64: 32, 1>}, {transform_indices = @transform_9, window_bounds = array<i64: 1, 256>}, {transform_indices = @transform_10, window_bounds = array<i64: 32, 256>}]} {
    %c0 = arith.constant 0 : index
    %c0_0 = arith.constant 0 : index
    %0 = vector.load %arg10[%c0, %c0_0] : memref<1x256xf32, #tpu.memory_space<vmem>>, vector<1x256xf32>
    %c0_1 = arith.constant 0 : index
    %c0_2 = arith.constant 0 : index
    %1 = vector.load %arg1[%c0_1, %c0_2] : memref<32x256xf32, #tpu.memory_space<vmem>>, vector<32x256xf32>
    %c0_3 = arith.constant 0 : index
    %c0_4 = arith.constant 0 : index
    %2 = vector.load %arg2[%c0_3, %c0_4] : memref<32x1xf32, #tpu.memory_space<vmem>>, vector<32x1xf32>
    %3 = vector.broadcast %2 : vector<32x1xf32> to vector<32x256xf32>
    %4 = arith.mulf %1, %3 : vector<32x256xf32>
    %c0_5 = arith.constant 0 : index
    %c0_6 = arith.constant 0 : index
    %5 = vector.load %arg3[%c0_5, %c0_6] : memref<32x1xf32, #tpu.memory_space<vmem>>, vector<32x1xf32>
    %6 = vector.broadcast %5 : vector<32x1xf32> to vector<32x256xf32>
    %7 = arith.addf %4, %6 : vector<32x256xf32>
    %cst = arith.constant 0.000000e+00 : f32
    %8 = vector.broadcast %cst : f32 to vector<32x256xf32>
    %9 = arith.maximumf %7, %8 : vector<32x256xf32>
    %c0_7 = arith.constant 0 : index
    %c0_8 = arith.constant 0 : index
    %10 = vector.load %arg4[%c0_7, %c0_8] : memref<128x32xf32, #tpu.memory_space<vmem>>, vector<128x32xf32>
    %cst_9 = arith.constant dense<0.000000e+00> : vector<128x256xf32>
    %11 = tpu.matmul %10, %9, %cst_9 {dimension_numbers = #tpu.dot_dimension_numbers<[1], [0], [0], [1], [0, 0, 1, 1], [], []>} : vector<128x32xf32>, vector<32x256xf32>, vector<128x256xf32> -> vector<128x256xf32>
    %c0_10 = arith.constant 0 : index
    %c0_11 = arith.constant 0 : index
    %12 = vector.load %arg5[%c0_10, %c0_11] : memref<128x1xf32, #tpu.memory_space<vmem>>, vector<128x1xf32>
    %13 = vector.broadcast %12 : vector<128x1xf32> to vector<128x256xf32>
    %14 = arith.addf %11, %13 : vector<128x256xf32>
    %c0_12 = arith.constant 0 : index
    %c0_13 = arith.constant 0 : index
    %15 = vector.load %arg6[%c0_12, %c0_13] : memref<128x1xf32, #tpu.memory_space<vmem>>, vector<128x1xf32>
    %16 = vector.broadcast %15 : vector<128x1xf32> to vector<128x256xf32>
    %17 = arith.mulf %14, %16 : vector<128x256xf32>
    %c0_14 = arith.constant 0 : index
    %c0_15 = arith.constant 0 : index
    %18 = vector.load %arg7[%c0_14, %c0_15] : memref<128x1xf32, #tpu.memory_space<vmem>>, vector<128x1xf32>
    %19 = vector.broadcast %18 : vector<128x1xf32> to vector<128x256xf32>
    %20 = arith.addf %17, %19 : vector<128x256xf32>
    %cst_16 = arith.constant 0.000000e+00 : f32
    %21 = vector.broadcast %cst_16 : f32 to vector<128x256xf32>
    %22 = arith.maximumf %20, %21 : vector<128x256xf32>
    %23 = vector.broadcast %0 : vector<1x256xf32> to vector<128x256xf32>
    %24 = arith.mulf %22, %23 : vector<128x256xf32>
    %c0_17 = arith.constant 0 : index
    %c0_18 = arith.constant 0 : index
    %25 = vector.load %arg8[%c0_17, %c0_18] : memref<96x128xf32, #tpu.memory_space<vmem>>, vector<96x128xf32>
    %cst_19 = arith.constant dense<0.000000e+00> : vector<96x256xf32>
    %26 = tpu.matmul %25, %24, %cst_19 {dimension_numbers = #tpu.dot_dimension_numbers<[1], [0], [0], [1], [0, 0, 1, 1], [], []>} : vector<96x128xf32>, vector<128x256xf32>, vector<96x256xf32> -> vector<96x256xf32>
    %27 = vector.extract_strided_slice %26 {offsets = [0, 0], sizes = [32, 256], strides = [1, 1]} : vector<96x256xf32> to vector<32x256xf32>
    %c1_i32 = arith.constant 1 : i32
    %28 = tpu.dynamic_rotate %27 by %c1_i32 dim 1 : vector<32x256xf32>, i32 -> vector<32x256xf32>
    %29 = vector.extract_strided_slice %26 {offsets = [32, 0], sizes = [32, 256], strides = [1, 1]} : vector<96x256xf32> to vector<32x256xf32>
    %30 = vector.extract_strided_slice %26 {offsets = [64, 0], sizes = [32, 256], strides = [1, 1]} : vector<96x256xf32> to vector<32x256xf32>
    %c255_i32 = arith.constant 255 : i32
    %31 = tpu.dynamic_rotate %30 by %c255_i32 dim 1 : vector<32x256xf32>, i32 -> vector<32x256xf32>
    %c0_20 = arith.constant 0 : index
    %c0_21 = arith.constant 0 : index
    %32 = vector.load %arg9[%c0_20, %c0_21] : memref<32x1xf32, #tpu.memory_space<vmem>>, vector<32x1xf32>
    %33 = vector.broadcast %32 : vector<32x1xf32> to vector<32x256xf32>
    %34 = arith.addf %33, %28 : vector<32x256xf32>
    %35 = arith.addf %34, %29 : vector<32x256xf32>
    %36 = arith.addf %35, %31 : vector<32x256xf32>
    %37 = vector.broadcast %0 : vector<1x256xf32> to vector<32x256xf32>
    %38 = arith.mulf %36, %37 : vector<32x256xf32>
    %c0_22 = arith.constant 0 : index
    %c0_23 = arith.constant 0 : index
    %39 = vector.load %arg11[%c0_22, %c0_23] : memref<32x256xf32, #tpu.memory_space<vmem>>, vector<32x256xf32>
    tpu.vector_store %arg11[%c0_22, %c0_23], %38 {strides = array<i32>} : memref<32x256xf32, #tpu.memory_space<vmem>>, vector<32x256xf32>,
    return
  }
  func.func @transform_0(%arg0: i32) -> (i32, i32) {
    %c0_i32 = arith.constant 0 : i32
    %c0_i32_0 = arith.constant 0 : i32
    return %c0_i32, %arg0 : i32, i32
  }
  func.func @transform_1(%arg0: i32) -> (i32, i32) {
    %c0_i32 = arith.constant 0 : i32
    %c0_i32_0 = arith.constant 0 : i32
    %c0_i32_1 = arith.constant 0 : i32
    return %c0_i32, %c0_i32_0 : i32, i32
  }
  func.func @transform_2(%arg0: i32) -> (i32, i32) {
    %c0_i32 = arith.constant 0 : i32
    %c0_i32_0 = arith.constant 0 : i32
    %c0_i32_1 = arith.constant 0 : i32
    return %c0_i32, %c0_i32_0 : i32, i32
  }
  func.func @transform_3(%arg0: i32) -> (i32, i32) {
    %c0_i32 = arith.constant 0 : i32
    %c0_i32_0 = arith.constant 0 : i32
    %c0_i32_1 = arith.constant 0 : i32
    return %c0_i32, %c0_i32_0 : i32, i32
  }
  func.func @transform_4(%arg0: i32) -> (i32, i32) {
    %c0_i32 = arith.constant 0 : i32
    %c0_i32_0 = arith.constant 0 : i32
    %c0_i32_1 = arith.constant 0 : i32
    return %c0_i32, %c0_i32_0 : i32, i32
  }
  func.func @transform_5(%arg0: i32) -> (i32, i32) {
    %c0_i32 = arith.constant 0 : i32
    %c0_i32_0 = arith.constant 0 : i32
    %c0_i32_1 = arith.constant 0 : i32
    return %c0_i32, %c0_i32_0 : i32, i32
  }
  func.func @transform_6(%arg0: i32) -> (i32, i32) {
    %c0_i32 = arith.constant 0 : i32
    %c0_i32_0 = arith.constant 0 : i32
    %c0_i32_1 = arith.constant 0 : i32
    return %c0_i32, %c0_i32_0 : i32, i32
  }
  func.func @transform_7(%arg0: i32) -> (i32, i32) {
    %c0_i32 = arith.constant 0 : i32
    %c0_i32_0 = arith.constant 0 : i32
    %c0_i32_1 = arith.constant 0 : i32
    return %c0_i32, %c0_i32_0 : i32, i32
  }
  func.func @transform_8(%arg0: i32) -> (i32, i32) {
    %c0_i32 = arith.constant 0 : i32
    %c0_i32_0 = arith.constant 0 : i32
    %c0_i32_1 = arith.constant 0 : i32
    return %c0_i32, %c0_i32_0 : i32, i32
  }
  func.func @transform_9(%arg0: i32) -> (i32, i32) {
    %c0_i32 = arith.constant 0 : i32
    %c0_i32_0 = arith.constant 0 : i32
    return %c0_i32, %arg0 : i32, i32
  }
  func.func @transform_10(%arg0: i32) -> (i32, i32) {
    %c0_i32 = arith.constant 0 : i32
    %c0_i32_0 = arith.constant 0 : i32
    return %c0_i32, %arg0 : i32, i32
  }
}

module attributes {stable_mosaic.version = 11 : i64} {
  func.func @_bn2_stats_kernel(%arg0: i32, %arg1: memref<64x256xf32, #tpu.memory_space<vmem>>, %arg2: memref<64x1xf32, #tpu.memory_space<vmem>>, %arg3: memref<64x1xf32, #tpu.memory_space<vmem>>, %arg4: memref<128x64xf32, #tpu.memory_space<vmem>>, %arg5: memref<128x1xf32, #tpu.memory_space<vmem>>, %arg6: memref<1x256xf32, #tpu.memory_space<vmem>>, %arg7: memref<128x1xf32, #tpu.memory_space<vmem>>, %arg8: memref<128x1xf32, #tpu.memory_space<vmem>>) attributes {dimension_semantics = [#tpu.dimension_semantics<arbitrary>], iteration_bounds = array<i64: 1>, scalar_prefetch = 0 : i64, scratch_operands = 0 : i64, tpu.core_type = #tpu.core_type<tc>, window_params = [{transform_indices = @transform_0, window_bounds = array<i64: 64, 256>}, {pipeline_mode = #tpu.pipeline_mode<synchronous>, transform_indices = @transform_1, window_bounds = array<i64: 64, 1>}, {pipeline_mode = #tpu.pipeline_mode<synchronous>, transform_indices = @transform_2, window_bounds = array<i64: 64, 1>}, {pipeline_mode = #tpu.pipeline_mode<synchronous>, transform_indices = @transform_3, window_bounds = array<i64: 128, 64>}, {pipeline_mode = #tpu.pipeline_mode<synchronous>, transform_indices = @transform_4, window_bounds = array<i64: 128, 1>}, {transform_indices = @transform_5, window_bounds = array<i64: 1, 256>}, {pipeline_mode = #tpu.pipeline_mode<synchronous>, transform_indices = @transform_6, window_bounds = array<i64: 128, 1>}, {pipeline_mode = #tpu.pipeline_mode<synchronous>, transform_indices = @transform_7, window_bounds = array<i64: 128, 1>}]} {
    %c0_i32 = arith.constant 0 : i32
    %0 = arith.cmpi eq, %arg0, %c0_i32 : i32
    %1 = arith.extui %0 : i1 to i32
    %c0_i32_0 = arith.constant 0 : i32
    %2 = arith.cmpi ne, %1, %c0_i32_0 : i32
    scf.if %2 {
      %cst_23 = arith.constant 0.000000e+00 : f32
      %31 = vector.broadcast %cst_23 : f32 to vector<128x1xf32>
      %c0_24 = arith.constant 0 : index
      %c0_25 = arith.constant 0 : index
      %32 = vector.load %arg7[%c0_24, %c0_25] : memref<128x1xf32, #tpu.memory_space<vmem>>, vector<128x1xf32>
      tpu.vector_store %arg7[%c0_24, %c0_25], %31 {strides = array<i32>} : memref<128x1xf32, #tpu.memory_space<vmem>>, vector<128x1xf32>,
      %cst_26 = arith.constant 0.000000e+00 : f32
      %33 = vector.broadcast %cst_26 : f32 to vector<128x1xf32>
      %c0_27 = arith.constant 0 : index
      %c0_28 = arith.constant 0 : index
      %34 = vector.load %arg8[%c0_27, %c0_28] : memref<128x1xf32, #tpu.memory_space<vmem>>, vector<128x1xf32>
      tpu.vector_store %arg8[%c0_27, %c0_28], %33 {strides = array<i32>} : memref<128x1xf32, #tpu.memory_space<vmem>>, vector<128x1xf32>,
    } else {
    }
    %c0 = arith.constant 0 : index
    %c0_1 = arith.constant 0 : index
    %3 = vector.load %arg1[%c0, %c0_1] : memref<64x256xf32, #tpu.memory_space<vmem>>, vector<64x256xf32>
    %c0_2 = arith.constant 0 : index
    %c0_3 = arith.constant 0 : index
    %4 = vector.load %arg2[%c0_2, %c0_3] : memref<64x1xf32, #tpu.memory_space<vmem>>, vector<64x1xf32>
    %5 = vector.broadcast %4 : vector<64x1xf32> to vector<64x256xf32>
    %6 = arith.mulf %3, %5 : vector<64x256xf32>
    %c0_4 = arith.constant 0 : index
    %c0_5 = arith.constant 0 : index
    %7 = vector.load %arg3[%c0_4, %c0_5] : memref<64x1xf32, #tpu.memory_space<vmem>>, vector<64x1xf32>
    %8 = vector.broadcast %7 : vector<64x1xf32> to vector<64x256xf32>
    %9 = arith.addf %6, %8 : vector<64x256xf32>
    %cst = arith.constant 0.000000e+00 : f32
    %10 = vector.broadcast %cst : f32 to vector<64x256xf32>
    %11 = arith.maximumf %9, %10 : vector<64x256xf32>
    %c0_6 = arith.constant 0 : index
    %c0_7 = arith.constant 0 : index
    %12 = vector.load %arg4[%c0_6, %c0_7] : memref<128x64xf32, #tpu.memory_space<vmem>>, vector<128x64xf32>
    %cst_8 = arith.constant dense<0.000000e+00> : vector<128x256xf32>
    %13 = tpu.matmul %12, %11, %cst_8 {dimension_numbers = #tpu.dot_dimension_numbers<[1], [0], [0], [1], [0, 0, 1, 1], [], []>} : vector<128x64xf32>, vector<64x256xf32>, vector<128x256xf32> -> vector<128x256xf32>
    %c0_9 = arith.constant 0 : index
    %c0_10 = arith.constant 0 : index
    %14 = vector.load %arg5[%c0_9, %c0_10] : memref<128x1xf32, #tpu.memory_space<vmem>>, vector<128x1xf32>
    %15 = vector.broadcast %14 : vector<128x1xf32> to vector<128x256xf32>
    %16 = arith.addf %13, %15 : vector<128x256xf32>
    %c0_11 = arith.constant 0 : index
    %c0_12 = arith.constant 0 : index
    %17 = vector.load %arg6[%c0_11, %c0_12] : memref<1x256xf32, #tpu.memory_space<vmem>>, vector<1x256xf32>
    %18 = vector.broadcast %17 : vector<1x256xf32> to vector<128x256xf32>
    %19 = arith.mulf %16, %18 : vector<128x256xf32>
    %c0_13 = arith.constant 0 : index
    %c0_14 = arith.constant 0 : index
    %20 = vector.load %arg7[%c0_13, %c0_14] : memref<128x1xf32, #tpu.memory_space<vmem>>, vector<128x1xf32>
    %cst_15 = arith.constant dense<0.000000e+00> : vector<128xf32>
    %21 = vector.multi_reduction <add>, %19, %cst_15 [1] : vector<128x256xf32> to vector<128xf32>
    %22 = vector.shape_cast %21 : vector<128xf32> to vector<128x1xf32>
    %23 = arith.addf %20, %22 : vector<128x1xf32>
    %c0_16 = arith.constant 0 : index
    %c0_17 = arith.constant 0 : index
    %24 = vector.load %arg7[%c0_16, %c0_17] : memref<128x1xf32, #tpu.memory_space<vmem>>, vector<128x1xf32>
    tpu.vector_store %arg7[%c0_16, %c0_17], %23 {strides = array<i32>} : memref<128x1xf32, #tpu.memory_space<vmem>>, vector<128x1xf32>,
    %c0_18 = arith.constant 0 : index
    %c0_19 = arith.constant 0 : index
    %25 = vector.load %arg8[%c0_18, %c0_19] : memref<128x1xf32, #tpu.memory_space<vmem>>, vector<128x1xf32>
    %26 = arith.mulf %19, %19 : vector<128x256xf32>
    %cst_20 = arith.constant dense<0.000000e+00> : vector<128xf32>
    %27 = vector.multi_reduction <add>, %26, %cst_20 [1] : vector<128x256xf32> to vector<128xf32>
    %28 = vector.shape_cast %27 : vector<128xf32> to vector<128x1xf32>
    %29 = arith.addf %25, %28 : vector<128x1xf32>
    %c0_21 = arith.constant 0 : index
    %c0_22 = arith.constant 0 : index
    %30 = vector.load %arg8[%c0_21, %c0_22] : memref<128x1xf32, #tpu.memory_space<vmem>>, vector<128x1xf32>
    tpu.vector_store %arg8[%c0_21, %c0_22], %29 {strides = array<i32>} : memref<128x1xf32, #tpu.memory_space<vmem>>, vector<128x1xf32>,
    return
  }
  func.func @transform_0(%arg0: i32) -> (i32, i32) {
    %c0_i32 = arith.constant 0 : i32
    %c0_i32_0 = arith.constant 0 : i32
    return %c0_i32, %arg0 : i32, i32
  }
  func.func @transform_1(%arg0: i32) -> (i32, i32) {
    %c0_i32 = arith.constant 0 : i32
    %c0_i32_0 = arith.constant 0 : i32
    %c0_i32_1 = arith.constant 0 : i32
    return %c0_i32, %c0_i32_0 : i32, i32
  }
  func.func @transform_2(%arg0: i32) -> (i32, i32) {
    %c0_i32 = arith.constant 0 : i32
    %c0_i32_0 = arith.constant 0 : i32
    %c0_i32_1 = arith.constant 0 : i32
    return %c0_i32, %c0_i32_0 : i32, i32
  }
  func.func @transform_3(%arg0: i32) -> (i32, i32) {
    %c0_i32 = arith.constant 0 : i32
    %c0_i32_0 = arith.constant 0 : i32
    %c0_i32_1 = arith.constant 0 : i32
    return %c0_i32, %c0_i32_0 : i32, i32
  }
  func.func @transform_4(%arg0: i32) -> (i32, i32) {
    %c0_i32 = arith.constant 0 : i32
    %c0_i32_0 = arith.constant 0 : i32
    %c0_i32_1 = arith.constant 0 : i32
    return %c0_i32, %c0_i32_0 : i32, i32
  }
  func.func @transform_5(%arg0: i32) -> (i32, i32) {
    %c0_i32 = arith.constant 0 : i32
    %c0_i32_0 = arith.constant 0 : i32
    return %c0_i32, %arg0 : i32, i32
  }
  func.func @transform_6(%arg0: i32) -> (i32, i32) {
    %c0_i32 = arith.constant 0 : i32
    %c0_i32_0 = arith.constant 0 : i32
    %c0_i32_1 = arith.constant 0 : i32
    return %c0_i32, %c0_i32_0 : i32, i32
  }
  func.func @transform_7(%arg0: i32) -> (i32, i32) {
    %c0_i32 = arith.constant 0 : i32
    %c0_i32_0 = arith.constant 0 : i32
    %c0_i32_1 = arith.constant 0 : i32
    return %c0_i32, %c0_i32_0 : i32, i32
  }
}

module attributes {stable_mosaic.version = 11 : i64} {
  func.func @_bottleneck_kernel(%arg0: i32, %arg1: memref<64x256xf32, #tpu.memory_space<vmem>>, %arg2: memref<64x1xf32, #tpu.memory_space<vmem>>, %arg3: memref<64x1xf32, #tpu.memory_space<vmem>>, %arg4: memref<128x64xf32, #tpu.memory_space<vmem>>, %arg5: memref<128x1xf32, #tpu.memory_space<vmem>>, %arg6: memref<128x1xf32, #tpu.memory_space<vmem>>, %arg7: memref<128x1xf32, #tpu.memory_space<vmem>>, %arg8: memref<96x128xf32, #tpu.memory_space<vmem>>, %arg9: memref<32x1xf32, #tpu.memory_space<vmem>>, %arg10: memref<1x256xf32, #tpu.memory_space<vmem>>, %arg11: memref<32x256xf32, #tpu.memory_space<vmem>>) attributes {dimension_semantics = [#tpu.dimension_semantics<parallel>], iteration_bounds = array<i64: 1>, scalar_prefetch = 0 : i64, scratch_operands = 0 : i64, tpu.core_type = #tpu.core_type<tc>, window_params = [{transform_indices = @transform_0, window_bounds = array<i64: 64, 256>}, {pipeline_mode = #tpu.pipeline_mode<synchronous>, transform_indices = @transform_1, window_bounds = array<i64: 64, 1>}, {pipeline_mode = #tpu.pipeline_mode<synchronous>, transform_indices = @transform_2, window_bounds = array<i64: 64, 1>}, {pipeline_mode = #tpu.pipeline_mode<synchronous>, transform_indices = @transform_3, window_bounds = array<i64: 128, 64>}, {pipeline_mode = #tpu.pipeline_mode<synchronous>, transform_indices = @transform_4, window_bounds = array<i64: 128, 1>}, {pipeline_mode = #tpu.pipeline_mode<synchronous>, transform_indices = @transform_5, window_bounds = array<i64: 128, 1>}, {pipeline_mode = #tpu.pipeline_mode<synchronous>, transform_indices = @transform_6, window_bounds = array<i64: 128, 1>}, {pipeline_mode = #tpu.pipeline_mode<synchronous>, transform_indices = @transform_7, window_bounds = array<i64: 96, 128>}, {pipeline_mode = #tpu.pipeline_mode<synchronous>, transform_indices = @transform_8, window_bounds = array<i64: 32, 1>}, {transform_indices = @transform_9, window_bounds = array<i64: 1, 256>}, {transform_indices = @transform_10, window_bounds = array<i64: 32, 256>}]} {
    %c0 = arith.constant 0 : index
    %c0_0 = arith.constant 0 : index
    %0 = vector.load %arg10[%c0, %c0_0] : memref<1x256xf32, #tpu.memory_space<vmem>>, vector<1x256xf32>
    %c0_1 = arith.constant 0 : index
    %c0_2 = arith.constant 0 : index
    %1 = vector.load %arg1[%c0_1, %c0_2] : memref<64x256xf32, #tpu.memory_space<vmem>>, vector<64x256xf32>
    %c0_3 = arith.constant 0 : index
    %c0_4 = arith.constant 0 : index
    %2 = vector.load %arg2[%c0_3, %c0_4] : memref<64x1xf32, #tpu.memory_space<vmem>>, vector<64x1xf32>
    %3 = vector.broadcast %2 : vector<64x1xf32> to vector<64x256xf32>
    %4 = arith.mulf %1, %3 : vector<64x256xf32>
    %c0_5 = arith.constant 0 : index
    %c0_6 = arith.constant 0 : index
    %5 = vector.load %arg3[%c0_5, %c0_6] : memref<64x1xf32, #tpu.memory_space<vmem>>, vector<64x1xf32>
    %6 = vector.broadcast %5 : vector<64x1xf32> to vector<64x256xf32>
    %7 = arith.addf %4, %6 : vector<64x256xf32>
    %cst = arith.constant 0.000000e+00 : f32
    %8 = vector.broadcast %cst : f32 to vector<64x256xf32>
    %9 = arith.maximumf %7, %8 : vector<64x256xf32>
    %c0_7 = arith.constant 0 : index
    %c0_8 = arith.constant 0 : index
    %10 = vector.load %arg4[%c0_7, %c0_8] : memref<128x64xf32, #tpu.memory_space<vmem>>, vector<128x64xf32>
    %cst_9 = arith.constant dense<0.000000e+00> : vector<128x256xf32>
    %11 = tpu.matmul %10, %9, %cst_9 {dimension_numbers = #tpu.dot_dimension_numbers<[1], [0], [0], [1], [0, 0, 1, 1], [], []>} : vector<128x64xf32>, vector<64x256xf32>, vector<128x256xf32> -> vector<128x256xf32>
    %c0_10 = arith.constant 0 : index
    %c0_11 = arith.constant 0 : index
    %12 = vector.load %arg5[%c0_10, %c0_11] : memref<128x1xf32, #tpu.memory_space<vmem>>, vector<128x1xf32>
    %13 = vector.broadcast %12 : vector<128x1xf32> to vector<128x256xf32>
    %14 = arith.addf %11, %13 : vector<128x256xf32>
    %c0_12 = arith.constant 0 : index
    %c0_13 = arith.constant 0 : index
    %15 = vector.load %arg6[%c0_12, %c0_13] : memref<128x1xf32, #tpu.memory_space<vmem>>, vector<128x1xf32>
    %16 = vector.broadcast %15 : vector<128x1xf32> to vector<128x256xf32>
    %17 = arith.mulf %14, %16 : vector<128x256xf32>
    %c0_14 = arith.constant 0 : index
    %c0_15 = arith.constant 0 : index
    %18 = vector.load %arg7[%c0_14, %c0_15] : memref<128x1xf32, #tpu.memory_space<vmem>>, vector<128x1xf32>
    %19 = vector.broadcast %18 : vector<128x1xf32> to vector<128x256xf32>
    %20 = arith.addf %17, %19 : vector<128x256xf32>
    %cst_16 = arith.constant 0.000000e+00 : f32
    %21 = vector.broadcast %cst_16 : f32 to vector<128x256xf32>
    %22 = arith.maximumf %20, %21 : vector<128x256xf32>
    %23 = vector.broadcast %0 : vector<1x256xf32> to vector<128x256xf32>
    %24 = arith.mulf %22, %23 : vector<128x256xf32>
    %c0_17 = arith.constant 0 : index
    %c0_18 = arith.constant 0 : index
    %25 = vector.load %arg8[%c0_17, %c0_18] : memref<96x128xf32, #tpu.memory_space<vmem>>, vector<96x128xf32>
    %cst_19 = arith.constant dense<0.000000e+00> : vector<96x256xf32>
    %26 = tpu.matmul %25, %24, %cst_19 {dimension_numbers = #tpu.dot_dimension_numbers<[1], [0], [0], [1], [0, 0, 1, 1], [], []>} : vector<96x128xf32>, vector<128x256xf32>, vector<96x256xf32> -> vector<96x256xf32>
    %27 = vector.extract_strided_slice %26 {offsets = [0, 0], sizes = [32, 256], strides = [1, 1]} : vector<96x256xf32> to vector<32x256xf32>
    %c1_i32 = arith.constant 1 : i32
    %28 = tpu.dynamic_rotate %27 by %c1_i32 dim 1 : vector<32x256xf32>, i32 -> vector<32x256xf32>
    %29 = vector.extract_strided_slice %26 {offsets = [32, 0], sizes = [32, 256], strides = [1, 1]} : vector<96x256xf32> to vector<32x256xf32>
    %30 = vector.extract_strided_slice %26 {offsets = [64, 0], sizes = [32, 256], strides = [1, 1]} : vector<96x256xf32> to vector<32x256xf32>
    %c255_i32 = arith.constant 255 : i32
    %31 = tpu.dynamic_rotate %30 by %c255_i32 dim 1 : vector<32x256xf32>, i32 -> vector<32x256xf32>
    %c0_20 = arith.constant 0 : index
    %c0_21 = arith.constant 0 : index
    %32 = vector.load %arg9[%c0_20, %c0_21] : memref<32x1xf32, #tpu.memory_space<vmem>>, vector<32x1xf32>
    %33 = vector.broadcast %32 : vector<32x1xf32> to vector<32x256xf32>
    %34 = arith.addf %33, %28 : vector<32x256xf32>
    %35 = arith.addf %34, %29 : vector<32x256xf32>
    %36 = arith.addf %35, %31 : vector<32x256xf32>
    %37 = vector.broadcast %0 : vector<1x256xf32> to vector<32x256xf32>
    %38 = arith.mulf %36, %37 : vector<32x256xf32>
    %c0_22 = arith.constant 0 : index
    %c0_23 = arith.constant 0 : index
    %39 = vector.load %arg11[%c0_22, %c0_23] : memref<32x256xf32, #tpu.memory_space<vmem>>, vector<32x256xf32>
    tpu.vector_store %arg11[%c0_22, %c0_23], %38 {strides = array<i32>} : memref<32x256xf32, #tpu.memory_space<vmem>>, vector<32x256xf32>,
    return
  }
  func.func @transform_0(%arg0: i32) -> (i32, i32) {
    %c0_i32 = arith.constant 0 : i32
    %c0_i32_0 = arith.constant 0 : i32
    return %c0_i32, %arg0 : i32, i32
  }
  func.func @transform_1(%arg0: i32) -> (i32, i32) {
    %c0_i32 = arith.constant 0 : i32
    %c0_i32_0 = arith.constant 0 : i32
    %c0_i32_1 = arith.constant 0 : i32
    return %c0_i32, %c0_i32_0 : i32, i32
  }
  func.func @transform_2(%arg0: i32) -> (i32, i32) {
    %c0_i32 = arith.constant 0 : i32
    %c0_i32_0 = arith.constant 0 : i32
    %c0_i32_1 = arith.constant 0 : i32
    return %c0_i32, %c0_i32_0 : i32, i32
  }
  func.func @transform_3(%arg0: i32) -> (i32, i32) {
    %c0_i32 = arith.constant 0 : i32
    %c0_i32_0 = arith.constant 0 : i32
    %c0_i32_1 = arith.constant 0 : i32
    return %c0_i32, %c0_i32_0 : i32, i32
  }
  func.func @transform_4(%arg0: i32) -> (i32, i32) {
    %c0_i32 = arith.constant 0 : i32
    %c0_i32_0 = arith.constant 0 : i32
    %c0_i32_1 = arith.constant 0 : i32
    return %c0_i32, %c0_i32_0 : i32, i32
  }
  func.func @transform_5(%arg0: i32) -> (i32, i32) {
    %c0_i32 = arith.constant 0 : i32
    %c0_i32_0 = arith.constant 0 : i32
    %c0_i32_1 = arith.constant 0 : i32
    return %c0_i32, %c0_i32_0 : i32, i32
  }
  func.func @transform_6(%arg0: i32) -> (i32, i32) {
    %c0_i32 = arith.constant 0 : i32
    %c0_i32_0 = arith.constant 0 : i32
    %c0_i32_1 = arith.constant 0 : i32
    return %c0_i32, %c0_i32_0 : i32, i32
  }
  func.func @transform_7(%arg0: i32) -> (i32, i32) {
    %c0_i32 = arith.constant 0 : i32
    %c0_i32_0 = arith.constant 0 : i32
    %c0_i32_1 = arith.constant 0 : i32
    return %c0_i32, %c0_i32_0 : i32, i32
  }
  func.func @transform_8(%arg0: i32) -> (i32, i32) {
    %c0_i32 = arith.constant 0 : i32
    %c0_i32_0 = arith.constant 0 : i32
    %c0_i32_1 = arith.constant 0 : i32
    return %c0_i32, %c0_i32_0 : i32, i32
  }
  func.func @transform_9(%arg0: i32) -> (i32, i32) {
    %c0_i32 = arith.constant 0 : i32
    %c0_i32_0 = arith.constant 0 : i32
    return %c0_i32, %arg0 : i32, i32
  }
  func.func @transform_10(%arg0: i32) -> (i32, i32) {
    %c0_i32 = arith.constant 0 : i32
    %c0_i32_0 = arith.constant 0 : i32
    return %c0_i32, %arg0 : i32, i32
  }
}

module attributes {stable_mosaic.version = 11 : i64} {
  func.func @_bottleneck_kernel(%arg0: i32, %arg1: memref<96x256xf32, #tpu.memory_space<vmem>>, %arg2: memref<96x1xf32, #tpu.memory_space<vmem>>, %arg3: memref<96x1xf32, #tpu.memory_space<vmem>>, %arg4: memref<128x96xf32, #tpu.memory_space<vmem>>, %arg5: memref<128x1xf32, #tpu.memory_space<vmem>>, %arg6: memref<128x1xf32, #tpu.memory_space<vmem>>, %arg7: memref<128x1xf32, #tpu.memory_space<vmem>>, %arg8: memref<96x128xf32, #tpu.memory_space<vmem>>, %arg9: memref<32x1xf32, #tpu.memory_space<vmem>>, %arg10: memref<1x256xf32, #tpu.memory_space<vmem>>, %arg11: memref<32x256xf32, #tpu.memory_space<vmem>>) attributes {dimension_semantics = [#tpu.dimension_semantics<parallel>], iteration_bounds = array<i64: 1>, scalar_prefetch = 0 : i64, scratch_operands = 0 : i64, tpu.core_type = #tpu.core_type<tc>, window_params = [{transform_indices = @transform_0, window_bounds = array<i64: 96, 256>}, {pipeline_mode = #tpu.pipeline_mode<synchronous>, transform_indices = @transform_1, window_bounds = array<i64: 96, 1>}, {pipeline_mode = #tpu.pipeline_mode<synchronous>, transform_indices = @transform_2, window_bounds = array<i64: 96, 1>}, {pipeline_mode = #tpu.pipeline_mode<synchronous>, transform_indices = @transform_3, window_bounds = array<i64: 128, 96>}, {pipeline_mode = #tpu.pipeline_mode<synchronous>, transform_indices = @transform_4, window_bounds = array<i64: 128, 1>}, {pipeline_mode = #tpu.pipeline_mode<synchronous>, transform_indices = @transform_5, window_bounds = array<i64: 128, 1>}, {pipeline_mode = #tpu.pipeline_mode<synchronous>, transform_indices = @transform_6, window_bounds = array<i64: 128, 1>}, {pipeline_mode = #tpu.pipeline_mode<synchronous>, transform_indices = @transform_7, window_bounds = array<i64: 96, 128>}, {pipeline_mode = #tpu.pipeline_mode<synchronous>, transform_indices = @transform_8, window_bounds = array<i64: 32, 1>}, {transform_indices = @transform_9, window_bounds = array<i64: 1, 256>}, {transform_indices = @transform_10, window_bounds = array<i64: 32, 256>}]} {
    %c0 = arith.constant 0 : index
    %c0_0 = arith.constant 0 : index
    %0 = vector.load %arg10[%c0, %c0_0] : memref<1x256xf32, #tpu.memory_space<vmem>>, vector<1x256xf32>
    %c0_1 = arith.constant 0 : index
    %c0_2 = arith.constant 0 : index
    %1 = vector.load %arg1[%c0_1, %c0_2] : memref<96x256xf32, #tpu.memory_space<vmem>>, vector<96x256xf32>
    %c0_3 = arith.constant 0 : index
    %c0_4 = arith.constant 0 : index
    %2 = vector.load %arg2[%c0_3, %c0_4] : memref<96x1xf32, #tpu.memory_space<vmem>>, vector<96x1xf32>
    %3 = vector.broadcast %2 : vector<96x1xf32> to vector<96x256xf32>
    %4 = arith.mulf %1, %3 : vector<96x256xf32>
    %c0_5 = arith.constant 0 : index
    %c0_6 = arith.constant 0 : index
    %5 = vector.load %arg3[%c0_5, %c0_6] : memref<96x1xf32, #tpu.memory_space<vmem>>, vector<96x1xf32>
    %6 = vector.broadcast %5 : vector<96x1xf32> to vector<96x256xf32>
    %7 = arith.addf %4, %6 : vector<96x256xf32>
    %cst = arith.constant 0.000000e+00 : f32
    %8 = vector.broadcast %cst : f32 to vector<96x256xf32>
    %9 = arith.maximumf %7, %8 : vector<96x256xf32>
    %c0_7 = arith.constant 0 : index
    %c0_8 = arith.constant 0 : index
    %10 = vector.load %arg4[%c0_7, %c0_8] : memref<128x96xf32, #tpu.memory_space<vmem>>, vector<128x96xf32>
    %cst_9 = arith.constant dense<0.000000e+00> : vector<128x256xf32>
    %11 = tpu.matmul %10, %9, %cst_9 {dimension_numbers = #tpu.dot_dimension_numbers<[1], [0], [0], [1], [0, 0, 1, 1], [], []>} : vector<128x96xf32>, vector<96x256xf32>, vector<128x256xf32> -> vector<128x256xf32>
    %c0_10 = arith.constant 0 : index
    %c0_11 = arith.constant 0 : index
    %12 = vector.load %arg5[%c0_10, %c0_11] : memref<128x1xf32, #tpu.memory_space<vmem>>, vector<128x1xf32>
    %13 = vector.broadcast %12 : vector<128x1xf32> to vector<128x256xf32>
    %14 = arith.addf %11, %13 : vector<128x256xf32>
    %c0_12 = arith.constant 0 : index
    %c0_13 = arith.constant 0 : index
    %15 = vector.load %arg6[%c0_12, %c0_13] : memref<128x1xf32, #tpu.memory_space<vmem>>, vector<128x1xf32>
    %16 = vector.broadcast %15 : vector<128x1xf32> to vector<128x256xf32>
    %17 = arith.mulf %14, %16 : vector<128x256xf32>
    %c0_14 = arith.constant 0 : index
    %c0_15 = arith.constant 0 : index
    %18 = vector.load %arg7[%c0_14, %c0_15] : memref<128x1xf32, #tpu.memory_space<vmem>>, vector<128x1xf32>
    %19 = vector.broadcast %18 : vector<128x1xf32> to vector<128x256xf32>
    %20 = arith.addf %17, %19 : vector<128x256xf32>
    %cst_16 = arith.constant 0.000000e+00 : f32
    %21 = vector.broadcast %cst_16 : f32 to vector<128x256xf32>
    %22 = arith.maximumf %20, %21 : vector<128x256xf32>
    %23 = vector.broadcast %0 : vector<1x256xf32> to vector<128x256xf32>
    %24 = arith.mulf %22, %23 : vector<128x256xf32>
    %c0_17 = arith.constant 0 : index
    %c0_18 = arith.constant 0 : index
    %25 = vector.load %arg8[%c0_17, %c0_18] : memref<96x128xf32, #tpu.memory_space<vmem>>, vector<96x128xf32>
    %cst_19 = arith.constant dense<0.000000e+00> : vector<96x256xf32>
    %26 = tpu.matmul %25, %24, %cst_19 {dimension_numbers = #tpu.dot_dimension_numbers<[1], [0], [0], [1], [0, 0, 1, 1], [], []>} : vector<96x128xf32>, vector<128x256xf32>, vector<96x256xf32> -> vector<96x256xf32>
    %27 = vector.extract_strided_slice %26 {offsets = [0, 0], sizes = [32, 256], strides = [1, 1]} : vector<96x256xf32> to vector<32x256xf32>
    %c1_i32 = arith.constant 1 : i32
    %28 = tpu.dynamic_rotate %27 by %c1_i32 dim 1 : vector<32x256xf32>, i32 -> vector<32x256xf32>
    %29 = vector.extract_strided_slice %26 {offsets = [32, 0], sizes = [32, 256], strides = [1, 1]} : vector<96x256xf32> to vector<32x256xf32>
    %30 = vector.extract_strided_slice %26 {offsets = [64, 0], sizes = [32, 256], strides = [1, 1]} : vector<96x256xf32> to vector<32x256xf32>
    %c255_i32 = arith.constant 255 : i32
    %31 = tpu.dynamic_rotate %30 by %c255_i32 dim 1 : vector<32x256xf32>, i32 -> vector<32x256xf32>
    %c0_20 = arith.constant 0 : index
    %c0_21 = arith.constant 0 : index
    %32 = vector.load %arg9[%c0_20, %c0_21] : memref<32x1xf32, #tpu.memory_space<vmem>>, vector<32x1xf32>
    %33 = vector.broadcast %32 : vector<32x1xf32> to vector<32x256xf32>
    %34 = arith.addf %33, %28 : vector<32x256xf32>
    %35 = arith.addf %34, %29 : vector<32x256xf32>
    %36 = arith.addf %35, %31 : vector<32x256xf32>
    %37 = vector.broadcast %0 : vector<1x256xf32> to vector<32x256xf32>
    %38 = arith.mulf %36, %37 : vector<32x256xf32>
    %c0_22 = arith.constant 0 : index
    %c0_23 = arith.constant 0 : index
    %39 = vector.load %arg11[%c0_22, %c0_23] : memref<32x256xf32, #tpu.memory_space<vmem>>, vector<32x256xf32>
    tpu.vector_store %arg11[%c0_22, %c0_23], %38 {strides = array<i32>} : memref<32x256xf32, #tpu.memory_space<vmem>>, vector<32x256xf32>,
    return
  }
  func.func @transform_0(%arg0: i32) -> (i32, i32) {
    %c0_i32 = arith.constant 0 : i32
    %c0_i32_0 = arith.constant 0 : i32
    return %c0_i32, %arg0 : i32, i32
  }
  func.func @transform_1(%arg0: i32) -> (i32, i32) {
    %c0_i32 = arith.constant 0 : i32
    %c0_i32_0 = arith.constant 0 : i32
    %c0_i32_1 = arith.constant 0 : i32
    return %c0_i32, %c0_i32_0 : i32, i32
  }
  func.func @transform_2(%arg0: i32) -> (i32, i32) {
    %c0_i32 = arith.constant 0 : i32
    %c0_i32_0 = arith.constant 0 : i32
    %c0_i32_1 = arith.constant 0 : i32
    return %c0_i32, %c0_i32_0 : i32, i32
  }
  func.func @transform_3(%arg0: i32) -> (i32, i32) {
    %c0_i32 = arith.constant 0 : i32
    %c0_i32_0 = arith.constant 0 : i32
    %c0_i32_1 = arith.constant 0 : i32
    return %c0_i32, %c0_i32_0 : i32, i32
  }
  func.func @transform_4(%arg0: i32) -> (i32, i32) {
    %c0_i32 = arith.constant 0 : i32
    %c0_i32_0 = arith.constant 0 : i32
    %c0_i32_1 = arith.constant 0 : i32
    return %c0_i32, %c0_i32_0 : i32, i32
  }
  func.func @transform_5(%arg0: i32) -> (i32, i32) {
    %c0_i32 = arith.constant 0 : i32
    %c0_i32_0 = arith.constant 0 : i32
    %c0_i32_1 = arith.constant 0 : i32
    return %c0_i32, %c0_i32_0 : i32, i32
  }
  func.func @transform_6(%arg0: i32) -> (i32, i32) {
    %c0_i32 = arith.constant 0 : i32
    %c0_i32_0 = arith.constant 0 : i32
    %c0_i32_1 = arith.constant 0 : i32
    return %c0_i32, %c0_i32_0 : i32, i32
  }
  func.func @transform_7(%arg0: i32) -> (i32, i32) {
    %c0_i32 = arith.constant 0 : i32
    %c0_i32_0 = arith.constant 0 : i32
    %c0_i32_1 = arith.constant 0 : i32
    return %c0_i32, %c0_i32_0 : i32, i32
  }
  func.func @transform_8(%arg0: i32) -> (i32, i32) {
    %c0_i32 = arith.constant 0 : i32
    %c0_i32_0 = arith.constant 0 : i32
    %c0_i32_1 = arith.constant 0 : i32
    return %c0_i32, %c0_i32_0 : i32, i32
  }
  func.func @transform_9(%arg0: i32) -> (i32, i32) {
    %c0_i32 = arith.constant 0 : i32
    %c0_i32_0 = arith.constant 0 : i32
    return %c0_i32, %arg0 : i32, i32
  }
  func.func @transform_10(%arg0: i32) -> (i32, i32) {
    %c0_i32 = arith.constant 0 : i32
    %c0_i32_0 = arith.constant 0 : i32
    return %c0_i32, %arg0 : i32, i32
  }
}

module attributes {stable_mosaic.version = 11 : i64} {
  func.func @_bn2_stats_kernel(%arg0: i32, %arg1: memref<96x256xf32, #tpu.memory_space<vmem>>, %arg2: memref<96x1xf32, #tpu.memory_space<vmem>>, %arg3: memref<96x1xf32, #tpu.memory_space<vmem>>, %arg4: memref<128x96xf32, #tpu.memory_space<vmem>>, %arg5: memref<128x1xf32, #tpu.memory_space<vmem>>, %arg6: memref<1x256xf32, #tpu.memory_space<vmem>>, %arg7: memref<128x1xf32, #tpu.memory_space<vmem>>, %arg8: memref<128x1xf32, #tpu.memory_space<vmem>>) attributes {dimension_semantics = [#tpu.dimension_semantics<arbitrary>], iteration_bounds = array<i64: 1>, scalar_prefetch = 0 : i64, scratch_operands = 0 : i64, tpu.core_type = #tpu.core_type<tc>, window_params = [{transform_indices = @transform_0, window_bounds = array<i64: 96, 256>}, {pipeline_mode = #tpu.pipeline_mode<synchronous>, transform_indices = @transform_1, window_bounds = array<i64: 96, 1>}, {pipeline_mode = #tpu.pipeline_mode<synchronous>, transform_indices = @transform_2, window_bounds = array<i64: 96, 1>}, {pipeline_mode = #tpu.pipeline_mode<synchronous>, transform_indices = @transform_3, window_bounds = array<i64: 128, 96>}, {pipeline_mode = #tpu.pipeline_mode<synchronous>, transform_indices = @transform_4, window_bounds = array<i64: 128, 1>}, {transform_indices = @transform_5, window_bounds = array<i64: 1, 256>}, {pipeline_mode = #tpu.pipeline_mode<synchronous>, transform_indices = @transform_6, window_bounds = array<i64: 128, 1>}, {pipeline_mode = #tpu.pipeline_mode<synchronous>, transform_indices = @transform_7, window_bounds = array<i64: 128, 1>}]} {
    %c0_i32 = arith.constant 0 : i32
    %0 = arith.cmpi eq, %arg0, %c0_i32 : i32
    %1 = arith.extui %0 : i1 to i32
    %c0_i32_0 = arith.constant 0 : i32
    %2 = arith.cmpi ne, %1, %c0_i32_0 : i32
    scf.if %2 {
      %cst_23 = arith.constant 0.000000e+00 : f32
      %31 = vector.broadcast %cst_23 : f32 to vector<128x1xf32>
      %c0_24 = arith.constant 0 : index
      %c0_25 = arith.constant 0 : index
      %32 = vector.load %arg7[%c0_24, %c0_25] : memref<128x1xf32, #tpu.memory_space<vmem>>, vector<128x1xf32>
      tpu.vector_store %arg7[%c0_24, %c0_25], %31 {strides = array<i32>} : memref<128x1xf32, #tpu.memory_space<vmem>>, vector<128x1xf32>,
      %cst_26 = arith.constant 0.000000e+00 : f32
      %33 = vector.broadcast %cst_26 : f32 to vector<128x1xf32>
      %c0_27 = arith.constant 0 : index
      %c0_28 = arith.constant 0 : index
      %34 = vector.load %arg8[%c0_27, %c0_28] : memref<128x1xf32, #tpu.memory_space<vmem>>, vector<128x1xf32>
      tpu.vector_store %arg8[%c0_27, %c0_28], %33 {strides = array<i32>} : memref<128x1xf32, #tpu.memory_space<vmem>>, vector<128x1xf32>,
    } else {
    }
    %c0 = arith.constant 0 : index
    %c0_1 = arith.constant 0 : index
    %3 = vector.load %arg1[%c0, %c0_1] : memref<96x256xf32, #tpu.memory_space<vmem>>, vector<96x256xf32>
    %c0_2 = arith.constant 0 : index
    %c0_3 = arith.constant 0 : index
    %4 = vector.load %arg2[%c0_2, %c0_3] : memref<96x1xf32, #tpu.memory_space<vmem>>, vector<96x1xf32>
    %5 = vector.broadcast %4 : vector<96x1xf32> to vector<96x256xf32>
    %6 = arith.mulf %3, %5 : vector<96x256xf32>
    %c0_4 = arith.constant 0 : index
    %c0_5 = arith.constant 0 : index
    %7 = vector.load %arg3[%c0_4, %c0_5] : memref<96x1xf32, #tpu.memory_space<vmem>>, vector<96x1xf32>
    %8 = vector.broadcast %7 : vector<96x1xf32> to vector<96x256xf32>
    %9 = arith.addf %6, %8 : vector<96x256xf32>
    %cst = arith.constant 0.000000e+00 : f32
    %10 = vector.broadcast %cst : f32 to vector<96x256xf32>
    %11 = arith.maximumf %9, %10 : vector<96x256xf32>
    %c0_6 = arith.constant 0 : index
    %c0_7 = arith.constant 0 : index
    %12 = vector.load %arg4[%c0_6, %c0_7] : memref<128x96xf32, #tpu.memory_space<vmem>>, vector<128x96xf32>
    %cst_8 = arith.constant dense<0.000000e+00> : vector<128x256xf32>
    %13 = tpu.matmul %12, %11, %cst_8 {dimension_numbers = #tpu.dot_dimension_numbers<[1], [0], [0], [1], [0, 0, 1, 1], [], []>} : vector<128x96xf32>, vector<96x256xf32>, vector<128x256xf32> -> vector<128x256xf32>
    %c0_9 = arith.constant 0 : index
    %c0_10 = arith.constant 0 : index
    %14 = vector.load %arg5[%c0_9, %c0_10] : memref<128x1xf32, #tpu.memory_space<vmem>>, vector<128x1xf32>
    %15 = vector.broadcast %14 : vector<128x1xf32> to vector<128x256xf32>
    %16 = arith.addf %13, %15 : vector<128x256xf32>
    %c0_11 = arith.constant 0 : index
    %c0_12 = arith.constant 0 : index
    %17 = vector.load %arg6[%c0_11, %c0_12] : memref<1x256xf32, #tpu.memory_space<vmem>>, vector<1x256xf32>
    %18 = vector.broadcast %17 : vector<1x256xf32> to vector<128x256xf32>
    %19 = arith.mulf %16, %18 : vector<128x256xf32>
    %c0_13 = arith.constant 0 : index
    %c0_14 = arith.constant 0 : index
    %20 = vector.load %arg7[%c0_13, %c0_14] : memref<128x1xf32, #tpu.memory_space<vmem>>, vector<128x1xf32>
    %cst_15 = arith.constant dense<0.000000e+00> : vector<128xf32>
    %21 = vector.multi_reduction <add>, %19, %cst_15 [1] : vector<128x256xf32> to vector<128xf32>
    %22 = vector.shape_cast %21 : vector<128xf32> to vector<128x1xf32>
    %23 = arith.addf %20, %22 : vector<128x1xf32>
    %c0_16 = arith.constant 0 : index
    %c0_17 = arith.constant 0 : index
    %24 = vector.load %arg7[%c0_16, %c0_17] : memref<128x1xf32, #tpu.memory_space<vmem>>, vector<128x1xf32>
    tpu.vector_store %arg7[%c0_16, %c0_17], %23 {strides = array<i32>} : memref<128x1xf32, #tpu.memory_space<vmem>>, vector<128x1xf32>,
    %c0_18 = arith.constant 0 : index
    %c0_19 = arith.constant 0 : index
    %25 = vector.load %arg8[%c0_18, %c0_19] : memref<128x1xf32, #tpu.memory_space<vmem>>, vector<128x1xf32>
    %26 = arith.mulf %19, %19 : vector<128x256xf32>
    %cst_20 = arith.constant dense<0.000000e+00> : vector<128xf32>
    %27 = vector.multi_reduction <add>, %26, %cst_20 [1] : vector<128x256xf32> to vector<128xf32>
    %28 = vector.shape_cast %27 : vector<128xf32> to vector<128x1xf32>
    %29 = arith.addf %25, %28 : vector<128x1xf32>
    %c0_21 = arith.constant 0 : index
    %c0_22 = arith.constant 0 : index
    %30 = vector.load %arg8[%c0_21, %c0_22] : memref<128x1xf32, #tpu.memory_space<vmem>>, vector<128x1xf32>
    tpu.vector_store %arg8[%c0_21, %c0_22], %29 {strides = array<i32>} : memref<128x1xf32, #tpu.memory_space<vmem>>, vector<128x1xf32>,
    return
  }
  func.func @transform_0(%arg0: i32) -> (i32, i32) {
    %c0_i32 = arith.constant 0 : i32
    %c0_i32_0 = arith.constant 0 : i32
    return %c0_i32, %arg0 : i32, i32
  }
  func.func @transform_1(%arg0: i32) -> (i32, i32) {
    %c0_i32 = arith.constant 0 : i32
    %c0_i32_0 = arith.constant 0 : i32
    %c0_i32_1 = arith.constant 0 : i32
    return %c0_i32, %c0_i32_0 : i32, i32
  }
  func.func @transform_2(%arg0: i32) -> (i32, i32) {
    %c0_i32 = arith.constant 0 : i32
    %c0_i32_0 = arith.constant 0 : i32
    %c0_i32_1 = arith.constant 0 : i32
    return %c0_i32, %c0_i32_0 : i32, i32
  }
  func.func @transform_3(%arg0: i32) -> (i32, i32) {
    %c0_i32 = arith.constant 0 : i32
    %c0_i32_0 = arith.constant 0 : i32
    %c0_i32_1 = arith.constant 0 : i32
    return %c0_i32, %c0_i32_0 : i32, i32
  }
  func.func @transform_4(%arg0: i32) -> (i32, i32) {
    %c0_i32 = arith.constant 0 : i32
    %c0_i32_0 = arith.constant 0 : i32
    %c0_i32_1 = arith.constant 0 : i32
    return %c0_i32, %c0_i32_0 : i32, i32
  }
  func.func @transform_5(%arg0: i32) -> (i32, i32) {
    %c0_i32 = arith.constant 0 : i32
    %c0_i32_0 = arith.constant 0 : i32
    return %c0_i32, %arg0 : i32, i32
  }
  func.func @transform_6(%arg0: i32) -> (i32, i32) {
    %c0_i32 = arith.constant 0 : i32
    %c0_i32_0 = arith.constant 0 : i32
    %c0_i32_1 = arith.constant 0 : i32
    return %c0_i32, %c0_i32_0 : i32, i32
  }
  func.func @transform_7(%arg0: i32) -> (i32, i32) {
    %c0_i32 = arith.constant 0 : i32
    %c0_i32_0 = arith.constant 0 : i32
    %c0_i32_1 = arith.constant 0 : i32
    return %c0_i32, %c0_i32_0 : i32, i32
  }
}

</mosaic_0001>

<bundles_post_ra>
// kernel: dense_block.6
= control target key start
LH: loop header
LB: loop body
LE: loop exit
PB: predicated region body
PF: predicated region fallthrough
CT: control target
= control target key end

     0   :  { %v769_v0 = vmov 0   ;;  %v770_v11 = vmov 0.0   ;;  %vm254_vm0 = vcmask 261120   ;;  %vm29_vm1 = vcmask 7168   ;;  %s1434_s2 = inlined_call_operand.vmem [shape: f32[32,1], index: 2, kind: input, shape index: {}]   ;;  %s1435_s1 = inlined_call_operand.vmem [shape: f32[32,1], index: 1, kind: input, shape index: {}]   ;;  %s1436_s4 = inlined_call_operand.vmem [shape: f32[128,1], index: 4, kind: input, shape index: {}]   ;;  %s1437_s0 = inlined_call_operand.vmem [shape: f32[128,256], index: 0, kind: input, shape index: {}]   ;;  %s1438_s3 = inlined_call_operand.vmem [shape: f32[128,32], index: 3, kind: input, shape index: {}]   ;;  %s1439_s6 = inlined_call_operand.vmem [shape: f32[128,1], index: 6, kind: output, shape index: {0}]   ;;  %s1440_s5 = inlined_call_operand.vmem [shape: f32[1,256], index: 5, kind: input, shape index: {}]   ;;  %s1441_s7 = inlined_call_operand.vmem [shape: f32[128,1], index: 7, kind: output, shape index: {1}]  }
   0x1   :  { %768 = vset.pattern.permute.xlu1 %v769_v0  ;;  %767 = vset.pattern.permute.xlu0 %v769_v0  ;;  %v105_v1 = vld [vmem:[%s1434_s2 + $0x18] sm:$0xff]  ;;  %v72_v3 = vld [vmem:[%s1435_s1 + $0x10] sm:$0xff]  ;;  %v71_v4 = vld [vmem:[%s1435_s1 + $0x8] sm:$0xff]  ;;  %38 = vst.msk [vmem:[%s1439_s6 + $0x40] sm:$0xff] %vm29_vm1, %v770_v11 }
   0x2   :  { %v73_v2 = vld [vmem:[%s1435_s1 + $0x18] sm:$0xff]  ;;  %123 = vperm.xlu1 %768, %v105_v1   ;;  %v104_v5 = vld [vmem:[%s1434_s2 + $0x10] sm:$0xff]  ;;  %v70_v6 = vld [vmem:[%s1435_s1] sm:$0xff]  ;;  %367 = vmatprep.mubr.f32.mxu0 %v770_v11  ;;  %30 = vst.msk [vmem:[%s1439_s6] sm:$0xff] %vm29_vm1, %v770_v11 }
   0x3   :  { %91 = vperm.xlu0 %767, %v73_v2   ;;  %v103_v7 = vld [vmem:[%s1434_s2 + $0x8] sm:$0xff]  ;;  %v102_v8 = vld [vmem:[%s1434_s2] sm:$0xff]  ;;  %415 = vmatprep.mubr.f32.mxu1 %v770_v11  ;;  %v160_v12 = vld [vmem:[%s1436_s4 + $0x10] sm:$0xff]  ;;  %31 = vst.msk [vmem:[%s1439_s6 + $0x8] sm:$0xff] %vm29_vm1, %v770_v11 }
   0x4   :  { %v158_v9 = vld [vmem:[%s1436_s4] sm:$0xff]  ;;  %v159_v10 = vld [vmem:[%s1436_s4 + $0x8] sm:$0xff]  ;;  %v161_v13 = vld [vmem:[%s1436_s4 + $0x18] sm:$0xff]  ;;  %32 = vst.msk [vmem:[%s1439_s6 + $0x10] sm:$0xff] %vm29_vm1, %v770_v11 }
   0x5   :  { %v162_v14 = vld [vmem:[%s1436_s4 + $0x20] sm:$0xff]  ;;  %v163_v15 = vld [vmem:[%s1436_s4 + $0x28] sm:$0xff]  ;;  %v164_v16 = vld [vmem:[%s1436_s4 + $0x30] sm:$0xff]  ;;  %33 = vst.msk [vmem:[%s1439_s6 + $0x18] sm:$0xff] %vm29_vm1, %v770_v11 }
   0x6   :  { %81 = vperm.xlu1 %768, %v71_v4   ;;  %v165_v17 = vld [vmem:[%s1436_s4 + $0x38] sm:$0xff]  ;;  %v166_v18 = vld [vmem:[%s1436_s4 + $0x40] sm:$0xff]  ;;  %v167_v19 = vld [vmem:[%s1436_s4 + $0x48] sm:$0xff]  ;;  %34 = vst.msk [vmem:[%s1439_s6 + $0x20] sm:$0xff] %vm29_vm1, %v770_v11 }
   0x7   :  { %86 = vperm.xlu0 %767, %v72_v3   ;;  %v168_v20 = vld [vmem:[%s1436_s4 + $0x50] sm:$0xff]  ;;  %v169_v21 = vld [vmem:[%s1436_s4 + $0x58] sm:$0xff]  ;;  %v170_v22 = vld [vmem:[%s1436_s4 + $0x60] sm:$0xff]  ;;  %35 = vst.msk [vmem:[%s1439_s6 + $0x28] sm:$0xff] %vm29_vm1, %v770_v11 }
   0x8   :  { %v171_v23 = vld [vmem:[%s1436_s4 + $0x68] sm:$0xff]  ;;  %v172_v24 = vld [vmem:[%s1436_s4 + $0x70] sm:$0xff]  ;;  %v173_v25 = vld [vmem:[%s1436_s4 + $0x78] sm:$0xff]  ;;  %36 = vst.msk [vmem:[%s1439_s6 + $0x30] sm:$0xff] %vm29_vm1, %v770_v11 }
   0x9   :  { %v68_v26 = vld [vmem:[%s1437_s0 + $0x30] sm:$0xff]  ;;  %v69_v27 = vld [vmem:[%s1437_s0 + $0x38] sm:$0xff]  ;;  %v66_v35 = vld [vmem:[%s1437_s0 + $0x20] sm:$0xff]  ;;  %37 = vst.msk [vmem:[%s1439_s6 + $0x38] sm:$0xff] %vm29_vm1, %v770_v11 }
   0xa   :  { %76 = vperm.xlu1 %768, %v70_v6   ;;  %v67_v36 = vld [vmem:[%s1437_s0 + $0x28] sm:$0xff]  ;;  %v64_v42 = vld [vmem:[%s1437_s0 + $0x10] sm:$0xff]  ;;  %v65_v43 = vld [vmem:[%s1437_s0 + $0x18] sm:$0xff]  ;;  %39 = vst.msk [vmem:[%s1439_s6 + $0x48] sm:$0xff] %vm29_vm1, %v770_v11 }
   0xb   :  { %118 = vperm.xlu0 %767, %v104_v5   ;;  %v63_v46 = vld [vmem:[%s1437_s0 + $0x8] sm:$0xff]  ;;  %v62_v49 = vld [vmem:[%s1437_s0] sm:$0xff]  ;;  %v144_v6 = vld [vmem:[%s1438_s3 + $0x10] sm:$0xff]  ;;  %40 = vst.msk [vmem:[%s1439_s6 + $0x50] sm:$0xff] %vm29_vm1, %v770_v11 }
   0xc   :  { %v142_v2 = vld [vmem:[%s1438_s3] sm:$0xff]  ;;  %v143_v4 = vld [vmem:[%s1438_s3 + $0x8] sm:$0xff]  ;;  %41 = vst.msk [vmem:[%s1439_s6 + $0x58] sm:$0xff] %vm29_vm1, %v770_v11  ;;  %42 = vst.msk [vmem:[%s1439_s6 + $0x60] sm:$0xff] %vm29_vm1, %v770_v11 }
   0xd   :  { %v150_v3 = vld [vmem:[%s1438_s3 + $0x40] sm:$0xff]  ;;  %v151_v5 = vld [vmem:[%s1438_s3 + $0x48] sm:$0xff]  ;;  %43 = vst.msk [vmem:[%s1439_s6 + $0x68] sm:$0xff] %vm29_vm1, %v770_v11  ;;  %44 = vst.msk [vmem:[%s1439_s6 + $0x70] sm:$0xff] %vm29_vm1, %v770_v11 }
   0xe   :  { %108 = vperm.xlu1 %768, %v102_v8   ;;  %v145_v8 = vld [vmem:[%s1438_s3 + $0x18] sm:$0xff]  ;;  %45 = vst.msk [vmem:[%s1439_s6 + $0x78] sm:$0xff] %vm29_vm1, %v770_v11  ;;  %46 = vst.msk [vmem:[%s1441_s7] sm:$0xff] %vm29_vm1, %v770_v11 }
   0xf   :  { %113 = vperm.xlu0 %767, %v103_v7   ;;  %v152_v7 = vld [vmem:[%s1438_s3 + $0x50] sm:$0xff]  ;;  %47 = vst.msk [vmem:[%s1441_s7 + $0x8] sm:$0xff] %vm29_vm1, %v770_v11  ;;  %48 = vst.msk [vmem:[%s1441_s7 + $0x10] sm:$0xff] %vm29_vm1, %v770_v11 }
  0x10   :  { %49 = vst.msk [vmem:[%s1441_s7 + $0x18] sm:$0xff] %vm29_vm1, %v770_v11  ;;  %50 = vst.msk [vmem:[%s1441_s7 + $0x20] sm:$0xff] %vm29_vm1, %v770_v11 }
  0x11   :  { %51 = vst.msk [vmem:[%s1441_s7 + $0x28] sm:$0xff] %vm29_vm1, %v770_v11  ;;  %52 = vst.msk [vmem:[%s1441_s7 + $0x30] sm:$0xff] %vm29_vm1, %v770_v11 }
  0x12   :  { %181 = vperm.xlu1 %768, %v159_v10   ;;  %v146_v10 = vld [vmem:[%s1438_s3 + $0x20] sm:$0xff]  ;;  %53 = vst.msk [vmem:[%s1441_s7 + $0x38] sm:$0xff] %vm29_vm1, %v770_v11  ;;  %54 = vst.msk [vmem:[%s1441_s7 + $0x40] sm:$0xff] %vm29_vm1, %v770_v11 }
  0x13   :  { %176 = vperm.xlu0 %767, %v158_v9   ;;  %v153_v9 = vld [vmem:[%s1438_s3 + $0x58] sm:$0xff]  ;;  %55 = vst.msk [vmem:[%s1441_s7 + $0x48] sm:$0xff] %vm29_vm1, %v770_v11  ;;  %56 = vst.msk [vmem:[%s1441_s7 + $0x50] sm:$0xff] %vm29_vm1, %v770_v11 }
  0x14   :  { %57 = vst.msk [vmem:[%s1441_s7 + $0x58] sm:$0xff] %vm29_vm1, %v770_v11  ;;  %58 = vst.msk [vmem:[%s1441_s7 + $0x60] sm:$0xff] %vm29_vm1, %v770_v11 }
  0x15   :  { %59 = vst.msk [vmem:[%s1441_s7 + $0x68] sm:$0xff] %vm29_vm1, %v770_v11  ;;  %60 = vst.msk [vmem:[%s1441_s7 + $0x70] sm:$0xff] %vm29_vm1, %v770_v11 }
  0x16   :  { %191 = vperm.xlu1 %768, %v161_v13   ;;  %v147_v13 = vld [vmem:[%s1438_s3 + $0x28] sm:$0xff]  ;;  %61 = vst.msk [vmem:[%s1441_s7 + $0x78] sm:$0xff] %vm29_vm1, %v770_v11 }
  0x17   :  { %186 = vperm.xlu0 %767, %v160_v12   ;;  %v154_v12 = vld [vmem:[%s1438_s3 + $0x60] sm:$0xff] }
  0x1a   :  { %201 = vperm.xlu1 %768, %v163_v15   ;;  %v148_v15 = vld [vmem:[%s1438_s3 + $0x30] sm:$0xff] }
  0x1b   :  { %196 = vperm.xlu0 %767, %v162_v14   ;;  %v155_v14 = vld [vmem:[%s1438_s3 + $0x68] sm:$0xff] }
  0x1e   :  { %211 = vperm.xlu1 %768, %v165_v17   ;;  %v149_v17 = vld [vmem:[%s1438_s3 + $0x38] sm:$0xff] }
  0x1f   :  { %206 = vperm.xlu0 %767, %v164_v16   ;;  %v156_v16 = vld [vmem:[%s1438_s3 + $0x70] sm:$0xff] }
  0x22   :  { %221 = vperm.xlu1 %768, %v167_v19  }
  0x23   :  { %216 = vperm.xlu0 %767, %v166_v18   ;;  %v157_v18 = vld [vmem:[%s1438_s3 + $0x78] sm:$0xff] }
  0x26   :  { %231 = vperm.xlu1 %768, %v169_v21  }
  0x27   :  { %226 = vperm.xlu0 %767, %v168_v20  }
  0x2a   :  { %241 = vperm.xlu1 %768, %v171_v23  }
  0x2b   :  { %236 = vperm.xlu0 %767, %v170_v22  }
  0x2e   :  { %251 = vperm.xlu1 %768, %v173_v25  }
  0x2f   :  { %246 = vperm.xlu0 %767, %v172_v24   ;;  %v466_v24 = vlaneseq }
  0x7d   :  { %v124_v28 = vpop.permute.xlu1 %123 }
  0x7e   :  { %v92_v29 = vpop.permute.xlu0 %91 }
  0x7f   :  { %v100_v30 = vmul.f32 %v92_v29, %v68_v26  ;;  %v101_v31 = vmul.f32 %v92_v29, %v69_v27  ;;  %v467_v26 = vshrl.u32 %v466_v24, 7 }
  0x81   :  { %v133_v32 = vadd.f32 %v124_v28, %v101_v31  ;;  %v132_v33 = vadd.f32 %v124_v28, %v100_v30  ;;  %v82_v37 = vpop.permute.xlu1 %81  ;;  %v472_v28 = vsub.s32 1, %v467_v26  ;;  %v468_v29 = vsub.s32 0, %v467_v26  ;;  %v464_v31 = vld [vmem:[%s1440_s5] sm:$0x3] }
  0x82   :  { %v87_v34 = vpop.permute.xlu0 %86  ;;  %v96_v50 = vmul.f32 %v82_v37, %v64_v42  ;;  %v97_v51 = vmul.f32 %v82_v37, %v65_v43 }
  0x83   :  { %v141_v38 = vmax.f32 %v133_v32, 0.0  ;;  %v140_v39 = vmax.f32 %v132_v33, 0.0  ;;  %v98_v40 = vmul.f32 %v87_v34, %v66_v35  ;;  %v99_v41 = vmul.f32 %v87_v34, %v67_v36 }
  0x84   :  { %v1082_v35 = vrot.slane %v464_v31, %v472_v28  ;;  %v1084_v37 = vrot.slane %v464_v31, %v468_v29 }
  0x85   :  { %327 = vmatprep.subr.mxu0 %v141_v38  ;;  %757 = vmatprep.subr.mxu1 %v141_v38  ;;  %v77_v45 = vpop.permute.xlu1 %76 }
  0x86   :  { %v119_v44 = vpop.permute.xlu0 %118  ;;  %328 = vmatpush1.msra.mxu0 %v140_v39  ;;  %761 = vmatpush1.msra.mxu1 %v140_v39  ;;  %v95_v54 = vmul.f32 %v77_v45, %v63_v46  ;;  %v94_v55 = vmul.f32 %v77_v45, %v62_v49 }
  0x87   :  { %v130_v47 = vadd.f32 %v119_v44, %v98_v40  ;;  %v131_v48 = vadd.f32 %v119_v44, %v99_v41 }
  0x89   :  { %v138_v52 = vmax.f32 %v130_v47, 0.0  ;;  %v139_v53 = vmax.f32 %v131_v48, 0.0  ;;  %v109_v57 = vpop.permute.xlu1 %108 }
  0x8a   :  { %v114_v56 = vpop.permute.xlu0 %113  ;;  %v127_v60 = vadd.f32 %v109_v57, %v95_v54  ;;  %v126_v61 = vadd.f32 %v109_v57, %v94_v55 }
  0x8b   :  { %v128_v58 = vadd.f32 %v114_v56, %v96_v50  ;;  %v129_v59 = vadd.f32 %v114_v56, %v97_v51  ;;  %329 = vmatprep.subr.mxu0 %v139_v53  ;;  %758 = vmatprep.subr.mxu1 %v139_v53 }
  0x8c   :  { %330 = vmatpush1.msra.mxu0 %v138_v52  ;;  %762 = vmatpush1.msra.mxu1 %v138_v52  ;;  %v135_v0 = vmax.f32 %v127_v60, 0.0  ;;  %v134_v1 = vmax.f32 %v126_v61, 0.0 }
  0x8d   :  { %v136_v62 = vmax.f32 %v128_v58, 0.0  ;;  %v137_v63 = vmax.f32 %v129_v59, 0.0  ;;  %v182_v20 = vpop.permute.xlu1 %181 }
  0x8e   :  { %v177_v19 = vpop.permute.xlu0 %176 }
  0x8f   :  { %331 = vmatprep.subr.mxu0 %v137_v63  ;;  %759 = vmatprep.subr.mxu1 %v137_v63 }
  0x90   :  { %332 = vmatpush1.msra.mxu0 %v136_v62  ;;  %763 = vmatpush1.msra.mxu1 %v136_v62 }
  0x91   :  { %333 = vmatprep.subr.mxu0 %v135_v0  ;;  %760 = vmatprep.subr.mxu1 %v135_v0  ;;  %v1069_v22 = vpop.permute.xlu1 %191 }
  0x92   :  { %334 = vmatpush1.msra.mxu0 %v134_v1  ;;  %764 = vmatpush1.msra.mxu1 %v134_v1  ;;  %v1067_v21 = vpop.permute.xlu0 %186 }
  0x93   :  { %741 = vmatmul.mubr.msk.f32.vlgmr.msra.gmra.mxu0 %vm254_vm0, %v142_v2  ;;  %749 = vmatmul.mubr.msk.f32.vlgmr.msra.gmra.mxu1 %vm254_vm0, %v150_v3 }
  0x94   :  { %373 = vmatprep.mubr.f32.mxu0 %v770_v11  ;;  %421 = vmatprep.mubr.f32.mxu1 %v770_v11 }
  0x95   :  { %v1073_v25 = vpop.permute.xlu1 %201 }
  0x96   :  { %v1071_v23 = vpop.permute.xlu0 %196 }
  0x97   :  { %742 = vmatmul.mubr.msk.f32.gmra.mxu0 %vm254_vm0, %v143_v4  ;;  %750 = vmatmul.mubr.msk.f32.gmra.mxu1 %vm254_vm0, %v151_v5 }
  0x98   :  { %379 = vmatprep.mubr.f32.mxu0 %v770_v11  ;;  %427 = vmatprep.mubr.f32.mxu1 %v770_v11 }
  0x99   :  { %v1077_v30 = vpop.permute.xlu1 %211 }
  0x9a   :  { %v1075_v27 = vpop.permute.xlu0 %206 }
  0x9b   :  { %743 = vmatmul.mubr.msk.f32.gmra.mxu0 %vm254_vm0, %v144_v6  ;;  %751 = vmatmul.mubr.msk.f32.gmra.mxu1 %vm254_vm0, %v152_v7 }
  0x9c   :  { %385 = vmatprep.mubr.f32.mxu0 %v770_v11  ;;  %433 = vmatprep.mubr.f32.mxu1 %v770_v11 }
  0x9d   :  { %v222_v45 = vpop.permute.xlu1 %221 }
  0x9e   :  { %v217_v34 = vpop.permute.xlu0 %216 }
  0x9f   :  { %744 = vmatmul.mubr.msk.f32.gmra.mxu0 %vm254_vm0, %v145_v8  ;;  %752 = vmatmul.mubr.msk.f32.gmra.mxu1 %vm254_vm0, %v153_v9 }
  0xa0   :  { %391 = vmatprep.mubr.f32.mxu0 %v770_v11  ;;  %439 = vmatprep.mubr.f32.mxu1 %v770_v11 }
  0xa3   :  { %745 = vmatmul.mubr.msk.f32.gmra.mxu0 %vm254_vm0, %v146_v10  ;;  %753 = vmatmul.mubr.msk.f32.gmra.mxu1 %vm254_vm0, %v154_v12  ;;  %v227_v12 = vpop.permute.xlu0 %226 }
  0xa4   :  { %397 = vmatprep.mubr.f32.mxu0 %v770_v11  ;;  %445 = vmatprep.mubr.f32.mxu1 %v770_v11 }
  0xa7   :  { %746 = vmatmul.mubr.msk.f32.gmra.mxu0 %vm254_vm0, %v147_v13  ;;  %754 = vmatmul.mubr.msk.f32.gmra.mxu1 %vm254_vm0, %v155_v14 }
  0xa8   :  { %403 = vmatprep.mubr.f32.mxu0 %v770_v11  ;;  %451 = vmatprep.mubr.f32.mxu1 %v770_v11 }
  0xab   :  { %747 = vmatmul.mubr.msk.f32.gmra.mxu0 %vm254_vm0, %v148_v15  ;;  %755 = vmatmul.mubr.msk.f32.gmra.mxu1 %vm254_vm0, %v156_v16 }
  0xac   :  { %409 = vmatprep.mubr.f32.mxu0 %v770_v11  ;;  %457 = vmatprep.mubr.f32.mxu1 %v770_v11 }
  0xaf   :  { %748 = vmatmul.mubr.msk.f32.gmra.mxu0 %vm254_vm0, %v149_v17  ;;  %756 = vmatmul.mubr.msk.f32.gmra.mxu1 %vm254_vm0, %v157_v18 }
 0x153   :  { %v369_v32 = vpop.f32.mrf.mxu0  ;;  %v417_v33 = vpop.f32.mrf.mxu1 }
 0x154   :  { %v370_v36 = vadd.f32 %v369_v32, %v177_v19  ;;  %v418_v38 = vadd.f32 %v417_v33, %v217_v34 }
 0x155   :  { %v371_v39 = vpop.f32.mrf.mxu0  ;;  %v419_v40 = vpop.f32.mrf.mxu1 }
 0x156   :  { %v372_v41 = vadd.f32 %v371_v39, %v177_v19  ;;  %v420_v42 = vadd.f32 %v419_v40, %v217_v34  ;;  %v476_v48 = vmul.f32 %v1084_v37, %v370_v36  ;;  %v492_v49 = vmul.f32 %v1084_v37, %v418_v38  ;;  %v232_v38 = vpop.permute.xlu1 %231 }
 0x157   :  { %v375_v43 = vpop.f32.mrf.mxu0  ;;  %v423_v44 = vpop.f32.mrf.mxu1 }
 0x158   :  { %v477_v46 = vmul.f32 %v1082_v35, %v372_v41  ;;  %v493_v47 = vmul.f32 %v1082_v35, %v420_v42  ;;  %v376_v50 = vadd.f32 %v375_v43, %v182_v20  ;;  %v424_v51 = vadd.f32 %v423_v44, %v222_v45 }
 0x159   :  { %v377_v52 = vpop.f32.mrf.mxu0  ;;  %v425_v53 = vpop.f32.mrf.mxu1  ;;  %v621_v2 = vmul.f32 %v476_v48, %v476_v48  ;;  %v637_v9 = vmul.f32 %v492_v49, %v492_v49 }
 0x15a   :  { %v378_v54 = vadd.f32 %v377_v52, %v182_v20  ;;  %v426_v55 = vadd.f32 %v425_v53, %v222_v45  ;;  %v548_v58 = vadd.f32 %v493_v47, %v492_v49  ;;  %v524_v59 = vadd.f32 %v477_v46, %v476_v48 }
 0x15b   :  { %v381_v56 = vpop.f32.mrf.mxu0  ;;  %v429_v57 = vpop.f32.mrf.mxu1  ;;  %v622_v60 = vmul.f32 %v477_v46, %v477_v46  ;;  %v478_v63 = vmul.f32 %v1084_v37, %v376_v50  ;;  %v494_v0 = vmul.f32 %v1084_v37, %v424_v51  ;;  %v638_v3 = vmul.f32 %v493_v47, %v493_v47 }
 0x15c   :  { %v479_v61 = vmul.f32 %v1082_v35, %v378_v54  ;;  %v495_v62 = vmul.f32 %v1082_v35, %v426_v55  ;;  %549 = vadd.xlane.f32.xlu1 %v548_v58  ;;  %525 = vadd.xlane.f32.xlu0 %v524_v59  ;;  %v382_v20 = vadd.f32 %v381_v56, %v1067_v21  ;;  %v237_v56 = vpop.permute.xlu0 %236 }
 0x15d   :  { %v383_v1 = vpop.f32.mrf.mxu0  ;;  %v431_v4 = vpop.f32.mrf.mxu1  ;;  %v653_v5 = vadd.f32 %v622_v60, %v621_v2  ;;  %v623_v10 = vmul.f32 %v478_v63, %v478_v63  ;;  %v677_v13 = vadd.f32 %v638_v3, %v637_v9  ;;  %v430_v24 = vadd.f32 %v429_v57, %v227_v12 }
 0x15e   :  { %v551_v6 = vadd.f32 %v495_v62, %v494_v0  ;;  %v624_v7 = vmul.f32 %v479_v61, %v479_v61  ;;  %v384_v14 = vadd.f32 %v383_v1, %v1067_v21  ;;  %v432_v15 = vadd.f32 %v431_v4, %v227_v12 }
 0x15f   :  { %v387_v8 = vpop.f32.mrf.mxu0  ;;  %v435_v16 = vpop.f32.mrf.mxu1  ;;  %v640_v18 = vmul.f32 %v495_v62, %v495_v62  ;;  %v639_v26 = vmul.f32 %v494_v0, %v494_v0  ;;  %v527_v28 = vadd.f32 %v479_v61, %v478_v63  ;;  %v480_v39 = vmul.f32 %v1084_v37, %v382_v20 }
 0x160   :  { %654 = vadd.xlane.f32.xlu1 %v653_v5  ;;  %552 = vadd.xlane.f32.xlu0 %v551_v6  ;;  %v656_v17 = vadd.f32 %v624_v7, %v623_v10  ;;  %v481_v29 = vmul.f32 %v1082_v35, %v384_v14  ;;  %v497_v31 = vmul.f32 %v1082_v35, %v432_v15 }
 0x161   :  { %v389_v19 = vpop.f32.mrf.mxu0  ;;  %v437_v33 = vpop.f32.mrf.mxu1  ;;  %v680_v34 = vadd.f32 %v640_v18, %v639_v26  ;;  %v496_v40 = vmul.f32 %v1084_v37, %v430_v24  ;;  %v388_v21 = vadd.f32 %v387_v8, %v1069_v22  ;;  %v436_v48 = vadd.f32 %v435_v16, %v232_v38 }
 0x162   :  { %v390_v32 = vadd.f32 %v389_v19, %v1069_v22  ;;  %v438_v22 = vadd.f32 %v437_v33, %v232_v38  ;;  %v530_v44 = vadd.f32 %v481_v29, %v480_v39  ;;  %v626_v45 = vmul.f32 %v481_v29, %v481_v29 }
 0x163   :  { %v393_v36 = vpop.f32.mrf.mxu0  ;;  %v441_v42 = vpop.f32.mrf.mxu1  ;;  %v554_v43 = vadd.f32 %v497_v31, %v496_v40  ;;  %v482_v47 = vmul.f32 %v1084_v37, %v388_v21  ;;  %v625_v49 = vmul.f32 %v480_v39, %v480_v39  ;;  %v642_v54 = vmul.f32 %v497_v31, %v497_v31 }
 0x164   :  { %678 = vadd.xlane.f32.xlu1 %v677_v13  ;;  %657 = vadd.xlane.f32.xlu0 %v656_v17  ;;  %v483_v41 = vmul.f32 %v1082_v35, %v390_v32  ;;  %v499_v50 = vmul.f32 %v1082_v35, %v438_v22  ;;  %v498_v57 = vmul.f32 %v1084_v37, %v436_v48  ;;  %v242_v13 = vpop.permute.xlu1 %241  ;;  %v247_v21 = vpop.permute.xlu0 %246 }
 0x165   :  { %v395_v46 = vpop.f32.mrf.mxu0  ;;  %v443_v52 = vpop.f32.mrf.mxu1  ;;  %v659_v11 = vadd.f32 %v626_v45, %v625_v49  ;;  %v394_v58 = vadd.f32 %v393_v36, %v1071_v23  ;;  %v641_v59 = vmul.f32 %v496_v40, %v496_v40  ;;  %v442_v4 = vadd.f32 %v441_v42, %v237_v56 }
 0x166   :  { %v396_v51 = vadd.f32 %v395_v46, %v1071_v23  ;;  %v533_v53 = vadd.f32 %v483_v41, %v482_v47  ;;  %v444_v60 = vadd.f32 %v443_v52, %v237_v56  ;;  %v557_v0 = vadd.f32 %v499_v50, %v498_v57 }
 0x167   :  { %v399_v55 = vpop.f32.mrf.mxu0  ;;  %v447_v62 = vpop.f32.mrf.mxu1  ;;  %v683_v63 = vadd.f32 %v642_v54, %v641_v59  ;;  %v628_v1 = vmul.f32 %v483_v41, %v483_v41  ;;  %v484_v3 = vmul.f32 %v1084_v37, %v394_v58  ;;  %v627_v5 = vmul.f32 %v482_v47, %v482_v47 }
 0x168   :  { %528 = vadd.xlane.f32.xlu1 %v527_v28  ;;  %681 = vadd.xlane.f32.xlu0 %v680_v34  ;;  %v485_v61 = vmul.f32 %v1082_v35, %v396_v51  ;;  %v501_v6 = vmul.f32 %v1082_v35, %v444_v60  ;;  %v644_v10 = vmul.f32 %v499_v50, %v499_v50 }
 0x169   :  { %v401_v2 = vpop.f32.mrf.mxu0  ;;  %v449_v7 = vpop.f32.mrf.mxu1  ;;  %v662_v9 = vadd.f32 %v628_v1, %v627_v5  ;;  %v500_v14 = vmul.f32 %v1084_v37, %v442_v4  ;;  %v400_v15 = vadd.f32 %v399_v55, %v1073_v25  ;;  %v643_v16 = vmul.f32 %v498_v57, %v498_v57 }
 0x16a   :  { %v402_v23 = vadd.f32 %v401_v2, %v1073_v25  ;;  %v536_v8 = vadd.f32 %v485_v61, %v484_v3  ;;  %v450_v17 = vadd.f32 %v449_v7, %v242_v13  ;;  %v630_v26 = vmul.f32 %v485_v61, %v485_v61  ;;  %v252_v57 = vpop.permute.xlu1 %251 }
 0x16b   :  { %v405_v12 = vpop.f32.mrf.mxu0  ;;  %v453_v19 = vpop.f32.mrf.mxu1  ;;  %v560_v20 = vadd.f32 %v501_v6, %v500_v14  ;;  %v686_v24 = vadd.f32 %v644_v10, %v643_v16  ;;  %v486_v29 = vmul.f32 %v1084_v37, %v400_v15  ;;  %v448_v31 = vadd.f32 %v447_v62, %v242_v13 }
 0x16c   :  { %555 = vadd.xlane.f32.xlu1 %v554_v43  ;;  %531 = vadd.xlane.f32.xlu0 %v530_v44  ;;  %v487_v18 = vmul.f32 %v1082_v35, %v402_v23  ;;  %v629_v32 = vmul.f32 %v484_v3, %v484_v3  ;;  %v503_v33 = vmul.f32 %v1082_v35, %v450_v17 }
 0x16d   :  { %v407_v28 = vpop.f32.mrf.mxu0  ;;  %v455_v34 = vpop.f32.mrf.mxu1  ;;  %v646_v39 = vmul.f32 %v501_v6, %v501_v6  ;;  %v502_v22 = vmul.f32 %v1084_v37, %v448_v31  ;;  %v406_v41 = vadd.f32 %v405_v12, %v1075_v27  ;;  %v645_v42 = vmul.f32 %v500_v14, %v500_v14 }
 0x16e   :  { %v408_v25 = vadd.f32 %v407_v28, %v1075_v27  ;;  %v665_v36 = vadd.f32 %v630_v26, %v629_v32  ;;  %v539_v38 = vadd.f32 %v487_v18, %v486_v29  ;;  %v456_v43 = vadd.f32 %v455_v34, %v247_v21  ;;  %v605_v26 = vld [vmem:[%s1441_s7] sm:$0xff]  ;;  %v517_v28 = vld [vmem:[%s1439_s6 + $0x48] sm:$0xff] }
 0x16f   :  { %v411_v40 = vpop.f32.mrf.mxu0  ;;  %v459_v45 = vpop.f32.mrf.mxu1  ;;  %v689_v46 = vadd.f32 %v646_v39, %v645_v42  ;;  %v563_v47 = vadd.f32 %v503_v33, %v502_v22  ;;  %v632_v48 = vmul.f32 %v487_v18, %v487_v18  ;;  %v488_v50 = vmul.f32 %v1084_v37, %v406_v41  ;;  %v606_v34 = vld [vmem:[%s1441_s7 + $0x8] sm:$0xff] }
 0x170   :  { %660 = vadd.xlane.f32.xlu1 %v659_v11  ;;  %534 = vadd.xlane.f32.xlu0 %v533_v53  ;;  %v489_v44 = vmul.f32 %v1082_v35, %v408_v25  ;;  %v454_v51 = vadd.f32 %v453_v19, %v247_v21  ;;  %v631_v52 = vmul.f32 %v486_v29, %v486_v29  ;;  %v613_v25 = vld [vmem:[%s1441_s7 + $0x40] sm:$0xff]  ;;  %v509_v21 = vld [vmem:[%s1439_s6 + $0x8] sm:$0xff] }
 0x171   :  { %v413_v49 = vpop.f32.mrf.mxu0  ;;  %v505_v11 = vmul.f32 %v1082_v35, %v456_v43  ;;  %v461_v53 = vpop.f32.mrf.mxu1  ;;  %v648_v56 = vmul.f32 %v503_v33, %v503_v33  ;;  %v412_v59 = vadd.f32 %v411_v40, %v1077_v30  ;;  %v647_v60 = vmul.f32 %v502_v22, %v502_v22  ;;  %v614_v22 = vld [vmem:[%s1441_s7 + $0x48] sm:$0xff] }
 0x172   :  { %v414_v27 = vadd.f32 %v413_v49, %v1077_v30  ;;  %v542_v54 = vadd.f32 %v489_v44, %v488_v50  ;;  %v668_v55 = vadd.f32 %v632_v48, %v631_v52  ;;  %v504_v58 = vmul.f32 %v1084_v37, %v454_v51  ;;  %v607_v51 = vld [vmem:[%s1441_s7 + $0x10] sm:$0xff]  ;;  %v511_v52 = vld [vmem:[%s1439_s6 + $0x18] sm:$0xff] }
 0x173   :  { %v462_v61 = vadd.f32 %v461_v53, %v252_v57  ;;  %v634_v1 = vmul.f32 %v489_v44, %v489_v44  ;;  %v490_v2 = vmul.f32 %v1084_v37, %v412_v59  ;;  %v460_v3 = vadd.f32 %v459_v45, %v252_v57  ;;  %v518_v45 = vld [vmem:[%s1439_s6 + $0x50] sm:$0xff] }
 0x174   :  { %684 = vadd.xlane.f32.xlu1 %v683_v63  ;;  %558 = vadd.xlane.f32.xlu0 %v557_v0  ;;  %v491_v62 = vmul.f32 %v1082_v35, %v414_v27  ;;  %v566_v63 = vadd.f32 %v505_v11, %v504_v58  ;;  %v692_v0 = vadd.f32 %v648_v56, %v647_v60  ;;  %v519_v56 = vld [vmem:[%s1439_s6 + $0x58] sm:$0xff] }
 0x175   :  { %v633_v4 = vmul.f32 %v488_v50, %v488_v50  ;;  %v507_v5 = vmul.f32 %v1082_v35, %v462_v61  ;;  %v650_v30 = vmul.f32 %v505_v11, %v505_v11  ;;  %v506_v7 = vmul.f32 %v1084_v37, %v460_v3  ;;  %v516_v35 = vld [vmem:[%s1439_s6 + $0x40] sm:$0xff] }
 0x176   :  { %v545_v23 = vadd.f32 %v491_v62, %v490_v2  ;;  %v636_v12 = vmul.f32 %v491_v62, %v491_v62  ;;  %v635_v13 = vmul.f32 %v490_v2, %v490_v2  ;;  %v508_v37 = vld [vmem:[%s1439_s6] sm:$0xff]  ;;  %v608_v62 = vld [vmem:[%s1441_s7 + $0x18] sm:$0xff] }
 0x177   :  { %v671_v6 = vadd.f32 %v634_v1, %v633_v4  ;;  %v569_v10 = vadd.f32 %v507_v5, %v506_v7  ;;  %v652_v15 = vmul.f32 %v507_v5, %v507_v5  ;;  %v651_v16 = vmul.f32 %v506_v7, %v506_v7  ;;  %v512_v61 = vld [vmem:[%s1439_s6 + $0x20] sm:$0xff]  ;;  %v616_v4 = vld [vmem:[%s1441_s7 + $0x58] sm:$0xff] }
 0x178   :  { %537 = vadd.xlane.f32.xlu1 %v536_v8  ;;  %663 = vadd.xlane.f32.xlu0 %v662_v9  ;;  %v649_v8 = vmul.f32 %v504_v58, %v504_v58  ;;  %v674_v14 = vadd.f32 %v636_v12, %v635_v13  ;;  %v520_v3 = vld [vmem:[%s1439_s6 + $0x60] sm:$0xff] }
 0x179   :  { %v698_v17 = vadd.f32 %v652_v15, %v651_v16  ;;  %v609_v7 = vld [vmem:[%s1441_s7 + $0x20] sm:$0xff]  ;;  %v521_v15 = vld [vmem:[%s1439_s6 + $0x68] sm:$0xff] }
 0x17a   :  { %v695_v9 = vadd.f32 %v650_v30, %v649_v8  ;;  %v513_v8 = vld [vmem:[%s1439_s6 + $0x28] sm:$0xff] }
 0x17c   :  { %561 = vadd.xlane.f32.xlu1 %v560_v20  ;;  %687 = vadd.xlane.f32.xlu0 %v686_v24 }
 0x180   :  { %666 = vadd.xlane.f32.xlu1 %v665_v36  ;;  %540 = vadd.xlane.f32.xlu0 %v539_v38 }
 0x184   :  { %690 = vadd.xlane.f32.xlu1 %v689_v46  ;;  %564 = vadd.xlane.f32.xlu0 %v563_v47  ;;  %v510_v46 = vld [vmem:[%s1439_s6 + $0x10] sm:$0xff] }
 0x188   :  { %543 = vadd.xlane.f32.xlu1 %v542_v54  ;;  %669 = vadd.xlane.f32.xlu0 %v668_v55  ;;  %v615_v55 = vld [vmem:[%s1441_s7 + $0x50] sm:$0xff] }
 0x18c   :  { %567 = vadd.xlane.f32.xlu1 %v566_v63  ;;  %693 = vadd.xlane.f32.xlu0 %v692_v0 }
 0x190   :  { %672 = vadd.xlane.f32.xlu1 %v671_v6  ;;  %546 = vadd.xlane.f32.xlu0 %v545_v23 }
 0x194   :  { %696 = vadd.xlane.f32.xlu1 %v695_v9  ;;  %570 = vadd.xlane.f32.xlu0 %v569_v10 }
 0x198   :  { %675 = vadd.xlane.f32.xlu0 %v674_v14  ;;  %v617_v14 = vld [vmem:[%s1441_s7 + $0x60] sm:$0xff] }
 0x19c   :  { %699 = vadd.xlane.f32.xlu0 %v698_v17 }
 0x1e5   :  { %v550_v18 = vpop.xlane.xlu1 %549  ;;  %v526_v19 = vpop.xlane.xlu0 %525 }
 0x1e6   :  { %v580_v20 = vadd.f32 %v550_v18, %v516_v35  ;;  %v572_v24 = vadd.f32 %v526_v19, %v508_v37  ;;  %v514_v18 = vld [vmem:[%s1439_s6 + $0x30] sm:$0xff]  ;;  %v610_v19 = vld [vmem:[%s1441_s7 + $0x28] sm:$0xff] }
 0x1e8   :  { %597 = vst.msk [vmem:[%s1439_s6 + $0x40] sm:$0xff] %vm29_vm1, %v580_v20  ;;  %589 = vst.msk [vmem:[%s1439_s6] sm:$0xff] %vm29_vm1, %v572_v24 }
 0x1e9   :  { %v655_v29 = vpop.xlane.xlu1 %654  ;;  %v553_v31 = vpop.xlane.xlu0 %552 }
 0x1ea   :  { %v701_v32 = vadd.f32 %v655_v29, %v605_v26  ;;  %v581_v33 = vadd.f32 %v553_v31, %v517_v28  ;;  %v522_v29 = vld [vmem:[%s1439_s6 + $0x70] sm:$0xff]  ;;  %v618_v31 = vld [vmem:[%s1441_s7 + $0x68] sm:$0xff] }
 0x1ec   :  { %717 = vst.msk [vmem:[%s1441_s7] sm:$0xff] %vm29_vm1, %v701_v32  ;;  %598 = vst.msk [vmem:[%s1439_s6 + $0x48] sm:$0xff] %vm29_vm1, %v581_v33 }
 0x1ed   :  { %v679_v36 = vpop.xlane.xlu1 %678  ;;  %v658_v38 = vpop.xlane.xlu0 %657 }
 0x1ee   :  { %v709_v39 = vadd.f32 %v679_v36, %v613_v25  ;;  %v702_v40 = vadd.f32 %v658_v38, %v606_v34  ;;  %v611_v36 = vld [vmem:[%s1441_s7 + $0x30] sm:$0xff]  ;;  %v515_v38 = vld [vmem:[%s1439_s6 + $0x38] sm:$0xff] }
 0x1f0   :  { %725 = vst.msk [vmem:[%s1441_s7 + $0x40] sm:$0xff] %vm29_vm1, %v709_v39  ;;  %718 = vst.msk [vmem:[%s1441_s7 + $0x8] sm:$0xff] %vm29_vm1, %v702_v40 }
 0x1f1   :  { %v529_v41 = vpop.xlane.xlu1 %528  ;;  %v682_v42 = vpop.xlane.xlu0 %681 }
 0x1f2   :  { %v573_v43 = vadd.f32 %v529_v41, %v509_v21  ;;  %v710_v44 = vadd.f32 %v682_v42, %v614_v22  ;;  %v619_v41 = vld [vmem:[%s1441_s7 + $0x70] sm:$0xff]  ;;  %v523_v42 = vld [vmem:[%s1439_s6 + $0x78] sm:$0xff] }
 0x1f4   :  { %590 = vst.msk [vmem:[%s1439_s6 + $0x8] sm:$0xff] %vm29_vm1, %v573_v43  ;;  %726 = vst.msk [vmem:[%s1441_s7 + $0x48] sm:$0xff] %vm29_vm1, %v710_v44 }
 0x1f5   :  { %v556_v47 = vpop.xlane.xlu1 %555  ;;  %v532_v48 = vpop.xlane.xlu0 %531 }
 0x1f6   :  { %v582_v49 = vadd.f32 %v556_v47, %v518_v45  ;;  %v574_v50 = vadd.f32 %v532_v48, %v510_v46  ;;  %v612_v47 = vld [vmem:[%s1441_s7 + $0x38] sm:$0xff] }
 0x1f8   :  { %599 = vst.msk [vmem:[%s1439_s6 + $0x50] sm:$0xff] %vm29_vm1, %v582_v49  ;;  %591 = vst.msk [vmem:[%s1439_s6 + $0x10] sm:$0xff] %vm29_vm1, %v574_v50  ;;  %v620_v50 = vld [vmem:[%s1441_s7 + $0x78] sm:$0xff] }
 0x1f9   :  { %v661_v11 = vpop.xlane.xlu1 %660  ;;  %v535_v27 = vpop.xlane.xlu0 %534 }
 0x1fa   :  { %v703_v53 = vadd.f32 %v661_v11, %v607_v51  ;;  %v575_v54 = vadd.f32 %v535_v27, %v511_v52 }
 0x1fc   :  { %719 = vst.msk [vmem:[%s1441_s7 + $0x10] sm:$0xff] %vm29_vm1, %v703_v53  ;;  %592 = vst.msk [vmem:[%s1439_s6 + $0x18] sm:$0xff] %vm29_vm1, %v575_v54 }
 0x1fd   :  { %v685_v57 = vpop.xlane.xlu1 %684  ;;  %v559_v58 = vpop.xlane.xlu0 %558 }
 0x1fe   :  { %v711_v59 = vadd.f32 %v685_v57, %v615_v55  ;;  %v583_v60 = vadd.f32 %v559_v58, %v519_v56 }
 0x200   :  { %727 = vst.msk [vmem:[%s1441_s7 + $0x50] sm:$0xff] %vm29_vm1, %v711_v59  ;;  %600 = vst.msk [vmem:[%s1439_s6 + $0x58] sm:$0xff] %vm29_vm1, %v583_v60 }
 0x201   :  { %v538_v63 = vpop.xlane.xlu1 %537  ;;  %v664_v0 = vpop.xlane.xlu0 %663 }
 0x202   :  { %v576_v1 = vadd.f32 %v538_v63, %v512_v61  ;;  %v704_v2 = vadd.f32 %v664_v0, %v608_v62 }
 0x204   :  { %593 = vst.msk [vmem:[%s1439_s6 + $0x20] sm:$0xff] %vm29_vm1, %v576_v1  ;;  %720 = vst.msk [vmem:[%s1441_s7 + $0x18] sm:$0xff] %vm29_vm1, %v704_v2 }
 0x205   :  { %v562_v5 = vpop.xlane.xlu1 %561  ;;  %v688_v6 = vpop.xlane.xlu0 %687 }
 0x206   :  { %v584_v23 = vadd.f32 %v562_v5, %v520_v3  ;;  %v712_v30 = vadd.f32 %v688_v6, %v616_v4 }
 0x208   :  { %601 = vst.msk [vmem:[%s1439_s6 + $0x60] sm:$0xff] %vm29_vm1, %v584_v23  ;;  %728 = vst.msk [vmem:[%s1441_s7 + $0x58] sm:$0xff] %vm29_vm1, %v712_v30 }
 0x209   :  { %v667_v9 = vpop.xlane.xlu1 %666  ;;  %v541_v10 = vpop.xlane.xlu0 %540 }
 0x20a   :  { %v705_v12 = vadd.f32 %v667_v9, %v609_v7  ;;  %v577_v13 = vadd.f32 %v541_v10, %v513_v8 }
 0x20c   :  { %721 = vst.msk [vmem:[%s1441_s7 + $0x20] sm:$0xff] %vm29_vm1, %v705_v12  ;;  %594 = vst.msk [vmem:[%s1439_s6 + $0x28] sm:$0xff] %vm29_vm1, %v577_v13 }
 0x20d   :  { %v691_v16 = vpop.xlane.xlu1 %690  ;;  %v565_v17 = vpop.xlane.xlu0 %564 }
 0x20e   :  { %v713_v35 = vadd.f32 %v691_v16, %v617_v14  ;;  %v585_v37 = vadd.f32 %v565_v17, %v521_v15 }
 0x210   :  { %729 = vst.msk [vmem:[%s1441_s7 + $0x60] sm:$0xff] %vm29_vm1, %v713_v35  ;;  %602 = vst.msk [vmem:[%s1439_s6 + $0x68] sm:$0xff] %vm29_vm1, %v585_v37 }
 0x211   :  { %v544_v20 = vpop.xlane.xlu1 %543  ;;  %v670_v24 = vpop.xlane.xlu0 %669 }
 0x212   :  { %v578_v26 = vadd.f32 %v544_v20, %v514_v18  ;;  %v706_v28 = vadd.f32 %v670_v24, %v610_v19 }
 0x214   :  { %595 = vst.msk [vmem:[%s1439_s6 + $0x30] sm:$0xff] %vm29_vm1, %v578_v26  ;;  %722 = vst.msk [vmem:[%s1441_s7 + $0x28] sm:$0xff] %vm29_vm1, %v706_v28 }
 0x215   :  { %v568_v32 = vpop.xlane.xlu1 %567  ;;  %v694_v33 = vpop.xlane.xlu0 %693 }
 0x216   :  { %v586_v25 = vadd.f32 %v568_v32, %v522_v29  ;;  %v714_v34 = vadd.f32 %v694_v33, %v618_v31 }
 0x218   :  { %603 = vst.msk [vmem:[%s1439_s6 + $0x70] sm:$0xff] %vm29_vm1, %v586_v25  ;;  %730 = vst.msk [vmem:[%s1441_s7 + $0x68] sm:$0xff] %vm29_vm1, %v714_v34 }
 0x219   :  { %v673_v39 = vpop.xlane.xlu1 %672  ;;  %v547_v40 = vpop.xlane.xlu0 %546 }
 0x21a   :  { %v707_v21 = vadd.f32 %v673_v39, %v611_v36  ;;  %v579_v22 = vadd.f32 %v547_v40, %v515_v38 }
 0x21c   :  { %723 = vst.msk [vmem:[%s1441_s7 + $0x30] sm:$0xff] %vm29_vm1, %v707_v21  ;;  %596 = vst.msk [vmem:[%s1439_s6 + $0x38] sm:$0xff] %vm29_vm1, %v579_v22 }
 0x21d   :  { %v697_v43 = vpop.xlane.xlu1 %696  ;;  %v571_v44 = vpop.xlane.xlu0 %570 }
 0x21e   :  { %v715_v45 = vadd.f32 %v697_v43, %v619_v41  ;;  %v587_v46 = vadd.f32 %v571_v44, %v523_v42 }
 0x220   :  { %731 = vst.msk [vmem:[%s1441_s7 + $0x70] sm:$0xff] %vm29_vm1, %v715_v45  ;;  %604 = vst.msk [vmem:[%s1439_s6 + $0x78] sm:$0xff] %vm29_vm1, %v587_v46 }
 0x221   :  { %v676_v48 = vpop.xlane.xlu0 %675 }
 0x222   :  { %v708_v49 = vadd.f32 %v676_v48, %v612_v47 }
 0x224   :  { %724 = vst.msk [vmem:[%s1441_s7 + $0x38] sm:$0xff] %vm29_vm1, %v708_v49 }
 0x225   :  { %v700_v51 = vpop.xlane.xlu0 %699 }
 0x226   :  { %v716_v52 = vadd.f32 %v700_v51, %v620_v50 }
 0x228   :  { %732 = vst.msk [vmem:[%s1441_s7 + $0x78] sm:$0xff] %vm29_vm1, %v716_v52 }

// kernel: dense_block.7
= control target key start
LH: loop header
LB: loop body
LE: loop exit
PB: predicated region body
PF: predicated region fallthrough
CT: control target
= control target key end

     0   :  { %v1092_v0 = vmov 0   ;;  %v1826_v11 = vmov 0.0   ;;  %vm228_vm0 = vcmask 261120   ;;  %s1815_s2 = inlined_call_operand.vmem [shape: f32[32,1], index: 2, kind: input, shape index: {}]   ;;  %s1816_s1 = inlined_call_operand.vmem [shape: f32[32,1], index: 1, kind: input, shape index: {}]   ;;  %s1817_s4 = inlined_call_operand.vmem [shape: f32[128,1], index: 4, kind: input, shape index: {}]   ;;  %s1818_s5 = inlined_call_operand.vmem [shape: f32[128,1], index: 5, kind: input, shape index: {}]   ;;  %s1819_s6 = inlined_call_operand.vmem [shape: f32[128,1], index: 6, kind: input, shape index: {}]   ;;  %s1820_s8 = inlined_call_operand.vmem [shape: f32[32,1], index: 8, kind: input, shape index: {}]   ;;  %s1821_s0 = inlined_call_operand.vmem [shape: f32[128,256], index: 0, kind: input, shape index: {}]   ;;  %s1822_s3 = inlined_call_operand.vmem [shape: f32[128,32], index: 3, kind: input, shape index: {}]   ;;  %s1823_s9 = inlined_call_operand.vmem [shape: f32[1,256], index: 9, kind: input, shape index: {}]   ;;  %s1824_s7 = inlined_call_operand.vmem [shape: f32[96,128], index: 7, kind: input, shape index: {}]   ;;  %s1825_s10 = inlined_call_operand.vmem [shape: f32[32,256], index: 10, kind: output, shape index: {}]  }
   0x1   :  { %1091 = vset.pattern.permute.xlu1 %v1092_v0  ;;  %1090 = vset.pattern.permute.xlu0 %v1092_v0  ;;  %v79_v1 = vld [vmem:[%s1815_s2 + $0x18] sm:$0xff]  ;;  %v46_v3 = vld [vmem:[%s1816_s1 + $0x10] sm:$0xff]  ;;  %v45_v4 = vld [vmem:[%s1816_s1 + $0x8] sm:$0xff] }
   0x2   :  { %v47_v2 = vld [vmem:[%s1816_s1 + $0x18] sm:$0xff]  ;;  %97 = vperm.xlu1 %1091, %v79_v1   ;;  %v78_v5 = vld [vmem:[%s1815_s2 + $0x10] sm:$0xff]  ;;  %v44_v6 = vld [vmem:[%s1816_s1] sm:$0xff]  ;;  %341 = vmatprep.mubr.f32.mxu0 %v1826_v11 }
   0x3   :  { %65 = vperm.xlu0 %1090, %v47_v2   ;;  %v77_v7 = vld [vmem:[%s1815_s2 + $0x8] sm:$0xff]  ;;  %v76_v8 = vld [vmem:[%s1815_s2] sm:$0xff]  ;;  %v147_v9 = vld [vmem:[%s1817_s4 + $0x78] sm:$0xff]  ;;  %851 = vmatprep.mubr.f32.mxu1 %v1826_v11  ;;  %s1094_s2 = smov 1  }
   0x4   :  { %v146_v10 = vld [vmem:[%s1817_s4 + $0x70] sm:$0xff]  ;;  %v453_v12 = vld [vmem:[%s1818_s5 + $0x78] sm:$0xff]  ;;  %v145_v13 = vld [vmem:[%s1817_s4 + $0x68] sm:$0xff] }
   0x5   :  { %v452_v14 = vld [vmem:[%s1818_s5 + $0x70] sm:$0xff]  ;;  %v581_v15 = vld [vmem:[%s1819_s6 + $0x78] sm:$0xff]  ;;  %v144_v16 = vld [vmem:[%s1817_s4 + $0x60] sm:$0xff] }
   0x6   :  { %55 = vperm.xlu1 %1091, %v45_v4   ;;  %v451_v17 = vld [vmem:[%s1818_s5 + $0x68] sm:$0xff]  ;;  %v580_v18 = vld [vmem:[%s1819_s6 + $0x70] sm:$0xff]  ;;  %v143_v19 = vld [vmem:[%s1817_s4 + $0x58] sm:$0xff] }
   0x7   :  { %60 = vperm.xlu0 %1090, %v46_v3   ;;  %v450_v20 = vld [vmem:[%s1818_s5 + $0x60] sm:$0xff]  ;;  %v579_v21 = vld [vmem:[%s1819_s6 + $0x68] sm:$0xff]  ;;  %v142_v22 = vld [vmem:[%s1817_s4 + $0x50] sm:$0xff] }
   0x8   :  { %v449_v23 = vld [vmem:[%s1818_s5 + $0x58] sm:$0xff]  ;;  %v578_v24 = vld [vmem:[%s1819_s6 + $0x60] sm:$0xff]  ;;  %v141_v25 = vld [vmem:[%s1817_s4 + $0x48] sm:$0xff] }
   0x9   :  { %v448_v26 = vld [vmem:[%s1818_s5 + $0x50] sm:$0xff]  ;;  %v577_v27 = vld [vmem:[%s1819_s6 + $0x58] sm:$0xff]  ;;  %v140_v28 = vld [vmem:[%s1817_s4 + $0x40] sm:$0xff] }
   0xa   :  { %50 = vperm.xlu1 %1091, %v44_v6   ;;  %v447_v29 = vld [vmem:[%s1818_s5 + $0x48] sm:$0xff]  ;;  %v576_v30 = vld [vmem:[%s1819_s6 + $0x50] sm:$0xff]  ;;  %v139_v31 = vld [vmem:[%s1817_s4 + $0x38] sm:$0xff] }
   0xb   :  { %92 = vperm.xlu0 %1090, %v78_v5   ;;  %v446_v32 = vld [vmem:[%s1818_s5 + $0x40] sm:$0xff]  ;;  %v575_v33 = vld [vmem:[%s1819_s6 + $0x48] sm:$0xff]  ;;  %v138_v34 = vld [vmem:[%s1817_s4 + $0x30] sm:$0xff] }
   0xc   :  { %v445_v35 = vld [vmem:[%s1818_s5 + $0x38] sm:$0xff]  ;;  %v574_v36 = vld [vmem:[%s1819_s6 + $0x40] sm:$0xff]  ;;  %v137_v37 = vld [vmem:[%s1817_s4 + $0x28] sm:$0xff] }
   0xd   :  { %v444_v38 = vld [vmem:[%s1818_s5 + $0x30] sm:$0xff]  ;;  %v573_v39 = vld [vmem:[%s1819_s6 + $0x38] sm:$0xff]  ;;  %v136_v40 = vld [vmem:[%s1817_s4 + $0x20] sm:$0xff] }
   0xe   :  { %82 = vperm.xlu1 %1091, %v76_v8   ;;  %v443_v41 = vld [vmem:[%s1818_s5 + $0x28] sm:$0xff]  ;;  %v572_v42 = vld [vmem:[%s1819_s6 + $0x30] sm:$0xff]  ;;  %v135_v43 = vld [vmem:[%s1817_s4 + $0x18] sm:$0xff] }
   0xf   :  { %87 = vperm.xlu0 %1090, %v77_v7   ;;  %v442_v44 = vld [vmem:[%s1818_s5 + $0x20] sm:$0xff]  ;;  %v571_v45 = vld [vmem:[%s1819_s6 + $0x28] sm:$0xff]  ;;  %v134_v46 = vld [vmem:[%s1817_s4 + $0x10] sm:$0xff] }
  0x10   :  { %v441_v47 = vld [vmem:[%s1818_s5 + $0x18] sm:$0xff]  ;;  %v570_v48 = vld [vmem:[%s1819_s6 + $0x20] sm:$0xff]  ;;  %v133_v49 = vld [vmem:[%s1817_s4 + $0x8] sm:$0xff] }
  0x11   :  { %v440_v50 = vld [vmem:[%s1818_s5 + $0x10] sm:$0xff]  ;;  %v569_v51 = vld [vmem:[%s1819_s6 + $0x18] sm:$0xff]  ;;  %v132_v52 = vld [vmem:[%s1817_s4] sm:$0xff] }
  0x12   :  { %220 = vperm.xlu1 %1091, %v146_v10   ;;  %v439_v53 = vld [vmem:[%s1818_s5 + $0x8] sm:$0xff]  ;;  %v568_v54 = vld [vmem:[%s1819_s6 + $0x10] sm:$0xff]  ;;  %v438_v55 = vld [vmem:[%s1818_s5] sm:$0xff] }
  0x13   :  { %225 = vperm.xlu0 %1090, %v147_v9   ;;  %v567_v56 = vld [vmem:[%s1819_s6 + $0x8] sm:$0xff]  ;;  %v566_v57 = vld [vmem:[%s1819_s6] sm:$0xff]  ;;  %v972_v60 = vld [vmem:[%s1820_s8 + $0x10] sm:$0xff] }
  0x14   :  { %v970_v58 = vld [vmem:[%s1820_s8] sm:$0xff]  ;;  %v971_v59 = vld [vmem:[%s1820_s8 + $0x8] sm:$0xff]  ;;  %v973_v61 = vld [vmem:[%s1820_s8 + $0x18] sm:$0xff] }
  0x15   :  { %v42_v62 = vld [vmem:[%s1821_s0 + $0x30] sm:$0xff]  ;;  %v43_v63 = vld [vmem:[%s1821_s0 + $0x38] sm:$0xff]  ;;  %v40_v7 = vld [vmem:[%s1821_s0 + $0x20] sm:$0xff] }
  0x16   :  { %215 = vperm.xlu1 %1091, %v145_v13   ;;  %v41_v8 = vld [vmem:[%s1821_s0 + $0x28] sm:$0xff] }
  0x17   :  { %531 = vperm.xlu0 %1090, %v453_v12  }
  0x1a   :  { %659 = vperm.xlu1 %1091, %v581_v15   ;;  %v38_v15 = vld [vmem:[%s1821_s0 + $0x10] sm:$0xff] }
  0x1b   :  { %526 = vperm.xlu0 %1090, %v452_v14  }
  0x1e   :  { %521 = vperm.xlu1 %1091, %v451_v17  }
  0x1f   :  { %210 = vperm.xlu0 %1090, %v144_v16   ;;  %v39_v16 = vld [vmem:[%s1821_s0 + $0x18] sm:$0xff] }
  0x22   :  { %205 = vperm.xlu1 %1091, %v143_v19   ;;  %v37_v19 = vld [vmem:[%s1821_s0 + $0x8] sm:$0xff] }
  0x23   :  { %654 = vperm.xlu0 %1090, %v580_v18  }
  0x26   :  { %649 = vperm.xlu1 %1091, %v579_v21  }
  0x27   :  { %516 = vperm.xlu0 %1090, %v450_v20  }
  0x2a   :  { %511 = vperm.xlu1 %1091, %v449_v23  }
  0x2b   :  { %200 = vperm.xlu0 %1090, %v142_v22   ;;  %v36_v22 = vld [vmem:[%s1821_s0] sm:$0xff] }
  0x2e   :  { %195 = vperm.xlu1 %1091, %v141_v25  }
  0x2f   :  { %644 = vperm.xlu0 %1090, %v578_v24  }
  0x32   :  { %639 = vperm.xlu1 %1091, %v577_v27  }
  0x33   :  { %506 = vperm.xlu0 %1090, %v448_v26  }
  0x36   :  { %501 = vperm.xlu1 %1091, %v447_v29  }
  0x37   :  { %190 = vperm.xlu0 %1090, %v140_v28  }
  0x3a   :  { %185 = vperm.xlu1 %1091, %v139_v31  }
  0x3b   :  { %634 = vperm.xlu0 %1090, %v576_v30  }
  0x3e   :  { %629 = vperm.xlu1 %1091, %v575_v33  }
  0x3f   :  { %496 = vperm.xlu0 %1090, %v446_v32  }
  0x42   :  { %491 = vperm.xlu1 %1091, %v445_v35  }
  0x43   :  { %180 = vperm.xlu0 %1090, %v138_v34  }
  0x46   :  { %175 = vperm.xlu1 %1091, %v137_v37  }
  0x47   :  { %624 = vperm.xlu0 %1090, %v574_v36  }
  0x4a   :  { %619 = vperm.xlu1 %1091, %v573_v39   ;;  %v116_v39 = vld [vmem:[%s1822_s3] sm:$0xff] }
  0x4b   :  { %486 = vperm.xlu0 %1090, %v444_v38  }
  0x4e   :  { %481 = vperm.xlu1 %1091, %v443_v41   ;;  %v118_v41 = vld [vmem:[%s1822_s3 + $0x10] sm:$0xff] }
  0x4f   :  { %170 = vperm.xlu0 %1090, %v136_v40   ;;  %v117_v40 = vld [vmem:[%s1822_s3 + $0x8] sm:$0xff] }
  0x52   :  { %165 = vperm.xlu1 %1091, %v135_v43   ;;  %v120_v43 = vld [vmem:[%s1822_s3 + $0x20] sm:$0xff] }
  0x53   :  { %614 = vperm.xlu0 %1090, %v572_v42   ;;  %v119_v42 = vld [vmem:[%s1822_s3 + $0x18] sm:$0xff] }
  0x56   :  { %609 = vperm.xlu1 %1091, %v571_v45   ;;  %v122_v45 = vld [vmem:[%s1822_s3 + $0x30] sm:$0xff] }
  0x57   :  { %476 = vperm.xlu0 %1090, %v442_v44   ;;  %v121_v44 = vld [vmem:[%s1822_s3 + $0x28] sm:$0xff] }
  0x5a   :  { %471 = vperm.xlu1 %1091, %v441_v47   ;;  %v124_v47 = vld [vmem:[%s1822_s3 + $0x40] sm:$0xff] }
  0x5b   :  { %160 = vperm.xlu0 %1090, %v134_v46   ;;  %v123_v46 = vld [vmem:[%s1822_s3 + $0x38] sm:$0xff] }
  0x5e   :  { %155 = vperm.xlu1 %1091, %v133_v49   ;;  %v126_v49 = vld [vmem:[%s1822_s3 + $0x50] sm:$0xff] }
  0x5f   :  { %604 = vperm.xlu0 %1090, %v570_v48   ;;  %v125_v48 = vld [vmem:[%s1822_s3 + $0x48] sm:$0xff] }
  0x62   :  { %599 = vperm.xlu1 %1091, %v569_v51   ;;  %v128_v51 = vld [vmem:[%s1822_s3 + $0x60] sm:$0xff] }
  0x63   :  { %466 = vperm.xlu0 %1090, %v440_v50   ;;  %v127_v50 = vld [vmem:[%s1822_s3 + $0x58] sm:$0xff] }
  0x66   :  { %461 = vperm.xlu1 %1091, %v439_v53   ;;  %v130_v53 = vld [vmem:[%s1822_s3 + $0x70] sm:$0xff] }
  0x67   :  { %150 = vperm.xlu0 %1090, %v132_v52   ;;  %v129_v52 = vld [vmem:[%s1822_s3 + $0x68] sm:$0xff] }
  0x6a   :  { %456 = vperm.xlu1 %1091, %v438_v55  }
  0x6b   :  { %594 = vperm.xlu0 %1090, %v568_v54   ;;  %v131_v54 = vld [vmem:[%s1822_s3 + $0x78] sm:$0xff] }
  0x6e   :  { %584 = vperm.xlu1 %1091, %v566_v57  }
  0x6f   :  { %589 = vperm.xlu0 %1090, %v567_v56  }
  0x72   :  { %981 = vperm.xlu1 %1091, %v971_v59  }
  0x73   :  { %976 = vperm.xlu0 %1090, %v970_v58  }
  0x76   :  { %991 = vperm.xlu1 %1091, %v973_v61  }
  0x77   :  { %986 = vperm.xlu0 %1090, %v972_v60  }
  0x7d   :  { %v98_v0 = vpop.permute.xlu1 %97 }
  0x7e   :  { %v66_v1 = vpop.permute.xlu0 %65 }
  0x7f   :  { %v74_v2 = vmul.f32 %v66_v1, %v42_v62  ;;  %v75_v3 = vmul.f32 %v66_v1, %v43_v63 }
  0x81   :  { %v107_v4 = vadd.f32 %v98_v0, %v75_v3  ;;  %v106_v5 = vadd.f32 %v98_v0, %v74_v2  ;;  %v56_v9 = vpop.permute.xlu1 %55 }
  0x82   :  { %v61_v6 = vpop.permute.xlu0 %60  ;;  %v70_v23 = vmul.f32 %v56_v9, %v38_v15  ;;  %v71_v24 = vmul.f32 %v56_v9, %v39_v16 }
  0x83   :  { %v115_v10 = vmax.f32 %v107_v4, 0.0  ;;  %v114_v12 = vmax.f32 %v106_v5, 0.0  ;;  %v72_v13 = vmul.f32 %v61_v6, %v40_v7  ;;  %v73_v14 = vmul.f32 %v61_v6, %v41_v8 }
  0x85   :  { %301 = vmatprep.subr.mxu0 %v115_v10  ;;  %v51_v18 = vpop.permute.xlu1 %50 }
  0x86   :  { %v93_v17 = vpop.permute.xlu0 %92  ;;  %302 = vmatpush1.msra.mxu0 %v114_v12  ;;  %v69_v27 = vmul.f32 %v51_v18, %v37_v19  ;;  %v68_v28 = vmul.f32 %v51_v18, %v36_v22 }
  0x87   :  { %v104_v20 = vadd.f32 %v93_v17, %v72_v13  ;;  %v105_v21 = vadd.f32 %v93_v17, %v73_v14 }
  0x89   :  { %v112_v25 = vmax.f32 %v104_v20, 0.0  ;;  %v113_v26 = vmax.f32 %v105_v21, 0.0  ;;  %v83_v30 = vpop.permute.xlu1 %82 }
  0x8a   :  { %v88_v29 = vpop.permute.xlu0 %87  ;;  %v101_v33 = vadd.f32 %v83_v30, %v69_v27  ;;  %v100_v34 = vadd.f32 %v83_v30, %v68_v28 }
  0x8b   :  { %v102_v31 = vadd.f32 %v88_v29, %v70_v23  ;;  %v103_v32 = vadd.f32 %v88_v29, %v71_v24  ;;  %303 = vmatprep.subr.mxu0 %v113_v26 }
  0x8c   :  { %304 = vmatpush1.msra.mxu0 %v112_v25  ;;  %v109_v37 = vmax.f32 %v101_v33, 0.0  ;;  %v108_v38 = vmax.f32 %v100_v34, 0.0 }
  0x8d   :  { %v110_v35 = vmax.f32 %v102_v31, 0.0  ;;  %v111_v36 = vmax.f32 %v103_v32, 0.0  ;;  %v1441_v57 = vpop.permute.xlu1 %220 }
  0x8e   :  { %v1437_v55 = vpop.permute.xlu0 %225 }
  0x8f   :  { %305 = vmatprep.subr.mxu0 %v111_v36 }
  0x90   :  { %306 = vmatpush1.msra.mxu0 %v110_v35 }
  0x91   :  { %307 = vmatprep.subr.mxu0 %v109_v37  ;;  %v1445_v59 = vpop.permute.xlu1 %215 }
  0x92   :  { %308 = vmatpush1.msra.mxu0 %v108_v38  ;;  %v1439_v56 = vpop.permute.xlu0 %531 }
  0x93   :  { %1038 = vmatmul.mubr.msk.f32.vlgmr.msra.gmra.mxu0 %vm228_vm0, %v116_v39 }
  0x94   :  { %347 = vmatprep.mubr.f32.mxu0 %v1826_v11 }
  0x95   :  { %v1449_v61 = vpop.permute.xlu1 %659 }
  0x96   :  { %v1443_v58 = vpop.permute.xlu0 %526 }
  0x97   :  { %1039 = vmatmul.mubr.msk.f32.gmra.mxu0 %vm228_vm0, %v117_v40 }
  0x98   :  { %353 = vmatprep.mubr.f32.mxu0 %v1826_v11 }
  0x99   :  { %v1453_v63 = vpop.permute.xlu1 %521 }
  0x9a   :  { %v1447_v60 = vpop.permute.xlu0 %210 }
  0x9b   :  { %1040 = vmatmul.mubr.msk.f32.gmra.mxu0 %vm228_vm0, %v118_v41 }
  0x9c   :  { %359 = vmatprep.mubr.f32.mxu0 %v1826_v11 }
  0x9d   :  { %v1457_v1 = vpop.permute.xlu1 %205 }
  0x9e   :  { %v1451_v62 = vpop.permute.xlu0 %654 }
  0x9f   :  { %1041 = vmatmul.mubr.msk.f32.gmra.mxu0 %vm228_vm0, %v119_v42 }
  0xa0   :  { %365 = vmatprep.mubr.f32.mxu0 %v1826_v11 }
  0xa1   :  { %v1461_v3 = vpop.permute.xlu1 %649 }
  0xa2   :  { %v1455_v0 = vpop.permute.xlu0 %516 }
  0xa3   :  { %1042 = vmatmul.mubr.msk.f32.gmra.mxu0 %vm228_vm0, %v120_v43 }
  0xa4   :  { %371 = vmatprep.mubr.f32.mxu0 %v1826_v11 }
  0xa5   :  { %v1465_v5 = vpop.permute.xlu1 %511 }
  0xa6   :  { %v1459_v2 = vpop.permute.xlu0 %200 }
  0xa7   :  { %1043 = vmatmul.mubr.msk.f32.gmra.mxu0 %vm228_vm0, %v121_v44 }
  0xa8   :  { %377 = vmatprep.mubr.f32.mxu0 %v1826_v11 }
  0xa9   :  { %v1469_v7 = vpop.permute.xlu1 %195 }
  0xaa   :  { %v1463_v4 = vpop.permute.xlu0 %644 }
  0xab   :  { %1044 = vmatmul.mubr.msk.f32.gmra.mxu0 %vm228_vm0, %v122_v45  ;;  %1848 = vst [vmem:[#allocation2_spill] sm:$0xff] %v1463_v4 }
  0xac   :  { %383 = vmatprep.mubr.f32.mxu0 %v1826_v11 }
  0xad   :  { %v1473_v9 = vpop.permute.xlu1 %639 }
  0xae   :  { %v1467_v6 = vpop.permute.xlu0 %506  ;;  %1850 = vst [vmem:[#allocation4_spill] sm:$0xff] %v1473_v9 }
  0xaf   :  { %1045 = vmatmul.mubr.msk.f32.gmra.mxu0 %vm228_vm0, %v123_v46  ;;  %1849 = vst [vmem:[#allocation3_spill] sm:$0xff] %v1467_v6 }
  0xb0   :  { %389 = vmatprep.mubr.f32.mxu0 %v1826_v11 }
  0xb1   :  { %v1477_v12 = vpop.permute.xlu1 %501 }
  0xb2   :  { %v1471_v8 = vpop.permute.xlu0 %190  ;;  %1852 = vst [vmem:[#allocation6_spill] sm:$0xff] %v1477_v12 }
  0xb3   :  { %1046 = vmatmul.mubr.msk.f32.gmra.mxu0 %vm228_vm0, %v124_v47 }
  0xb4   :  { %395 = vmatprep.mubr.f32.mxu0 %v1826_v11 }
  0xb5   :  { %v1481_v15 = vpop.permute.xlu1 %185 }
  0xb6   :  { %v1475_v10 = vpop.permute.xlu0 %634 }
  0xb7   :  { %1047 = vmatmul.mubr.msk.f32.gmra.mxu0 %vm228_vm0, %v125_v48  ;;  %1851 = vst [vmem:[#allocation5_spill] sm:$0xff] %v1475_v10 }
  0xb8   :  { %401 = vmatprep.mubr.f32.mxu0 %v1826_v11 }
  0xb9   :  { %v1485_v20 = vpop.permute.xlu1 %629 }
  0xba   :  { %v1479_v13 = vpop.permute.xlu0 %496  ;;  %1854 = vst [vmem:[#allocation8_spill] sm:$0xff] %v1485_v20 }
  0xbb   :  { %1048 = vmatmul.mubr.msk.f32.gmra.mxu0 %vm228_vm0, %v126_v49  ;;  %1853 = vst [vmem:[#allocation7_spill] sm:$0xff] %v1479_v13 }
  0xbc   :  { %407 = vmatprep.mubr.f32.mxu0 %v1826_v11 }
  0xbd   :  { %v1489_v25 = vpop.permute.xlu1 %491 }
  0xbe   :  { %v1483_v16 = vpop.permute.xlu0 %180  ;;  %1856 = vst [vmem:[#allocation10_spill] sm:$0xff] %v1489_v25 }
  0xbf   :  { %1049 = vmatmul.mubr.msk.f32.gmra.mxu0 %vm228_vm0, %v127_v50 }
  0xc0   :  { %413 = vmatprep.mubr.f32.mxu0 %v1826_v11 }
  0xc1   :  { %v176_v30 = vpop.permute.xlu1 %175 }
  0xc2   :  { %v1487_v21 = vpop.permute.xlu0 %624 }
  0xc3   :  { %1050 = vmatmul.mubr.msk.f32.gmra.mxu0 %vm228_vm0, %v128_v51  ;;  %1855 = vst [vmem:[#allocation9_spill] sm:$0xff] %v1487_v21 }
  0xc4   :  { %419 = vmatprep.mubr.f32.mxu0 %v1826_v11 }
  0xc5   :  { %v1493_v35 = vpop.permute.xlu1 %619 }
  0xc6   :  { %v1491_v26 = vpop.permute.xlu0 %486  ;;  %1858 = vst [vmem:[#allocation12_spill] sm:$0xff] %v1493_v35 }
  0xc7   :  { %1051 = vmatmul.mubr.msk.f32.gmra.mxu0 %vm228_vm0, %v129_v52  ;;  %1857 = vst [vmem:[#allocation11_spill] sm:$0xff] %v1491_v26  ;;  %v1841_v52 = vlaneseq }
  0xc8   :  { %425 = vmatprep.mubr.f32.mxu0 %v1826_v11 }
  0xc9   :  { %v1499_v40 = vpop.permute.xlu1 %481 }
  0xca   :  { %v171_v31 = vpop.permute.xlu0 %170  ;;  %1860 = vst [vmem:[#allocation14_spill] sm:$0xff] %v1499_v40 }
  0xcb   :  { %1052 = vmatmul.mubr.msk.f32.gmra.mxu0 %vm228_vm0, %v130_v53 }
  0xcc   :  { %431 = vmatprep.mubr.f32.mxu0 %v1826_v11 }
  0xcd   :  { %v166_v45 = vpop.permute.xlu1 %165 }
  0xce   :  { %v1495_v36 = vpop.permute.xlu0 %614 }
  0xcf   :  { %1053 = vmatmul.mubr.msk.f32.gmra.mxu0 %vm228_vm0, %v131_v54  ;;  %1859 = vst [vmem:[#allocation13_spill] sm:$0xff] %v1495_v36 }
  0xd0   :  { %845 = vmatprep.mubr.f32.mxu0 %v1826_v11  ;;  %v728_v11 = vshrl.u32 %v1841_v52, 7 }
  0xd1   :  { %v1513_v50 = vpop.permute.xlu1 %609 }
  0xd2   :  { %v1501_v41 = vpop.permute.xlu0 %476  ;;  %1864 = vst [vmem:[#allocation18_spill] sm:$0xff] %v1513_v50  ;;  %v729_v21 = vsub.s32 0, %v728_v11  ;;  %v733_v20 = vsub.s32 1, %v728_v11  ;;  %v35_v50 = vld [vmem:[%s1823_s9] sm:$0x3] }
  0xd3   :  { %1861 = vst [vmem:[#allocation15_spill] sm:$0xff] %v1501_v41 }
  0xd4   :  { %v1525_v13 = vrot.slane %v35_v50, %v729_v21  ;;  %v1527_v52 = vrot.slane %v35_v50, %v733_v20 }
  0xd5   :  { %v1518_v41 = vpop.permute.xlu1 %471 }
  0xd6   :  { %v161_v46 = vpop.permute.xlu0 %160  ;;  %1866 = vst [vmem:[#allocation20_spill] sm:$0xff] %v1518_v41  ;;  %1868 = vst [vmem:[#allocation22_spill] sm:$0xff] %v1525_v13 }
  0xda   :  { %v1515_v51 = vpop.permute.xlu0 %604 }
  0xdb   :  { %1865 = vst [vmem:[#allocation19_spill] sm:$0xff] %v1515_v51  ;;  %v156_v51 = vpop.permute.xlu1 %155 }
  0xde   :  { %v1520_v35 = vpop.permute.xlu0 %466 }
  0xdf   :  { %1867 = vst [vmem:[#allocation21_spill] sm:$0xff] %v1520_v35 }
  0xe2   :  { %v151_v10 = vpop.permute.xlu0 %150 }
 0x153   :  { %v343_v14 = vpop.f32.mrf.mxu0 }
 0x154   :  { %v1529_v12 = vadd.f32 %v343_v14, %v151_v10 }
 0x155   :  { %v345_v17 = vpop.f32.mrf.mxu0 }
 0x156   :  { %v1531_v41 = vadd.f32 %v345_v17, %v151_v10 }
 0x157   :  { %v349_v18 = vpop.f32.mrf.mxu0 }
 0x158   :  { %v1533_v35 = vadd.f32 %v349_v18, %v156_v51 }
 0x159   :  { %v351_v19 = vpop.f32.mrf.mxu0 }
 0x15b   :  { %v355_v22 = vpop.f32.mrf.mxu0 }
 0x15c   :  { %v1537_v11 = vadd.f32 %v355_v22, %v161_v46 }
 0x15d   :  { %v357_v23 = vpop.f32.mrf.mxu0 }
 0x15e   :  { %v1539_v4 = vadd.f32 %v357_v23, %v161_v46 }
 0x15f   :  { %v361_v24 = vpop.f32.mrf.mxu0 }
 0x160   :  { %v1541_v6 = vadd.f32 %v361_v24, %v166_v45 }
 0x161   :  { %v363_v27 = vpop.f32.mrf.mxu0 }
 0x163   :  { %v367_v28 = vpop.f32.mrf.mxu0 }
 0x164   :  { %v1546_v20 = vadd.f32 %v367_v28, %v171_v31 }
 0x165   :  { %v369_v29 = vpop.f32.mrf.mxu0 }
 0x166   :  { %v1550_v17 = vadd.f32 %v369_v29, %v171_v31 }
 0x167   :  { %v373_v32 = vpop.f32.mrf.mxu0 }
 0x168   :  { %v1552_v18 = vadd.f32 %v373_v32, %v176_v30 }
 0x169   :  { %v375_v33 = vpop.f32.mrf.mxu0 }
 0x16b   :  { %v379_v34 = vpop.f32.mrf.mxu0 }
 0x16d   :  { %v381_v37 = vpop.f32.mrf.mxu0 }
 0x16f   :  { %v385_v38 = vpop.f32.mrf.mxu0 }
 0x171   :  { %v1497_v39 = vpop.f32.mrf.mxu0 }
 0x173   :  { %v1503_v42 = vpop.f32.mrf.mxu0 }
 0x174   :  { %1862 = vst [vmem:[#allocation16_spill] sm:$0xff] %v1503_v42  ;;  %v1535_v42 = vadd.f32 %v351_v19, %v156_v51  ;;  %v1554_v19 = vadd.f32 %v375_v33, %v176_v30 }
 0x175   :  { %v1505_v43 = vpop.f32.mrf.mxu0 }
 0x177   :  { %v1507_v44 = vpop.f32.mrf.mxu0 }
 0x178   :  { %1863 = vst [vmem:[#allocation17_spill] sm:$0xff] %v1507_v44  ;;  %v1544_v44 = vadd.f32 %v363_v27, %v166_v45 }
 0x179   :  { %v1509_v47 = vpop.f32.mrf.mxu0 }
 0x17b   :  { %v1511_v48 = vpop.f32.mrf.mxu0 }
 0x17d   :  { %v405_v49 = vpop.f32.mrf.mxu0 }
 0x17e   :  { %v406_v33 = vadd.f32 %v405_v49, %v1459_v2 }
 0x17f   :  { %v409_v53 = vpop.f32.mrf.mxu0 }
 0x181   :  { %v411_v54 = vpop.f32.mrf.mxu0 }
 0x182   :  { %v412_v29 = vadd.f32 %v411_v54, %v1457_v1  ;;  %v1872_v54 = vld [vmem:[#allocation16_spill] sm:$0xff] }
 0x183   :  { %v415_v36 = vpop.f32.mrf.mxu0 }
 0x184   :  { %v416_v28 = vadd.f32 %v415_v36, %v1447_v60 }
 0x185   :  { %v417_v40 = vpop.f32.mrf.mxu0 }
 0x186   :  { %v418_v24 = vadd.f32 %v417_v40, %v1447_v60  ;;  %v557_v40 = vmul.f32 %v1465_v5, %v412_v29 }
 0x187   :  { %v421_v26 = vpop.f32.mrf.mxu0 }
 0x188   :  { %v422_v22 = vadd.f32 %v421_v26, %v1445_v59 }
 0x189   :  { %v423_v25 = vpop.f32.mrf.mxu0 }
 0x18a   :  { %v424_v10 = vadd.f32 %v423_v25, %v1445_v59  ;;  %v560_v60 = vmul.f32 %v1453_v63, %v422_v22 }
 0x18b   :  { %v427_v9 = vpop.f32.mrf.mxu0 }
 0x18c   :  { %v428_v21 = vadd.f32 %v427_v9, %v1441_v57  ;;  %v1558_v9 = vadd.f32 %v379_v34, %v1483_v16  ;;  %v561_v30 = vmul.f32 %v1453_v63, %v424_v10  ;;  %v410_v34 = vadd.f32 %v409_v53, %v1457_v1 }
 0x18d   :  { %v429_v13 = vpop.f32.mrf.mxu0  ;;  %v400_v63 = vadd.f32 %v1509_v47, %v1469_v7 }
 0x18e   :  { %v430_v14 = vadd.f32 %v429_v13, %v1441_v57  ;;  %v1564_v57 = vadd.f32 %v381_v37, %v1483_v16  ;;  %v1567_v13 = vadd.f32 %v385_v38, %v1481_v15  ;;  %v562_v59 = vmul.f32 %v1443_v58, %v428_v21 }
 0x18f   :  { %v433_v23 = vpop.f32.mrf.mxu0  ;;  %v388_v16 = vadd.f32 %v1497_v39, %v1481_v15  ;;  %v404_v15 = vadd.f32 %v1511_v48, %v1459_v2  ;;  %v558_v39 = vmul.f32 %v1455_v0, %v416_v28  ;;  %v689_v45 = vadd.f32 %v1461_v3, %v561_v30  ;;  %v1877_v30 = vld [vmem:[#allocation5_spill] sm:$0xff] }
 0x190   :  { %v563_v27 = vmul.f32 %v1443_v58, %v430_v14  ;;  %v434_v25 = vadd.f32 %v433_v23, %v1437_v55  ;;  %v559_v58 = vmul.f32 %v1455_v0, %v418_v24  ;;  %v690_v1 = vadd.f32 %v1451_v62, %v562_v59  ;;  %v1870_v0 = vld [vmem:[#allocation3_spill] sm:$0xff]  ;;  %v1875_v59 = vld [vmem:[#allocation22_spill] sm:$0xff] }
 0x191   :  { %v435_v26 = vpop.f32.mrf.mxu0  ;;  %v688_v2 = vadd.f32 %v1461_v3, %v560_v60  ;;  %v555_v50 = vmul.f32 %v1870_v0, %v406_v33  ;;  %v392_v21 = vadd.f32 %v1872_v54, %v1471_v8  ;;  %v554_v10 = vmul.f32 %v1870_v0, %v404_v15  ;;  %v1879_v15 = vld [vmem:[#allocation8_spill] sm:$0xff] }
 0x192   :  { %v564_v31 = vmul.f32 %v1439_v56, %v434_v25  ;;  %v436_v32 = vadd.f32 %v435_v26, %v1437_v55  ;;  %v691_v36 = vadd.f32 %v1451_v62, %v563_v27  ;;  %v394_v55 = vadd.f32 %v1505_v43, %v1471_v8  ;;  %v1871_v62 = vld [vmem:[#allocation2_spill] sm:$0xff]  ;;  %v1876_v8 = vld [vmem:[#allocation7_spill] sm:$0xff] }
 0x193   :  { %v556_v43 = vmul.f32 %v1465_v5, %v410_v34  ;;  %v687_v51 = vadd.f32 %v1871_v62, %v559_v58  ;;  %v722_v14 = vmax.f32 %v690_v1, 0.0  ;;  %v1874_v5 = vld [vmem:[#allocation4_spill] sm:$0xff]  ;;  %v721_v3 = vmax.f32 %v689_v45, 0.0  ;;  %v1614_v34 = vpop.permute.xlu1 %599 }
 0x194   :  { %v692_v37 = vadd.f32 %v1449_v61, %v564_v31  ;;  %v565_v38 = vmul.f32 %v1439_v56, %v436_v32  ;;  %v1869_v56 = vld [vmem:[#allocation17_spill] sm:$0xff]  ;;  %v723_v53 = vmax.f32 %v691_v36, 0.0  ;;  %v685_v23 = vadd.f32 %v1874_v5, %v557_v40 }
 0x195   :  { %v398_v49 = vadd.f32 %v1869_v56, %v1469_v7  ;;  %v1873_v7 = vld [vmem:[#allocation6_spill] sm:$0xff]  ;;  %v684_v25 = vadd.f32 %v1874_v5, %v556_v43  ;;  %v720_v28 = vmax.f32 %v688_v2, 0.0  ;;  %v551_v29 = vmul.f32 %v1876_v8, %v394_v55  ;;  %v1881_v43 = vld [vmem:[#allocation9_spill] sm:$0xff] }
 0x196   :  { %v693_v46 = vadd.f32 %v1449_v61, %v565_v38  ;;  %v724_v48 = vmax.f32 %v692_v37, 0.0  ;;  %v686_v61 = vadd.f32 %v1871_v62, %v558_v39  ;;  %v553_v22 = vmul.f32 %v1873_v7, %v400_v63  ;;  %v1878_v38 = vld [vmem:[#allocation10_spill] sm:$0xff] }
 0x197   :  { %v552_v27 = vmul.f32 %v1873_v7, %v398_v49  ;;  %v683_v31 = vadd.f32 %v1877_v30, %v555_v50  ;;  %v719_v32 = vmax.f32 %v687_v51, 0.0  ;;  %v766_v33 = vmul.f32 %v1527_v52, %v723_v53  ;;  %v1880_v49 = vld [vmem:[#allocation11_spill] sm:$0xff]  ;;  %v1882_v53 = vld [vmem:[#allocation14_spill] sm:$0xff] }
 0x198   :  { %v725_v47 = vmax.f32 %v693_v46, 0.0  ;;  %v767_v26 = vmul.f32 %v1875_v59, %v724_v48  ;;  %v550_v60 = vmul.f32 %v1876_v8, %v392_v21  ;;  %v682_v58 = vadd.f32 %v1877_v30, %v554_v10  ;;  %v1886_v8 = vld [vmem:[#allocation20_spill] sm:$0xff] }
 0x199   :  { %v718_v36 = vmax.f32 %v686_v61, 0.0  ;;  %v765_v37 = vmul.f32 %v1875_v59, %v722_v14  ;;  %v549_v55 = vmul.f32 %v1878_v38, %v388_v16  ;;  %v681_v39 = vadd.f32 %v1879_v15, %v553_v22  ;;  %v462_v61 = vpop.permute.xlu1 %461 }
 0x19a   :  { %v768_v24 = vmul.f32 %v1527_v52, %v725_v47  ;;  %v717_v1 = vmax.f32 %v685_v23, 0.0  ;;  %v764_v63 = vmul.f32 %v1527_v52, %v721_v3  ;;  %v548_v40 = vmul.f32 %v1878_v38, %v1567_v13  ;;  %v1883_v47 = vld [vmem:[#allocation12_spill] sm:$0xff]  ;;  %v1885_v23 = vld [vmem:[#allocation13_spill] sm:$0xff]  ;;  %v1889_v38 = vld [vmem:[#allocation19_spill] sm:$0xff] }
 0x19b   :  { %v680_v45 = vadd.f32 %v1879_v15, %v552_v27  ;;  %v716_v46 = vmax.f32 %v684_v25, 0.0  ;;  %v763_v56 = vmul.f32 %v1875_v59, %v720_v28  ;;  %v547_v16 = vmul.f32 %v1880_v49, %v1564_v57 }
 0x19c   :  { %781 = vmatprep.subr.mxu0 %v768_v24  ;;  %1054 = vmatprep.subr.mxu1 %v768_v24  ;;  %v679_v2 = vadd.f32 %v1881_v43, %v551_v29  ;;  %v715_v48 = vmax.f32 %v683_v31, 0.0  ;;  %v762_v0 = vmul.f32 %v1527_v52, %v719_v32  ;;  %v546_v13 = vmul.f32 %v1880_v49, %v1558_v9  ;;  %v1887_v29 = vld [vmem:[#allocation18_spill] sm:$0xff] }
 0x19d   :  { %782 = vmatpush1.msra.mxu0 %v767_v26  ;;  %1070 = vmatpush1.msra.mxu1 %v767_v26  ;;  %v678_v50 = vadd.f32 %v1881_v43, %v550_v60  ;;  %v714_v62 = vmax.f32 %v682_v58, 0.0  ;;  %v761_v51 = vmul.f32 %v1875_v59, %v718_v36  ;;  %v545_v57 = vmul.f32 %v1882_v53, %v1554_v19  ;;  %v1884_v19 = vld [vmem:[#allocation15_spill] sm:$0xff] }
 0x19e   :  { %783 = vmatprep.subr.mxu0 %v766_v33  ;;  %1055 = vmatprep.subr.mxu1 %v766_v33  ;;  %v677_v54 = vadd.f32 %v1883_v47, %v549_v55  ;;  %v713_v21 = vmax.f32 %v681_v39, 0.0  ;;  %v760_v10 = vmul.f32 %v1527_v52, %v717_v1  ;;  %v544_v9 = vmul.f32 %v1882_v53, %v1552_v18  ;;  %v595_v33 = vpop.permute.xlu0 %594  ;;  %v457_v1 = vpop.permute.xlu1 %456 }
 0x19f   :  { %784 = vmatpush1.msra.mxu0 %v765_v37  ;;  %1071 = vmatpush1.msra.mxu1 %v765_v37  ;;  %v676_v14 = vadd.f32 %v1883_v47, %v548_v40  ;;  %v712_v7 = vmax.f32 %v680_v45, 0.0  ;;  %v759_v22 = vmul.f32 %v1875_v59, %v716_v46  ;;  %v543_v5 = vmul.f32 %v1884_v19, %v1550_v17 }
 0x1a0   :  { %785 = vmatprep.subr.mxu0 %v764_v63  ;;  %1056 = vmatprep.subr.mxu1 %v764_v63  ;;  %v675_v3 = vadd.f32 %v1885_v23, %v547_v16  ;;  %v711_v24 = vmax.f32 %v679_v2, 0.0  ;;  %v758_v27 = vmul.f32 %v1527_v52, %v715_v48  ;;  %v542_v18 = vmul.f32 %v1884_v19, %v1546_v20 }
 0x1a1   :  { %786 = vmatpush1.msra.mxu0 %v763_v56  ;;  %1072 = vmatpush1.msra.mxu1 %v763_v56  ;;  %v674_v25 = vadd.f32 %v1885_v23, %v546_v13  ;;  %v710_v28 = vmax.f32 %v678_v50, 0.0  ;;  %v757_v26 = vmul.f32 %v1875_v59, %v714_v62  ;;  %v541_v17 = vmul.f32 %v1886_v8, %v1544_v44  ;;  %v1888_v44 = vld [vmem:[#allocation21_spill] sm:$0xff] }
 0x1a2   :  { %787 = vmatprep.subr.mxu0 %v762_v0  ;;  %1057 = vmatprep.subr.mxu1 %v762_v0  ;;  %v673_v30 = vadd.f32 %v1887_v29, %v545_v57  ;;  %v709_v31 = vmax.f32 %v677_v54, 0.0  ;;  %v756_v32 = vmul.f32 %v1527_v52, %v713_v21  ;;  %v540_v20 = vmul.f32 %v1886_v8, %v1541_v6  ;;  %v590_v50 = vpop.permute.xlu0 %589  ;;  %v585_v47 = vpop.permute.xlu1 %584 }
 0x1a3   :  { %788 = vmatpush1.msra.mxu0 %v761_v51  ;;  %1073 = vmatpush1.msra.mxu1 %v761_v51  ;;  %v672_v60 = vadd.f32 %v1887_v29, %v544_v9  ;;  %v708_v58 = vmax.f32 %v676_v14, 0.0  ;;  %v755_v36 = vmul.f32 %v1875_v59, %v712_v7  ;;  %v539_v37 = vmul.f32 %v1888_v44, %v1539_v4  ;;  %v769_v29 = vld [vmem:[%s1824_s7] sm:$0xff] }
 0x1a4   :  { %789 = vmatprep.subr.mxu0 %v760_v10  ;;  %1058 = vmatprep.subr.mxu1 %v760_v10  ;;  %v671_v55 = vadd.f32 %v1889_v38, %v543_v5  ;;  %v707_v15 = vmax.f32 %v675_v3, 0.0  ;;  %v754_v39 = vmul.f32 %v1527_v52, %v711_v24  ;;  %v538_v6 = vmul.f32 %v1888_v44, %v1537_v11  ;;  %v777_v44 = vld [vmem:[%s1824_s7 + $0x40] sm:$0xff] }
 0x1a5   :  { %790 = vmatpush1.msra.mxu0 %v759_v22  ;;  %1074 = vmatpush1.msra.mxu1 %v759_v22  ;;  %v670_v63 = vadd.f32 %v1889_v38, %v542_v18  ;;  %v706_v40 = vmax.f32 %v674_v25, 0.0  ;;  %v753_v45 = vmul.f32 %v1875_v59, %v710_v28  ;;  %v537_v4 = vmul.f32 %v462_v61, %v1535_v42  ;;  %v779_v38 = vld [vmem:[%s1824_s7 + $0x50] sm:$0xff] }
 0x1a6   :  { %791 = vmatprep.subr.mxu0 %v758_v27  ;;  %1059 = vmatprep.subr.mxu1 %v758_v27  ;;  %v669_v46 = vadd.f32 %v1614_v34, %v541_v17  ;;  %v705_v56 = vmax.f32 %v673_v30, 0.0  ;;  %v752_v49 = vmul.f32 %v1527_v52, %v709_v31  ;;  %v536_v16 = vmul.f32 %v462_v61, %v1533_v35  ;;  %v770_v30 = vld [vmem:[%s1824_s7 + $0x8] sm:$0xff] }
 0x1a7   :  { %792 = vmatpush1.msra.mxu0 %v757_v26  ;;  %1075 = vmatpush1.msra.mxu1 %v757_v26  ;;  %v668_v11 = vadd.f32 %v1614_v34, %v540_v20  ;;  %v704_v43 = vmax.f32 %v672_v60, 0.0  ;;  %v751_v2 = vmul.f32 %v1875_v59, %v708_v58  ;;  %v535_v48 = vmul.f32 %v457_v1, %v1531_v41  ;;  %v773_v20 = vld [vmem:[%s1824_s7 + $0x20] sm:$0xff]  ;;  %v774_v60 = vld [vmem:[%s1824_s7 + $0x28] sm:$0xff]  ;;  %v775_v58 = vld [vmem:[%s1824_s7 + $0x30] sm:$0xff] }
 0x1a8   :  { %793 = vmatprep.subr.mxu0 %v756_v32  ;;  %1060 = vmatprep.subr.mxu1 %v756_v32  ;;  %v667_v0 = vadd.f32 %v595_v33, %v539_v37  ;;  %v703_v42 = vmax.f32 %v671_v55, 0.0  ;;  %v750_v13 = vmul.f32 %v1527_v52, %v707_v15  ;;  %v534_v62 = vmul.f32 %v457_v1, %v1529_v12  ;;  %v771_v32 = vld [vmem:[%s1824_s7 + $0x10] sm:$0xff]  ;;  %v778_v37 = vld [vmem:[%s1824_s7 + $0x48] sm:$0xff]  ;;  %v780_v55 = vld [vmem:[%s1824_s7 + $0x58] sm:$0xff] }
 0x1a9   :  { %794 = vmatpush1.msra.mxu0 %v755_v36  ;;  %1076 = vmatpush1.msra.mxu1 %v755_v36  ;;  %v666_v51 = vadd.f32 %v595_v33, %v538_v6  ;;  %v702_v35 = vmax.f32 %v670_v63, 0.0  ;;  %v749_v34 = vmul.f32 %v1875_v59, %v706_v40  ;;  %v665_v53 = vadd.f32 %v590_v50, %v537_v4  ;;  %v772_v33 = vld [vmem:[%s1824_s7 + $0x18] sm:$0xff] }
 0x1aa   :  { %795 = vmatprep.subr.mxu0 %v754_v39  ;;  %1061 = vmatprep.subr.mxu1 %v754_v39  ;;  %v701_v57 = vmax.f32 %v669_v46, 0.0  ;;  %v748_v41 = vmul.f32 %v1527_v52, %v705_v56  ;;  %v664_v54 = vadd.f32 %v590_v50, %v536_v16  ;;  %v700_v21 = vmax.f32 %v668_v11, 0.0  ;;  %v776_v36 = vld [vmem:[%s1824_s7 + $0x38] sm:$0xff]  ;;  %s1095_s7 = smov 127  }
 0x1ab   :  { %796 = vmatpush1.msra.mxu0 %v753_v45  ;;  %1077 = vmatpush1.msra.mxu1 %v753_v45  ;;  %v747_v10 = vmul.f32 %v1875_v59, %v704_v43  ;;  %v663_v12 = vadd.f32 %v585_v47, %v535_v48  ;;  %v699_v61 = vmax.f32 %v667_v0, 0.0  ;;  %v746_v9 = vmul.f32 %v1527_v52, %v703_v42 }
 0x1ac   :  { %797 = vmatprep.subr.mxu0 %v752_v49  ;;  %1062 = vmatprep.subr.mxu1 %v752_v49  ;;  %v662_v14 = vadd.f32 %v585_v47, %v534_v62  ;;  %v698_v7 = vmax.f32 %v666_v51, 0.0  ;;  %v745_v22 = vmul.f32 %v1875_v59, %v702_v35  ;;  %v697_v19 = vmax.f32 %v665_v53, 0.0  ;;  %v977_v53 = vpop.permute.xlu0 %976 }
 0x1ad   :  { %798 = vmatpush1.msra.mxu0 %v751_v2  ;;  %1078 = vmatpush1.msra.mxu1 %v751_v2  ;;  %v744_v5 = vmul.f32 %v1527_v52, %v701_v57  ;;  %v696_v23 = vmax.f32 %v664_v54, 0.0  ;;  %v743_v3 = vmul.f32 %v1875_v59, %v700_v21  ;;  %v695_v24 = vmax.f32 %v663_v12, 0.0  ;;  %v982_v57 = vpop.permute.xlu1 %981 }
 0x1ae   :  { %799 = vmatprep.subr.mxu0 %v750_v13  ;;  %1063 = vmatprep.subr.mxu1 %v750_v13  ;;  %v742_v27 = vmul.f32 %v1527_v52, %v699_v61  ;;  %v694_v18 = vmax.f32 %v662_v14, 0.0  ;;  %v741_v25 = vmul.f32 %v1875_v59, %v698_v7  ;;  %v740_v28 = vmul.f32 %v1527_v52, %v697_v19 }
 0x1af   :  { %800 = vmatpush1.msra.mxu0 %v749_v34  ;;  %1079 = vmatpush1.msra.mxu1 %v749_v34  ;;  %v739_v26 = vmul.f32 %v1875_v59, %v696_v23  ;;  %v738_v8 = vmul.f32 %v1527_v52, %v695_v24  ;;  %v1890_v31 = vmov 0.0   ;;  %v1891_v61 = vlaneseq }
 0x1b0   :  { %801 = vmatprep.subr.mxu0 %v748_v41  ;;  %1064 = vmatprep.subr.mxu1 %v748_v41  ;;  %v737_v17 = vmul.f32 %v1875_v59, %v694_v18  ;;  %v987_v41 = vpop.permute.xlu0 %986 }
 0x1b1   :  { %802 = vmatpush1.msra.mxu0 %v747_v10  ;;  %1080 = vmatpush1.msra.mxu1 %v747_v10  ;;  %v992_v47 = vpop.permute.xlu1 %991 }
 0x1b2   :  { %803 = vmatprep.subr.mxu0 %v746_v9  ;;  %1065 = vmatprep.subr.mxu1 %v746_v9  ;;  %v1743_v9 = vand.u32 127, %v1891_v61 }
 0x1b3   :  { %804 = vmatpush1.msra.mxu0 %v745_v22  ;;  %1081 = vmatpush1.msra.mxu1 %v745_v22 }
 0x1b4   :  { %805 = vmatprep.subr.mxu0 %v744_v5  ;;  %1066 = vmatprep.subr.mxu1 %v744_v5  ;;  %vm936_vm1 = vcmp.lt.s32.totalorder %v1743_v9, 1  ;;  %vm961_vm2 = vcmp.lt.s32.totalorder %v1743_v9, 127 }
 0x1b5   :  { %806 = vmatpush1.msra.mxu0 %v743_v3  ;;  %1082 = vmatpush1.msra.mxu1 %v743_v3 }
 0x1b6   :  { %807 = vmatprep.subr.mxu0 %v742_v27  ;;  %1067 = vmatprep.subr.mxu1 %v742_v27 }
 0x1b7   :  { %808 = vmatpush1.msra.mxu0 %v741_v25  ;;  %1083 = vmatpush1.msra.mxu1 %v741_v25 }
 0x1b8   :  { %809 = vmatprep.subr.mxu0 %v740_v28  ;;  %1068 = vmatprep.subr.mxu1 %v740_v28 }
 0x1b9   :  { %810 = vmatpush1.msra.mxu0 %v739_v26  ;;  %1084 = vmatpush1.msra.mxu1 %v739_v26 }
 0x1ba   :  { %811 = vmatprep.subr.mxu0 %v738_v8  ;;  %1069 = vmatprep.subr.mxu1 %v738_v8 }
 0x1bb   :  { %812 = vmatpush1.msra.mxu0 %v737_v17  ;;  %1085 = vmatpush1.msra.mxu1 %v737_v17 }
 0x1bc   :  { %846 = vmatmul.mubr.f32.vlgmr.msra.gmra.mxu0 %v769_v29  ;;  %852 = vmatmul.mubr.f32.vlgmr.msra.gmra.mxu1 %v770_v30 }
 0x1bd   :  { %857 = vmatprep.mubr.f32.mxu1 %v1890_v31 }
 0x1c0   :  { %858 = vmatmul.mubr.f32.gmra.mxu1 %v771_v32 }
 0x1c1   :  { %863 = vmatprep.mubr.f32.mxu1 %v1890_v31 }
 0x1c4   :  { %864 = vmatmul.mubr.f32.gmra.mxu1 %v772_v33 }
 0x1c5   :  { %869 = vmatprep.mubr.f32.mxu1 %v1890_v31 }
 0x1c8   :  { %870 = vmatmul.mubr.f32.gmra.mxu1 %v773_v20 }
 0x1c9   :  { %875 = vmatprep.mubr.f32.mxu1 %v1890_v31 }
 0x1cc   :  { %876 = vmatmul.mubr.f32.gmra.mxu1 %v774_v60 }
 0x1cd   :  { %881 = vmatprep.mubr.f32.mxu1 %v1890_v31 }
 0x1d0   :  { %882 = vmatmul.mubr.f32.gmra.mxu1 %v775_v58 }
 0x1d1   :  { %887 = vmatprep.mubr.f32.mxu1 %v1890_v31 }
 0x1d4   :  { %888 = vmatmul.mubr.f32.gmra.mxu1 %v776_v36 }
 0x1d5   :  { %893 = vmatprep.mubr.f32.mxu1 %v1890_v31 }
 0x1d8   :  { %894 = vmatmul.mubr.f32.gmra.mxu1 %v777_v44 }
 0x1d9   :  { %899 = vmatprep.mubr.f32.mxu1 %v1890_v31 }
 0x1dc   :  { %900 = vmatmul.mubr.f32.gmra.mxu1 %v778_v37 }
 0x1dd   :  { %905 = vmatprep.mubr.f32.mxu1 %v1890_v31 }
 0x1e0   :  { %906 = vmatmul.mubr.f32.gmra.mxu1 %v779_v38 }
 0x1e1   :  { %911 = vmatprep.mubr.f32.mxu1 %v1890_v31 }
 0x1e4   :  { %912 = vmatmul.mubr.f32.gmra.mxu1 %v780_v55 }
 0x27c   :  { %v847_v15 = vpop.f32.mrf.mxu0  ;;  %v853_v39 = vpop.f32.mrf.mxu1 }
 0x27d   :  { %920 = vrot.lane.b32.xlu1 %v853_v39, %s1094_s2  ;;  %918 = vrot.lane.b32.xlu0 %v847_v15, %s1094_s2 }
 0x27e   :  { %v855_v1 = vpop.f32.mrf.mxu1  ;;  %v849_v6 = vpop.f32.mrf.mxu0 }
 0x280   :  { %v859_v63 = vpop.f32.mrf.mxu1 }
 0x281   :  { %928 = vrot.lane.b32.xlu1 %v855_v1, %s1094_s2  ;;  %926 = vrot.lane.b32.xlu0 %v849_v6, %s1094_s2 }
 0x282   :  { %v861_v40 = vpop.f32.mrf.mxu1 }
 0x284   :  { %v865_v45 = vpop.f32.mrf.mxu1 }
 0x285   :  { %924 = vrot.lane.b32.xlu1 %v865_v45, %s1094_s2  ;;  %922 = vrot.lane.b32.xlu0 %v859_v63, %s1094_s2 }
 0x286   :  { %v867_v4 = vpop.f32.mrf.mxu1 }
 0x288   :  { %v871_v46 = vpop.f32.mrf.mxu1 }
 0x289   :  { %932 = vrot.lane.b32.xlu1 %v867_v4, %s1094_s2  ;;  %930 = vrot.lane.b32.xlu0 %v861_v40, %s1094_s2 }
 0x28a   :  { %v873_v56 = vpop.f32.mrf.mxu1 }
 0x28c   :  { %v877_v49 = vpop.f32.mrf.mxu1 }
 0x28e   :  { %v879_v16 = vpop.f32.mrf.mxu1 }
 0x290   :  { %v1734_v11 = vpop.f32.mrf.mxu1 }
 0x292   :  { %v1736_v43 = vpop.f32.mrf.mxu1 }
 0x294   :  { %v1738_v2 = vpop.f32.mrf.mxu1 }
 0x296   :  { %v1740_v48 = vpop.f32.mrf.mxu1 }
 0x298   :  { %v895_v0 = vpop.f32.mrf.mxu1 }
 0x299   :  { %945 = vrot.lane.b32.xlu0 %v895_v0, %s1095_s7 }
 0x29a   :  { %v897_v42 = vpop.f32.mrf.mxu1 }
 0x29c   :  { %v901_v13 = vpop.f32.mrf.mxu1 }
 0x29d   :  { %947 = vrot.lane.b32.xlu1 %v901_v13, %s1095_s7  ;;  %953 = vrot.lane.b32.xlu0 %v897_v42, %s1095_s7 }
 0x29e   :  { %v903_v50 = vpop.f32.mrf.mxu1 }
 0x2a0   :  { %v907_v62 = vpop.f32.mrf.mxu1 }
 0x2a1   :  { %955 = vrot.lane.b32.xlu1 %v903_v50, %s1095_s7  ;;  %949 = vrot.lane.b32.xlu0 %v907_v62, %s1095_s7 }
 0x2a2   :  { %v909_v51 = vpop.f32.mrf.mxu1 }
 0x2a4   :  { %v913_v35 = vpop.f32.mrf.mxu1 }
 0x2a5   :  { %951 = vrot.lane.b32.xlu1 %v913_v35, %s1095_s7  ;;  %957 = vrot.lane.b32.xlu0 %v909_v51, %s1095_s7 }
 0x2a6   :  { %v915_v34 = vpop.f32.mrf.mxu1 }
 0x2a9   :  { %959 = vrot.lane.b32.xlu1 %v915_v34, %s1095_s7 }
 0x2ef   :  { %v919_v54 = vpop.permute.xlu0 %918  ;;  %v921_v21 = vpop.permute.xlu1 %920 }
 0x2f3   :  { %v927_v10 = vpop.permute.xlu0 %926  ;;  %v929_v12 = vpop.permute.xlu1 %928 }
 0x2f4   :  { %v937_v19 = vsel %vm936_vm1, %v919_v54, %v927_v10  ;;  %v941_v5 = vsel %vm936_vm1, %v927_v10, %v919_v54  ;;  %v938_v23 = vsel %vm936_vm1, %v921_v21, %v929_v12  ;;  %v942_v3 = vsel %vm936_vm1, %v929_v12, %v921_v21 }
 0x2f5   :  { %v994_v24 = vadd.f32 %v977_v53, %v941_v5  ;;  %v995_v27 = vadd.f32 %v977_v53, %v937_v19  ;;  %v996_v28 = vadd.f32 %v982_v57, %v942_v3  ;;  %v997_v26 = vadd.f32 %v982_v57, %v938_v23 }
 0x2f7   :  { %v923_v14 = vpop.permute.xlu0 %922  ;;  %v925_v7 = vpop.permute.xlu1 %924  ;;  %v1002_v17 = vadd.f32 %v994_v24, %v871_v46  ;;  %v1003_v29 = vadd.f32 %v995_v27, %v873_v56  ;;  %v1004_v37 = vadd.f32 %v996_v28, %v877_v49  ;;  %v1005_v38 = vadd.f32 %v997_v26, %v879_v16 }
 0x2fb   :  { %v931_v22 = vpop.permute.xlu0 %930  ;;  %v933_v18 = vpop.permute.xlu1 %932 }
 0x2fc   :  { %v939_v31 = vsel %vm936_vm1, %v923_v14, %v931_v22  ;;  %v943_v32 = vsel %vm936_vm1, %v931_v22, %v923_v14  ;;  %v940_v36 = vsel %vm936_vm1, %v925_v7, %v933_v18  ;;  %v944_v44 = vsel %vm936_vm1, %v933_v18, %v925_v7 }
 0x2fd   :  { %v998_v55 = vadd.f32 %v987_v41, %v943_v32  ;;  %v999_v15 = vadd.f32 %v987_v41, %v939_v31  ;;  %v1000_v56 = vadd.f32 %v992_v47, %v944_v44  ;;  %v1001_v49 = vadd.f32 %v992_v47, %v940_v36 }
 0x2ff   :  { %v1006_v13 = vadd.f32 %v998_v55, %v1734_v11  ;;  %v1007_v50 = vadd.f32 %v999_v15, %v1736_v43  ;;  %v1008_v57 = vadd.f32 %v1000_v56, %v1738_v2  ;;  %v1009_v41 = vadd.f32 %v1001_v49, %v1740_v48 }
 0x30b   :  { %v946_v25 = vpop.permute.xlu0 %945 }
 0x30f   :  { %v948_v8 = vpop.permute.xlu1 %947  ;;  %v954_v30 = vpop.permute.xlu0 %953 }
 0x310   :  { %v962_v33 = vsel %vm961_vm2, %v946_v25, %v954_v30  ;;  %v966_v20 = vsel %vm961_vm2, %v954_v30, %v946_v25 }
 0x311   :  { %v1010_v60 = vadd.f32 %v1002_v17, %v962_v33  ;;  %v1011_v58 = vadd.f32 %v1003_v29, %v966_v20 }
 0x313   :  { %v1018_v39 = vmul.f32 %v1010_v60, %v1875_v59  ;;  %v1019_v1 = vmul.f32 %v1011_v58, %v1527_v52  ;;  %v956_v6 = vpop.permute.xlu1 %955  ;;  %v950_v63 = vpop.permute.xlu0 %949 }
 0x314   :  { %v963_v40 = vsel %vm961_vm2, %v948_v8, %v956_v6  ;;  %v967_v45 = vsel %vm961_vm2, %v956_v6, %v948_v8 }
 0x315   :  { %1026 = vst [vmem:[%s1825_s10] sm:$0xff] %v1018_v39  ;;  %1027 = vst [vmem:[%s1825_s10 + $0x8] sm:$0xff] %v1019_v1  ;;  %v1012_v4 = vadd.f32 %v1004_v37, %v963_v40  ;;  %v1013_v46 = vadd.f32 %v1005_v38, %v967_v45 }
 0x317   :  { %v1020_v16 = vmul.f32 %v1012_v4, %v1875_v59  ;;  %v1021_v0 = vmul.f32 %v1013_v46, %v1527_v52  ;;  %v952_v42 = vpop.permute.xlu1 %951  ;;  %v958_v62 = vpop.permute.xlu0 %957 }
 0x318   :  { %v964_v51 = vsel %vm961_vm2, %v950_v63, %v958_v62  ;;  %v968_v35 = vsel %vm961_vm2, %v958_v62, %v950_v63 }
 0x319   :  { %1028 = vst [vmem:[%s1825_s10 + $0x10] sm:$0xff] %v1020_v16  ;;  %1029 = vst [vmem:[%s1825_s10 + $0x18] sm:$0xff] %v1021_v0  ;;  %v1014_v34 = vadd.f32 %v1006_v13, %v964_v51  ;;  %v1015_v53 = vadd.f32 %v1007_v50, %v968_v35 }
 0x31b   :  { %v1022_v11 = vmul.f32 %v1014_v34, %v1875_v59  ;;  %v1023_v43 = vmul.f32 %v1015_v53, %v1527_v52  ;;  %v960_v47 = vpop.permute.xlu1 %959 }
 0x31c   :  { %v965_v54 = vsel %vm961_vm2, %v952_v42, %v960_v47  ;;  %v969_v21 = vsel %vm961_vm2, %v960_v47, %v952_v42 }
 0x31d   :  { %1030 = vst [vmem:[%s1825_s10 + $0x20] sm:$0xff] %v1022_v11  ;;  %1031 = vst [vmem:[%s1825_s10 + $0x28] sm:$0xff] %v1023_v43  ;;  %v1016_v10 = vadd.f32 %v1008_v57, %v965_v54  ;;  %v1017_v12 = vadd.f32 %v1009_v41, %v969_v21 }
 0x31f   :  { %v1024_v2 = vmul.f32 %v1016_v10, %v1875_v59  ;;  %v1025_v48 = vmul.f32 %v1017_v12, %v1527_v52 }
 0x321   :  { %1032 = vst [vmem:[%s1825_s10 + $0x30] sm:$0xff] %v1024_v2  ;;  %1033 = vst [vmem:[%s1825_s10 + $0x38] sm:$0xff] %v1025_v48 }

// kernel: dense_block.8
= control target key start
LH: loop header
LB: loop body
LE: loop exit
PB: predicated region body
PF: predicated region fallthrough
CT: control target
= control target key end

     0   :  { %v857_v0 = vmov 0   ;;  %v858_v19 = vmov 0.0   ;;  %vm334_vm0 = vcmask 523264   ;;  %vm29_vm1 = vcmask 7168   ;;  %s1570_s2 = inlined_call_operand.vmem [shape: f32[64,1], index: 2, kind: input, shape index: {}]   ;;  %s1571_s1 = inlined_call_operand.vmem [shape: f32[64,1], index: 1, kind: input, shape index: {}]   ;;  %s1572_s4 = inlined_call_operand.vmem [shape: f32[128,1], index: 4, kind: input, shape index: {}]   ;;  %s1573_s0 = inlined_call_operand.vmem [shape: f32[128,256], index: 0, kind: input, shape index: {}]   ;;  %s1574_s3 = inlined_call_operand.vmem [shape: f32[128,64], index: 3, kind: input, shape index: {}]   ;;  %s1575_s6 = inlined_call_operand.vmem [shape: f32[128,1], index: 6, kind: output, shape index: {0}]   ;;  %s1576_s5 = inlined_call_operand.vmem [shape: f32[1,256], index: 5, kind: input, shape index: {}]   ;;  %s1577_s7 = inlined_call_operand.vmem [shape: f32[128,1], index: 7, kind: output, shape index: {1}]  }
   0x1   :  { %856 = vset.pattern.permute.xlu1 %v857_v0  ;;  %855 = vset.pattern.permute.xlu0 %v857_v0  ;;  %v149_v1 = vld [vmem:[%s1570_s2 + $0x38] sm:$0xff]  ;;  %v84_v3 = vld [vmem:[%s1571_s1 + $0x30] sm:$0xff]  ;;  %v83_v4 = vld [vmem:[%s1571_s1 + $0x28] sm:$0xff]  ;;  %38 = vst.msk [vmem:[%s1575_s6 + $0x40] sm:$0xff] %vm29_vm1, %v858_v19 }
   0x2   :  { %v85_v2 = vld [vmem:[%s1571_s1 + $0x38] sm:$0xff]  ;;  %187 = vperm.xlu1 %856, %v149_v1   ;;  %v148_v5 = vld [vmem:[%s1570_s2 + $0x30] sm:$0xff]  ;;  %v82_v6 = vld [vmem:[%s1571_s1 + $0x20] sm:$0xff]  ;;  %447 = vmatprep.mubr.f32.mxu0 %v858_v19  ;;  %30 = vst.msk [vmem:[%s1575_s6] sm:$0xff] %vm29_vm1, %v858_v19 }
   0x3   :  { %123 = vperm.xlu0 %855, %v85_v2   ;;  %v147_v7 = vld [vmem:[%s1570_s2 + $0x28] sm:$0xff]  ;;  %v81_v8 = vld [vmem:[%s1571_s1 + $0x18] sm:$0xff]  ;;  %v146_v9 = vld [vmem:[%s1570_s2 + $0x20] sm:$0xff]  ;;  %495 = vmatprep.mubr.f32.mxu1 %v858_v19  ;;  %31 = vst.msk [vmem:[%s1575_s6 + $0x8] sm:$0xff] %vm29_vm1, %v858_v19 }
   0x4   :  { %v80_v10 = vld [vmem:[%s1571_s1 + $0x10] sm:$0xff]  ;;  %v145_v11 = vld [vmem:[%s1570_s2 + $0x18] sm:$0xff]  ;;  %v79_v12 = vld [vmem:[%s1571_s1 + $0x8] sm:$0xff]  ;;  %32 = vst.msk [vmem:[%s1575_s6 + $0x10] sm:$0xff] %vm29_vm1, %v858_v19 }
   0x5   :  { %v144_v13 = vld [vmem:[%s1570_s2 + $0x10] sm:$0xff]  ;;  %v78_v14 = vld [vmem:[%s1571_s1] sm:$0xff]  ;;  %v143_v15 = vld [vmem:[%s1570_s2 + $0x8] sm:$0xff]  ;;  %33 = vst.msk [vmem:[%s1575_s6 + $0x18] sm:$0xff] %vm29_vm1, %v858_v19 }
   0x6   :  { %113 = vperm.xlu1 %856, %v83_v4   ;;  %v142_v16 = vld [vmem:[%s1570_s2] sm:$0xff]  ;;  %v239_v18 = vld [vmem:[%s1572_s4 + $0x8] sm:$0xff]  ;;  %v240_v20 = vld [vmem:[%s1572_s4 + $0x10] sm:$0xff]  ;;  %34 = vst.msk [vmem:[%s1575_s6 + $0x20] sm:$0xff] %vm29_vm1, %v858_v19 }
   0x7   :  { %118 = vperm.xlu0 %855, %v84_v3   ;;  %v238_v17 = vld [vmem:[%s1572_s4] sm:$0xff]  ;;  %v241_v21 = vld [vmem:[%s1572_s4 + $0x18] sm:$0xff]  ;;  %v243_v23 = vld [vmem:[%s1572_s4 + $0x28] sm:$0xff]  ;;  %35 = vst.msk [vmem:[%s1575_s6 + $0x28] sm:$0xff] %vm29_vm1, %v858_v19 }
   0x8   :  { %v242_v22 = vld [vmem:[%s1572_s4 + $0x20] sm:$0xff]  ;;  %v244_v24 = vld [vmem:[%s1572_s4 + $0x30] sm:$0xff]  ;;  %v245_v25 = vld [vmem:[%s1572_s4 + $0x38] sm:$0xff]  ;;  %36 = vst.msk [vmem:[%s1575_s6 + $0x30] sm:$0xff] %vm29_vm1, %v858_v19 }
   0x9   :  { %v246_v26 = vld [vmem:[%s1572_s4 + $0x40] sm:$0xff]  ;;  %v247_v27 = vld [vmem:[%s1572_s4 + $0x48] sm:$0xff]  ;;  %v248_v28 = vld [vmem:[%s1572_s4 + $0x50] sm:$0xff]  ;;  %37 = vst.msk [vmem:[%s1575_s6 + $0x38] sm:$0xff] %vm29_vm1, %v858_v19 }
   0xa   :  { %108 = vperm.xlu1 %856, %v82_v6   ;;  %v249_v29 = vld [vmem:[%s1572_s4 + $0x58] sm:$0xff]  ;;  %v250_v30 = vld [vmem:[%s1572_s4 + $0x60] sm:$0xff]  ;;  %v251_v31 = vld [vmem:[%s1572_s4 + $0x68] sm:$0xff]  ;;  %39 = vst.msk [vmem:[%s1575_s6 + $0x48] sm:$0xff] %vm29_vm1, %v858_v19 }
   0xb   :  { %182 = vperm.xlu0 %855, %v148_v5   ;;  %v252_v32 = vld [vmem:[%s1572_s4 + $0x70] sm:$0xff]  ;;  %v253_v33 = vld [vmem:[%s1572_s4 + $0x78] sm:$0xff]  ;;  %v74_v43 = vld [vmem:[%s1573_s0 + $0x60] sm:$0xff]  ;;  %40 = vst.msk [vmem:[%s1575_s6 + $0x50] sm:$0xff] %vm29_vm1, %v858_v19 }
   0xc   :  { %v76_v34 = vld [vmem:[%s1573_s0 + $0x70] sm:$0xff]  ;;  %v77_v35 = vld [vmem:[%s1573_s0 + $0x78] sm:$0xff]  ;;  %v75_v44 = vld [vmem:[%s1573_s0 + $0x68] sm:$0xff]  ;;  %41 = vst.msk [vmem:[%s1575_s6 + $0x58] sm:$0xff] %vm29_vm1, %v858_v19 }
   0xd   :  { %v72_v50 = vld [vmem:[%s1573_s0 + $0x50] sm:$0xff]  ;;  %v73_v51 = vld [vmem:[%s1573_s0 + $0x58] sm:$0xff]  ;;  %v70_v60 = vld [vmem:[%s1573_s0 + $0x40] sm:$0xff]  ;;  %42 = vst.msk [vmem:[%s1575_s6 + $0x60] sm:$0xff] %vm29_vm1, %v858_v19 }
   0xe   :  { %103 = vperm.xlu1 %856, %v81_v8   ;;  %v71_v61 = vld [vmem:[%s1573_s0 + $0x48] sm:$0xff]  ;;  %v68_v6 = vld [vmem:[%s1573_s0 + $0x30] sm:$0xff]  ;;  %43 = vst.msk [vmem:[%s1575_s6 + $0x68] sm:$0xff] %vm29_vm1, %v858_v19  ;;  %44 = vst.msk [vmem:[%s1575_s6 + $0x70] sm:$0xff] %vm29_vm1, %v858_v19 }
   0xf   :  { %177 = vperm.xlu0 %855, %v147_v7   ;;  %v69_v7 = vld [vmem:[%s1573_s0 + $0x38] sm:$0xff]  ;;  %45 = vst.msk [vmem:[%s1575_s6 + $0x78] sm:$0xff] %vm29_vm1, %v858_v19  ;;  %46 = vst.msk [vmem:[%s1577_s7] sm:$0xff] %vm29_vm1, %v858_v19 }
  0x10   :  { %47 = vst.msk [vmem:[%s1577_s7 + $0x8] sm:$0xff] %vm29_vm1, %v858_v19  ;;  %48 = vst.msk [vmem:[%s1577_s7 + $0x10] sm:$0xff] %vm29_vm1, %v858_v19 }
  0x11   :  { %49 = vst.msk [vmem:[%s1577_s7 + $0x18] sm:$0xff] %vm29_vm1, %v858_v19  ;;  %50 = vst.msk [vmem:[%s1577_s7 + $0x20] sm:$0xff] %vm29_vm1, %v858_v19 }
  0x12   :  { %98 = vperm.xlu1 %856, %v80_v10   ;;  %51 = vst.msk [vmem:[%s1577_s7 + $0x28] sm:$0xff] %vm29_vm1, %v858_v19  ;;  %52 = vst.msk [vmem:[%s1577_s7 + $0x30] sm:$0xff] %vm29_vm1, %v858_v19 }
  0x13   :  { %172 = vperm.xlu0 %855, %v146_v9   ;;  %53 = vst.msk [vmem:[%s1577_s7 + $0x38] sm:$0xff] %vm29_vm1, %v858_v19  ;;  %54 = vst.msk [vmem:[%s1577_s7 + $0x40] sm:$0xff] %vm29_vm1, %v858_v19 }
  0x14   :  { %55 = vst.msk [vmem:[%s1577_s7 + $0x48] sm:$0xff] %vm29_vm1, %v858_v19  ;;  %56 = vst.msk [vmem:[%s1577_s7 + $0x50] sm:$0xff] %vm29_vm1, %v858_v19 }
  0x15   :  { %57 = vst.msk [vmem:[%s1577_s7 + $0x58] sm:$0xff] %vm29_vm1, %v858_v19  ;;  %58 = vst.msk [vmem:[%s1577_s7 + $0x60] sm:$0xff] %vm29_vm1, %v858_v19 }
  0x16   :  { %93 = vperm.xlu1 %856, %v79_v12   ;;  %59 = vst.msk [vmem:[%s1577_s7 + $0x68] sm:$0xff] %vm29_vm1, %v858_v19  ;;  %60 = vst.msk [vmem:[%s1577_s7 + $0x70] sm:$0xff] %vm29_vm1, %v858_v19 }
  0x17   :  { %167 = vperm.xlu0 %855, %v145_v11   ;;  %61 = vst.msk [vmem:[%s1577_s7 + $0x78] sm:$0xff] %vm29_vm1, %v858_v19 }
  0x1a   :  { %88 = vperm.xlu1 %856, %v78_v14  }
  0x1b   :  { %162 = vperm.xlu0 %855, %v144_v13  }
  0x1e   :  { %152 = vperm.xlu1 %856, %v142_v16   ;;  %v66_v16 = vld [vmem:[%s1573_s0 + $0x20] sm:$0xff] }
  0x1f   :  { %157 = vperm.xlu0 %855, %v143_v15  }
  0x22   :  { %261 = vperm.xlu1 %856, %v239_v18  }
  0x23   :  { %256 = vperm.xlu0 %855, %v238_v17   ;;  %v67_v17 = vld [vmem:[%s1573_s0 + $0x28] sm:$0xff] }
  0x26   :  { %271 = vperm.xlu1 %856, %v241_v21  }
  0x27   :  { %266 = vperm.xlu0 %855, %v240_v20  }
  0x2a   :  { %281 = vperm.xlu1 %856, %v243_v23  }
  0x2b   :  { %276 = vperm.xlu0 %855, %v242_v22  }
  0x2e   :  { %291 = vperm.xlu1 %856, %v245_v25  }
  0x2f   :  { %286 = vperm.xlu0 %855, %v244_v24  }
  0x32   :  { %301 = vperm.xlu1 %856, %v247_v27   ;;  %v64_v27 = vld [vmem:[%s1573_s0 + $0x10] sm:$0xff] }
  0x33   :  { %296 = vperm.xlu0 %855, %v246_v26  }
  0x36   :  { %311 = vperm.xlu1 %856, %v249_v29  }
  0x37   :  { %306 = vperm.xlu0 %855, %v248_v28   ;;  %v65_v28 = vld [vmem:[%s1573_s0 + $0x18] sm:$0xff] }
  0x3a   :  { %321 = vperm.xlu1 %856, %v251_v31   ;;  %v63_v31 = vld [vmem:[%s1573_s0 + $0x8] sm:$0xff] }
  0x3b   :  { %316 = vperm.xlu0 %855, %v250_v30  }
  0x3e   :  { %331 = vperm.xlu1 %856, %v253_v33  }
  0x3f   :  { %326 = vperm.xlu0 %855, %v252_v32  }
  0x7d   :  { %v188_v36 = vpop.permute.xlu1 %187 }
  0x7e   :  { %v124_v37 = vpop.permute.xlu0 %123 }
  0x7f   :  { %v140_v38 = vmul.f32 %v124_v37, %v76_v34  ;;  %v141_v39 = vmul.f32 %v124_v37, %v77_v35  ;;  %v62_v34 = vld [vmem:[%s1573_s0] sm:$0xff] }
  0x81   :  { %v205_v40 = vadd.f32 %v188_v36, %v141_v39  ;;  %v204_v41 = vadd.f32 %v188_v36, %v140_v38  ;;  %v114_v45 = vpop.permute.xlu1 %113 }
  0x82   :  { %v119_v42 = vpop.permute.xlu0 %118  ;;  %v136_v56 = vmul.f32 %v114_v45, %v72_v50  ;;  %v137_v57 = vmul.f32 %v114_v45, %v73_v51  ;;  %v222_v51 = vld [vmem:[%s1574_s3] sm:$0xff] }
  0x83   :  { %v221_v46 = vmax.f32 %v205_v40, 0.0  ;;  %v220_v47 = vmax.f32 %v204_v41, 0.0  ;;  %v138_v48 = vmul.f32 %v119_v42, %v74_v43  ;;  %v139_v49 = vmul.f32 %v119_v42, %v75_v44 }
  0x85   :  { %399 = vmatprep.subr.mxu0 %v221_v46  ;;  %837 = vmatprep.subr.mxu1 %v221_v46  ;;  %v109_v53 = vpop.permute.xlu1 %108 }
  0x86   :  { %v183_v52 = vpop.permute.xlu0 %182  ;;  %400 = vmatpush1.msra.mxu0 %v220_v47  ;;  %845 = vmatpush1.msra.mxu1 %v220_v47  ;;  %v134_v2 = vmul.f32 %v109_v53, %v70_v60  ;;  %v135_v3 = vmul.f32 %v109_v53, %v71_v61  ;;  %v223_v53 = vld [vmem:[%s1574_s3 + $0x8] sm:$0xff]  ;;  %v234_v60 = vld [vmem:[%s1574_s3 + $0x60] sm:$0xff] }
  0x87   :  { %v202_v54 = vadd.f32 %v183_v52, %v138_v48  ;;  %v203_v55 = vadd.f32 %v183_v52, %v139_v49  ;;  %v230_v52 = vld [vmem:[%s1574_s3 + $0x40] sm:$0xff]  ;;  %v227_v61 = vld [vmem:[%s1574_s3 + $0x28] sm:$0xff] }
  0x89   :  { %v218_v58 = vmax.f32 %v202_v54, 0.0  ;;  %v219_v59 = vmax.f32 %v203_v55, 0.0  ;;  %v104_v63 = vpop.permute.xlu1 %103  ;;  %v231_v54 = vld [vmem:[%s1574_s3 + $0x48] sm:$0xff]  ;;  %v224_v55 = vld [vmem:[%s1574_s3 + $0x10] sm:$0xff] }
  0x8a   :  { %v178_v62 = vpop.permute.xlu0 %177  ;;  %v132_v12 = vmul.f32 %v104_v63, %v68_v6  ;;  %v133_v13 = vmul.f32 %v104_v63, %v69_v7  ;;  %v228_v63 = vld [vmem:[%s1574_s3 + $0x30] sm:$0xff] }
  0x8b   :  { %v200_v0 = vadd.f32 %v178_v62, %v136_v56  ;;  %v201_v1 = vadd.f32 %v178_v62, %v137_v57  ;;  %401 = vmatprep.subr.mxu0 %v219_v59  ;;  %838 = vmatprep.subr.mxu1 %v219_v59  ;;  %v232_v56 = vld [vmem:[%s1574_s3 + $0x50] sm:$0xff]  ;;  %v225_v57 = vld [vmem:[%s1574_s3 + $0x18] sm:$0xff]  ;;  %v226_v59 = vld [vmem:[%s1574_s3 + $0x20] sm:$0xff] }
  0x8c   :  { %402 = vmatpush1.msra.mxu0 %v218_v58  ;;  %846 = vmatpush1.msra.mxu1 %v218_v58  ;;  %v233_v58 = vld [vmem:[%s1574_s3 + $0x58] sm:$0xff]  ;;  %v235_v62 = vld [vmem:[%s1574_s3 + $0x68] sm:$0xff] }
  0x8d   :  { %v216_v4 = vmax.f32 %v200_v0, 0.0  ;;  %v217_v5 = vmax.f32 %v201_v1, 0.0  ;;  %v99_v9 = vpop.permute.xlu1 %98  ;;  %v236_v0 = vld [vmem:[%s1574_s3 + $0x70] sm:$0xff]  ;;  %v229_v1 = vld [vmem:[%s1574_s3 + $0x38] sm:$0xff] }
  0x8e   :  { %v173_v8 = vpop.permute.xlu0 %172  ;;  %v130_v23 = vmul.f32 %v99_v9, %v66_v16  ;;  %v131_v24 = vmul.f32 %v99_v9, %v67_v17 }
  0x8f   :  { %v198_v10 = vadd.f32 %v173_v8, %v134_v2  ;;  %v199_v11 = vadd.f32 %v173_v8, %v135_v3  ;;  %403 = vmatprep.subr.mxu0 %v217_v5  ;;  %839 = vmatprep.subr.mxu1 %v217_v5  ;;  %v237_v2 = vld [vmem:[%s1574_s3 + $0x78] sm:$0xff]  ;;  %v546_v8 = vlaneseq }
  0x90   :  { %404 = vmatpush1.msra.mxu0 %v216_v4  ;;  %847 = vmatpush1.msra.mxu1 %v216_v4 }
  0x91   :  { %v214_v14 = vmax.f32 %v198_v10, 0.0  ;;  %v215_v15 = vmax.f32 %v199_v11, 0.0  ;;  %v94_v20 = vpop.permute.xlu1 %93  ;;  %v547_v10 = vshrl.u32 %v546_v8, 7 }
  0x92   :  { %v168_v18 = vpop.permute.xlu0 %167  ;;  %v128_v35 = vmul.f32 %v94_v20, %v64_v27  ;;  %v129_v36 = vmul.f32 %v94_v20, %v65_v28 }
  0x93   :  { %v196_v21 = vadd.f32 %v168_v18, %v132_v12  ;;  %v197_v22 = vadd.f32 %v168_v18, %v133_v13  ;;  %405 = vmatprep.subr.mxu0 %v215_v15  ;;  %840 = vmatprep.subr.mxu1 %v215_v15  ;;  %v552_v12 = vsub.s32 1, %v547_v10  ;;  %v548_v13 = vsub.s32 0, %v547_v10  ;;  %v544_v15 = vld [vmem:[%s1576_s5] sm:$0x3] }
  0x94   :  { %406 = vmatpush1.msra.mxu0 %v214_v14  ;;  %848 = vmatpush1.msra.mxu1 %v214_v14 }
  0x95   :  { %v212_v25 = vmax.f32 %v196_v21, 0.0  ;;  %v213_v26 = vmax.f32 %v197_v22, 0.0  ;;  %v89_v30 = vpop.permute.xlu1 %88  ;;  %v1218_v20 = vrot.slane %v544_v15, %v552_v12  ;;  %v1220_v22 = vrot.slane %v544_v15, %v548_v13 }
  0x96   :  { %v163_v29 = vpop.permute.xlu0 %162  ;;  %v127_v39 = vmul.f32 %v89_v30, %v63_v31  ;;  %v126_v40 = vmul.f32 %v89_v30, %v62_v34 }
  0x97   :  { %v194_v32 = vadd.f32 %v163_v29, %v130_v23  ;;  %v195_v33 = vadd.f32 %v163_v29, %v131_v24  ;;  %407 = vmatprep.subr.mxu0 %v213_v26  ;;  %841 = vmatprep.subr.mxu1 %v213_v26 }
  0x98   :  { %408 = vmatpush1.msra.mxu0 %v212_v25  ;;  %849 = vmatpush1.msra.mxu1 %v212_v25 }
  0x99   :  { %v210_v37 = vmax.f32 %v194_v32, 0.0  ;;  %v211_v38 = vmax.f32 %v195_v33, 0.0  ;;  %v153_v42 = vpop.permute.xlu1 %152 }
  0x9a   :  { %v158_v41 = vpop.permute.xlu0 %157  ;;  %v191_v45 = vadd.f32 %v153_v42, %v127_v39  ;;  %v190_v46 = vadd.f32 %v153_v42, %v126_v40 }
  0x9b   :  { %v192_v43 = vadd.f32 %v158_v41, %v128_v35  ;;  %v193_v44 = vadd.f32 %v158_v41, %v129_v36  ;;  %409 = vmatprep.subr.mxu0 %v211_v38  ;;  %842 = vmatprep.subr.mxu1 %v211_v38 }
  0x9c   :  { %410 = vmatpush1.msra.mxu0 %v210_v37  ;;  %850 = vmatpush1.msra.mxu1 %v210_v37  ;;  %v207_v49 = vmax.f32 %v191_v45, 0.0  ;;  %v206_v50 = vmax.f32 %v190_v46, 0.0 }
  0x9d   :  { %v208_v47 = vmax.f32 %v192_v43, 0.0  ;;  %v209_v48 = vmax.f32 %v193_v44, 0.0  ;;  %v262_v4 = vpop.permute.xlu1 %261 }
  0x9e   :  { %v257_v3 = vpop.permute.xlu0 %256 }
  0x9f   :  { %411 = vmatprep.subr.mxu0 %v209_v48  ;;  %843 = vmatprep.subr.mxu1 %v209_v48 }
  0xa0   :  { %412 = vmatpush1.msra.mxu0 %v208_v47  ;;  %851 = vmatpush1.msra.mxu1 %v208_v47 }
  0xa1   :  { %413 = vmatprep.subr.mxu0 %v207_v49  ;;  %844 = vmatprep.subr.mxu1 %v207_v49  ;;  %v1205_v6 = vpop.permute.xlu1 %271 }
  0xa2   :  { %414 = vmatpush1.msra.mxu0 %v206_v50  ;;  %852 = vmatpush1.msra.mxu1 %v206_v50  ;;  %v1203_v5 = vpop.permute.xlu0 %266 }
  0xa3   :  { %821 = vmatmul.mubr.msk.f32.vlgmr.msra.gmra.mxu0 %vm334_vm0, %v222_v51  ;;  %829 = vmatmul.mubr.msk.f32.vlgmr.msra.gmra.mxu1 %vm334_vm0, %v230_v52 }
  0xa4   :  { %453 = vmatprep.mubr.f32.mxu0 %v858_v19  ;;  %501 = vmatprep.mubr.f32.mxu1 %v858_v19 }
  0xa5   :  { %v1209_v9 = vpop.permute.xlu1 %281 }
  0xa6   :  { %v1207_v7 = vpop.permute.xlu0 %276 }
  0xa7   :  { %822 = vmatmul.mubr.msk.f32.gmra.mxu0 %vm334_vm0, %v223_v53  ;;  %830 = vmatmul.mubr.msk.f32.gmra.mxu1 %vm334_vm0, %v231_v54 }
  0xa8   :  { %459 = vmatprep.mubr.f32.mxu0 %v858_v19  ;;  %507 = vmatprep.mubr.f32.mxu1 %v858_v19 }
  0xa9   :  { %v1213_v14 = vpop.permute.xlu1 %291 }
  0xaa   :  { %v1211_v11 = vpop.permute.xlu0 %286 }
  0xab   :  { %823 = vmatmul.mubr.msk.f32.gmra.mxu0 %vm334_vm0, %v224_v55  ;;  %831 = vmatmul.mubr.msk.f32.gmra.mxu1 %vm334_vm0, %v232_v56 }
  0xac   :  { %465 = vmatprep.mubr.f32.mxu0 %v858_v19  ;;  %513 = vmatprep.mubr.f32.mxu1 %v858_v19 }
  0xad   :  { %v302_v30 = vpop.permute.xlu1 %301 }
  0xae   :  { %v297_v18 = vpop.permute.xlu0 %296 }
  0xaf   :  { %824 = vmatmul.mubr.msk.f32.gmra.mxu0 %vm334_vm0, %v225_v57  ;;  %832 = vmatmul.mubr.msk.f32.gmra.mxu1 %vm334_vm0, %v233_v58 }
  0xb0   :  { %471 = vmatprep.mubr.f32.mxu0 %v858_v19  ;;  %519 = vmatprep.mubr.f32.mxu1 %v858_v19 }
  0xb3   :  { %825 = vmatmul.mubr.msk.f32.gmra.mxu0 %vm334_vm0, %v226_v59  ;;  %833 = vmatmul.mubr.msk.f32.gmra.mxu1 %vm334_vm0, %v234_v60  ;;  %v307_v60 = vpop.permute.xlu0 %306 }
  0xb4   :  { %477 = vmatprep.mubr.f32.mxu0 %v858_v19  ;;  %525 = vmatprep.mubr.f32.mxu1 %v858_v19 }
  0xb7   :  { %826 = vmatmul.mubr.msk.f32.gmra.mxu0 %vm334_vm0, %v227_v61  ;;  %834 = vmatmul.mubr.msk.f32.gmra.mxu1 %vm334_vm0, %v235_v62 }
  0xb8   :  { %483 = vmatprep.mubr.f32.mxu0 %v858_v19  ;;  %531 = vmatprep.mubr.f32.mxu1 %v858_v19 }
  0xbb   :  { %827 = vmatmul.mubr.msk.f32.gmra.mxu0 %vm334_vm0, %v228_v63  ;;  %835 = vmatmul.mubr.msk.f32.gmra.mxu1 %vm334_vm0, %v236_v0 }
  0xbc   :  { %489 = vmatprep.mubr.f32.mxu0 %v858_v19  ;;  %537 = vmatprep.mubr.f32.mxu1 %v858_v19 }
  0xbf   :  { %828 = vmatmul.mubr.msk.f32.gmra.mxu0 %vm334_vm0, %v229_v1  ;;  %836 = vmatmul.mubr.msk.f32.gmra.mxu1 %vm334_vm0, %v237_v2 }
 0x163   :  { %v449_v16 = vpop.f32.mrf.mxu0  ;;  %v497_v17 = vpop.f32.mrf.mxu1 }
 0x164   :  { %v450_v21 = vadd.f32 %v449_v16, %v257_v3  ;;  %v498_v23 = vadd.f32 %v497_v17, %v297_v18 }
 0x165   :  { %v451_v24 = vpop.f32.mrf.mxu0  ;;  %v499_v25 = vpop.f32.mrf.mxu1 }
 0x166   :  { %v452_v26 = vadd.f32 %v451_v24, %v257_v3  ;;  %v500_v27 = vadd.f32 %v499_v25, %v297_v18  ;;  %v556_v33 = vmul.f32 %v1220_v22, %v450_v21  ;;  %v572_v34 = vmul.f32 %v1220_v22, %v498_v23  ;;  %v312_v23 = vpop.permute.xlu1 %311 }
 0x167   :  { %v455_v28 = vpop.f32.mrf.mxu0  ;;  %v503_v29 = vpop.f32.mrf.mxu1 }
 0x168   :  { %v557_v31 = vmul.f32 %v1218_v20, %v452_v26  ;;  %v573_v32 = vmul.f32 %v1218_v20, %v500_v27  ;;  %v456_v35 = vadd.f32 %v455_v28, %v262_v4  ;;  %v504_v36 = vadd.f32 %v503_v29, %v302_v30 }
 0x169   :  { %v457_v37 = vpop.f32.mrf.mxu0  ;;  %v505_v38 = vpop.f32.mrf.mxu1  ;;  %v701_v51 = vmul.f32 %v556_v33, %v556_v33  ;;  %v717_v58 = vmul.f32 %v572_v34, %v572_v34 }
 0x16a   :  { %v458_v39 = vadd.f32 %v457_v37, %v262_v4  ;;  %v506_v40 = vadd.f32 %v505_v38, %v302_v30  ;;  %v628_v43 = vadd.f32 %v573_v32, %v572_v34  ;;  %v604_v44 = vadd.f32 %v557_v31, %v556_v33 }
 0x16b   :  { %v461_v41 = vpop.f32.mrf.mxu0  ;;  %v509_v42 = vpop.f32.mrf.mxu1  ;;  %v702_v45 = vmul.f32 %v557_v31, %v557_v31  ;;  %v558_v48 = vmul.f32 %v1220_v22, %v456_v35  ;;  %v574_v49 = vmul.f32 %v1220_v22, %v504_v36  ;;  %v718_v52 = vmul.f32 %v573_v32, %v573_v32 }
 0x16c   :  { %v559_v46 = vmul.f32 %v1218_v20, %v458_v39  ;;  %v575_v47 = vmul.f32 %v1218_v20, %v506_v40  ;;  %629 = vadd.xlane.f32.xlu1 %v628_v43  ;;  %605 = vadd.xlane.f32.xlu0 %v604_v44  ;;  %v462_v4 = vadd.f32 %v461_v41, %v1203_v5  ;;  %v317_v41 = vpop.permute.xlu0 %316 }
 0x16d   :  { %v463_v50 = vpop.f32.mrf.mxu0  ;;  %v511_v53 = vpop.f32.mrf.mxu1  ;;  %v733_v54 = vadd.f32 %v702_v45, %v701_v51  ;;  %v703_v59 = vmul.f32 %v558_v48, %v558_v48  ;;  %v757_v61 = vadd.f32 %v718_v52, %v717_v58  ;;  %v510_v8 = vadd.f32 %v509_v42, %v307_v60 }
 0x16e   :  { %v631_v55 = vadd.f32 %v575_v47, %v574_v49  ;;  %v704_v56 = vmul.f32 %v559_v46, %v559_v46  ;;  %v464_v62 = vadd.f32 %v463_v50, %v1203_v5  ;;  %v512_v63 = vadd.f32 %v511_v53, %v307_v60 }
 0x16f   :  { %v467_v57 = vpop.f32.mrf.mxu0  ;;  %v515_v0 = vpop.f32.mrf.mxu1  ;;  %v720_v2 = vmul.f32 %v575_v47, %v575_v47  ;;  %v719_v10 = vmul.f32 %v574_v49, %v574_v49  ;;  %v607_v12 = vadd.f32 %v559_v46, %v558_v48  ;;  %v560_v24 = vmul.f32 %v1220_v22, %v462_v4 }
 0x170   :  { %734 = vadd.xlane.f32.xlu1 %v733_v54  ;;  %632 = vadd.xlane.f32.xlu0 %v631_v55  ;;  %v736_v1 = vadd.f32 %v704_v56, %v703_v59  ;;  %v561_v13 = vmul.f32 %v1218_v20, %v464_v62  ;;  %v577_v15 = vmul.f32 %v1218_v20, %v512_v63 }
 0x171   :  { %v469_v3 = vpop.f32.mrf.mxu0  ;;  %v517_v17 = vpop.f32.mrf.mxu1  ;;  %v760_v18 = vadd.f32 %v720_v2, %v719_v10  ;;  %v576_v25 = vmul.f32 %v1220_v22, %v510_v8  ;;  %v468_v5 = vadd.f32 %v467_v57, %v1205_v6  ;;  %v516_v33 = vadd.f32 %v515_v0, %v312_v23 }
 0x172   :  { %v470_v16 = vadd.f32 %v469_v3, %v1205_v6  ;;  %v518_v6 = vadd.f32 %v517_v17, %v312_v23  ;;  %v610_v29 = vadd.f32 %v561_v13, %v560_v24  ;;  %v706_v30 = vmul.f32 %v561_v13, %v561_v13 }
 0x173   :  { %v473_v21 = vpop.f32.mrf.mxu0  ;;  %v521_v27 = vpop.f32.mrf.mxu1  ;;  %v634_v28 = vadd.f32 %v577_v15, %v576_v25  ;;  %v562_v32 = vmul.f32 %v1220_v22, %v468_v5  ;;  %v705_v34 = vmul.f32 %v560_v24, %v560_v24  ;;  %v722_v39 = vmul.f32 %v577_v15, %v577_v15 }
 0x174   :  { %758 = vadd.xlane.f32.xlu1 %v757_v61  ;;  %737 = vadd.xlane.f32.xlu0 %v736_v1  ;;  %v563_v26 = vmul.f32 %v1218_v20, %v470_v16  ;;  %v579_v35 = vmul.f32 %v1218_v20, %v518_v6  ;;  %v578_v42 = vmul.f32 %v1220_v22, %v516_v33  ;;  %v322_v61 = vpop.permute.xlu1 %321  ;;  %v327_v5 = vpop.permute.xlu0 %326 }
 0x175   :  { %v475_v31 = vpop.f32.mrf.mxu0  ;;  %v523_v37 = vpop.f32.mrf.mxu1  ;;  %v739_v19 = vadd.f32 %v706_v30, %v705_v34  ;;  %v474_v43 = vadd.f32 %v473_v21, %v1207_v7  ;;  %v721_v44 = vmul.f32 %v576_v25, %v576_v25  ;;  %v522_v53 = vadd.f32 %v521_v27, %v317_v41 }
 0x176   :  { %v476_v36 = vadd.f32 %v475_v31, %v1207_v7  ;;  %v613_v38 = vadd.f32 %v563_v26, %v562_v32  ;;  %v524_v45 = vadd.f32 %v523_v37, %v317_v41  ;;  %v637_v49 = vadd.f32 %v579_v35, %v578_v42 }
 0x177   :  { %v479_v40 = vpop.f32.mrf.mxu0  ;;  %v527_v47 = vpop.f32.mrf.mxu1  ;;  %v763_v48 = vadd.f32 %v722_v39, %v721_v44  ;;  %v708_v50 = vmul.f32 %v563_v26, %v563_v26  ;;  %v564_v52 = vmul.f32 %v1220_v22, %v474_v43  ;;  %v707_v54 = vmul.f32 %v562_v32, %v562_v32 }
 0x178   :  { %608 = vadd.xlane.f32.xlu1 %v607_v12  ;;  %761 = vadd.xlane.f32.xlu0 %v760_v18  ;;  %v565_v46 = vmul.f32 %v1218_v20, %v476_v36  ;;  %v581_v55 = vmul.f32 %v1218_v20, %v524_v45  ;;  %v724_v59 = vmul.f32 %v579_v35, %v579_v35 }
 0x179   :  { %v481_v51 = vpop.f32.mrf.mxu0  ;;  %v529_v56 = vpop.f32.mrf.mxu1  ;;  %v742_v58 = vadd.f32 %v708_v50, %v707_v54  ;;  %v580_v62 = vmul.f32 %v1220_v22, %v522_v53  ;;  %v480_v63 = vadd.f32 %v479_v40, %v1209_v9  ;;  %v723_v0 = vmul.f32 %v578_v42, %v578_v42 }
 0x17a   :  { %v482_v7 = vadd.f32 %v481_v51, %v1209_v9  ;;  %v616_v57 = vadd.f32 %v565_v46, %v564_v52  ;;  %v530_v1 = vadd.f32 %v529_v56, %v322_v61  ;;  %v710_v10 = vmul.f32 %v565_v46, %v565_v46  ;;  %v332_v42 = vpop.permute.xlu1 %331 }
 0x17b   :  { %v485_v60 = vpop.f32.mrf.mxu0  ;;  %v533_v3 = vpop.f32.mrf.mxu1  ;;  %v640_v4 = vadd.f32 %v581_v55, %v580_v62  ;;  %v766_v8 = vadd.f32 %v724_v59, %v723_v0  ;;  %v566_v13 = vmul.f32 %v1220_v22, %v480_v63  ;;  %v528_v15 = vadd.f32 %v527_v47, %v322_v61 }
 0x17c   :  { %635 = vadd.xlane.f32.xlu1 %v634_v28  ;;  %611 = vadd.xlane.f32.xlu0 %v610_v29  ;;  %v567_v2 = vmul.f32 %v1218_v20, %v482_v7  ;;  %v709_v16 = vmul.f32 %v564_v52, %v564_v52  ;;  %v583_v17 = vmul.f32 %v1218_v20, %v530_v1 }
 0x17d   :  { %v487_v12 = vpop.f32.mrf.mxu0  ;;  %v535_v18 = vpop.f32.mrf.mxu1  ;;  %v726_v24 = vmul.f32 %v581_v55, %v581_v55  ;;  %v582_v6 = vmul.f32 %v1220_v22, %v528_v15  ;;  %v486_v26 = vadd.f32 %v485_v60, %v1211_v11  ;;  %v725_v27 = vmul.f32 %v580_v62, %v580_v62 }
 0x17e   :  { %v488_v9 = vadd.f32 %v487_v12, %v1211_v11  ;;  %v745_v21 = vadd.f32 %v710_v10, %v709_v16  ;;  %v619_v23 = vadd.f32 %v567_v2, %v566_v13  ;;  %v536_v28 = vadd.f32 %v535_v18, %v327_v5  ;;  %v685_v10 = vld [vmem:[%s1577_s7] sm:$0xff]  ;;  %v597_v12 = vld [vmem:[%s1575_s6 + $0x48] sm:$0xff] }
 0x17f   :  { %v491_v25 = vpop.f32.mrf.mxu0  ;;  %v539_v30 = vpop.f32.mrf.mxu1  ;;  %v769_v31 = vadd.f32 %v726_v24, %v725_v27  ;;  %v643_v32 = vadd.f32 %v583_v17, %v582_v6  ;;  %v712_v33 = vmul.f32 %v567_v2, %v567_v2  ;;  %v568_v35 = vmul.f32 %v1220_v22, %v486_v26  ;;  %v686_v18 = vld [vmem:[%s1577_s7 + $0x8] sm:$0xff] }
 0x180   :  { %740 = vadd.xlane.f32.xlu1 %v739_v19  ;;  %614 = vadd.xlane.f32.xlu0 %v613_v38  ;;  %v569_v29 = vmul.f32 %v1218_v20, %v488_v9  ;;  %v534_v36 = vadd.f32 %v533_v3, %v327_v5  ;;  %v711_v37 = vmul.f32 %v566_v13, %v566_v13  ;;  %v693_v9 = vld [vmem:[%s1577_s7 + $0x40] sm:$0xff]  ;;  %v589_v5 = vld [vmem:[%s1575_s6 + $0x8] sm:$0xff] }
 0x181   :  { %v493_v34 = vpop.f32.mrf.mxu0  ;;  %v585_v19 = vmul.f32 %v1218_v20, %v536_v28  ;;  %v541_v38 = vpop.f32.mrf.mxu1  ;;  %v728_v41 = vmul.f32 %v583_v17, %v583_v17  ;;  %v492_v44 = vadd.f32 %v491_v25, %v1213_v14  ;;  %v727_v45 = vmul.f32 %v582_v6, %v582_v6  ;;  %v694_v6 = vld [vmem:[%s1577_s7 + $0x48] sm:$0xff] }
 0x182   :  { %v494_v11 = vadd.f32 %v493_v34, %v1213_v14  ;;  %v622_v39 = vadd.f32 %v569_v29, %v568_v35  ;;  %v748_v40 = vadd.f32 %v712_v33, %v711_v37  ;;  %v584_v43 = vmul.f32 %v1220_v22, %v534_v36  ;;  %v687_v36 = vld [vmem:[%s1577_s7 + $0x10] sm:$0xff]  ;;  %v591_v37 = vld [vmem:[%s1575_s6 + $0x18] sm:$0xff] }
 0x183   :  { %v542_v46 = vadd.f32 %v541_v38, %v332_v42  ;;  %v714_v50 = vmul.f32 %v569_v29, %v569_v29  ;;  %v570_v51 = vmul.f32 %v1220_v22, %v492_v44  ;;  %v540_v52 = vadd.f32 %v539_v30, %v332_v42  ;;  %v598_v30 = vld [vmem:[%s1575_s6 + $0x50] sm:$0xff] }
 0x184   :  { %764 = vadd.xlane.f32.xlu1 %v763_v48  ;;  %638 = vadd.xlane.f32.xlu0 %v637_v49  ;;  %v571_v47 = vmul.f32 %v1218_v20, %v494_v11  ;;  %v646_v48 = vadd.f32 %v585_v19, %v584_v43  ;;  %v772_v49 = vadd.f32 %v728_v41, %v727_v45  ;;  %v599_v41 = vld [vmem:[%s1575_s6 + $0x58] sm:$0xff] }
 0x185   :  { %v713_v53 = vmul.f32 %v568_v35, %v568_v35  ;;  %v587_v54 = vmul.f32 %v1218_v20, %v542_v46  ;;  %v730_v14 = vmul.f32 %v585_v19, %v585_v19  ;;  %v586_v56 = vmul.f32 %v1220_v22, %v540_v52  ;;  %v596_v20 = vld [vmem:[%s1575_s6 + $0x40] sm:$0xff] }
 0x186   :  { %v625_v7 = vadd.f32 %v571_v47, %v570_v51  ;;  %v716_v60 = vmul.f32 %v571_v47, %v571_v47  ;;  %v715_v61 = vmul.f32 %v570_v51, %v570_v51  ;;  %v588_v22 = vld [vmem:[%s1575_s6] sm:$0xff]  ;;  %v688_v47 = vld [vmem:[%s1577_s7 + $0x18] sm:$0xff] }
 0x187   :  { %v751_v55 = vadd.f32 %v714_v50, %v713_v53  ;;  %v649_v59 = vadd.f32 %v587_v54, %v586_v56  ;;  %v732_v63 = vmul.f32 %v587_v54, %v587_v54  ;;  %v731_v0 = vmul.f32 %v586_v56, %v586_v56  ;;  %v592_v46 = vld [vmem:[%s1575_s6 + $0x20] sm:$0xff]  ;;  %v696_v53 = vld [vmem:[%s1577_s7 + $0x58] sm:$0xff] }
 0x188   :  { %617 = vadd.xlane.f32.xlu1 %v616_v57  ;;  %743 = vadd.xlane.f32.xlu0 %v742_v58  ;;  %v729_v57 = vmul.f32 %v584_v43, %v584_v43  ;;  %v754_v62 = vadd.f32 %v716_v60, %v715_v61  ;;  %v600_v52 = vld [vmem:[%s1575_s6 + $0x60] sm:$0xff] }
 0x189   :  { %v778_v1 = vadd.f32 %v732_v63, %v731_v0  ;;  %v689_v56 = vld [vmem:[%s1577_s7 + $0x20] sm:$0xff]  ;;  %v601_v63 = vld [vmem:[%s1575_s6 + $0x68] sm:$0xff] }
 0x18a   :  { %v775_v58 = vadd.f32 %v730_v14, %v729_v57  ;;  %v593_v57 = vld [vmem:[%s1575_s6 + $0x28] sm:$0xff] }
 0x18c   :  { %641 = vadd.xlane.f32.xlu1 %v640_v4  ;;  %767 = vadd.xlane.f32.xlu0 %v766_v8 }
 0x190   :  { %746 = vadd.xlane.f32.xlu1 %v745_v21  ;;  %620 = vadd.xlane.f32.xlu0 %v619_v23 }
 0x194   :  { %770 = vadd.xlane.f32.xlu1 %v769_v31  ;;  %644 = vadd.xlane.f32.xlu0 %v643_v32  ;;  %v590_v31 = vld [vmem:[%s1575_s6 + $0x10] sm:$0xff] }
 0x198   :  { %623 = vadd.xlane.f32.xlu1 %v622_v39  ;;  %749 = vadd.xlane.f32.xlu0 %v748_v40  ;;  %v695_v40 = vld [vmem:[%s1577_s7 + $0x50] sm:$0xff] }
 0x19c   :  { %647 = vadd.xlane.f32.xlu1 %v646_v48  ;;  %773 = vadd.xlane.f32.xlu0 %v772_v49 }
 0x1a0   :  { %752 = vadd.xlane.f32.xlu1 %v751_v55  ;;  %626 = vadd.xlane.f32.xlu0 %v625_v7 }
 0x1a4   :  { %776 = vadd.xlane.f32.xlu1 %v775_v58  ;;  %650 = vadd.xlane.f32.xlu0 %v649_v59 }
 0x1a8   :  { %755 = vadd.xlane.f32.xlu0 %v754_v62  ;;  %v697_v62 = vld [vmem:[%s1577_s7 + $0x60] sm:$0xff] }
 0x1ac   :  { %779 = vadd.xlane.f32.xlu0 %v778_v1 }
 0x1f5   :  { %v630_v2 = vpop.xlane.xlu1 %629  ;;  %v606_v3 = vpop.xlane.xlu0 %605 }
 0x1f6   :  { %v660_v4 = vadd.f32 %v630_v2, %v596_v20  ;;  %v652_v8 = vadd.f32 %v606_v3, %v588_v22  ;;  %v594_v2 = vld [vmem:[%s1575_s6 + $0x30] sm:$0xff]  ;;  %v690_v3 = vld [vmem:[%s1577_s7 + $0x28] sm:$0xff] }
 0x1f8   :  { %677 = vst.msk [vmem:[%s1575_s6 + $0x40] sm:$0xff] %vm29_vm1, %v660_v4  ;;  %669 = vst.msk [vmem:[%s1575_s6] sm:$0xff] %vm29_vm1, %v652_v8 }
 0x1f9   :  { %v735_v13 = vpop.xlane.xlu1 %734  ;;  %v633_v15 = vpop.xlane.xlu0 %632 }
 0x1fa   :  { %v781_v16 = vadd.f32 %v735_v13, %v685_v10  ;;  %v661_v17 = vadd.f32 %v633_v15, %v597_v12  ;;  %v602_v13 = vld [vmem:[%s1575_s6 + $0x70] sm:$0xff]  ;;  %v698_v15 = vld [vmem:[%s1577_s7 + $0x68] sm:$0xff] }
 0x1fc   :  { %797 = vst.msk [vmem:[%s1577_s7] sm:$0xff] %vm29_vm1, %v781_v16  ;;  %678 = vst.msk [vmem:[%s1575_s6 + $0x48] sm:$0xff] %vm29_vm1, %v661_v17 }
 0x1fd   :  { %v759_v21 = vpop.xlane.xlu1 %758  ;;  %v738_v23 = vpop.xlane.xlu0 %737 }
 0x1fe   :  { %v789_v24 = vadd.f32 %v759_v21, %v693_v9  ;;  %v782_v25 = vadd.f32 %v738_v23, %v686_v18  ;;  %v691_v21 = vld [vmem:[%s1577_s7 + $0x30] sm:$0xff]  ;;  %v595_v23 = vld [vmem:[%s1575_s6 + $0x38] sm:$0xff] }
 0x200   :  { %805 = vst.msk [vmem:[%s1577_s7 + $0x40] sm:$0xff] %vm29_vm1, %v789_v24  ;;  %798 = vst.msk [vmem:[%s1577_s7 + $0x8] sm:$0xff] %vm29_vm1, %v782_v25 }
 0x201   :  { %v609_v26 = vpop.xlane.xlu1 %608  ;;  %v762_v27 = vpop.xlane.xlu0 %761 }
 0x202   :  { %v653_v28 = vadd.f32 %v609_v26, %v589_v5  ;;  %v790_v29 = vadd.f32 %v762_v27, %v694_v6  ;;  %v699_v26 = vld [vmem:[%s1577_s7 + $0x70] sm:$0xff]  ;;  %v603_v27 = vld [vmem:[%s1575_s6 + $0x78] sm:$0xff] }
 0x204   :  { %670 = vst.msk [vmem:[%s1575_s6 + $0x8] sm:$0xff] %vm29_vm1, %v653_v28  ;;  %806 = vst.msk [vmem:[%s1577_s7 + $0x48] sm:$0xff] %vm29_vm1, %v790_v29 }
 0x205   :  { %v636_v32 = vpop.xlane.xlu1 %635  ;;  %v612_v33 = vpop.xlane.xlu0 %611 }
 0x206   :  { %v662_v34 = vadd.f32 %v636_v32, %v598_v30  ;;  %v654_v35 = vadd.f32 %v612_v33, %v590_v31  ;;  %v692_v32 = vld [vmem:[%s1577_s7 + $0x38] sm:$0xff] }
 0x208   :  { %679 = vst.msk [vmem:[%s1575_s6 + $0x50] sm:$0xff] %vm29_vm1, %v662_v34  ;;  %671 = vst.msk [vmem:[%s1575_s6 + $0x10] sm:$0xff] %vm29_vm1, %v654_v35  ;;  %v700_v35 = vld [vmem:[%s1577_s7 + $0x78] sm:$0xff] }
 0x209   :  { %v741_v19 = vpop.xlane.xlu1 %740  ;;  %v615_v11 = vpop.xlane.xlu0 %614 }
 0x20a   :  { %v783_v38 = vadd.f32 %v741_v19, %v687_v36  ;;  %v655_v39 = vadd.f32 %v615_v11, %v591_v37 }
 0x20c   :  { %799 = vst.msk [vmem:[%s1577_s7 + $0x10] sm:$0xff] %vm29_vm1, %v783_v38  ;;  %672 = vst.msk [vmem:[%s1575_s6 + $0x18] sm:$0xff] %vm29_vm1, %v655_v39 }
 0x20d   :  { %v765_v42 = vpop.xlane.xlu1 %764  ;;  %v639_v43 = vpop.xlane.xlu0 %638 }
 0x20e   :  { %v791_v44 = vadd.f32 %v765_v42, %v695_v40  ;;  %v663_v45 = vadd.f32 %v639_v43, %v599_v41 }
 0x210   :  { %807 = vst.msk [vmem:[%s1577_s7 + $0x50] sm:$0xff] %vm29_vm1, %v791_v44  ;;  %680 = vst.msk [vmem:[%s1575_s6 + $0x58] sm:$0xff] %vm29_vm1, %v663_v45 }
 0x211   :  { %v618_v48 = vpop.xlane.xlu1 %617  ;;  %v744_v49 = vpop.xlane.xlu0 %743 }
 0x212   :  { %v656_v50 = vadd.f32 %v618_v48, %v592_v46  ;;  %v784_v51 = vadd.f32 %v744_v49, %v688_v47 }
 0x214   :  { %673 = vst.msk [vmem:[%s1575_s6 + $0x20] sm:$0xff] %vm29_vm1, %v656_v50  ;;  %800 = vst.msk [vmem:[%s1577_s7 + $0x18] sm:$0xff] %vm29_vm1, %v784_v51 }
 0x215   :  { %v642_v54 = vpop.xlane.xlu1 %641  ;;  %v768_v55 = vpop.xlane.xlu0 %767 }
 0x216   :  { %v664_v7 = vadd.f32 %v642_v54, %v600_v52  ;;  %v792_v14 = vadd.f32 %v768_v55, %v696_v53 }
 0x218   :  { %681 = vst.msk [vmem:[%s1575_s6 + $0x60] sm:$0xff] %vm29_vm1, %v664_v7  ;;  %808 = vst.msk [vmem:[%s1577_s7 + $0x58] sm:$0xff] %vm29_vm1, %v792_v14 }
 0x219   :  { %v747_v58 = vpop.xlane.xlu1 %746  ;;  %v621_v59 = vpop.xlane.xlu0 %620 }
 0x21a   :  { %v785_v60 = vadd.f32 %v747_v58, %v689_v56  ;;  %v657_v61 = vadd.f32 %v621_v59, %v593_v57 }
 0x21c   :  { %801 = vst.msk [vmem:[%s1577_s7 + $0x20] sm:$0xff] %vm29_vm1, %v785_v60  ;;  %674 = vst.msk [vmem:[%s1575_s6 + $0x28] sm:$0xff] %vm29_vm1, %v657_v61 }
 0x21d   :  { %v771_v0 = vpop.xlane.xlu1 %770  ;;  %v645_v1 = vpop.xlane.xlu0 %644 }
 0x21e   :  { %v793_v20 = vadd.f32 %v771_v0, %v697_v62  ;;  %v665_v22 = vadd.f32 %v645_v1, %v601_v63 }
 0x220   :  { %809 = vst.msk [vmem:[%s1577_s7 + $0x60] sm:$0xff] %vm29_vm1, %v793_v20  ;;  %682 = vst.msk [vmem:[%s1575_s6 + $0x68] sm:$0xff] %vm29_vm1, %v665_v22 }
 0x221   :  { %v624_v4 = vpop.xlane.xlu1 %623  ;;  %v750_v8 = vpop.xlane.xlu0 %749 }
 0x222   :  { %v658_v10 = vadd.f32 %v624_v4, %v594_v2  ;;  %v786_v12 = vadd.f32 %v750_v8, %v690_v3 }
 0x224   :  { %675 = vst.msk [vmem:[%s1575_s6 + $0x30] sm:$0xff] %vm29_vm1, %v658_v10  ;;  %802 = vst.msk [vmem:[%s1577_s7 + $0x28] sm:$0xff] %vm29_vm1, %v786_v12 }
 0x225   :  { %v648_v16 = vpop.xlane.xlu1 %647  ;;  %v774_v17 = vpop.xlane.xlu0 %773 }
 0x226   :  { %v666_v9 = vadd.f32 %v648_v16, %v602_v13  ;;  %v794_v18 = vadd.f32 %v774_v17, %v698_v15 }
 0x228   :  { %683 = vst.msk [vmem:[%s1575_s6 + $0x70] sm:$0xff] %vm29_vm1, %v666_v9  ;;  %810 = vst.msk [vmem:[%s1577_s7 + $0x68] sm:$0xff] %vm29_vm1, %v794_v18 }
 0x229   :  { %v753_v24 = vpop.xlane.xlu1 %752  ;;  %v627_v25 = vpop.xlane.xlu0 %626 }
 0x22a   :  { %v787_v5 = vadd.f32 %v753_v24, %v691_v21  ;;  %v659_v6 = vadd.f32 %v627_v25, %v595_v23 }
 0x22c   :  { %803 = vst.msk [vmem:[%s1577_s7 + $0x30] sm:$0xff] %vm29_vm1, %v787_v5  ;;  %676 = vst.msk [vmem:[%s1575_s6 + $0x38] sm:$0xff] %vm29_vm1, %v659_v6 }
 0x22d   :  { %v777_v28 = vpop.xlane.xlu1 %776  ;;  %v651_v29 = vpop.xlane.xlu0 %650 }
 0x22e   :  { %v795_v30 = vadd.f32 %v777_v28, %v699_v26  ;;  %v667_v31 = vadd.f32 %v651_v29, %v603_v27 }
 0x230   :  { %811 = vst.msk [vmem:[%s1577_s7 + $0x70] sm:$0xff] %vm29_vm1, %v795_v30  ;;  %684 = vst.msk [vmem:[%s1575_s6 + $0x78] sm:$0xff] %vm29_vm1, %v667_v31 }
 0x231   :  { %v756_v33 = vpop.xlane.xlu0 %755 }
 0x232   :  { %v788_v34 = vadd.f32 %v756_v33, %v692_v32 }
 0x234   :  { %804 = vst.msk [vmem:[%s1577_s7 + $0x38] sm:$0xff] %vm29_vm1, %v788_v34 }
 0x235   :  { %v780_v36 = vpop.xlane.xlu0 %779 }
 0x236   :  { %v796_v37 = vadd.f32 %v780_v36, %v700_v35 }
 0x238   :  { %812 = vst.msk [vmem:[%s1577_s7 + $0x78] sm:$0xff] %vm29_vm1, %v796_v37 }

// kernel: dense_block.9
= control target key start
LH: loop header
LB: loop body
LE: loop exit
PB: predicated region body
PF: predicated region fallthrough
CT: control target
= control target key end

     0   :  { %v1140_v0 = vmov 0   ;;  %v1919_v19 = vmov 0.0   ;;  %vm308_vm0 = vcmask 523264   ;;  %s1142_s23 = smov 1   ;;  %s1908_s2 = inlined_call_operand.vmem [shape: f32[64,1], index: 2, kind: input, shape index: {}]   ;;  %s1909_s1 = inlined_call_operand.vmem [shape: f32[64,1], index: 1, kind: input, shape index: {}]   ;;  %s1910_s4 = inlined_call_operand.vmem [shape: f32[128,1], index: 4, kind: input, shape index: {}]   ;;  %s1911_s5 = inlined_call_operand.vmem [shape: f32[128,1], index: 5, kind: input, shape index: {}]   ;;  %s1912_s6 = inlined_call_operand.vmem [shape: f32[128,1], index: 6, kind: input, shape index: {}]   ;;  %s1913_s0 = inlined_call_operand.vmem [shape: f32[128,256], index: 0, kind: input, shape index: {}]   ;;  %s1914_s8 = inlined_call_operand.vmem [shape: f32[32,1], index: 8, kind: input, shape index: {}]   ;;  %s1915_s3 = inlined_call_operand.vmem [shape: f32[128,64], index: 3, kind: input, shape index: {}]   ;;  %s1916_s9 = inlined_call_operand.vmem [shape: f32[1,256], index: 9, kind: input, shape index: {}]   ;;  %s1917_s7 = inlined_call_operand.vmem [shape: f32[96,128], index: 7, kind: input, shape index: {}]   ;;  %s1918_s10 = inlined_call_operand.vmem [shape: f32[32,256], index: 10, kind: output, shape index: {}]  }
   0x1   :  { %1139 = vset.pattern.permute.xlu1 %v1140_v0  ;;  %1138 = vset.pattern.permute.xlu0 %v1140_v0  ;;  %v123_v1 = vld [vmem:[%s1908_s2 + $0x38] sm:$0xff]  ;;  %v58_v3 = vld [vmem:[%s1909_s1 + $0x30] sm:$0xff]  ;;  %v57_v4 = vld [vmem:[%s1909_s1 + $0x28] sm:$0xff] }
   0x2   :  { %v59_v2 = vld [vmem:[%s1909_s1 + $0x38] sm:$0xff]  ;;  %161 = vperm.xlu1 %1139, %v123_v1   ;;  %v122_v5 = vld [vmem:[%s1908_s2 + $0x30] sm:$0xff]  ;;  %v56_v6 = vld [vmem:[%s1909_s1 + $0x20] sm:$0xff]  ;;  %421 = vmatprep.mubr.f32.mxu0 %v1919_v19 }
   0x3   :  { %97 = vperm.xlu0 %1138, %v59_v2   ;;  %v121_v7 = vld [vmem:[%s1908_s2 + $0x28] sm:$0xff]  ;;  %v55_v8 = vld [vmem:[%s1909_s1 + $0x18] sm:$0xff]  ;;  %v120_v9 = vld [vmem:[%s1908_s2 + $0x20] sm:$0xff]  ;;  %925 = vmatprep.mubr.f32.mxu1 %v1919_v19 }
   0x4   :  { %v54_v10 = vld [vmem:[%s1909_s1 + $0x10] sm:$0xff]  ;;  %v119_v11 = vld [vmem:[%s1908_s2 + $0x18] sm:$0xff]  ;;  %v53_v12 = vld [vmem:[%s1909_s1 + $0x8] sm:$0xff] }
   0x5   :  { %v118_v13 = vld [vmem:[%s1908_s2 + $0x10] sm:$0xff]  ;;  %v52_v14 = vld [vmem:[%s1909_s1] sm:$0xff]  ;;  %v117_v15 = vld [vmem:[%s1908_s2 + $0x8] sm:$0xff] }
   0x6   :  { %87 = vperm.xlu1 %1139, %v57_v4   ;;  %v116_v16 = vld [vmem:[%s1908_s2] sm:$0xff]  ;;  %v227_v17 = vld [vmem:[%s1910_s4 + $0x78] sm:$0xff]  ;;  %v226_v18 = vld [vmem:[%s1910_s4 + $0x70] sm:$0xff] }
   0x7   :  { %92 = vperm.xlu0 %1138, %v58_v3   ;;  %v533_v20 = vld [vmem:[%s1911_s5 + $0x78] sm:$0xff]  ;;  %v225_v21 = vld [vmem:[%s1910_s4 + $0x68] sm:$0xff]  ;;  %v532_v22 = vld [vmem:[%s1911_s5 + $0x70] sm:$0xff] }
   0x8   :  { %v661_v23 = vld [vmem:[%s1912_s6 + $0x78] sm:$0xff]  ;;  %v224_v24 = vld [vmem:[%s1910_s4 + $0x60] sm:$0xff]  ;;  %v531_v25 = vld [vmem:[%s1911_s5 + $0x68] sm:$0xff] }
   0x9   :  { %v660_v26 = vld [vmem:[%s1912_s6 + $0x70] sm:$0xff]  ;;  %v223_v27 = vld [vmem:[%s1910_s4 + $0x58] sm:$0xff]  ;;  %v530_v28 = vld [vmem:[%s1911_s5 + $0x60] sm:$0xff] }
   0xa   :  { %82 = vperm.xlu1 %1139, %v56_v6   ;;  %v659_v29 = vld [vmem:[%s1912_s6 + $0x68] sm:$0xff]  ;;  %v222_v30 = vld [vmem:[%s1910_s4 + $0x50] sm:$0xff]  ;;  %v529_v31 = vld [vmem:[%s1911_s5 + $0x58] sm:$0xff] }
   0xb   :  { %156 = vperm.xlu0 %1138, %v122_v5   ;;  %v658_v32 = vld [vmem:[%s1912_s6 + $0x60] sm:$0xff]  ;;  %v221_v33 = vld [vmem:[%s1910_s4 + $0x48] sm:$0xff]  ;;  %v528_v34 = vld [vmem:[%s1911_s5 + $0x50] sm:$0xff] }
   0xc   :  { %v657_v35 = vld [vmem:[%s1912_s6 + $0x58] sm:$0xff]  ;;  %v220_v36 = vld [vmem:[%s1910_s4 + $0x40] sm:$0xff]  ;;  %v527_v37 = vld [vmem:[%s1911_s5 + $0x48] sm:$0xff] }
   0xd   :  { %v656_v38 = vld [vmem:[%s1912_s6 + $0x50] sm:$0xff]  ;;  %v219_v39 = vld [vmem:[%s1910_s4 + $0x38] sm:$0xff]  ;;  %v526_v40 = vld [vmem:[%s1911_s5 + $0x40] sm:$0xff] }
   0xe   :  { %77 = vperm.xlu1 %1139, %v55_v8   ;;  %v655_v41 = vld [vmem:[%s1912_s6 + $0x48] sm:$0xff]  ;;  %v218_v42 = vld [vmem:[%s1910_s4 + $0x30] sm:$0xff]  ;;  %v525_v43 = vld [vmem:[%s1911_s5 + $0x38] sm:$0xff] }
   0xf   :  { %151 = vperm.xlu0 %1138, %v121_v7   ;;  %v654_v44 = vld [vmem:[%s1912_s6 + $0x40] sm:$0xff]  ;;  %v217_v45 = vld [vmem:[%s1910_s4 + $0x28] sm:$0xff]  ;;  %v524_v46 = vld [vmem:[%s1911_s5 + $0x30] sm:$0xff] }
  0x10   :  { %v653_v47 = vld [vmem:[%s1912_s6 + $0x38] sm:$0xff]  ;;  %v216_v48 = vld [vmem:[%s1910_s4 + $0x20] sm:$0xff]  ;;  %v523_v49 = vld [vmem:[%s1911_s5 + $0x28] sm:$0xff] }
  0x11   :  { %v652_v50 = vld [vmem:[%s1912_s6 + $0x30] sm:$0xff]  ;;  %v215_v51 = vld [vmem:[%s1910_s4 + $0x18] sm:$0xff]  ;;  %v522_v52 = vld [vmem:[%s1911_s5 + $0x20] sm:$0xff] }
  0x12   :  { %72 = vperm.xlu1 %1139, %v54_v10   ;;  %v651_v53 = vld [vmem:[%s1912_s6 + $0x28] sm:$0xff]  ;;  %v214_v54 = vld [vmem:[%s1910_s4 + $0x10] sm:$0xff]  ;;  %v521_v55 = vld [vmem:[%s1911_s5 + $0x18] sm:$0xff] }
  0x13   :  { %146 = vperm.xlu0 %1138, %v120_v9   ;;  %v650_v56 = vld [vmem:[%s1912_s6 + $0x20] sm:$0xff]  ;;  %v213_v57 = vld [vmem:[%s1910_s4 + $0x8] sm:$0xff]  ;;  %v520_v58 = vld [vmem:[%s1911_s5 + $0x10] sm:$0xff] }
  0x14   :  { %v649_v59 = vld [vmem:[%s1912_s6 + $0x18] sm:$0xff]  ;;  %v212_v60 = vld [vmem:[%s1910_s4] sm:$0xff]  ;;  %v519_v61 = vld [vmem:[%s1911_s5 + $0x8] sm:$0xff] }
  0x15   :  { %v648_v62 = vld [vmem:[%s1912_s6 + $0x10] sm:$0xff]  ;;  %v518_v63 = vld [vmem:[%s1911_s5] sm:$0xff]  ;;  %v51_v1 = vld [vmem:[%s1913_s0 + $0x78] sm:$0xff] }
  0x16   :  { %67 = vperm.xlu1 %1139, %v53_v12   ;;  %v50_v0 = vld [vmem:[%s1913_s0 + $0x70] sm:$0xff]  ;;  %v647_v2 = vld [vmem:[%s1912_s6 + $0x8] sm:$0xff]  ;;  %v646_v3 = vld [vmem:[%s1912_s6] sm:$0xff] }
  0x17   :  { %141 = vperm.xlu0 %1138, %v119_v11   ;;  %v1050_v8 = vld [vmem:[%s1914_s8] sm:$0xff]  ;;  %v1051_v9 = vld [vmem:[%s1914_s8 + $0x8] sm:$0xff] }
  0x1a   :  { %62 = vperm.xlu1 %1139, %v52_v14   ;;  %v49_v14 = vld [vmem:[%s1913_s0 + $0x68] sm:$0xff] }
  0x1b   :  { %136 = vperm.xlu0 %1138, %v118_v13   ;;  %v48_v13 = vld [vmem:[%s1913_s0 + $0x60] sm:$0xff] }
  0x1e   :  { %126 = vperm.xlu1 %1139, %v116_v16  }
  0x1f   :  { %131 = vperm.xlu0 %1138, %v117_v15  }
  0x22   :  { %300 = vperm.xlu1 %1139, %v226_v18  }
  0x23   :  { %305 = vperm.xlu0 %1138, %v227_v17  }
  0x26   :  { %295 = vperm.xlu1 %1139, %v225_v21   ;;  %v1052_v21 = vld [vmem:[%s1914_s8 + $0x10] sm:$0xff] }
  0x27   :  { %611 = vperm.xlu0 %1138, %v533_v20  }
  0x2a   :  { %739 = vperm.xlu1 %1139, %v661_v23   ;;  %v46_v23 = vld [vmem:[%s1913_s0 + $0x50] sm:$0xff] }
  0x2b   :  { %606 = vperm.xlu0 %1138, %v532_v22   ;;  %v1053_v22 = vld [vmem:[%s1914_s8 + $0x18] sm:$0xff] }
  0x2e   :  { %601 = vperm.xlu1 %1139, %v531_v25  }
  0x2f   :  { %290 = vperm.xlu0 %1138, %v224_v24   ;;  %v47_v24 = vld [vmem:[%s1913_s0 + $0x58] sm:$0xff] }
  0x32   :  { %285 = vperm.xlu1 %1139, %v223_v27  }
  0x33   :  { %734 = vperm.xlu0 %1138, %v660_v26  }
  0x36   :  { %729 = vperm.xlu1 %1139, %v659_v29  }
  0x37   :  { %596 = vperm.xlu0 %1138, %v530_v28  }
  0x3a   :  { %591 = vperm.xlu1 %1139, %v529_v31  }
  0x3b   :  { %280 = vperm.xlu0 %1138, %v222_v30  }
  0x3e   :  { %275 = vperm.xlu1 %1139, %v221_v33   ;;  %v44_v33 = vld [vmem:[%s1913_s0 + $0x40] sm:$0xff] }
  0x3f   :  { %724 = vperm.xlu0 %1138, %v658_v32  }
  0x42   :  { %719 = vperm.xlu1 %1139, %v657_v35  }
  0x43   :  { %586 = vperm.xlu0 %1138, %v528_v34   ;;  %v45_v34 = vld [vmem:[%s1913_s0 + $0x48] sm:$0xff] }
  0x46   :  { %581 = vperm.xlu1 %1139, %v527_v37  }
  0x47   :  { %270 = vperm.xlu0 %1138, %v220_v36  }
  0x4a   :  { %265 = vperm.xlu1 %1139, %v219_v39  }
  0x4b   :  { %714 = vperm.xlu0 %1138, %v656_v38  }
  0x4e   :  { %709 = vperm.xlu1 %1139, %v655_v41  }
  0x4f   :  { %576 = vperm.xlu0 %1138, %v526_v40  }
  0x52   :  { %571 = vperm.xlu1 %1139, %v525_v43   ;;  %v42_v43 = vld [vmem:[%s1913_s0 + $0x30] sm:$0xff] }
  0x53   :  { %260 = vperm.xlu0 %1138, %v218_v42  }
  0x56   :  { %255 = vperm.xlu1 %1139, %v217_v45  }
  0x57   :  { %704 = vperm.xlu0 %1138, %v654_v44   ;;  %v43_v44 = vld [vmem:[%s1913_s0 + $0x38] sm:$0xff] }
  0x5a   :  { %699 = vperm.xlu1 %1139, %v653_v47  }
  0x5b   :  { %566 = vperm.xlu0 %1138, %v524_v46  }
  0x5e   :  { %561 = vperm.xlu1 %1139, %v523_v49  }
  0x5f   :  { %250 = vperm.xlu0 %1138, %v216_v48  }
  0x62   :  { %245 = vperm.xlu1 %1139, %v215_v51  }
  0x63   :  { %694 = vperm.xlu0 %1138, %v652_v50  }
  0x66   :  { %689 = vperm.xlu1 %1139, %v651_v53   ;;  %v40_v53 = vld [vmem:[%s1913_s0 + $0x20] sm:$0xff] }
  0x67   :  { %556 = vperm.xlu0 %1138, %v522_v52  }
  0x6a   :  { %551 = vperm.xlu1 %1139, %v521_v55  }
  0x6b   :  { %240 = vperm.xlu0 %1138, %v214_v54   ;;  %v41_v54 = vld [vmem:[%s1913_s0 + $0x28] sm:$0xff] }
  0x6e   :  { %235 = vperm.xlu1 %1139, %v213_v57  }
  0x6f   :  { %684 = vperm.xlu0 %1138, %v650_v56  }
  0x72   :  { %679 = vperm.xlu1 %1139, %v649_v59  }
  0x73   :  { %546 = vperm.xlu0 %1138, %v520_v58  }
  0x76   :  { %541 = vperm.xlu1 %1139, %v519_v61  }
  0x77   :  { %230 = vperm.xlu0 %1138, %v212_v60  }
  0x7a   :  { %536 = vperm.xlu1 %1139, %v518_v63   ;;  %v38_v63 = vld [vmem:[%s1913_s0 + $0x10] sm:$0xff] }
  0x7b   :  { %674 = vperm.xlu0 %1138, %v648_v62  }
  0x7d   :  { %v162_v4 = vpop.permute.xlu1 %161 }
  0x7e   :  { %v98_v5 = vpop.permute.xlu0 %97  ;;  %664 = vperm.xlu1 %1139, %v646_v3   ;;  %v37_v3 = vld [vmem:[%s1913_s0 + $0x8] sm:$0xff] }
  0x7f   :  { %v114_v6 = vmul.f32 %v98_v5, %v50_v0  ;;  %v115_v7 = vmul.f32 %v98_v5, %v51_v1  ;;  %669 = vperm.xlu0 %1138, %v647_v2   ;;  %v39_v0 = vld [vmem:[%s1913_s0 + $0x18] sm:$0xff] }
  0x81   :  { %v179_v10 = vadd.f32 %v162_v4, %v115_v7  ;;  %v178_v11 = vadd.f32 %v162_v4, %v114_v6  ;;  %v88_v15 = vpop.permute.xlu1 %87  ;;  %v36_v6 = vld [vmem:[%s1913_s0] sm:$0xff] }
  0x82   :  { %v93_v12 = vpop.permute.xlu0 %92  ;;  %1061 = vperm.xlu1 %1139, %v1051_v9   ;;  %v110_v29 = vmul.f32 %v88_v15, %v46_v23  ;;  %v111_v30 = vmul.f32 %v88_v15, %v47_v24  ;;  %v196_v24 = vld [vmem:[%s1915_s3] sm:$0xff] }
  0x83   :  { %1056 = vperm.xlu0 %1138, %v1050_v8   ;;  %v195_v16 = vmax.f32 %v179_v10, 0.0  ;;  %v194_v17 = vmax.f32 %v178_v11, 0.0  ;;  %v112_v18 = vmul.f32 %v93_v12, %v48_v13  ;;  %v113_v20 = vmul.f32 %v93_v12, %v49_v14 }
  0x85   :  { %373 = vmatprep.subr.mxu0 %v195_v16  ;;  %v83_v26 = vpop.permute.xlu1 %82 }
  0x86   :  { %v157_v25 = vpop.permute.xlu0 %156  ;;  %374 = vmatpush1.msra.mxu0 %v194_v17  ;;  %1071 = vperm.xlu1 %1139, %v1053_v22   ;;  %v108_v39 = vmul.f32 %v83_v26, %v44_v33  ;;  %v109_v40 = vmul.f32 %v83_v26, %v45_v34  ;;  %v198_v26 = vld [vmem:[%s1915_s3 + $0x10] sm:$0xff]  ;;  %v205_v33 = vld [vmem:[%s1915_s3 + $0x48] sm:$0xff] }
  0x87   :  { %v176_v27 = vadd.f32 %v157_v25, %v112_v18  ;;  %v177_v28 = vadd.f32 %v157_v25, %v113_v20  ;;  %1066 = vperm.xlu0 %1138, %v1052_v21   ;;  %v197_v25 = vld [vmem:[%s1915_s3 + $0x8] sm:$0xff]  ;;  %v206_v34 = vld [vmem:[%s1915_s3 + $0x50] sm:$0xff] }
  0x89   :  { %v192_v31 = vmax.f32 %v176_v27, 0.0  ;;  %v193_v32 = vmax.f32 %v177_v28, 0.0  ;;  %v78_v36 = vpop.permute.xlu1 %77  ;;  %v199_v27 = vld [vmem:[%s1915_s3 + $0x18] sm:$0xff]  ;;  %v200_v28 = vld [vmem:[%s1915_s3 + $0x20] sm:$0xff] }
  0x8a   :  { %v152_v35 = vpop.permute.xlu0 %151  ;;  %v106_v49 = vmul.f32 %v78_v36, %v42_v43  ;;  %v107_v50 = vmul.f32 %v78_v36, %v43_v44  ;;  %v208_v36 = vld [vmem:[%s1915_s3 + $0x60] sm:$0xff] }
  0x8b   :  { %v174_v37 = vadd.f32 %v152_v35, %v110_v29  ;;  %v175_v38 = vadd.f32 %v152_v35, %v111_v30  ;;  %375 = vmatprep.subr.mxu0 %v193_v32  ;;  %v201_v29 = vld [vmem:[%s1915_s3 + $0x28] sm:$0xff]  ;;  %v202_v30 = vld [vmem:[%s1915_s3 + $0x30] sm:$0xff]  ;;  %v204_v32 = vld [vmem:[%s1915_s3 + $0x40] sm:$0xff] }
  0x8c   :  { %376 = vmatpush1.msra.mxu0 %v192_v31  ;;  %v203_v31 = vld [vmem:[%s1915_s3 + $0x38] sm:$0xff] }
  0x8d   :  { %v190_v41 = vmax.f32 %v174_v37, 0.0  ;;  %v191_v42 = vmax.f32 %v175_v38, 0.0  ;;  %v73_v46 = vpop.permute.xlu1 %72  ;;  %v207_v35 = vld [vmem:[%s1915_s3 + $0x58] sm:$0xff]  ;;  %v209_v37 = vld [vmem:[%s1915_s3 + $0x68] sm:$0xff]  ;;  %v210_v38 = vld [vmem:[%s1915_s3 + $0x70] sm:$0xff] }
  0x8e   :  { %v147_v45 = vpop.permute.xlu0 %146  ;;  %v104_v59 = vmul.f32 %v73_v46, %v40_v53  ;;  %v105_v60 = vmul.f32 %v73_v46, %v41_v54 }
  0x8f   :  { %v172_v47 = vadd.f32 %v147_v45, %v108_v39  ;;  %v173_v48 = vadd.f32 %v147_v45, %v109_v40  ;;  %377 = vmatprep.subr.mxu0 %v191_v42  ;;  %v211_v39 = vld [vmem:[%s1915_s3 + $0x78] sm:$0xff] }
  0x90   :  { %378 = vmatpush1.msra.mxu0 %v190_v41 }
  0x91   :  { %v188_v51 = vmax.f32 %v172_v47, 0.0  ;;  %v189_v52 = vmax.f32 %v173_v48, 0.0  ;;  %v68_v56 = vpop.permute.xlu1 %67 }
  0x92   :  { %v142_v55 = vpop.permute.xlu0 %141  ;;  %v102_v7 = vmul.f32 %v68_v56, %v38_v63  ;;  %v103_v8 = vmul.f32 %v68_v56, %v39_v0 }
  0x93   :  { %v170_v57 = vadd.f32 %v142_v55, %v106_v49  ;;  %v171_v58 = vadd.f32 %v142_v55, %v107_v50  ;;  %379 = vmatprep.subr.mxu0 %v189_v52 }
  0x94   :  { %380 = vmatpush1.msra.mxu0 %v188_v51 }
  0x95   :  { %v186_v61 = vmax.f32 %v170_v57, 0.0  ;;  %v187_v62 = vmax.f32 %v171_v58, 0.0  ;;  %v63_v2 = vpop.permute.xlu1 %62 }
  0x96   :  { %v137_v1 = vpop.permute.xlu0 %136  ;;  %v101_v11 = vmul.f32 %v63_v2, %v37_v3  ;;  %v100_v12 = vmul.f32 %v63_v2, %v36_v6 }
  0x97   :  { %v168_v4 = vadd.f32 %v137_v1, %v104_v59  ;;  %v169_v5 = vadd.f32 %v137_v1, %v105_v60  ;;  %381 = vmatprep.subr.mxu0 %v187_v62 }
  0x98   :  { %382 = vmatpush1.msra.mxu0 %v186_v61 }
  0x99   :  { %v184_v9 = vmax.f32 %v168_v4, 0.0  ;;  %v185_v10 = vmax.f32 %v169_v5, 0.0  ;;  %v127_v14 = vpop.permute.xlu1 %126 }
  0x9a   :  { %v132_v13 = vpop.permute.xlu0 %131  ;;  %v165_v17 = vadd.f32 %v127_v14, %v101_v11  ;;  %v164_v18 = vadd.f32 %v127_v14, %v100_v12 }
  0x9b   :  { %v166_v15 = vadd.f32 %v132_v13, %v102_v7  ;;  %v167_v16 = vadd.f32 %v132_v13, %v103_v8  ;;  %383 = vmatprep.subr.mxu0 %v185_v10 }
  0x9c   :  { %384 = vmatpush1.msra.mxu0 %v184_v9  ;;  %v181_v22 = vmax.f32 %v165_v17, 0.0  ;;  %v180_v23 = vmax.f32 %v164_v18, 0.0 }
  0x9d   :  { %v182_v20 = vmax.f32 %v166_v15, 0.0  ;;  %v183_v21 = vmax.f32 %v167_v16, 0.0  ;;  %v1536_v42 = vpop.permute.xlu1 %300 }
  0x9e   :  { %v1532_v40 = vpop.permute.xlu0 %305 }
  0x9f   :  { %385 = vmatprep.subr.mxu0 %v183_v21 }
  0xa0   :  { %386 = vmatpush1.msra.mxu0 %v182_v20 }
  0xa1   :  { %387 = vmatprep.subr.mxu0 %v181_v22  ;;  %v1540_v44 = vpop.permute.xlu1 %295 }
  0xa2   :  { %388 = vmatpush1.msra.mxu0 %v180_v23  ;;  %v1534_v41 = vpop.permute.xlu0 %611 }
  0xa3   :  { %1118 = vmatmul.mubr.msk.f32.vlgmr.msra.gmra.mxu0 %vm308_vm0, %v196_v24 }
  0xa4   :  { %427 = vmatprep.mubr.f32.mxu0 %v1919_v19 }
  0xa5   :  { %v1544_v46 = vpop.permute.xlu1 %739 }
  0xa6   :  { %v1538_v43 = vpop.permute.xlu0 %606 }
  0xa7   :  { %1119 = vmatmul.mubr.msk.f32.gmra.mxu0 %vm308_vm0, %v197_v25 }
  0xa8   :  { %433 = vmatprep.mubr.f32.mxu0 %v1919_v19 }
  0xa9   :  { %v1548_v48 = vpop.permute.xlu1 %601 }
  0xaa   :  { %v1542_v45 = vpop.permute.xlu0 %290 }
  0xab   :  { %1120 = vmatmul.mubr.msk.f32.gmra.mxu0 %vm308_vm0, %v198_v26 }
  0xac   :  { %439 = vmatprep.mubr.f32.mxu0 %v1919_v19 }
  0xad   :  { %v1552_v50 = vpop.permute.xlu1 %285 }
  0xae   :  { %v1546_v47 = vpop.permute.xlu0 %734 }
  0xaf   :  { %1121 = vmatmul.mubr.msk.f32.gmra.mxu0 %vm308_vm0, %v199_v27 }
  0xb0   :  { %445 = vmatprep.mubr.f32.mxu0 %v1919_v19 }
  0xb1   :  { %v1556_v52 = vpop.permute.xlu1 %729 }
  0xb2   :  { %v1550_v49 = vpop.permute.xlu0 %596 }
  0xb3   :  { %1122 = vmatmul.mubr.msk.f32.gmra.mxu0 %vm308_vm0, %v200_v28 }
  0xb4   :  { %451 = vmatprep.mubr.f32.mxu0 %v1919_v19 }
  0xb5   :  { %v1560_v54 = vpop.permute.xlu1 %591 }
  0xb6   :  { %v1554_v51 = vpop.permute.xlu0 %280 }
  0xb7   :  { %1123 = vmatmul.mubr.msk.f32.gmra.mxu0 %vm308_vm0, %v201_v29 }
  0xb8   :  { %457 = vmatprep.mubr.f32.mxu0 %v1919_v19 }
  0xb9   :  { %v1564_v56 = vpop.permute.xlu1 %275 }
  0xba   :  { %v1558_v53 = vpop.permute.xlu0 %724 }
  0xbb   :  { %1124 = vmatmul.mubr.msk.f32.gmra.mxu0 %vm308_vm0, %v202_v30  ;;  %1941 = vst [vmem:[#allocation2_spill] sm:$0xff] %v1558_v53 }
  0xbc   :  { %463 = vmatprep.mubr.f32.mxu0 %v1919_v19 }
  0xbd   :  { %v1568_v58 = vpop.permute.xlu1 %719 }
  0xbe   :  { %v1562_v55 = vpop.permute.xlu0 %586  ;;  %1943 = vst [vmem:[#allocation4_spill] sm:$0xff] %v1568_v58 }
  0xbf   :  { %1125 = vmatmul.mubr.msk.f32.gmra.mxu0 %vm308_vm0, %v203_v31  ;;  %1942 = vst [vmem:[#allocation3_spill] sm:$0xff] %v1562_v55 }
  0xc0   :  { %469 = vmatprep.mubr.f32.mxu0 %v1919_v19 }
  0xc1   :  { %v1572_v60 = vpop.permute.xlu1 %581 }
  0xc2   :  { %v1566_v57 = vpop.permute.xlu0 %270  ;;  %1945 = vst [vmem:[#allocation6_spill] sm:$0xff] %v1572_v60 }
  0xc3   :  { %1126 = vmatmul.mubr.msk.f32.gmra.mxu0 %vm308_vm0, %v204_v32 }
  0xc4   :  { %475 = vmatprep.mubr.f32.mxu0 %v1919_v19 }
  0xc5   :  { %v1576_v63 = vpop.permute.xlu1 %265 }
  0xc6   :  { %v1570_v59 = vpop.permute.xlu0 %714 }
  0xc7   :  { %1127 = vmatmul.mubr.msk.f32.gmra.mxu0 %vm308_vm0, %v205_v33  ;;  %1944 = vst [vmem:[#allocation5_spill] sm:$0xff] %v1570_v59 }
  0xc8   :  { %481 = vmatprep.mubr.f32.mxu0 %v1919_v19 }
  0xc9   :  { %v1580_v4 = vpop.permute.xlu1 %709 }
  0xca   :  { %v1574_v61 = vpop.permute.xlu0 %576  ;;  %1947 = vst [vmem:[#allocation8_spill] sm:$0xff] %v1580_v4 }
  0xcb   :  { %1128 = vmatmul.mubr.msk.f32.gmra.mxu0 %vm308_vm0, %v206_v34  ;;  %1946 = vst [vmem:[#allocation7_spill] sm:$0xff] %v1574_v61 }
  0xcc   :  { %487 = vmatprep.mubr.f32.mxu0 %v1919_v19 }
  0xcd   :  { %v1584_v9 = vpop.permute.xlu1 %571 }
  0xce   :  { %v1578_v0 = vpop.permute.xlu0 %260  ;;  %1949 = vst [vmem:[#allocation10_spill] sm:$0xff] %v1584_v9 }
  0xcf   :  { %1129 = vmatmul.mubr.msk.f32.gmra.mxu0 %vm308_vm0, %v207_v35 }
  0xd0   :  { %493 = vmatprep.mubr.f32.mxu0 %v1919_v19 }
  0xd1   :  { %v256_v14 = vpop.permute.xlu1 %255 }
  0xd2   :  { %v1582_v5 = vpop.permute.xlu0 %704 }
  0xd3   :  { %1130 = vmatmul.mubr.msk.f32.gmra.mxu0 %vm308_vm0, %v208_v36  ;;  %1948 = vst [vmem:[#allocation9_spill] sm:$0xff] %v1582_v5 }
  0xd4   :  { %499 = vmatprep.mubr.f32.mxu0 %v1919_v19 }
  0xd5   :  { %v1588_v20 = vpop.permute.xlu1 %699 }
  0xd6   :  { %v1586_v10 = vpop.permute.xlu0 %566  ;;  %1951 = vst [vmem:[#allocation12_spill] sm:$0xff] %v1588_v20 }
  0xd7   :  { %1131 = vmatmul.mubr.msk.f32.gmra.mxu0 %vm308_vm0, %v209_v37  ;;  %1950 = vst [vmem:[#allocation11_spill] sm:$0xff] %v1586_v10 }
  0xd8   :  { %505 = vmatprep.mubr.f32.mxu0 %v1919_v19 }
  0xd9   :  { %v1594_v25 = vpop.permute.xlu1 %561 }
  0xda   :  { %v251_v15 = vpop.permute.xlu0 %250  ;;  %1953 = vst [vmem:[#allocation14_spill] sm:$0xff] %v1594_v25 }
  0xdb   :  { %1132 = vmatmul.mubr.msk.f32.gmra.mxu0 %vm308_vm0, %v210_v38  ;;  %v1935_v38 = vlaneseq }
  0xdc   :  { %511 = vmatprep.mubr.f32.mxu0 %v1919_v19 }
  0xdd   :  { %v246_v30 = vpop.permute.xlu1 %245 }
  0xde   :  { %v1590_v21 = vpop.permute.xlu0 %694 }
  0xdf   :  { %1133 = vmatmul.mubr.msk.f32.gmra.mxu0 %vm308_vm0, %v211_v39  ;;  %1952 = vst [vmem:[#allocation13_spill] sm:$0xff] %v1590_v21  ;;  %v808_v21 = vshrl.u32 %v1935_v38, 7 }
  0xe1   :  { %v1608_v35 = vpop.permute.xlu1 %689  ;;  %v813_v10 = vsub.s32 1, %v808_v21  ;;  %v809_v4 = vsub.s32 0, %v808_v21 }
  0xe2   :  { %v1596_v26 = vpop.permute.xlu0 %556  ;;  %1957 = vst [vmem:[#allocation18_spill] sm:$0xff] %v1608_v35  ;;  %v35_v35 = vld [vmem:[%s1916_s9] sm:$0x3] }
  0xe3   :  { %1954 = vst [vmem:[#allocation15_spill] sm:$0xff] %v1596_v26  ;;  %v1620_v58 = vrot.slane %v35_v35, %v813_v10  ;;  %v1622_v60 = vrot.slane %v35_v35, %v809_v4 }
  0xe5   :  { %v1613_v26 = vpop.permute.xlu1 %551  ;;  %1961 = vst [vmem:[#allocation22_spill] sm:$0xff] %v1620_v58 }
  0xe6   :  { %v241_v31 = vpop.permute.xlu0 %240  ;;  %1959 = vst [vmem:[#allocation20_spill] sm:$0xff] %v1613_v26 }
  0xea   :  { %v1610_v36 = vpop.permute.xlu0 %684 }
  0xeb   :  { %1958 = vst [vmem:[#allocation19_spill] sm:$0xff] %v1610_v36  ;;  %v236_v36 = vpop.permute.xlu1 %235 }
  0xee   :  { %v1615_v20 = vpop.permute.xlu0 %546 }
  0xef   :  { %1960 = vst [vmem:[#allocation21_spill] sm:$0xff] %v1615_v20 }
  0xf2   :  { %v231_v59 = vpop.permute.xlu0 %230 }
 0x163   :  { %v423_v62 = vpop.f32.mrf.mxu0 }
 0x164   :  { %v1624_v38 = vadd.f32 %v423_v62, %v231_v59 }
 0x165   :  { %v425_v1 = vpop.f32.mrf.mxu0 }
 0x166   :  { %v1626_v26 = vadd.f32 %v425_v1, %v231_v59 }
 0x167   :  { %v429_v2 = vpop.f32.mrf.mxu0 }
 0x168   :  { %v1628_v20 = vadd.f32 %v429_v2, %v236_v36 }
 0x169   :  { %v431_v3 = vpop.f32.mrf.mxu0 }
 0x16b   :  { %v435_v6 = vpop.f32.mrf.mxu0 }
 0x16c   :  { %v1632_v21 = vadd.f32 %v435_v6, %v241_v31 }
 0x16d   :  { %v437_v7 = vpop.f32.mrf.mxu0 }
 0x16e   :  { %v1634_v53 = vadd.f32 %v437_v7, %v241_v31 }
 0x16f   :  { %v441_v8 = vpop.f32.mrf.mxu0 }
 0x170   :  { %v1636_v55 = vadd.f32 %v441_v8, %v246_v30 }
 0x171   :  { %v443_v11 = vpop.f32.mrf.mxu0 }
 0x172   :  { %v1639_v58 = vadd.f32 %v443_v11, %v246_v30 }
 0x173   :  { %v447_v12 = vpop.f32.mrf.mxu0 }
 0x174   :  { %v1641_v4 = vadd.f32 %v447_v12, %v251_v15 }
 0x175   :  { %v449_v13 = vpop.f32.mrf.mxu0 }
 0x176   :  { %v1645_v1 = vadd.f32 %v449_v13, %v251_v15 }
 0x177   :  { %v453_v16 = vpop.f32.mrf.mxu0 }
 0x178   :  { %v1647_v2 = vadd.f32 %v453_v16, %v256_v14 }
 0x179   :  { %v455_v17 = vpop.f32.mrf.mxu0 }
 0x17b   :  { %v459_v18 = vpop.f32.mrf.mxu0 }
 0x17d   :  { %v461_v22 = vpop.f32.mrf.mxu0 }
 0x17f   :  { %v465_v23 = vpop.f32.mrf.mxu0 }
 0x180   :  { %v466_v12 = vadd.f32 %v465_v23, %v1576_v63 }
 0x181   :  { %v1592_v24 = vpop.f32.mrf.mxu0 }
 0x183   :  { %v1598_v27 = vpop.f32.mrf.mxu0 }
 0x184   :  { %1955 = vst [vmem:[#allocation16_spill] sm:$0xff] %v1598_v27  ;;  %v1630_v27 = vadd.f32 %v431_v3, %v236_v36  ;;  %v1649_v3 = vadd.f32 %v455_v17, %v256_v14 }
 0x185   :  { %v1600_v28 = vpop.f32.mrf.mxu0 }
 0x187   :  { %v1602_v29 = vpop.f32.mrf.mxu0 }
 0x188   :  { %1956 = vst [vmem:[#allocation17_spill] sm:$0xff] %v1602_v29 }
 0x189   :  { %v1604_v32 = vpop.f32.mrf.mxu0 }
 0x18b   :  { %v1606_v33 = vpop.f32.mrf.mxu0 }
 0x18d   :  { %v485_v34 = vpop.f32.mrf.mxu0 }
 0x18f   :  { %v489_v37 = vpop.f32.mrf.mxu0  ;;  %v1962_v31 = vld [vmem:[#allocation17_spill] sm:$0xff] }
 0x191   :  { %v491_v39 = vpop.f32.mrf.mxu0 }
 0x193   :  { %v495_v19 = vpop.f32.mrf.mxu0 }
 0x194   :  { %v496_v13 = vadd.f32 %v495_v19, %v1542_v45 }
 0x195   :  { %v497_v25 = vpop.f32.mrf.mxu0 }
 0x196   :  { %v498_v8 = vadd.f32 %v497_v25, %v1542_v45 }
 0x197   :  { %v501_v5 = vpop.f32.mrf.mxu0 }
 0x198   :  { %v502_v6 = vadd.f32 %v501_v5, %v1540_v44  ;;  %v492_v5 = vadd.f32 %v491_v39, %v1552_v50  ;;  %v1965_v39 = vld [vmem:[#allocation16_spill] sm:$0xff] }
 0x199   :  { %v503_v9 = vpop.f32.mrf.mxu0 }
 0x19a   :  { %v504_v59 = vadd.f32 %v503_v9, %v1540_v44  ;;  %v640_v19 = vmul.f32 %v1548_v48, %v502_v6 }
 0x19b   :  { %v507_v61 = vpop.f32.mrf.mxu0 }
 0x19c   :  { %v508_v29 = vadd.f32 %v507_v61, %v1536_v42  ;;  %v1653_v61 = vadd.f32 %v459_v18, %v1578_v0  ;;  %v641_v15 = vmul.f32 %v1548_v48, %v504_v59  ;;  %v468_v18 = vadd.f32 %v1592_v24, %v1576_v63 }
 0x19d   :  { %v509_v10 = vpop.f32.mrf.mxu0  ;;  %v484_v63 = vadd.f32 %v1606_v33, %v1554_v51  ;;  %v638_v24 = vmul.f32 %v1550_v49, %v496_v13  ;;  %v480_v48 = vadd.f32 %v1604_v32, %v1564_v56 }
 0x19e   :  { %v510_v62 = vadd.f32 %v509_v10, %v1536_v42  ;;  %v1659_v42 = vadd.f32 %v461_v22, %v1578_v0  ;;  %v642_v14 = vmul.f32 %v1538_v43, %v508_v29  ;;  %v486_v0 = vadd.f32 %v485_v34, %v1554_v51 }
 0x19f   :  { %v513_v7 = vpop.f32.mrf.mxu0  ;;  %v490_v22 = vadd.f32 %v489_v37, %v1552_v50  ;;  %v637_v29 = vmul.f32 %v1560_v54, %v492_v5  ;;  %v769_v30 = vadd.f32 %v1556_v52, %v641_v15  ;;  %v478_v34 = vadd.f32 %v1962_v31, %v1564_v56  ;;  %v1966_v56 = vld [vmem:[#allocation6_spill] sm:$0xff]  ;;  %v1970_v15 = vld [vmem:[#allocation5_spill] sm:$0xff] }
 0x1a0   :  { %v643_v11 = vmul.f32 %v1538_v43, %v510_v62  ;;  %v514_v9 = vadd.f32 %v513_v7, %v1532_v40  ;;  %v639_v43 = vmul.f32 %v1550_v49, %v498_v8  ;;  %v770_v50 = vadd.f32 %v1546_v47, %v642_v14  ;;  %v1963_v49 = vld [vmem:[#allocation3_spill] sm:$0xff]  ;;  %v1968_v8 = vld [vmem:[#allocation22_spill] sm:$0xff] }
 0x1a1   :  { %v515_v44 = vpop.f32.mrf.mxu0  ;;  %v768_v51 = vadd.f32 %v1556_v52, %v640_v19  ;;  %v635_v35 = vmul.f32 %v1963_v49, %v486_v0  ;;  %v472_v10 = vadd.f32 %v1965_v39, %v1566_v57  ;;  %v634_v59 = vmul.f32 %v1963_v49, %v484_v63  ;;  %v1976_v39 = vld [vmem:[#allocation12_spill] sm:$0xff] }
 0x1a2   :  { %v644_v16 = vmul.f32 %v1534_v41, %v514_v9  ;;  %v516_v17 = vadd.f32 %v515_v44, %v1532_v40  ;;  %v771_v45 = vadd.f32 %v1546_v47, %v643_v11  ;;  %v474_v40 = vadd.f32 %v1600_v28, %v1566_v57  ;;  %v1964_v47 = vld [vmem:[#allocation2_spill] sm:$0xff]  ;;  %v1969_v57 = vld [vmem:[#allocation7_spill] sm:$0xff] }
 0x1a3   :  { %v636_v28 = vmul.f32 %v1560_v54, %v490_v22  ;;  %v767_v36 = vadd.f32 %v1964_v47, %v639_v43  ;;  %v802_v62 = vmax.f32 %v770_v50, 0.0  ;;  %v633_v6 = vmul.f32 %v1966_v56, %v480_v48  ;;  %v1967_v54 = vld [vmem:[#allocation4_spill] sm:$0xff]  ;;  %v1707_v22 = vpop.permute.xlu1 %679 }
 0x1a4   :  { %v645_v23 = vmul.f32 %v1534_v41, %v516_v17  ;;  %v772_v25 = vadd.f32 %v1544_v46, %v644_v16  ;;  %v803_v37 = vmax.f32 %v771_v45, 0.0  ;;  %v765_v7 = vadd.f32 %v1967_v54, %v637_v29 }
 0x1a5   :  { %v801_v52 = vmax.f32 %v769_v30, 0.0  ;;  %v632_v9 = vmul.f32 %v1966_v56, %v478_v34  ;;  %v764_v13 = vadd.f32 %v1967_v54, %v636_v28  ;;  %v800_v14 = vmax.f32 %v768_v51, 0.0  ;;  %v1973_v34 = vld [vmem:[#allocation11_spill] sm:$0xff]  ;;  %v1974_v51 = vld [vmem:[#allocation9_spill] sm:$0xff] }
 0x1a6   :  { %v773_v41 = vadd.f32 %v1544_v46, %v645_v23  ;;  %v804_v33 = vmax.f32 %v772_v25, 0.0  ;;  %v766_v46 = vadd.f32 %v1964_v47, %v638_v24  ;;  %v631_v5 = vmul.f32 %v1969_v57, %v474_v40  ;;  %v1971_v25 = vld [vmem:[#allocation10_spill] sm:$0xff]  ;;  %v1972_v24 = vld [vmem:[#allocation8_spill] sm:$0xff]  ;;  %v1977_v54 = vld [vmem:[#allocation15_spill] sm:$0xff] }
 0x1a7   :  { %v763_v16 = vadd.f32 %v1970_v15, %v635_v35  ;;  %v799_v17 = vmax.f32 %v767_v36, 0.0  ;;  %v846_v0 = vmul.f32 %v1968_v8, %v803_v37  ;;  %v630_v19 = vmul.f32 %v1969_v57, %v472_v10  ;;  %v1975_v37 = vld [vmem:[#allocation14_spill] sm:$0xff]  ;;  %v1979_v57 = vld [vmem:[#allocation20_spill] sm:$0xff] }
 0x1a8   :  { %v805_v32 = vmax.f32 %v773_v41, 0.0  ;;  %v847_v44 = vmul.f32 %v1622_v60, %v804_v33  ;;  %v762_v43 = vadd.f32 %v1970_v15, %v634_v59  ;;  %v798_v45 = vmax.f32 %v766_v46, 0.0  ;;  %v542_v46 = vpop.permute.xlu1 %541  ;;  %v1980_v15 = vld [vmem:[#allocation18_spill] sm:$0xff] }
 0x1a9   :  { %v845_v23 = vmul.f32 %v1622_v60, %v802_v62  ;;  %v629_v63 = vmul.f32 %v1971_v25, %v468_v18  ;;  %v761_v40 = vadd.f32 %v1972_v24, %v633_v6  ;;  %v797_v50 = vmax.f32 %v765_v7, 0.0 }
 0x1aa   :  { %v848_v11 = vmul.f32 %v1968_v8, %v805_v32  ;;  %v844_v48 = vmul.f32 %v1968_v8, %v801_v52  ;;  %v628_v29 = vmul.f32 %v1971_v25, %v466_v12  ;;  %v760_v30 = vadd.f32 %v1972_v24, %v632_v9 }
 0x1ab   :  { %v796_v41 = vmax.f32 %v764_v13, 0.0  ;;  %v843_v31 = vmul.f32 %v1622_v60, %v800_v14  ;;  %v627_v28 = vmul.f32 %v1973_v34, %v1659_v42  ;;  %v759_v33 = vadd.f32 %v1974_v51, %v631_v5 }
 0x1ac   :  { %861 = vmatprep.subr.mxu1 %v848_v11  ;;  %v795_v18 = vmax.f32 %v763_v16, 0.0  ;;  %v842_v49 = vmul.f32 %v1968_v8, %v799_v17  ;;  %v626_v35 = vmul.f32 %v1973_v34, %v1653_v61  ;;  %v758_v12 = vadd.f32 %v1974_v51, %v630_v19 }
 0x1ad   :  { %862 = vmatpush1.msra.mxu1 %v847_v44  ;;  %v794_v47 = vmax.f32 %v762_v43, 0.0  ;;  %v841_v36 = vmul.f32 %v1622_v60, %v798_v45  ;;  %v625_v32 = vmul.f32 %v1975_v37, %v1649_v3  ;;  %v757_v42 = vadd.f32 %v1976_v39, %v629_v63  ;;  %v1978_v3 = vld [vmem:[#allocation13_spill] sm:$0xff] }
 0x1ae   :  { %863 = vmatprep.subr.mxu1 %v846_v0  ;;  %v793_v10 = vmax.f32 %v761_v40, 0.0  ;;  %v840_v59 = vmul.f32 %v1968_v8, %v797_v50  ;;  %v624_v62 = vmul.f32 %v1975_v37, %v1647_v2  ;;  %v756_v61 = vadd.f32 %v1976_v39, %v628_v29  ;;  %v675_v0 = vpop.permute.xlu0 %674  ;;  %v537_v50 = vpop.permute.xlu1 %536 }
 0x1af   :  { %864 = vmatpush1.msra.mxu1 %v845_v23  ;;  %v792_v56 = vmax.f32 %v760_v30, 0.0  ;;  %v839_v6 = vmul.f32 %v1622_v60, %v796_v41  ;;  %v623_v7 = vmul.f32 %v1977_v54, %v1645_v1  ;;  %v755_v52 = vadd.f32 %v1978_v3, %v627_v28  ;;  %v1981_v23 = vld [vmem:[#allocation21_spill] sm:$0xff] }
 0x1b0   :  { %865 = vmatprep.subr.mxu1 %v844_v48  ;;  %v791_v11 = vmax.f32 %v759_v33, 0.0  ;;  %v838_v9 = vmul.f32 %v1968_v8, %v795_v18  ;;  %v622_v13 = vmul.f32 %v1977_v54, %v1641_v4  ;;  %v754_v2 = vadd.f32 %v1978_v3, %v626_v35 }
 0x1b1   :  { %866 = vmatpush1.msra.mxu1 %v843_v31  ;;  %v790_v14 = vmax.f32 %v758_v12, 0.0  ;;  %v837_v44 = vmul.f32 %v1622_v60, %v794_v47  ;;  %v621_v5 = vmul.f32 %v1979_v57, %v1639_v58  ;;  %v753_v1 = vadd.f32 %v1980_v15, %v625_v32  ;;  %v1982_v58 = vld [vmem:[#allocation19_spill] sm:$0xff] }
 0x1b2   :  { %867 = vmatprep.subr.mxu1 %v842_v49  ;;  %v789_v16 = vmax.f32 %v757_v42, 0.0  ;;  %v836_v17 = vmul.f32 %v1968_v8, %v793_v10  ;;  %v620_v19 = vmul.f32 %v1979_v57, %v1636_v55  ;;  %v752_v4 = vadd.f32 %v1980_v15, %v624_v62  ;;  %v670_v12 = vpop.permute.xlu0 %669  ;;  %v665_v42 = vpop.permute.xlu1 %664  ;;  %v849_v15 = vld [vmem:[%s1917_s7] sm:$0xff] }
 0x1b3   :  { %868 = vmatpush1.msra.mxu1 %v841_v36  ;;  %v788_v43 = vmax.f32 %v756_v61, 0.0  ;;  %v835_v45 = vmul.f32 %v1622_v60, %v792_v56  ;;  %v619_v25 = vmul.f32 %v1981_v23, %v1634_v53  ;;  %v751_v63 = vadd.f32 %v1982_v58, %v623_v7 }
 0x1b4   :  { %869 = vmatprep.subr.mxu1 %v840_v59  ;;  %v787_v24 = vmax.f32 %v755_v52, 0.0  ;;  %v834_v40 = vmul.f32 %v1968_v8, %v791_v11  ;;  %v618_v48 = vmul.f32 %v1981_v23, %v1632_v21  ;;  %v750_v55 = vadd.f32 %v1982_v58, %v622_v13  ;;  %v857_v23 = vld [vmem:[%s1917_s7 + $0x40] sm:$0xff]  ;;  %v859_v58 = vld [vmem:[%s1917_s7 + $0x50] sm:$0xff] }
 0x1b5   :  { %870 = vmatpush1.msra.mxu1 %v839_v6  ;;  %v786_v29 = vmax.f32 %v754_v2, 0.0  ;;  %v833_v30 = vmul.f32 %v1622_v60, %v790_v14  ;;  %v617_v41 = vmul.f32 %v542_v46, %v1630_v27  ;;  %v749_v53 = vadd.f32 %v1707_v22, %v621_v5 }
 0x1b6   :  { %871 = vmatprep.subr.mxu1 %v838_v9  ;;  %v785_v31 = vmax.f32 %v753_v1, 0.0  ;;  %v832_v34 = vmul.f32 %v1968_v8, %v789_v16  ;;  %v616_v28 = vmul.f32 %v542_v46, %v1628_v20  ;;  %v748_v51 = vadd.f32 %v1707_v22, %v620_v19  ;;  %v850_v16 = vld [vmem:[%s1917_s7 + $0x8] sm:$0xff]  ;;  %v853_v19 = vld [vmem:[%s1917_s7 + $0x20] sm:$0xff] }
 0x1b7   :  { %872 = vmatpush1.msra.mxu1 %v837_v44  ;;  %v784_v33 = vmax.f32 %v752_v4, 0.0  ;;  %v831_v21 = vmul.f32 %v1622_v60, %v788_v43  ;;  %v615_v18 = vmul.f32 %v537_v50, %v1626_v26  ;;  %v747_v49 = vadd.f32 %v675_v0, %v619_v25  ;;  %v854_v4 = vld [vmem:[%s1917_s7 + $0x28] sm:$0xff]  ;;  %v855_v43 = vld [vmem:[%s1917_s7 + $0x30] sm:$0xff] }
 0x1b8   :  { %873 = vmatprep.subr.mxu1 %v836_v17  ;;  %v783_v35 = vmax.f32 %v751_v63, 0.0  ;;  %v830_v27 = vmul.f32 %v1968_v8, %v787_v24  ;;  %v614_v47 = vmul.f32 %v537_v50, %v1624_v38  ;;  %v746_v36 = vadd.f32 %v675_v0, %v618_v48  ;;  %v851_v17 = vld [vmem:[%s1917_s7 + $0x10] sm:$0xff]  ;;  %v852_v0 = vld [vmem:[%s1917_s7 + $0x18] sm:$0xff]  ;;  %v858_v25 = vld [vmem:[%s1917_s7 + $0x48] sm:$0xff] }
 0x1b9   :  { %874 = vmatpush1.msra.mxu1 %v835_v45  ;;  %v782_v37 = vmax.f32 %v750_v55, 0.0  ;;  %v829_v20 = vmul.f32 %v1622_v60, %v786_v29  ;;  %v745_v22 = vadd.f32 %v670_v12, %v617_v41  ;;  %v781_v32 = vmax.f32 %v749_v53, 0.0  ;;  %v856_v45 = vld [vmem:[%s1917_s7 + $0x38] sm:$0xff] }
 0x1ba   :  { %875 = vmatprep.subr.mxu1 %v834_v40  ;;  %v828_v39 = vmul.f32 %v1968_v8, %v785_v31  ;;  %v744_v26 = vadd.f32 %v670_v12, %v616_v28  ;;  %v780_v10 = vmax.f32 %v748_v51, 0.0  ;;  %v827_v59 = vmul.f32 %v1622_v60, %v784_v33  ;;  %v860_v63 = vld [vmem:[%s1917_s7 + $0x58] sm:$0xff]  ;;  %s1143_s7 = smov 127  }
 0x1bb   :  { %876 = vmatpush1.msra.mxu1 %v833_v30  ;;  %v743_v46 = vadd.f32 %v665_v42, %v615_v18  ;;  %v779_v62 = vmax.f32 %v747_v49, 0.0  ;;  %v826_v38 = vmul.f32 %v1968_v8, %v783_v35  ;;  %v742_v61 = vadd.f32 %v665_v42, %v614_v47 }
 0x1bc   :  { %877 = vmatprep.subr.mxu1 %v832_v34  ;;  %v778_v56 = vmax.f32 %v746_v36, 0.0  ;;  %v825_v6 = vmul.f32 %v1622_v60, %v782_v37  ;;  %v777_v54 = vmax.f32 %v745_v22, 0.0  ;;  %v824_v7 = vmul.f32 %v1968_v8, %v781_v32  ;;  %v1057_v22 = vpop.permute.xlu0 %1056  ;;  %v1062_v32 = vpop.permute.xlu1 %1061 }
 0x1bd   :  { %878 = vmatpush1.msra.mxu1 %v831_v21  ;;  %v776_v3 = vmax.f32 %v744_v26, 0.0  ;;  %v823_v52 = vmul.f32 %v1622_v60, %v780_v10  ;;  %v775_v11 = vmax.f32 %v743_v46, 0.0  ;;  %v822_v9 = vmul.f32 %v1968_v8, %v779_v62 }
 0x1be   :  { %879 = vmatprep.subr.mxu1 %v830_v27  ;;  %v774_v13 = vmax.f32 %v742_v61, 0.0  ;;  %v821_v2 = vmul.f32 %v1622_v60, %v778_v56  ;;  %v820_v14 = vmul.f32 %v1968_v8, %v777_v54  ;;  %v1983_v1 = vmov 0.0  }
 0x1bf   :  { %880 = vmatpush1.msra.mxu1 %v829_v20  ;;  %v819_v44 = vmul.f32 %v1622_v60, %v776_v3  ;;  %v818_v57 = vmul.f32 %v1968_v8, %v775_v11  ;;  %v1984_v62 = vlaneseq }
 0x1c0   :  { %881 = vmatprep.subr.mxu1 %v828_v39  ;;  %v817_v5 = vmul.f32 %v1622_v60, %v774_v13  ;;  %v1067_v39 = vpop.permute.xlu0 %1066  ;;  %v1072_v42 = vpop.permute.xlu1 %1071 }
 0x1c1   :  { %882 = vmatpush1.msra.mxu1 %v827_v59 }
 0x1c2   :  { %883 = vmatprep.subr.mxu1 %v826_v38  ;;  %v1836_v38 = vand.u32 127, %v1984_v62 }
 0x1c3   :  { %884 = vmatpush1.msra.mxu1 %v825_v6 }
 0x1c4   :  { %885 = vmatprep.subr.mxu1 %v824_v7  ;;  %vm1016_vm1 = vcmp.lt.s32.totalorder %v1836_v38, 1  ;;  %vm1041_vm2 = vcmp.lt.s32.totalorder %v1836_v38, 127 }
 0x1c5   :  { %886 = vmatpush1.msra.mxu1 %v823_v52 }
 0x1c6   :  { %887 = vmatprep.subr.mxu1 %v822_v9 }
 0x1c7   :  { %888 = vmatpush1.msra.mxu1 %v821_v2 }
 0x1c8   :  { %889 = vmatprep.subr.mxu1 %v820_v14 }
 0x1c9   :  { %890 = vmatpush1.msra.mxu1 %v819_v44 }
 0x1ca   :  { %891 = vmatprep.subr.mxu1 %v818_v57 }
 0x1cb   :  { %892 = vmatpush1.msra.mxu1 %v817_v5 }
 0x1cc   :  { %926 = vmatmul.mubr.f32.vlgmr.msra.gmra.mxu1 %v849_v15 }
 0x1cd   :  { %931 = vmatprep.mubr.f32.mxu1 %v1983_v1 }
 0x1d0   :  { %932 = vmatmul.mubr.f32.gmra.mxu1 %v850_v16 }
 0x1d1   :  { %937 = vmatprep.mubr.f32.mxu1 %v1983_v1 }
 0x1d4   :  { %938 = vmatmul.mubr.f32.gmra.mxu1 %v851_v17 }
 0x1d5   :  { %943 = vmatprep.mubr.f32.mxu1 %v1983_v1 }
 0x1d8   :  { %944 = vmatmul.mubr.f32.gmra.mxu1 %v852_v0 }
 0x1d9   :  { %949 = vmatprep.mubr.f32.mxu1 %v1983_v1 }
 0x1dc   :  { %950 = vmatmul.mubr.f32.gmra.mxu1 %v853_v19 }
 0x1dd   :  { %955 = vmatprep.mubr.f32.mxu1 %v1983_v1 }
 0x1e0   :  { %956 = vmatmul.mubr.f32.gmra.mxu1 %v854_v4 }
 0x1e1   :  { %961 = vmatprep.mubr.f32.mxu1 %v1983_v1 }
 0x1e4   :  { %962 = vmatmul.mubr.f32.gmra.mxu1 %v855_v43 }
 0x1e5   :  { %967 = vmatprep.mubr.f32.mxu1 %v1983_v1 }
 0x1e8   :  { %968 = vmatmul.mubr.f32.gmra.mxu1 %v856_v45 }
 0x1e9   :  { %973 = vmatprep.mubr.f32.mxu1 %v1983_v1 }
 0x1ec   :  { %974 = vmatmul.mubr.f32.gmra.mxu1 %v857_v23 }
 0x1ed   :  { %979 = vmatprep.mubr.f32.mxu1 %v1983_v1 }
 0x1f0   :  { %980 = vmatmul.mubr.f32.gmra.mxu1 %v858_v25 }
 0x1f1   :  { %985 = vmatprep.mubr.f32.mxu1 %v1983_v1 }
 0x1f4   :  { %986 = vmatmul.mubr.f32.gmra.mxu1 %v859_v58 }
 0x1f5   :  { %991 = vmatprep.mubr.f32.mxu1 %v1983_v1 }
 0x1f8   :  { %992 = vmatmul.mubr.f32.gmra.mxu1 %v860_v63 }
 0x28c   :  { %v927_v24 = vpop.f32.mrf.mxu1 }
 0x28d   :  { %998 = vrot.lane.b32.xlu0 %v927_v24, %s1142_s23 }
 0x28e   :  { %v929_v40 = vpop.f32.mrf.mxu1 }
 0x290   :  { %v933_v50 = vpop.f32.mrf.mxu1 }
 0x291   :  { %1006 = vrot.lane.b32.xlu0 %v929_v40, %s1142_s23  ;;  %1000 = vrot.lane.b32.xlu1 %v933_v50, %s1142_s23 }
 0x292   :  { %v935_v48 = vpop.f32.mrf.mxu1 }
 0x294   :  { %v939_v55 = vpop.f32.mrf.mxu1 }
 0x295   :  { %1008 = vrot.lane.b32.xlu1 %v935_v48, %s1142_s23  ;;  %1002 = vrot.lane.b32.xlu0 %v939_v55, %s1142_s23 }
 0x296   :  { %v941_v29 = vpop.f32.mrf.mxu1 }
 0x298   :  { %v945_v30 = vpop.f32.mrf.mxu1 }
 0x299   :  { %1010 = vrot.lane.b32.xlu0 %v941_v29, %s1142_s23  ;;  %1004 = vrot.lane.b32.xlu1 %v945_v30, %s1142_s23 }
 0x29a   :  { %v947_v41 = vpop.f32.mrf.mxu1 }
 0x29c   :  { %v951_v53 = vpop.f32.mrf.mxu1 }
 0x29d   :  { %1012 = vrot.lane.b32.xlu1 %v947_v41, %s1142_s23 }
 0x29e   :  { %v953_v31 = vpop.f32.mrf.mxu1 }
 0x2a0   :  { %v957_v34 = vpop.f32.mrf.mxu1 }
 0x2a2   :  { %v959_v28 = vpop.f32.mrf.mxu1 }
 0x2a4   :  { %v1827_v51 = vpop.f32.mrf.mxu1 }
 0x2a6   :  { %v1829_v33 = vpop.f32.mrf.mxu1 }
 0x2a8   :  { %v1831_v21 = vpop.f32.mrf.mxu1 }
 0x2aa   :  { %v1833_v18 = vpop.f32.mrf.mxu1 }
 0x2ac   :  { %v975_v49 = vpop.f32.mrf.mxu1 }
 0x2ad   :  { %1025 = vrot.lane.b32.xlu0 %v975_v49, %s1143_s7 }
 0x2ae   :  { %v977_v35 = vpop.f32.mrf.mxu1 }
 0x2b0   :  { %v981_v27 = vpop.f32.mrf.mxu1 }
 0x2b1   :  { %1033 = vrot.lane.b32.xlu0 %v977_v35, %s1143_s7  ;;  %1027 = vrot.lane.b32.xlu1 %v981_v27, %s1143_s7 }
 0x2b2   :  { %v983_v12 = vpop.f32.mrf.mxu1 }
 0x2b4   :  { %v987_v47 = vpop.f32.mrf.mxu1 }
 0x2b5   :  { %1035 = vrot.lane.b32.xlu1 %v983_v12, %s1143_s7  ;;  %1029 = vrot.lane.b32.xlu0 %v987_v47, %s1143_s7 }
 0x2b6   :  { %v989_v36 = vpop.f32.mrf.mxu1 }
 0x2b8   :  { %v993_v37 = vpop.f32.mrf.mxu1 }
 0x2b9   :  { %1037 = vrot.lane.b32.xlu0 %v989_v36, %s1143_s7  ;;  %1031 = vrot.lane.b32.xlu1 %v993_v37, %s1143_s7 }
 0x2ba   :  { %v995_v20 = vpop.f32.mrf.mxu1 }
 0x2bd   :  { %1039 = vrot.lane.b32.xlu1 %v995_v20, %s1143_s7 }
 0x2ff   :  { %v999_v26 = vpop.permute.xlu0 %998 }
 0x303   :  { %v1001_v10 = vpop.permute.xlu1 %1000  ;;  %v1007_v59 = vpop.permute.xlu0 %1006 }
 0x304   :  { %v1017_v6 = vsel %vm1016_vm1, %v999_v26, %v1007_v59  ;;  %v1021_v54 = vsel %vm1016_vm1, %v1007_v59, %v999_v26 }
 0x305   :  { %v1074_v3 = vadd.f32 %v1057_v22, %v1021_v54  ;;  %v1075_v52 = vadd.f32 %v1057_v22, %v1017_v6 }
 0x307   :  { %v1009_v46 = vpop.permute.xlu1 %1008  ;;  %v1003_v61 = vpop.permute.xlu0 %1002  ;;  %v1082_v14 = vadd.f32 %v1074_v3, %v951_v53  ;;  %v1083_v44 = vadd.f32 %v1075_v52, %v953_v31 }
 0x308   :  { %v1018_v13 = vsel %vm1016_vm1, %v1001_v10, %v1009_v46  ;;  %v1022_v2 = vsel %vm1016_vm1, %v1009_v46, %v1001_v10 }
 0x309   :  { %v1076_v57 = vadd.f32 %v1062_v32, %v1022_v2  ;;  %v1077_v5 = vadd.f32 %v1062_v32, %v1018_v13 }
 0x30b   :  { %v1005_v56 = vpop.permute.xlu1 %1004  ;;  %v1011_v7 = vpop.permute.xlu0 %1010  ;;  %v1084_v63 = vadd.f32 %v1076_v57, %v957_v34  ;;  %v1085_v24 = vadd.f32 %v1077_v5, %v959_v28 }
 0x30c   :  { %v1019_v15 = vsel %vm1016_vm1, %v1003_v61, %v1011_v7  ;;  %v1023_v1 = vsel %vm1016_vm1, %v1011_v7, %v1003_v61 }
 0x30d   :  { %v1078_v45 = vadd.f32 %v1067_v39, %v1023_v1  ;;  %v1079_v23 = vadd.f32 %v1067_v39, %v1019_v15 }
 0x30f   :  { %v1013_v11 = vpop.permute.xlu1 %1012  ;;  %v1086_v31 = vadd.f32 %v1078_v45, %v1827_v51  ;;  %v1087_v34 = vadd.f32 %v1079_v23, %v1829_v33 }
 0x310   :  { %v1020_v48 = vsel %vm1016_vm1, %v1005_v56, %v1013_v11  ;;  %v1024_v55 = vsel %vm1016_vm1, %v1013_v11, %v1005_v56 }
 0x311   :  { %v1080_v28 = vadd.f32 %v1072_v42, %v1024_v55  ;;  %v1081_v49 = vadd.f32 %v1072_v42, %v1020_v48 }
 0x313   :  { %v1088_v32 = vadd.f32 %v1080_v28, %v1831_v21  ;;  %v1089_v39 = vadd.f32 %v1081_v49, %v1833_v18 }
 0x31f   :  { %v1026_v9 = vpop.permute.xlu0 %1025 }
 0x323   :  { %v1034_v16 = vpop.permute.xlu0 %1033  ;;  %v1028_v17 = vpop.permute.xlu1 %1027 }
 0x324   :  { %v1042_v0 = vsel %vm1041_vm2, %v1026_v9, %v1034_v16  ;;  %v1046_v19 = vsel %vm1041_vm2, %v1034_v16, %v1026_v9 }
 0x325   :  { %v1090_v4 = vadd.f32 %v1082_v14, %v1042_v0  ;;  %v1091_v43 = vadd.f32 %v1083_v44, %v1046_v19 }
 0x327   :  { %v1098_v25 = vmul.f32 %v1090_v4, %v1622_v60  ;;  %v1099_v58 = vmul.f32 %v1091_v43, %v1968_v8  ;;  %v1036_v40 = vpop.permute.xlu1 %1035  ;;  %v1030_v50 = vpop.permute.xlu0 %1029 }
 0x328   :  { %v1043_v29 = vsel %vm1041_vm2, %v1028_v17, %v1036_v40  ;;  %v1047_v30 = vsel %vm1041_vm2, %v1036_v40, %v1028_v17 }
 0x329   :  { %1106 = vst [vmem:[%s1918_s10] sm:$0xff] %v1098_v25  ;;  %1107 = vst [vmem:[%s1918_s10 + $0x8] sm:$0xff] %v1099_v58  ;;  %v1092_v41 = vadd.f32 %v1084_v63, %v1043_v29  ;;  %v1093_v53 = vadd.f32 %v1085_v24, %v1047_v30 }
 0x32b   :  { %v1100_v35 = vmul.f32 %v1092_v41, %v1622_v60  ;;  %v1101_v27 = vmul.f32 %v1093_v53, %v1968_v8  ;;  %v1038_v12 = vpop.permute.xlu0 %1037  ;;  %v1032_v47 = vpop.permute.xlu1 %1031 }
 0x32c   :  { %v1044_v36 = vsel %vm1041_vm2, %v1030_v50, %v1038_v12  ;;  %v1048_v37 = vsel %vm1041_vm2, %v1038_v12, %v1030_v50 }
 0x32d   :  { %1108 = vst [vmem:[%s1918_s10 + $0x10] sm:$0xff] %v1100_v35  ;;  %1109 = vst [vmem:[%s1918_s10 + $0x18] sm:$0xff] %v1101_v27  ;;  %v1094_v51 = vadd.f32 %v1086_v31, %v1044_v36  ;;  %v1095_v33 = vadd.f32 %v1087_v34, %v1048_v37 }
 0x32f   :  { %v1102_v20 = vmul.f32 %v1094_v51, %v1622_v60  ;;  %v1103_v22 = vmul.f32 %v1095_v33, %v1968_v8  ;;  %v1040_v42 = vpop.permute.xlu1 %1039 }
 0x330   :  { %v1045_v26 = vsel %vm1041_vm2, %v1032_v47, %v1040_v42  ;;  %v1049_v10 = vsel %vm1041_vm2, %v1040_v42, %v1032_v47 }
 0x331   :  { %1110 = vst [vmem:[%s1918_s10 + $0x20] sm:$0xff] %v1102_v20  ;;  %1111 = vst [vmem:[%s1918_s10 + $0x28] sm:$0xff] %v1103_v22  ;;  %v1096_v59 = vadd.f32 %v1088_v32, %v1045_v26  ;;  %v1097_v46 = vadd.f32 %v1089_v39, %v1049_v10 }
 0x333   :  { %v1104_v21 = vmul.f32 %v1096_v59, %v1622_v60  ;;  %v1105_v18 = vmul.f32 %v1097_v46, %v1968_v8 }
 0x335   :  { %1112 = vst [vmem:[%s1918_s10 + $0x30] sm:$0xff] %v1104_v21  ;;  %1113 = vst [vmem:[%s1918_s10 + $0x38] sm:$0xff] %v1105_v18 }

// kernel: dense_block.10
= control target key start
LH: loop header
LB: loop body
LE: loop exit
PB: predicated region body
PF: predicated region fallthrough
CT: control target
= control target key end

     0   :  { %v945_v0 = vmov 0   ;;  %v946_v27 = vmov 0.0   ;;  %vm414_vm0 = vcmask 785408   ;;  %vm29_vm1 = vcmask 7168   ;;  %s1706_s2 = inlined_call_operand.vmem [shape: f32[96,1], index: 2, kind: input, shape index: {}]   ;;  %s1707_s1 = inlined_call_operand.vmem [shape: f32[96,1], index: 1, kind: input, shape index: {}]   ;;  %s1708_s4 = inlined_call_operand.vmem [shape: f32[128,1], index: 4, kind: input, shape index: {}]   ;;  %s1709_s0 = inlined_call_operand.vmem [shape: f32[128,256], index: 0, kind: input, shape index: {}]   ;;  %s1710_s3 = inlined_call_operand.vmem [shape: f32[128,96], index: 3, kind: input, shape index: {}]   ;;  %s1711_s6 = inlined_call_operand.vmem [shape: f32[128,1], index: 6, kind: output, shape index: {0}]   ;;  %s1712_s5 = inlined_call_operand.vmem [shape: f32[1,256], index: 5, kind: input, shape index: {}]   ;;  %s1713_s7 = inlined_call_operand.vmem [shape: f32[128,1], index: 7, kind: output, shape index: {1}]  }
   0x1   :  { %944 = vset.pattern.permute.xlu1 %v945_v0  ;;  %943 = vset.pattern.permute.xlu0 %v945_v0  ;;  %v193_v1 = vld [vmem:[%s1706_s2 + $0x58] sm:$0xff]  ;;  %v96_v3 = vld [vmem:[%s1707_s1 + $0x50] sm:$0xff]  ;;  %v95_v4 = vld [vmem:[%s1707_s1 + $0x48] sm:$0xff]  ;;  %38 = vst.msk [vmem:[%s1711_s6 + $0x40] sm:$0xff] %vm29_vm1, %v946_v27 }
   0x2   :  { %v97_v2 = vld [vmem:[%s1707_s1 + $0x58] sm:$0xff]  ;;  %251 = vperm.xlu1 %944, %v193_v1   ;;  %v192_v5 = vld [vmem:[%s1706_s2 + $0x50] sm:$0xff]  ;;  %v94_v6 = vld [vmem:[%s1707_s1 + $0x40] sm:$0xff]  ;;  %527 = vmatprep.mubr.f32.mxu0 %v946_v27  ;;  %30 = vst.msk [vmem:[%s1711_s6] sm:$0xff] %vm29_vm1, %v946_v27 }
   0x3   :  { %155 = vperm.xlu0 %943, %v97_v2   ;;  %v191_v7 = vld [vmem:[%s1706_s2 + $0x48] sm:$0xff]  ;;  %v93_v8 = vld [vmem:[%s1707_s1 + $0x38] sm:$0xff]  ;;  %v190_v9 = vld [vmem:[%s1706_s2 + $0x40] sm:$0xff]  ;;  %575 = vmatprep.mubr.f32.mxu1 %v946_v27  ;;  %31 = vst.msk [vmem:[%s1711_s6 + $0x8] sm:$0xff] %vm29_vm1, %v946_v27 }
   0x4   :  { %v92_v10 = vld [vmem:[%s1707_s1 + $0x30] sm:$0xff]  ;;  %v189_v11 = vld [vmem:[%s1706_s2 + $0x38] sm:$0xff]  ;;  %v91_v12 = vld [vmem:[%s1707_s1 + $0x28] sm:$0xff]  ;;  %32 = vst.msk [vmem:[%s1711_s6 + $0x10] sm:$0xff] %vm29_vm1, %v946_v27 }
   0x5   :  { %v188_v13 = vld [vmem:[%s1706_s2 + $0x30] sm:$0xff]  ;;  %v90_v14 = vld [vmem:[%s1707_s1 + $0x20] sm:$0xff]  ;;  %v187_v15 = vld [vmem:[%s1706_s2 + $0x28] sm:$0xff]  ;;  %33 = vst.msk [vmem:[%s1711_s6 + $0x18] sm:$0xff] %vm29_vm1, %v946_v27 }
   0x6   :  { %145 = vperm.xlu1 %944, %v95_v4   ;;  %v89_v16 = vld [vmem:[%s1707_s1 + $0x18] sm:$0xff]  ;;  %v186_v17 = vld [vmem:[%s1706_s2 + $0x20] sm:$0xff]  ;;  %v88_v18 = vld [vmem:[%s1707_s1 + $0x10] sm:$0xff]  ;;  %34 = vst.msk [vmem:[%s1711_s6 + $0x20] sm:$0xff] %vm29_vm1, %v946_v27 }
   0x7   :  { %150 = vperm.xlu0 %943, %v96_v3   ;;  %v185_v19 = vld [vmem:[%s1706_s2 + $0x18] sm:$0xff]  ;;  %v87_v20 = vld [vmem:[%s1707_s1 + $0x8] sm:$0xff]  ;;  %v184_v21 = vld [vmem:[%s1706_s2 + $0x10] sm:$0xff]  ;;  %35 = vst.msk [vmem:[%s1711_s6 + $0x28] sm:$0xff] %vm29_vm1, %v946_v27 }
   0x8   :  { %v86_v22 = vld [vmem:[%s1707_s1] sm:$0xff]  ;;  %v183_v23 = vld [vmem:[%s1706_s2 + $0x8] sm:$0xff]  ;;  %v320_v28 = vld [vmem:[%s1708_s4 + $0x10] sm:$0xff]  ;;  %36 = vst.msk [vmem:[%s1711_s6 + $0x30] sm:$0xff] %vm29_vm1, %v946_v27 }
   0x9   :  { %v182_v24 = vld [vmem:[%s1706_s2] sm:$0xff]  ;;  %v319_v26 = vld [vmem:[%s1708_s4 + $0x8] sm:$0xff]  ;;  %v321_v29 = vld [vmem:[%s1708_s4 + $0x18] sm:$0xff]  ;;  %37 = vst.msk [vmem:[%s1711_s6 + $0x38] sm:$0xff] %vm29_vm1, %v946_v27 }
   0xa   :  { %140 = vperm.xlu1 %944, %v94_v6   ;;  %v318_v25 = vld [vmem:[%s1708_s4] sm:$0xff]  ;;  %v323_v31 = vld [vmem:[%s1708_s4 + $0x28] sm:$0xff]  ;;  %v324_v32 = vld [vmem:[%s1708_s4 + $0x30] sm:$0xff]  ;;  %39 = vst.msk [vmem:[%s1711_s6 + $0x48] sm:$0xff] %vm29_vm1, %v946_v27 }
   0xb   :  { %246 = vperm.xlu0 %943, %v192_v5   ;;  %v322_v30 = vld [vmem:[%s1708_s4 + $0x20] sm:$0xff]  ;;  %v325_v33 = vld [vmem:[%s1708_s4 + $0x38] sm:$0xff]  ;;  %v327_v35 = vld [vmem:[%s1708_s4 + $0x48] sm:$0xff]  ;;  %40 = vst.msk [vmem:[%s1711_s6 + $0x50] sm:$0xff] %vm29_vm1, %v946_v27 }
   0xc   :  { %v326_v34 = vld [vmem:[%s1708_s4 + $0x40] sm:$0xff]  ;;  %v328_v36 = vld [vmem:[%s1708_s4 + $0x50] sm:$0xff]  ;;  %v329_v37 = vld [vmem:[%s1708_s4 + $0x58] sm:$0xff]  ;;  %41 = vst.msk [vmem:[%s1711_s6 + $0x58] sm:$0xff] %vm29_vm1, %v946_v27 }
   0xd   :  { %v330_v38 = vld [vmem:[%s1708_s4 + $0x60] sm:$0xff]  ;;  %v331_v39 = vld [vmem:[%s1708_s4 + $0x68] sm:$0xff]  ;;  %v332_v40 = vld [vmem:[%s1708_s4 + $0x70] sm:$0xff]  ;;  %42 = vst.msk [vmem:[%s1711_s6 + $0x60] sm:$0xff] %vm29_vm1, %v946_v27 }
   0xe   :  { %135 = vperm.xlu1 %944, %v93_v8   ;;  %v333_v41 = vld [vmem:[%s1708_s4 + $0x78] sm:$0xff]  ;;  %v84_v42 = vld [vmem:[%s1709_s0 + $0xb0] sm:$0xff]  ;;  %v82_v51 = vld [vmem:[%s1709_s0 + $0xa0] sm:$0xff]  ;;  %43 = vst.msk [vmem:[%s1711_s6 + $0x68] sm:$0xff] %vm29_vm1, %v946_v27 }
   0xf   :  { %241 = vperm.xlu0 %943, %v191_v7   ;;  %v85_v43 = vld [vmem:[%s1709_s0 + $0xb8] sm:$0xff]  ;;  %v83_v52 = vld [vmem:[%s1709_s0 + $0xa8] sm:$0xff]  ;;  %v80_v58 = vld [vmem:[%s1709_s0 + $0x90] sm:$0xff]  ;;  %44 = vst.msk [vmem:[%s1711_s6 + $0x70] sm:$0xff] %vm29_vm1, %v946_v27 }
  0x10   :  { %v81_v59 = vld [vmem:[%s1709_s0 + $0x98] sm:$0xff]  ;;  %v78_v4 = vld [vmem:[%s1709_s0 + $0x80] sm:$0xff]  ;;  %v79_v5 = vld [vmem:[%s1709_s0 + $0x88] sm:$0xff]  ;;  %45 = vst.msk [vmem:[%s1711_s6 + $0x78] sm:$0xff] %vm29_vm1, %v946_v27 }
  0x11   :  { %46 = vst.msk [vmem:[%s1713_s7] sm:$0xff] %vm29_vm1, %v946_v27  ;;  %47 = vst.msk [vmem:[%s1713_s7 + $0x8] sm:$0xff] %vm29_vm1, %v946_v27 }
  0x12   :  { %130 = vperm.xlu1 %944, %v92_v10   ;;  %48 = vst.msk [vmem:[%s1713_s7 + $0x10] sm:$0xff] %vm29_vm1, %v946_v27  ;;  %49 = vst.msk [vmem:[%s1713_s7 + $0x18] sm:$0xff] %vm29_vm1, %v946_v27 }
  0x13   :  { %236 = vperm.xlu0 %943, %v190_v9   ;;  %50 = vst.msk [vmem:[%s1713_s7 + $0x20] sm:$0xff] %vm29_vm1, %v946_v27  ;;  %51 = vst.msk [vmem:[%s1713_s7 + $0x28] sm:$0xff] %vm29_vm1, %v946_v27 }
  0x14   :  { %52 = vst.msk [vmem:[%s1713_s7 + $0x30] sm:$0xff] %vm29_vm1, %v946_v27  ;;  %53 = vst.msk [vmem:[%s1713_s7 + $0x38] sm:$0xff] %vm29_vm1, %v946_v27 }
  0x15   :  { %54 = vst.msk [vmem:[%s1713_s7 + $0x40] sm:$0xff] %vm29_vm1, %v946_v27  ;;  %55 = vst.msk [vmem:[%s1713_s7 + $0x48] sm:$0xff] %vm29_vm1, %v946_v27 }
  0x16   :  { %125 = vperm.xlu1 %944, %v91_v12   ;;  %56 = vst.msk [vmem:[%s1713_s7 + $0x50] sm:$0xff] %vm29_vm1, %v946_v27  ;;  %57 = vst.msk [vmem:[%s1713_s7 + $0x58] sm:$0xff] %vm29_vm1, %v946_v27 }
  0x17   :  { %231 = vperm.xlu0 %943, %v189_v11   ;;  %58 = vst.msk [vmem:[%s1713_s7 + $0x60] sm:$0xff] %vm29_vm1, %v946_v27  ;;  %59 = vst.msk [vmem:[%s1713_s7 + $0x68] sm:$0xff] %vm29_vm1, %v946_v27 }
  0x18   :  { %60 = vst.msk [vmem:[%s1713_s7 + $0x70] sm:$0xff] %vm29_vm1, %v946_v27  ;;  %61 = vst.msk [vmem:[%s1713_s7 + $0x78] sm:$0xff] %vm29_vm1, %v946_v27 }
  0x1a   :  { %120 = vperm.xlu1 %944, %v90_v14   ;;  %v76_v14 = vld [vmem:[%s1709_s0 + $0x70] sm:$0xff] }
  0x1b   :  { %226 = vperm.xlu0 %943, %v188_v13  }
  0x1e   :  { %115 = vperm.xlu1 %944, %v89_v16  }
  0x1f   :  { %221 = vperm.xlu0 %943, %v187_v15   ;;  %v77_v15 = vld [vmem:[%s1709_s0 + $0x78] sm:$0xff] }
  0x22   :  { %110 = vperm.xlu1 %944, %v88_v18  }
  0x23   :  { %216 = vperm.xlu0 %943, %v186_v17  }
  0x26   :  { %105 = vperm.xlu1 %944, %v87_v20  }
  0x27   :  { %211 = vperm.xlu0 %943, %v185_v19  }
  0x2a   :  { %100 = vperm.xlu1 %944, %v86_v22  }
  0x2b   :  { %206 = vperm.xlu0 %943, %v184_v21  }
  0x2e   :  { %196 = vperm.xlu1 %944, %v182_v24   ;;  %v74_v24 = vld [vmem:[%s1709_s0 + $0x60] sm:$0xff] }
  0x2f   :  { %201 = vperm.xlu0 %943, %v183_v23  }
  0x32   :  { %341 = vperm.xlu1 %944, %v319_v26  }
  0x33   :  { %336 = vperm.xlu0 %943, %v318_v25   ;;  %v75_v25 = vld [vmem:[%s1709_s0 + $0x68] sm:$0xff] }
  0x36   :  { %351 = vperm.xlu1 %944, %v321_v29  }
  0x37   :  { %346 = vperm.xlu0 %943, %v320_v28  }
  0x3a   :  { %361 = vperm.xlu1 %944, %v323_v31  }
  0x3b   :  { %356 = vperm.xlu0 %943, %v322_v30  }
  0x3e   :  { %371 = vperm.xlu1 %944, %v325_v33  }
  0x3f   :  { %366 = vperm.xlu0 %943, %v324_v32  }
  0x42   :  { %381 = vperm.xlu1 %944, %v327_v35   ;;  %v72_v35 = vld [vmem:[%s1709_s0 + $0x50] sm:$0xff] }
  0x43   :  { %376 = vperm.xlu0 %943, %v326_v34  }
  0x46   :  { %391 = vperm.xlu1 %944, %v329_v37  }
  0x47   :  { %386 = vperm.xlu0 %943, %v328_v36   ;;  %v73_v36 = vld [vmem:[%s1709_s0 + $0x58] sm:$0xff] }
  0x4a   :  { %401 = vperm.xlu1 %944, %v331_v39  }
  0x4b   :  { %396 = vperm.xlu0 %943, %v330_v38  }
  0x4e   :  { %411 = vperm.xlu1 %944, %v333_v41  }
  0x4f   :  { %406 = vperm.xlu0 %943, %v332_v40  }
  0x7d   :  { %v252_v44 = vpop.permute.xlu1 %251 }
  0x7e   :  { %v156_v45 = vpop.permute.xlu0 %155 }
  0x7f   :  { %v180_v46 = vmul.f32 %v156_v45, %v84_v42  ;;  %v181_v47 = vmul.f32 %v156_v45, %v85_v43  ;;  %v70_v45 = vld [vmem:[%s1709_s0 + $0x40] sm:$0xff] }
  0x81   :  { %v277_v48 = vadd.f32 %v252_v44, %v181_v47  ;;  %v276_v49 = vadd.f32 %v252_v44, %v180_v46  ;;  %v146_v53 = vpop.permute.xlu1 %145  ;;  %v71_v46 = vld [vmem:[%s1709_s0 + $0x48] sm:$0xff] }
  0x82   :  { %v151_v50 = vpop.permute.xlu0 %150  ;;  %v176_v0 = vmul.f32 %v146_v53, %v80_v58  ;;  %v177_v1 = vmul.f32 %v146_v53, %v81_v59 }
  0x83   :  { %v301_v54 = vmax.f32 %v277_v48, 0.0  ;;  %v300_v55 = vmax.f32 %v276_v49, 0.0  ;;  %v178_v56 = vmul.f32 %v151_v50, %v82_v51  ;;  %v179_v57 = vmul.f32 %v151_v50, %v83_v52 }
  0x85   :  { %471 = vmatprep.subr.mxu0 %v301_v54  ;;  %917 = vmatprep.subr.mxu1 %v301_v54  ;;  %v141_v61 = vpop.permute.xlu1 %140 }
  0x86   :  { %v247_v60 = vpop.permute.xlu0 %246  ;;  %472 = vmatpush1.msra.mxu0 %v300_v55  ;;  %929 = vmatpush1.msra.mxu1 %v300_v55  ;;  %v174_v10 = vmul.f32 %v141_v61, %v78_v4  ;;  %v175_v11 = vmul.f32 %v141_v61, %v79_v5  ;;  %v68_v55 = vld [vmem:[%s1709_s0 + $0x30] sm:$0xff] }
  0x87   :  { %v274_v62 = vadd.f32 %v247_v60, %v178_v56  ;;  %v275_v63 = vadd.f32 %v247_v60, %v179_v57  ;;  %v69_v56 = vld [vmem:[%s1709_s0 + $0x38] sm:$0xff] }
  0x89   :  { %v298_v2 = vmax.f32 %v274_v62, 0.0  ;;  %v299_v3 = vmax.f32 %v275_v63, 0.0  ;;  %v136_v7 = vpop.permute.xlu1 %135 }
  0x8a   :  { %v242_v6 = vpop.permute.xlu0 %241  ;;  %v172_v20 = vmul.f32 %v136_v7, %v76_v14  ;;  %v173_v21 = vmul.f32 %v136_v7, %v77_v15  ;;  %v63_v15 = vld [vmem:[%s1709_s0 + $0x8] sm:$0xff] }
  0x8b   :  { %v272_v8 = vadd.f32 %v242_v6, %v176_v0  ;;  %v273_v9 = vadd.f32 %v242_v6, %v177_v1  ;;  %473 = vmatprep.subr.mxu0 %v299_v3  ;;  %918 = vmatprep.subr.mxu1 %v299_v3  ;;  %v66_v1 = vld [vmem:[%s1709_s0 + $0x20] sm:$0xff] }
  0x8c   :  { %474 = vmatpush1.msra.mxu0 %v298_v2  ;;  %930 = vmatpush1.msra.mxu1 %v298_v2  ;;  %v67_v2 = vld [vmem:[%s1709_s0 + $0x28] sm:$0xff] }
  0x8d   :  { %v296_v12 = vmax.f32 %v272_v8, 0.0  ;;  %v297_v13 = vmax.f32 %v273_v9, 0.0  ;;  %v131_v17 = vpop.permute.xlu1 %130 }
  0x8e   :  { %v237_v16 = vpop.permute.xlu0 %236  ;;  %v170_v31 = vmul.f32 %v131_v17, %v74_v24  ;;  %v171_v32 = vmul.f32 %v131_v17, %v75_v25 }
  0x8f   :  { %v270_v18 = vadd.f32 %v237_v16, %v174_v10  ;;  %v271_v19 = vadd.f32 %v237_v16, %v175_v11  ;;  %475 = vmatprep.subr.mxu0 %v297_v13  ;;  %919 = vmatprep.subr.mxu1 %v297_v13  ;;  %v64_v11 = vld [vmem:[%s1709_s0 + $0x10] sm:$0xff] }
  0x90   :  { %476 = vmatpush1.msra.mxu0 %v296_v12  ;;  %931 = vmatpush1.msra.mxu1 %v296_v12  ;;  %v65_v12 = vld [vmem:[%s1709_s0 + $0x18] sm:$0xff] }
  0x91   :  { %v294_v22 = vmax.f32 %v270_v18, 0.0  ;;  %v295_v23 = vmax.f32 %v271_v19, 0.0  ;;  %v126_v28 = vpop.permute.xlu1 %125  ;;  %v62_v18 = vld [vmem:[%s1709_s0] sm:$0xff] }
  0x92   :  { %v232_v26 = vpop.permute.xlu0 %231  ;;  %v168_v41 = vmul.f32 %v126_v28, %v72_v35  ;;  %v169_v42 = vmul.f32 %v126_v28, %v73_v36  ;;  %v302_v36 = vld [vmem:[%s1710_s3] sm:$0xff] }
  0x93   :  { %v268_v29 = vadd.f32 %v232_v26, %v172_v20  ;;  %v269_v30 = vadd.f32 %v232_v26, %v173_v21  ;;  %477 = vmatprep.subr.mxu0 %v295_v23  ;;  %920 = vmatprep.subr.mxu1 %v295_v23 }
  0x94   :  { %478 = vmatpush1.msra.mxu0 %v294_v22  ;;  %932 = vmatpush1.msra.mxu1 %v294_v22 }
  0x95   :  { %v292_v33 = vmax.f32 %v268_v29, 0.0  ;;  %v293_v34 = vmax.f32 %v269_v30, 0.0  ;;  %v121_v38 = vpop.permute.xlu1 %120 }
  0x96   :  { %v227_v37 = vpop.permute.xlu0 %226  ;;  %v166_v51 = vmul.f32 %v121_v38, %v70_v45  ;;  %v167_v52 = vmul.f32 %v121_v38, %v71_v46  ;;  %v303_v38 = vld [vmem:[%s1710_s3 + $0x8] sm:$0xff]  ;;  %v314_v45 = vld [vmem:[%s1710_s3 + $0x60] sm:$0xff] }
  0x97   :  { %v266_v39 = vadd.f32 %v227_v37, %v170_v31  ;;  %v267_v40 = vadd.f32 %v227_v37, %v171_v32  ;;  %479 = vmatprep.subr.mxu0 %v293_v34  ;;  %921 = vmatprep.subr.mxu1 %v293_v34  ;;  %v310_v37 = vld [vmem:[%s1710_s3 + $0x40] sm:$0xff]  ;;  %v307_v46 = vld [vmem:[%s1710_s3 + $0x28] sm:$0xff] }
  0x98   :  { %480 = vmatpush1.msra.mxu0 %v292_v33  ;;  %933 = vmatpush1.msra.mxu1 %v292_v33 }
  0x99   :  { %v290_v43 = vmax.f32 %v266_v39, 0.0  ;;  %v291_v44 = vmax.f32 %v267_v40, 0.0  ;;  %v116_v48 = vpop.permute.xlu1 %115  ;;  %v311_v39 = vld [vmem:[%s1710_s3 + $0x48] sm:$0xff]  ;;  %v304_v40 = vld [vmem:[%s1710_s3 + $0x10] sm:$0xff] }
  0x9a   :  { %v222_v47 = vpop.permute.xlu0 %221  ;;  %v164_v61 = vmul.f32 %v116_v48, %v68_v55  ;;  %v165_v62 = vmul.f32 %v116_v48, %v69_v56  ;;  %v308_v48 = vld [vmem:[%s1710_s3 + $0x30] sm:$0xff] }
  0x9b   :  { %v264_v49 = vadd.f32 %v222_v47, %v168_v41  ;;  %v265_v50 = vadd.f32 %v222_v47, %v169_v42  ;;  %481 = vmatprep.subr.mxu0 %v291_v44  ;;  %922 = vmatprep.subr.mxu1 %v291_v44  ;;  %v312_v41 = vld [vmem:[%s1710_s3 + $0x50] sm:$0xff]  ;;  %v305_v42 = vld [vmem:[%s1710_s3 + $0x18] sm:$0xff]  ;;  %v306_v44 = vld [vmem:[%s1710_s3 + $0x20] sm:$0xff] }
  0x9c   :  { %482 = vmatpush1.msra.mxu0 %v290_v43  ;;  %934 = vmatpush1.msra.mxu1 %v290_v43  ;;  %v313_v43 = vld [vmem:[%s1710_s3 + $0x58] sm:$0xff]  ;;  %v315_v47 = vld [vmem:[%s1710_s3 + $0x68] sm:$0xff] }
  0x9d   :  { %v288_v53 = vmax.f32 %v264_v49, 0.0  ;;  %v289_v54 = vmax.f32 %v265_v50, 0.0  ;;  %v111_v58 = vpop.permute.xlu1 %110  ;;  %v316_v49 = vld [vmem:[%s1710_s3 + $0x70] sm:$0xff]  ;;  %v309_v50 = vld [vmem:[%s1710_s3 + $0x38] sm:$0xff] }
  0x9e   :  { %v217_v57 = vpop.permute.xlu0 %216  ;;  %v162_v7 = vmul.f32 %v111_v58, %v66_v1  ;;  %v163_v8 = vmul.f32 %v111_v58, %v67_v2 }
  0x9f   :  { %v262_v59 = vadd.f32 %v217_v57, %v166_v51  ;;  %v263_v60 = vadd.f32 %v217_v57, %v167_v52  ;;  %483 = vmatprep.subr.mxu0 %v289_v54  ;;  %923 = vmatprep.subr.mxu1 %v289_v54  ;;  %v317_v51 = vld [vmem:[%s1710_s3 + $0x78] sm:$0xff]  ;;  %v626_v57 = vlaneseq }
  0xa0   :  { %484 = vmatpush1.msra.mxu0 %v288_v53  ;;  %935 = vmatpush1.msra.mxu1 %v288_v53 }
  0xa1   :  { %v286_v63 = vmax.f32 %v262_v59, 0.0  ;;  %v287_v0 = vmax.f32 %v263_v60, 0.0  ;;  %v106_v4 = vpop.permute.xlu1 %105  ;;  %v627_v59 = vshrl.u32 %v626_v57, 7 }
  0xa2   :  { %v212_v3 = vpop.permute.xlu0 %211  ;;  %v160_v19 = vmul.f32 %v106_v4, %v64_v11  ;;  %v161_v20 = vmul.f32 %v106_v4, %v65_v12 }
  0xa3   :  { %v260_v5 = vadd.f32 %v212_v3, %v164_v61  ;;  %v261_v6 = vadd.f32 %v212_v3, %v165_v62  ;;  %485 = vmatprep.subr.mxu0 %v287_v0  ;;  %924 = vmatprep.subr.mxu1 %v287_v0  ;;  %v632_v61 = vsub.s32 1, %v627_v59  ;;  %v628_v62 = vsub.s32 0, %v627_v59  ;;  %v624_v0 = vld [vmem:[%s1712_s5] sm:$0x3] }
  0xa4   :  { %486 = vmatpush1.msra.mxu0 %v286_v63  ;;  %936 = vmatpush1.msra.mxu1 %v286_v63 }
  0xa5   :  { %v284_v9 = vmax.f32 %v260_v5, 0.0  ;;  %v285_v10 = vmax.f32 %v261_v6, 0.0  ;;  %v101_v14 = vpop.permute.xlu1 %100  ;;  %v1354_v4 = vrot.slane %v624_v0, %v632_v61  ;;  %v1356_v6 = vrot.slane %v624_v0, %v628_v62 }
  0xa6   :  { %v207_v13 = vpop.permute.xlu0 %206  ;;  %v159_v23 = vmul.f32 %v101_v14, %v63_v15  ;;  %v158_v24 = vmul.f32 %v101_v14, %v62_v18 }
  0xa7   :  { %v258_v16 = vadd.f32 %v207_v13, %v162_v7  ;;  %v259_v17 = vadd.f32 %v207_v13, %v163_v8  ;;  %487 = vmatprep.subr.mxu0 %v285_v10  ;;  %925 = vmatprep.subr.mxu1 %v285_v10 }
  0xa8   :  { %488 = vmatpush1.msra.mxu0 %v284_v9  ;;  %937 = vmatpush1.msra.mxu1 %v284_v9 }
  0xa9   :  { %v282_v21 = vmax.f32 %v258_v16, 0.0  ;;  %v283_v22 = vmax.f32 %v259_v17, 0.0  ;;  %v197_v26 = vpop.permute.xlu1 %196 }
  0xaa   :  { %v202_v25 = vpop.permute.xlu0 %201  ;;  %v255_v30 = vadd.f32 %v197_v26, %v159_v23  ;;  %v254_v31 = vadd.f32 %v197_v26, %v158_v24 }
  0xab   :  { %v256_v28 = vadd.f32 %v202_v25, %v160_v19  ;;  %v257_v29 = vadd.f32 %v202_v25, %v161_v20  ;;  %489 = vmatprep.subr.mxu0 %v283_v22  ;;  %926 = vmatprep.subr.mxu1 %v283_v22 }
  0xac   :  { %490 = vmatpush1.msra.mxu0 %v282_v21  ;;  %938 = vmatpush1.msra.mxu1 %v282_v21  ;;  %v279_v34 = vmax.f32 %v255_v30, 0.0  ;;  %v278_v35 = vmax.f32 %v254_v31, 0.0 }
  0xad   :  { %v280_v32 = vmax.f32 %v256_v28, 0.0  ;;  %v281_v33 = vmax.f32 %v257_v29, 0.0  ;;  %v342_v53 = vpop.permute.xlu1 %341 }
  0xae   :  { %v337_v52 = vpop.permute.xlu0 %336 }
  0xaf   :  { %491 = vmatprep.subr.mxu0 %v281_v33  ;;  %927 = vmatprep.subr.mxu1 %v281_v33 }
  0xb0   :  { %492 = vmatpush1.msra.mxu0 %v280_v32  ;;  %939 = vmatpush1.msra.mxu1 %v280_v32 }
  0xb1   :  { %493 = vmatprep.subr.mxu0 %v279_v34  ;;  %928 = vmatprep.subr.mxu1 %v279_v34  ;;  %v1341_v55 = vpop.permute.xlu1 %351 }
  0xb2   :  { %494 = vmatpush1.msra.mxu0 %v278_v35  ;;  %940 = vmatpush1.msra.mxu1 %v278_v35  ;;  %v1339_v54 = vpop.permute.xlu0 %346 }
  0xb3   :  { %901 = vmatmul.mubr.msk.f32.vlgmr.msra.gmra.mxu0 %vm414_vm0, %v302_v36  ;;  %909 = vmatmul.mubr.msk.f32.vlgmr.msra.gmra.mxu1 %vm414_vm0, %v310_v37 }
  0xb4   :  { %533 = vmatprep.mubr.f32.mxu0 %v946_v27  ;;  %581 = vmatprep.mubr.f32.mxu1 %v946_v27 }
  0xb5   :  { %v1345_v58 = vpop.permute.xlu1 %361 }
  0xb6   :  { %v1343_v56 = vpop.permute.xlu0 %356 }
  0xb7   :  { %902 = vmatmul.mubr.msk.f32.gmra.mxu0 %vm414_vm0, %v303_v38  ;;  %910 = vmatmul.mubr.msk.f32.gmra.mxu1 %vm414_vm0, %v311_v39 }
  0xb8   :  { %539 = vmatprep.mubr.f32.mxu0 %v946_v27  ;;  %587 = vmatprep.mubr.f32.mxu1 %v946_v27 }
  0xb9   :  { %v1349_v63 = vpop.permute.xlu1 %371 }
  0xba   :  { %v1347_v60 = vpop.permute.xlu0 %366 }
  0xbb   :  { %903 = vmatmul.mubr.msk.f32.gmra.mxu0 %vm414_vm0, %v304_v40  ;;  %911 = vmatmul.mubr.msk.f32.gmra.mxu1 %vm414_vm0, %v312_v41 }
  0xbc   :  { %545 = vmatprep.mubr.f32.mxu0 %v946_v27  ;;  %593 = vmatprep.mubr.f32.mxu1 %v946_v27 }
  0xbd   :  { %v382_v14 = vpop.permute.xlu1 %381 }
  0xbe   :  { %v377_v3 = vpop.permute.xlu0 %376 }
  0xbf   :  { %904 = vmatmul.mubr.msk.f32.gmra.mxu0 %vm414_vm0, %v305_v42  ;;  %912 = vmatmul.mubr.msk.f32.gmra.mxu1 %vm414_vm0, %v313_v43 }
  0xc0   :  { %551 = vmatprep.mubr.f32.mxu0 %v946_v27  ;;  %599 = vmatprep.mubr.f32.mxu1 %v946_v27 }
  0xc3   :  { %905 = vmatmul.mubr.msk.f32.gmra.mxu0 %vm414_vm0, %v306_v44  ;;  %913 = vmatmul.mubr.msk.f32.gmra.mxu1 %vm414_vm0, %v314_v45  ;;  %v387_v45 = vpop.permute.xlu0 %386 }
  0xc4   :  { %557 = vmatprep.mubr.f32.mxu0 %v946_v27  ;;  %605 = vmatprep.mubr.f32.mxu1 %v946_v27 }
  0xc7   :  { %906 = vmatmul.mubr.msk.f32.gmra.mxu0 %vm414_vm0, %v307_v46  ;;  %914 = vmatmul.mubr.msk.f32.gmra.mxu1 %vm414_vm0, %v315_v47 }
  0xc8   :  { %563 = vmatprep.mubr.f32.mxu0 %v946_v27  ;;  %611 = vmatprep.mubr.f32.mxu1 %v946_v27 }
  0xcb   :  { %907 = vmatmul.mubr.msk.f32.gmra.mxu0 %vm414_vm0, %v308_v48  ;;  %915 = vmatmul.mubr.msk.f32.gmra.mxu1 %vm414_vm0, %v316_v49 }
  0xcc   :  { %569 = vmatprep.mubr.f32.mxu0 %v946_v27  ;;  %617 = vmatprep.mubr.f32.mxu1 %v946_v27 }
  0xcf   :  { %908 = vmatmul.mubr.msk.f32.gmra.mxu0 %vm414_vm0, %v309_v50  ;;  %916 = vmatmul.mubr.msk.f32.gmra.mxu1 %vm414_vm0, %v317_v51 }
 0x173   :  { %v529_v1 = vpop.f32.mrf.mxu0  ;;  %v577_v2 = vpop.f32.mrf.mxu1 }
 0x174   :  { %v530_v5 = vadd.f32 %v529_v1, %v337_v52  ;;  %v578_v7 = vadd.f32 %v577_v2, %v377_v3 }
 0x175   :  { %v531_v8 = vpop.f32.mrf.mxu0  ;;  %v579_v9 = vpop.f32.mrf.mxu1 }
 0x176   :  { %v532_v10 = vadd.f32 %v531_v8, %v337_v52  ;;  %v580_v11 = vadd.f32 %v579_v9, %v377_v3  ;;  %v636_v17 = vmul.f32 %v1356_v6, %v530_v5  ;;  %v652_v18 = vmul.f32 %v1356_v6, %v578_v7  ;;  %v392_v7 = vpop.permute.xlu1 %391 }
 0x177   :  { %v535_v12 = vpop.f32.mrf.mxu0  ;;  %v583_v13 = vpop.f32.mrf.mxu1 }
 0x178   :  { %v637_v15 = vmul.f32 %v1354_v4, %v532_v10  ;;  %v653_v16 = vmul.f32 %v1354_v4, %v580_v11  ;;  %v536_v19 = vadd.f32 %v535_v12, %v342_v53  ;;  %v584_v20 = vadd.f32 %v583_v13, %v382_v14 }
 0x179   :  { %v537_v21 = vpop.f32.mrf.mxu0  ;;  %v585_v22 = vpop.f32.mrf.mxu1  ;;  %v781_v36 = vmul.f32 %v636_v17, %v636_v17  ;;  %v797_v43 = vmul.f32 %v652_v18, %v652_v18 }
 0x17a   :  { %v538_v23 = vadd.f32 %v537_v21, %v342_v53  ;;  %v586_v24 = vadd.f32 %v585_v22, %v382_v14  ;;  %v708_v28 = vadd.f32 %v653_v16, %v652_v18  ;;  %v684_v29 = vadd.f32 %v637_v15, %v636_v17 }
 0x17b   :  { %v541_v25 = vpop.f32.mrf.mxu0  ;;  %v589_v26 = vpop.f32.mrf.mxu1  ;;  %v782_v30 = vmul.f32 %v637_v15, %v637_v15  ;;  %v638_v33 = vmul.f32 %v1356_v6, %v536_v19  ;;  %v654_v34 = vmul.f32 %v1356_v6, %v584_v20  ;;  %v798_v37 = vmul.f32 %v653_v16, %v653_v16 }
 0x17c   :  { %v639_v31 = vmul.f32 %v1354_v4, %v538_v23  ;;  %v655_v32 = vmul.f32 %v1354_v4, %v586_v24  ;;  %709 = vadd.xlane.f32.xlu1 %v708_v28  ;;  %685 = vadd.xlane.f32.xlu0 %v684_v29  ;;  %v542_v53 = vadd.f32 %v541_v25, %v1339_v54  ;;  %v397_v25 = vpop.permute.xlu0 %396 }
 0x17d   :  { %v543_v35 = vpop.f32.mrf.mxu0  ;;  %v591_v38 = vpop.f32.mrf.mxu1  ;;  %v813_v39 = vadd.f32 %v782_v30, %v781_v36  ;;  %v783_v44 = vmul.f32 %v638_v33, %v638_v33  ;;  %v837_v46 = vadd.f32 %v798_v37, %v797_v43  ;;  %v590_v57 = vadd.f32 %v589_v26, %v387_v45 }
 0x17e   :  { %v711_v40 = vadd.f32 %v655_v32, %v654_v34  ;;  %v784_v41 = vmul.f32 %v639_v31, %v639_v31  ;;  %v544_v47 = vadd.f32 %v543_v35, %v1339_v54  ;;  %v592_v48 = vadd.f32 %v591_v38, %v387_v45 }
 0x17f   :  { %v547_v42 = vpop.f32.mrf.mxu0  ;;  %v595_v49 = vpop.f32.mrf.mxu1  ;;  %v800_v51 = vmul.f32 %v655_v32, %v655_v32  ;;  %v799_v59 = vmul.f32 %v654_v34, %v654_v34  ;;  %v687_v61 = vadd.f32 %v639_v31, %v638_v33  ;;  %v640_v8 = vmul.f32 %v1356_v6, %v542_v53 }
 0x180   :  { %814 = vadd.xlane.f32.xlu1 %v813_v39  ;;  %712 = vadd.xlane.f32.xlu0 %v711_v40  ;;  %v816_v50 = vadd.f32 %v784_v41, %v783_v44  ;;  %v641_v62 = vmul.f32 %v1354_v4, %v544_v47  ;;  %v657_v0 = vmul.f32 %v1354_v4, %v592_v48 }
 0x181   :  { %v549_v52 = vpop.f32.mrf.mxu0  ;;  %v597_v2 = vpop.f32.mrf.mxu1  ;;  %v840_v3 = vadd.f32 %v800_v51, %v799_v59  ;;  %v656_v9 = vmul.f32 %v1356_v6, %v590_v57  ;;  %v548_v54 = vadd.f32 %v547_v42, %v1341_v55  ;;  %v596_v17 = vadd.f32 %v595_v49, %v392_v7 }
 0x182   :  { %v550_v1 = vadd.f32 %v549_v52, %v1341_v55  ;;  %v598_v55 = vadd.f32 %v597_v2, %v392_v7  ;;  %v690_v13 = vadd.f32 %v641_v62, %v640_v8  ;;  %v786_v14 = vmul.f32 %v641_v62, %v641_v62 }
 0x183   :  { %v553_v5 = vpop.f32.mrf.mxu0  ;;  %v601_v11 = vpop.f32.mrf.mxu1  ;;  %v714_v12 = vadd.f32 %v657_v0, %v656_v9  ;;  %v642_v16 = vmul.f32 %v1356_v6, %v548_v54  ;;  %v785_v18 = vmul.f32 %v640_v8, %v640_v8  ;;  %v802_v23 = vmul.f32 %v657_v0, %v657_v0 }
 0x184   :  { %838 = vadd.xlane.f32.xlu1 %v837_v46  ;;  %817 = vadd.xlane.f32.xlu0 %v816_v50  ;;  %v643_v10 = vmul.f32 %v1354_v4, %v550_v1  ;;  %v659_v19 = vmul.f32 %v1354_v4, %v598_v55  ;;  %v658_v26 = vmul.f32 %v1356_v6, %v596_v17  ;;  %v402_v46 = vpop.permute.xlu1 %401  ;;  %v407_v54 = vpop.permute.xlu0 %406 }
 0x185   :  { %v555_v15 = vpop.f32.mrf.mxu0  ;;  %v603_v21 = vpop.f32.mrf.mxu1  ;;  %v819_v27 = vadd.f32 %v786_v14, %v785_v18  ;;  %v554_v28 = vadd.f32 %v553_v5, %v1343_v56  ;;  %v801_v29 = vmul.f32 %v656_v9, %v656_v9  ;;  %v602_v38 = vadd.f32 %v601_v11, %v397_v25 }
 0x186   :  { %v556_v20 = vadd.f32 %v555_v15, %v1343_v56  ;;  %v693_v22 = vadd.f32 %v643_v10, %v642_v16  ;;  %v604_v30 = vadd.f32 %v603_v21, %v397_v25  ;;  %v717_v34 = vadd.f32 %v659_v19, %v658_v26 }
 0x187   :  { %v559_v24 = vpop.f32.mrf.mxu0  ;;  %v607_v32 = vpop.f32.mrf.mxu1  ;;  %v843_v33 = vadd.f32 %v802_v23, %v801_v29  ;;  %v788_v35 = vmul.f32 %v643_v10, %v643_v10  ;;  %v644_v37 = vmul.f32 %v1356_v6, %v554_v28  ;;  %v787_v39 = vmul.f32 %v642_v16, %v642_v16 }
 0x188   :  { %688 = vadd.xlane.f32.xlu1 %v687_v61  ;;  %841 = vadd.xlane.f32.xlu0 %v840_v3  ;;  %v645_v31 = vmul.f32 %v1354_v4, %v556_v20  ;;  %v661_v40 = vmul.f32 %v1354_v4, %v604_v30  ;;  %v804_v44 = vmul.f32 %v659_v19, %v659_v19 }
 0x189   :  { %v561_v36 = vpop.f32.mrf.mxu0  ;;  %v609_v41 = vpop.f32.mrf.mxu1  ;;  %v822_v43 = vadd.f32 %v788_v35, %v787_v39  ;;  %v660_v47 = vmul.f32 %v1356_v6, %v602_v38  ;;  %v560_v48 = vadd.f32 %v559_v24, %v1345_v58  ;;  %v803_v49 = vmul.f32 %v658_v26, %v658_v26 }
 0x18a   :  { %v562_v56 = vadd.f32 %v561_v36, %v1345_v58  ;;  %v696_v42 = vadd.f32 %v645_v31, %v644_v37  ;;  %v610_v50 = vadd.f32 %v609_v41, %v402_v46  ;;  %v790_v59 = vmul.f32 %v645_v31, %v645_v31  ;;  %v412_v26 = vpop.permute.xlu1 %411 }
 0x18b   :  { %v565_v45 = vpop.f32.mrf.mxu0  ;;  %v613_v52 = vpop.f32.mrf.mxu1  ;;  %v720_v53 = vadd.f32 %v661_v40, %v660_v47  ;;  %v846_v57 = vadd.f32 %v804_v44, %v803_v49  ;;  %v646_v62 = vmul.f32 %v1356_v6, %v560_v48  ;;  %v608_v0 = vadd.f32 %v607_v32, %v402_v46 }
 0x18c   :  { %715 = vadd.xlane.f32.xlu1 %v714_v12  ;;  %691 = vadd.xlane.f32.xlu0 %v690_v13  ;;  %v647_v51 = vmul.f32 %v1354_v4, %v562_v56  ;;  %v789_v1 = vmul.f32 %v644_v37, %v644_v37  ;;  %v663_v2 = vmul.f32 %v1354_v4, %v610_v50 }
 0x18d   :  { %v567_v61 = vpop.f32.mrf.mxu0  ;;  %v615_v3 = vpop.f32.mrf.mxu1  ;;  %v806_v8 = vmul.f32 %v661_v40, %v661_v40  ;;  %v662_v55 = vmul.f32 %v1356_v6, %v608_v0  ;;  %v566_v10 = vadd.f32 %v565_v45, %v1347_v60  ;;  %v805_v11 = vmul.f32 %v660_v47, %v660_v47 }
 0x18e   :  { %v568_v58 = vadd.f32 %v567_v61, %v1347_v60  ;;  %v825_v5 = vadd.f32 %v790_v59, %v789_v1  ;;  %v699_v7 = vadd.f32 %v647_v51, %v646_v62  ;;  %v616_v12 = vadd.f32 %v615_v3, %v407_v54  ;;  %v765_v59 = vld [vmem:[%s1713_s7] sm:$0xff]  ;;  %v677_v61 = vld [vmem:[%s1711_s6 + $0x48] sm:$0xff] }
 0x18f   :  { %v571_v9 = vpop.f32.mrf.mxu0  ;;  %v619_v14 = vpop.f32.mrf.mxu1  ;;  %v849_v15 = vadd.f32 %v806_v8, %v805_v11  ;;  %v723_v16 = vadd.f32 %v663_v2, %v662_v55  ;;  %v792_v17 = vmul.f32 %v647_v51, %v647_v51  ;;  %v648_v19 = vmul.f32 %v1356_v6, %v566_v10  ;;  %v766_v3 = vld [vmem:[%s1713_s7 + $0x8] sm:$0xff] }
 0x190   :  { %820 = vadd.xlane.f32.xlu1 %v819_v27  ;;  %694 = vadd.xlane.f32.xlu0 %v693_v22  ;;  %v649_v13 = vmul.f32 %v1354_v4, %v568_v58  ;;  %v614_v20 = vadd.f32 %v613_v52, %v407_v54  ;;  %v791_v21 = vmul.f32 %v646_v62, %v646_v62  ;;  %v773_v58 = vld [vmem:[%s1713_s7 + $0x40] sm:$0xff]  ;;  %v669_v54 = vld [vmem:[%s1711_s6 + $0x8] sm:$0xff] }
 0x191   :  { %v573_v18 = vpop.f32.mrf.mxu0  ;;  %v665_v27 = vmul.f32 %v1354_v4, %v616_v12  ;;  %v621_v22 = vpop.f32.mrf.mxu1  ;;  %v808_v25 = vmul.f32 %v663_v2, %v663_v2  ;;  %v572_v29 = vadd.f32 %v571_v9, %v1349_v63  ;;  %v807_v30 = vmul.f32 %v662_v55, %v662_v55  ;;  %v774_v55 = vld [vmem:[%s1713_s7 + $0x48] sm:$0xff] }
 0x192   :  { %v574_v60 = vadd.f32 %v573_v18, %v1349_v63  ;;  %v702_v23 = vadd.f32 %v649_v13, %v648_v19  ;;  %v828_v24 = vadd.f32 %v792_v17, %v791_v21  ;;  %v664_v28 = vmul.f32 %v1356_v6, %v614_v20  ;;  %v767_v20 = vld [vmem:[%s1713_s7 + $0x10] sm:$0xff]  ;;  %v671_v21 = vld [vmem:[%s1711_s6 + $0x18] sm:$0xff] }
 0x193   :  { %v622_v31 = vadd.f32 %v621_v22, %v412_v26  ;;  %v794_v35 = vmul.f32 %v649_v13, %v649_v13  ;;  %v650_v36 = vmul.f32 %v1356_v6, %v572_v29  ;;  %v620_v37 = vadd.f32 %v619_v14, %v412_v26  ;;  %v678_v14 = vld [vmem:[%s1711_s6 + $0x50] sm:$0xff] }
 0x194   :  { %844 = vadd.xlane.f32.xlu1 %v843_v33  ;;  %718 = vadd.xlane.f32.xlu0 %v717_v34  ;;  %v651_v32 = vmul.f32 %v1354_v4, %v574_v60  ;;  %v726_v33 = vadd.f32 %v665_v27, %v664_v28  ;;  %v852_v34 = vadd.f32 %v808_v25, %v807_v30  ;;  %v679_v25 = vld [vmem:[%s1711_s6 + $0x58] sm:$0xff] }
 0x195   :  { %v793_v38 = vmul.f32 %v648_v19, %v648_v19  ;;  %v667_v39 = vmul.f32 %v1354_v4, %v622_v31  ;;  %v810_v63 = vmul.f32 %v665_v27, %v665_v27  ;;  %v666_v41 = vmul.f32 %v1356_v6, %v620_v37  ;;  %v676_v4 = vld [vmem:[%s1711_s6 + $0x40] sm:$0xff] }
 0x196   :  { %v705_v56 = vadd.f32 %v651_v32, %v650_v36  ;;  %v796_v45 = vmul.f32 %v651_v32, %v651_v32  ;;  %v795_v46 = vmul.f32 %v650_v36, %v650_v36  ;;  %v668_v6 = vld [vmem:[%s1711_s6] sm:$0xff]  ;;  %v768_v32 = vld [vmem:[%s1713_s7 + $0x18] sm:$0xff] }
 0x197   :  { %v831_v40 = vadd.f32 %v794_v35, %v793_v38  ;;  %v729_v44 = vadd.f32 %v667_v39, %v666_v41  ;;  %v812_v48 = vmul.f32 %v667_v39, %v667_v39  ;;  %v811_v49 = vmul.f32 %v666_v41, %v666_v41  ;;  %v672_v31 = vld [vmem:[%s1711_s6 + $0x20] sm:$0xff]  ;;  %v776_v38 = vld [vmem:[%s1713_s7 + $0x58] sm:$0xff] }
 0x198   :  { %697 = vadd.xlane.f32.xlu1 %v696_v42  ;;  %823 = vadd.xlane.f32.xlu0 %v822_v43  ;;  %v809_v42 = vmul.f32 %v664_v28, %v664_v28  ;;  %v834_v47 = vadd.f32 %v796_v45, %v795_v46  ;;  %v680_v37 = vld [vmem:[%s1711_s6 + $0x60] sm:$0xff] }
 0x199   :  { %v858_v50 = vadd.f32 %v812_v48, %v811_v49  ;;  %v769_v41 = vld [vmem:[%s1713_s7 + $0x20] sm:$0xff]  ;;  %v681_v48 = vld [vmem:[%s1711_s6 + $0x68] sm:$0xff] }
 0x19a   :  { %v855_v43 = vadd.f32 %v810_v63, %v809_v42  ;;  %v673_v42 = vld [vmem:[%s1711_s6 + $0x28] sm:$0xff] }
 0x19c   :  { %721 = vadd.xlane.f32.xlu1 %v720_v53  ;;  %847 = vadd.xlane.f32.xlu0 %v846_v57 }
 0x1a0   :  { %826 = vadd.xlane.f32.xlu1 %v825_v5  ;;  %700 = vadd.xlane.f32.xlu0 %v699_v7 }
 0x1a4   :  { %850 = vadd.xlane.f32.xlu1 %v849_v15  ;;  %724 = vadd.xlane.f32.xlu0 %v723_v16  ;;  %v670_v15 = vld [vmem:[%s1711_s6 + $0x10] sm:$0xff] }
 0x1a8   :  { %703 = vadd.xlane.f32.xlu1 %v702_v23  ;;  %829 = vadd.xlane.f32.xlu0 %v828_v24  ;;  %v775_v24 = vld [vmem:[%s1713_s7 + $0x50] sm:$0xff] }
 0x1ac   :  { %727 = vadd.xlane.f32.xlu1 %v726_v33  ;;  %853 = vadd.xlane.f32.xlu0 %v852_v34 }
 0x1b0   :  { %832 = vadd.xlane.f32.xlu1 %v831_v40  ;;  %706 = vadd.xlane.f32.xlu0 %v705_v56 }
 0x1b4   :  { %856 = vadd.xlane.f32.xlu1 %v855_v43  ;;  %730 = vadd.xlane.f32.xlu0 %v729_v44 }
 0x1b8   :  { %835 = vadd.xlane.f32.xlu0 %v834_v47  ;;  %v777_v47 = vld [vmem:[%s1713_s7 + $0x60] sm:$0xff] }
 0x1bc   :  { %859 = vadd.xlane.f32.xlu0 %v858_v50 }
 0x205   :  { %v710_v51 = vpop.xlane.xlu1 %709  ;;  %v686_v52 = vpop.xlane.xlu0 %685 }
 0x206   :  { %v740_v53 = vadd.f32 %v710_v51, %v676_v4  ;;  %v732_v57 = vadd.f32 %v686_v52, %v668_v6  ;;  %v674_v51 = vld [vmem:[%s1711_s6 + $0x30] sm:$0xff]  ;;  %v770_v52 = vld [vmem:[%s1713_s7 + $0x28] sm:$0xff] }
 0x208   :  { %757 = vst.msk [vmem:[%s1711_s6 + $0x40] sm:$0xff] %vm29_vm1, %v740_v53  ;;  %749 = vst.msk [vmem:[%s1711_s6] sm:$0xff] %vm29_vm1, %v732_v57 }
 0x209   :  { %v815_v62 = vpop.xlane.xlu1 %814  ;;  %v713_v0 = vpop.xlane.xlu0 %712 }
 0x20a   :  { %v861_v1 = vadd.f32 %v815_v62, %v765_v59  ;;  %v741_v2 = vadd.f32 %v713_v0, %v677_v61  ;;  %v682_v62 = vld [vmem:[%s1711_s6 + $0x70] sm:$0xff]  ;;  %v778_v0 = vld [vmem:[%s1713_s7 + $0x68] sm:$0xff] }
 0x20c   :  { %877 = vst.msk [vmem:[%s1713_s7] sm:$0xff] %vm29_vm1, %v861_v1  ;;  %758 = vst.msk [vmem:[%s1711_s6 + $0x48] sm:$0xff] %vm29_vm1, %v741_v2 }
 0x20d   :  { %v839_v5 = vpop.xlane.xlu1 %838  ;;  %v818_v7 = vpop.xlane.xlu0 %817 }
 0x20e   :  { %v869_v8 = vadd.f32 %v839_v5, %v773_v58  ;;  %v862_v9 = vadd.f32 %v818_v7, %v766_v3  ;;  %v771_v5 = vld [vmem:[%s1713_s7 + $0x30] sm:$0xff]  ;;  %v675_v7 = vld [vmem:[%s1711_s6 + $0x38] sm:$0xff] }
 0x210   :  { %885 = vst.msk [vmem:[%s1713_s7 + $0x40] sm:$0xff] %vm29_vm1, %v869_v8  ;;  %878 = vst.msk [vmem:[%s1713_s7 + $0x8] sm:$0xff] %vm29_vm1, %v862_v9 }
 0x211   :  { %v689_v10 = vpop.xlane.xlu1 %688  ;;  %v842_v11 = vpop.xlane.xlu0 %841 }
 0x212   :  { %v733_v12 = vadd.f32 %v689_v10, %v669_v54  ;;  %v870_v13 = vadd.f32 %v842_v11, %v774_v55  ;;  %v779_v10 = vld [vmem:[%s1713_s7 + $0x70] sm:$0xff]  ;;  %v683_v11 = vld [vmem:[%s1711_s6 + $0x78] sm:$0xff] }
 0x214   :  { %750 = vst.msk [vmem:[%s1711_s6 + $0x8] sm:$0xff] %vm29_vm1, %v733_v12  ;;  %886 = vst.msk [vmem:[%s1713_s7 + $0x48] sm:$0xff] %vm29_vm1, %v870_v13 }
 0x215   :  { %v716_v16 = vpop.xlane.xlu1 %715  ;;  %v692_v17 = vpop.xlane.xlu0 %691 }
 0x216   :  { %v742_v18 = vadd.f32 %v716_v16, %v678_v14  ;;  %v734_v19 = vadd.f32 %v692_v17, %v670_v15  ;;  %v772_v16 = vld [vmem:[%s1713_s7 + $0x38] sm:$0xff] }
 0x218   :  { %759 = vst.msk [vmem:[%s1711_s6 + $0x50] sm:$0xff] %vm29_vm1, %v742_v18  ;;  %751 = vst.msk [vmem:[%s1711_s6 + $0x10] sm:$0xff] %vm29_vm1, %v734_v19  ;;  %v780_v19 = vld [vmem:[%s1713_s7 + $0x78] sm:$0xff] }
 0x219   :  { %v821_v27 = vpop.xlane.xlu1 %820  ;;  %v695_v60 = vpop.xlane.xlu0 %694 }
 0x21a   :  { %v863_v22 = vadd.f32 %v821_v27, %v767_v20  ;;  %v735_v23 = vadd.f32 %v695_v60, %v671_v21 }
 0x21c   :  { %879 = vst.msk [vmem:[%s1713_s7 + $0x10] sm:$0xff] %vm29_vm1, %v863_v22  ;;  %752 = vst.msk [vmem:[%s1711_s6 + $0x18] sm:$0xff] %vm29_vm1, %v735_v23 }
 0x21d   :  { %v845_v26 = vpop.xlane.xlu1 %844  ;;  %v719_v28 = vpop.xlane.xlu0 %718 }
 0x21e   :  { %v871_v29 = vadd.f32 %v845_v26, %v775_v24  ;;  %v743_v30 = vadd.f32 %v719_v28, %v679_v25 }
 0x220   :  { %887 = vst.msk [vmem:[%s1713_s7 + $0x50] sm:$0xff] %vm29_vm1, %v871_v29  ;;  %760 = vst.msk [vmem:[%s1711_s6 + $0x58] sm:$0xff] %vm29_vm1, %v743_v30 }
 0x221   :  { %v698_v33 = vpop.xlane.xlu1 %697  ;;  %v824_v34 = vpop.xlane.xlu0 %823 }
 0x222   :  { %v736_v35 = vadd.f32 %v698_v33, %v672_v31  ;;  %v864_v36 = vadd.f32 %v824_v34, %v768_v32 }
 0x224   :  { %753 = vst.msk [vmem:[%s1711_s6 + $0x20] sm:$0xff] %vm29_vm1, %v736_v35  ;;  %880 = vst.msk [vmem:[%s1713_s7 + $0x18] sm:$0xff] %vm29_vm1, %v864_v36 }
 0x225   :  { %v722_v39 = vpop.xlane.xlu1 %721  ;;  %v848_v40 = vpop.xlane.xlu0 %847 }
 0x226   :  { %v744_v56 = vadd.f32 %v722_v39, %v680_v37  ;;  %v872_v63 = vadd.f32 %v848_v40, %v776_v38 }
 0x228   :  { %761 = vst.msk [vmem:[%s1711_s6 + $0x60] sm:$0xff] %vm29_vm1, %v744_v56  ;;  %888 = vst.msk [vmem:[%s1713_s7 + $0x58] sm:$0xff] %vm29_vm1, %v872_v63 }
 0x229   :  { %v827_v43 = vpop.xlane.xlu1 %826  ;;  %v701_v44 = vpop.xlane.xlu0 %700 }
 0x22a   :  { %v865_v45 = vadd.f32 %v827_v43, %v769_v41  ;;  %v737_v46 = vadd.f32 %v701_v44, %v673_v42 }
 0x22c   :  { %881 = vst.msk [vmem:[%s1713_s7 + $0x20] sm:$0xff] %vm29_vm1, %v865_v45  ;;  %754 = vst.msk [vmem:[%s1711_s6 + $0x28] sm:$0xff] %vm29_vm1, %v737_v46 }
 0x22d   :  { %v851_v49 = vpop.xlane.xlu1 %850  ;;  %v725_v50 = vpop.xlane.xlu0 %724 }
 0x22e   :  { %v873_v4 = vadd.f32 %v851_v49, %v777_v47  ;;  %v745_v6 = vadd.f32 %v725_v50, %v681_v48 }
 0x230   :  { %889 = vst.msk [vmem:[%s1713_s7 + $0x60] sm:$0xff] %vm29_vm1, %v873_v4  ;;  %762 = vst.msk [vmem:[%s1711_s6 + $0x68] sm:$0xff] %vm29_vm1, %v745_v6 }
 0x231   :  { %v704_v53 = vpop.xlane.xlu1 %703  ;;  %v830_v57 = vpop.xlane.xlu0 %829 }
 0x232   :  { %v738_v59 = vadd.f32 %v704_v53, %v674_v51  ;;  %v866_v61 = vadd.f32 %v830_v57, %v770_v52 }
 0x234   :  { %755 = vst.msk [vmem:[%s1711_s6 + $0x30] sm:$0xff] %vm29_vm1, %v738_v59  ;;  %882 = vst.msk [vmem:[%s1713_s7 + $0x28] sm:$0xff] %vm29_vm1, %v866_v61 }
 0x235   :  { %v728_v1 = vpop.xlane.xlu1 %727  ;;  %v854_v2 = vpop.xlane.xlu0 %853 }
 0x236   :  { %v746_v58 = vadd.f32 %v728_v1, %v682_v62  ;;  %v874_v3 = vadd.f32 %v854_v2, %v778_v0 }
 0x238   :  { %763 = vst.msk [vmem:[%s1711_s6 + $0x70] sm:$0xff] %vm29_vm1, %v746_v58  ;;  %890 = vst.msk [vmem:[%s1713_s7 + $0x68] sm:$0xff] %vm29_vm1, %v874_v3 }
 0x239   :  { %v833_v8 = vpop.xlane.xlu1 %832  ;;  %v707_v9 = vpop.xlane.xlu0 %706 }
 0x23a   :  { %v867_v54 = vadd.f32 %v833_v8, %v771_v5  ;;  %v739_v55 = vadd.f32 %v707_v9, %v675_v7 }
 0x23c   :  { %883 = vst.msk [vmem:[%s1713_s7 + $0x30] sm:$0xff] %vm29_vm1, %v867_v54  ;;  %756 = vst.msk [vmem:[%s1711_s6 + $0x38] sm:$0xff] %vm29_vm1, %v739_v55 }
 0x23d   :  { %v857_v12 = vpop.xlane.xlu1 %856  ;;  %v731_v13 = vpop.xlane.xlu0 %730 }
 0x23e   :  { %v875_v14 = vadd.f32 %v857_v12, %v779_v10  ;;  %v747_v15 = vadd.f32 %v731_v13, %v683_v11 }
 0x240   :  { %891 = vst.msk [vmem:[%s1713_s7 + $0x70] sm:$0xff] %vm29_vm1, %v875_v14  ;;  %764 = vst.msk [vmem:[%s1711_s6 + $0x78] sm:$0xff] %vm29_vm1, %v747_v15 }
 0x241   :  { %v836_v17 = vpop.xlane.xlu0 %835 }
 0x242   :  { %v868_v18 = vadd.f32 %v836_v17, %v772_v16 }
 0x244   :  { %884 = vst.msk [vmem:[%s1713_s7 + $0x38] sm:$0xff] %vm29_vm1, %v868_v18 }
 0x245   :  { %v860_v20 = vpop.xlane.xlu0 %859 }
 0x246   :  { %v876_v21 = vadd.f32 %v860_v20, %v780_v19 }
 0x248   :  { %892 = vst.msk [vmem:[%s1713_s7 + $0x78] sm:$0xff] %vm29_vm1, %v876_v21 }

// kernel: dense_block.11
= control target key start
LH: loop header
LB: loop body
LE: loop exit
PB: predicated region body
PF: predicated region fallthrough
CT: control target
= control target key end

     0   :  { %v1220_v0 = vmov 0   ;;  %v2047_v27 = vmov 0.0   ;;  %vm388_vm0 = vcmask 785408   ;;  %s1222_s12 = smov 1   ;;  %s2036_s2 = inlined_call_operand.vmem [shape: f32[96,1], index: 2, kind: input, shape index: {}]   ;;  %s2037_s1 = inlined_call_operand.vmem [shape: f32[96,1], index: 1, kind: input, shape index: {}]   ;;  %s2038_s4 = inlined_call_operand.vmem [shape: f32[128,1], index: 4, kind: input, shape index: {}]   ;;  %s2039_s5 = inlined_call_operand.vmem [shape: f32[128,1], index: 5, kind: input, shape index: {}]   ;;  %s2040_s6 = inlined_call_operand.vmem [shape: f32[128,1], index: 6, kind: input, shape index: {}]   ;;  %s2041_s0 = inlined_call_operand.vmem [shape: f32[128,256], index: 0, kind: input, shape index: {}]   ;;  %s2042_s8 = inlined_call_operand.vmem [shape: f32[32,1], index: 8, kind: input, shape index: {}]   ;;  %s2043_s3 = inlined_call_operand.vmem [shape: f32[128,96], index: 3, kind: input, shape index: {}]   ;;  %s2044_s9 = inlined_call_operand.vmem [shape: f32[1,256], index: 9, kind: input, shape index: {}]   ;;  %s2045_s7 = inlined_call_operand.vmem [shape: f32[96,128], index: 7, kind: input, shape index: {}]   ;;  %s2046_s10 = inlined_call_operand.vmem [shape: f32[32,256], index: 10, kind: output, shape index: {}]  }
   0x1   :  { %1219 = vset.pattern.permute.xlu1 %v1220_v0  ;;  %1218 = vset.pattern.permute.xlu0 %v1220_v0  ;;  %v167_v1 = vld [vmem:[%s2036_s2 + $0x58] sm:$0xff]  ;;  %v70_v3 = vld [vmem:[%s2037_s1 + $0x50] sm:$0xff]  ;;  %v69_v4 = vld [vmem:[%s2037_s1 + $0x48] sm:$0xff] }
   0x2   :  { %v71_v2 = vld [vmem:[%s2037_s1 + $0x58] sm:$0xff]  ;;  %225 = vperm.xlu1 %1219, %v167_v1   ;;  %v166_v5 = vld [vmem:[%s2036_s2 + $0x50] sm:$0xff]  ;;  %v68_v6 = vld [vmem:[%s2037_s1 + $0x40] sm:$0xff]  ;;  %501 = vmatprep.mubr.f32.mxu0 %v2047_v27 }
   0x3   :  { %129 = vperm.xlu0 %1218, %v71_v2   ;;  %v165_v7 = vld [vmem:[%s2036_s2 + $0x48] sm:$0xff]  ;;  %v67_v8 = vld [vmem:[%s2037_s1 + $0x38] sm:$0xff]  ;;  %v164_v9 = vld [vmem:[%s2036_s2 + $0x40] sm:$0xff]  ;;  %1005 = vmatprep.mubr.f32.mxu1 %v2047_v27 }
   0x4   :  { %v66_v10 = vld [vmem:[%s2037_s1 + $0x30] sm:$0xff]  ;;  %v163_v11 = vld [vmem:[%s2036_s2 + $0x38] sm:$0xff]  ;;  %v65_v12 = vld [vmem:[%s2037_s1 + $0x28] sm:$0xff] }
   0x5   :  { %v162_v13 = vld [vmem:[%s2036_s2 + $0x30] sm:$0xff]  ;;  %v64_v14 = vld [vmem:[%s2037_s1 + $0x20] sm:$0xff]  ;;  %v161_v15 = vld [vmem:[%s2036_s2 + $0x28] sm:$0xff] }
   0x6   :  { %119 = vperm.xlu1 %1219, %v69_v4   ;;  %v63_v16 = vld [vmem:[%s2037_s1 + $0x18] sm:$0xff]  ;;  %v160_v17 = vld [vmem:[%s2036_s2 + $0x20] sm:$0xff]  ;;  %v62_v18 = vld [vmem:[%s2037_s1 + $0x10] sm:$0xff] }
   0x7   :  { %124 = vperm.xlu0 %1218, %v70_v3   ;;  %v159_v19 = vld [vmem:[%s2036_s2 + $0x18] sm:$0xff]  ;;  %v61_v20 = vld [vmem:[%s2037_s1 + $0x8] sm:$0xff]  ;;  %v158_v21 = vld [vmem:[%s2036_s2 + $0x10] sm:$0xff] }
   0x8   :  { %v60_v22 = vld [vmem:[%s2037_s1] sm:$0xff]  ;;  %v157_v23 = vld [vmem:[%s2036_s2 + $0x8] sm:$0xff]  ;;  %v307_v25 = vld [vmem:[%s2038_s4 + $0x78] sm:$0xff] }
   0x9   :  { %v156_v24 = vld [vmem:[%s2036_s2] sm:$0xff]  ;;  %v306_v26 = vld [vmem:[%s2038_s4 + $0x70] sm:$0xff]  ;;  %v613_v28 = vld [vmem:[%s2039_s5 + $0x78] sm:$0xff] }
   0xa   :  { %114 = vperm.xlu1 %1219, %v68_v6   ;;  %v305_v29 = vld [vmem:[%s2038_s4 + $0x68] sm:$0xff]  ;;  %v612_v30 = vld [vmem:[%s2039_s5 + $0x70] sm:$0xff]  ;;  %v741_v31 = vld [vmem:[%s2040_s6 + $0x78] sm:$0xff] }
   0xb   :  { %220 = vperm.xlu0 %1218, %v166_v5   ;;  %v304_v32 = vld [vmem:[%s2038_s4 + $0x60] sm:$0xff]  ;;  %v611_v33 = vld [vmem:[%s2039_s5 + $0x68] sm:$0xff]  ;;  %v740_v34 = vld [vmem:[%s2040_s6 + $0x70] sm:$0xff] }
   0xc   :  { %v303_v35 = vld [vmem:[%s2038_s4 + $0x58] sm:$0xff]  ;;  %v610_v36 = vld [vmem:[%s2039_s5 + $0x60] sm:$0xff]  ;;  %v739_v37 = vld [vmem:[%s2040_s6 + $0x68] sm:$0xff] }
   0xd   :  { %v302_v38 = vld [vmem:[%s2038_s4 + $0x50] sm:$0xff]  ;;  %v609_v39 = vld [vmem:[%s2039_s5 + $0x58] sm:$0xff]  ;;  %v738_v40 = vld [vmem:[%s2040_s6 + $0x60] sm:$0xff] }
   0xe   :  { %109 = vperm.xlu1 %1219, %v67_v8   ;;  %v301_v41 = vld [vmem:[%s2038_s4 + $0x48] sm:$0xff]  ;;  %v608_v42 = vld [vmem:[%s2039_s5 + $0x50] sm:$0xff]  ;;  %v737_v43 = vld [vmem:[%s2040_s6 + $0x58] sm:$0xff] }
   0xf   :  { %215 = vperm.xlu0 %1218, %v165_v7   ;;  %v300_v44 = vld [vmem:[%s2038_s4 + $0x40] sm:$0xff]  ;;  %v607_v45 = vld [vmem:[%s2039_s5 + $0x48] sm:$0xff]  ;;  %v736_v46 = vld [vmem:[%s2040_s6 + $0x50] sm:$0xff] }
  0x10   :  { %v299_v47 = vld [vmem:[%s2038_s4 + $0x38] sm:$0xff]  ;;  %v606_v48 = vld [vmem:[%s2039_s5 + $0x40] sm:$0xff]  ;;  %v735_v49 = vld [vmem:[%s2040_s6 + $0x48] sm:$0xff] }
  0x11   :  { %v298_v50 = vld [vmem:[%s2038_s4 + $0x30] sm:$0xff]  ;;  %v605_v51 = vld [vmem:[%s2039_s5 + $0x38] sm:$0xff]  ;;  %v734_v52 = vld [vmem:[%s2040_s6 + $0x40] sm:$0xff] }
  0x12   :  { %104 = vperm.xlu1 %1219, %v66_v10   ;;  %v297_v53 = vld [vmem:[%s2038_s4 + $0x28] sm:$0xff]  ;;  %v604_v54 = vld [vmem:[%s2039_s5 + $0x30] sm:$0xff]  ;;  %v733_v55 = vld [vmem:[%s2040_s6 + $0x38] sm:$0xff] }
  0x13   :  { %210 = vperm.xlu0 %1218, %v164_v9   ;;  %v296_v56 = vld [vmem:[%s2038_s4 + $0x20] sm:$0xff]  ;;  %v603_v57 = vld [vmem:[%s2039_s5 + $0x28] sm:$0xff]  ;;  %v732_v58 = vld [vmem:[%s2040_s6 + $0x30] sm:$0xff] }
  0x14   :  { %v295_v59 = vld [vmem:[%s2038_s4 + $0x18] sm:$0xff]  ;;  %v602_v60 = vld [vmem:[%s2039_s5 + $0x20] sm:$0xff]  ;;  %v731_v61 = vld [vmem:[%s2040_s6 + $0x28] sm:$0xff] }
  0x15   :  { %v294_v62 = vld [vmem:[%s2038_s4 + $0x10] sm:$0xff]  ;;  %v601_v63 = vld [vmem:[%s2039_s5 + $0x18] sm:$0xff]  ;;  %v730_v2 = vld [vmem:[%s2040_s6 + $0x20] sm:$0xff] }
  0x16   :  { %99 = vperm.xlu1 %1219, %v65_v12   ;;  %v58_v0 = vld [vmem:[%s2041_s0 + $0xb0] sm:$0xff]  ;;  %v59_v1 = vld [vmem:[%s2041_s0 + $0xb8] sm:$0xff]  ;;  %v293_v3 = vld [vmem:[%s2038_s4 + $0x8] sm:$0xff] }
  0x17   :  { %205 = vperm.xlu0 %1218, %v163_v11   ;;  %v600_v8 = vld [vmem:[%s2039_s5 + $0x10] sm:$0xff]  ;;  %v729_v9 = vld [vmem:[%s2040_s6 + $0x18] sm:$0xff] }
  0x1a   :  { %94 = vperm.xlu1 %1219, %v64_v14   ;;  %v57_v14 = vld [vmem:[%s2041_s0 + $0xa8] sm:$0xff] }
  0x1b   :  { %200 = vperm.xlu0 %1218, %v162_v13   ;;  %v56_v13 = vld [vmem:[%s2041_s0 + $0xa0] sm:$0xff] }
  0x1e   :  { %89 = vperm.xlu1 %1219, %v63_v16  }
  0x1f   :  { %195 = vperm.xlu0 %1218, %v161_v15  }
  0x22   :  { %84 = vperm.xlu1 %1219, %v62_v18  }
  0x23   :  { %190 = vperm.xlu0 %1218, %v160_v17  }
  0x26   :  { %79 = vperm.xlu1 %1219, %v61_v20   ;;  %v292_v20 = vld [vmem:[%s2038_s4] sm:$0xff] }
  0x27   :  { %185 = vperm.xlu0 %1218, %v159_v19  }
  0x2a   :  { %74 = vperm.xlu1 %1219, %v60_v22   ;;  %v54_v22 = vld [vmem:[%s2041_s0 + $0x90] sm:$0xff] }
  0x2b   :  { %180 = vperm.xlu0 %1218, %v158_v21   ;;  %v599_v21 = vld [vmem:[%s2039_s5 + $0x8] sm:$0xff] }
  0x2e   :  { %170 = vperm.xlu1 %1219, %v156_v24  }
  0x2f   :  { %175 = vperm.xlu0 %1218, %v157_v23   ;;  %v55_v23 = vld [vmem:[%s2041_s0 + $0x98] sm:$0xff] }
  0x32   :  { %380 = vperm.xlu1 %1219, %v306_v26  }
  0x33   :  { %385 = vperm.xlu0 %1218, %v307_v25  }
  0x36   :  { %375 = vperm.xlu1 %1219, %v305_v29  }
  0x37   :  { %691 = vperm.xlu0 %1218, %v613_v28  }
  0x3a   :  { %819 = vperm.xlu1 %1219, %v741_v31  }
  0x3b   :  { %686 = vperm.xlu0 %1218, %v612_v30  }
  0x3e   :  { %681 = vperm.xlu1 %1219, %v611_v33   ;;  %v728_v33 = vld [vmem:[%s2040_s6 + $0x10] sm:$0xff] }
  0x3f   :  { %370 = vperm.xlu0 %1218, %v304_v32  }
  0x42   :  { %365 = vperm.xlu1 %1219, %v303_v35   ;;  %v52_v35 = vld [vmem:[%s2041_s0 + $0x80] sm:$0xff] }
  0x43   :  { %814 = vperm.xlu0 %1218, %v740_v34   ;;  %v598_v34 = vld [vmem:[%s2039_s5] sm:$0xff] }
  0x46   :  { %809 = vperm.xlu1 %1219, %v739_v37  }
  0x47   :  { %676 = vperm.xlu0 %1218, %v610_v36   ;;  %v53_v36 = vld [vmem:[%s2041_s0 + $0x88] sm:$0xff] }
  0x4a   :  { %671 = vperm.xlu1 %1219, %v609_v39  }
  0x4b   :  { %360 = vperm.xlu0 %1218, %v302_v38  }
  0x4e   :  { %355 = vperm.xlu1 %1219, %v301_v41  }
  0x4f   :  { %804 = vperm.xlu0 %1218, %v738_v40  }
  0x52   :  { %799 = vperm.xlu1 %1219, %v737_v43  }
  0x53   :  { %666 = vperm.xlu0 %1218, %v608_v42  }
  0x56   :  { %661 = vperm.xlu1 %1219, %v607_v45   ;;  %v727_v45 = vld [vmem:[%s2040_s6 + $0x8] sm:$0xff] }
  0x57   :  { %350 = vperm.xlu0 %1218, %v300_v44  }
  0x5a   :  { %345 = vperm.xlu1 %1219, %v299_v47   ;;  %v50_v47 = vld [vmem:[%s2041_s0 + $0x70] sm:$0xff] }
  0x5b   :  { %794 = vperm.xlu0 %1218, %v736_v46   ;;  %v726_v46 = vld [vmem:[%s2040_s6] sm:$0xff] }
  0x5e   :  { %789 = vperm.xlu1 %1219, %v735_v49  }
  0x5f   :  { %656 = vperm.xlu0 %1218, %v606_v48   ;;  %v51_v48 = vld [vmem:[%s2041_s0 + $0x78] sm:$0xff] }
  0x62   :  { %651 = vperm.xlu1 %1219, %v605_v51  }
  0x63   :  { %340 = vperm.xlu0 %1218, %v298_v50  }
  0x66   :  { %335 = vperm.xlu1 %1219, %v297_v53  }
  0x67   :  { %784 = vperm.xlu0 %1218, %v734_v52  }
  0x6a   :  { %779 = vperm.xlu1 %1219, %v733_v55  }
  0x6b   :  { %646 = vperm.xlu0 %1218, %v604_v54  }
  0x6e   :  { %641 = vperm.xlu1 %1219, %v603_v57   ;;  %v1130_v57 = vld [vmem:[%s2042_s8] sm:$0xff] }
  0x6f   :  { %330 = vperm.xlu0 %1218, %v296_v56  }
  0x72   :  { %325 = vperm.xlu1 %1219, %v295_v59   ;;  %v48_v59 = vld [vmem:[%s2041_s0 + $0x60] sm:$0xff] }
  0x73   :  { %774 = vperm.xlu0 %1218, %v732_v58   ;;  %v1131_v58 = vld [vmem:[%s2042_s8 + $0x8] sm:$0xff] }
  0x76   :  { %769 = vperm.xlu1 %1219, %v731_v61  }
  0x77   :  { %636 = vperm.xlu0 %1218, %v602_v60   ;;  %v49_v60 = vld [vmem:[%s2041_s0 + $0x68] sm:$0xff] }
  0x7a   :  { %631 = vperm.xlu1 %1219, %v601_v63  }
  0x7b   :  { %320 = vperm.xlu0 %1218, %v294_v62  }
  0x7d   :  { %v226_v4 = vpop.permute.xlu1 %225 }
  0x7e   :  { %v130_v5 = vpop.permute.xlu0 %129  ;;  %315 = vperm.xlu1 %1219, %v293_v3  }
  0x7f   :  { %v154_v6 = vmul.f32 %v130_v5, %v58_v0  ;;  %v155_v7 = vmul.f32 %v130_v5, %v59_v1  ;;  %764 = vperm.xlu0 %1218, %v730_v2   ;;  %v1132_v5 = vld [vmem:[%s2042_s8 + $0x10] sm:$0xff] }
  0x81   :  { %v251_v10 = vadd.f32 %v226_v4, %v155_v7  ;;  %v250_v11 = vadd.f32 %v226_v4, %v154_v6  ;;  %v120_v15 = vpop.permute.xlu1 %119  ;;  %v1133_v6 = vld [vmem:[%s2042_s8 + $0x18] sm:$0xff]  ;;  %v46_v7 = vld [vmem:[%s2041_s0 + $0x50] sm:$0xff] }
  0x82   :  { %v125_v12 = vpop.permute.xlu0 %124  ;;  %759 = vperm.xlu1 %1219, %v729_v9   ;;  %v150_v29 = vmul.f32 %v120_v15, %v54_v22  ;;  %v151_v30 = vmul.f32 %v120_v15, %v55_v23 }
  0x83   :  { %626 = vperm.xlu0 %1218, %v600_v8   ;;  %v275_v16 = vmax.f32 %v251_v10, 0.0  ;;  %v274_v17 = vmax.f32 %v250_v11, 0.0  ;;  %v152_v18 = vmul.f32 %v125_v12, %v56_v13  ;;  %v153_v19 = vmul.f32 %v125_v12, %v57_v14  ;;  %v47_v8 = vld [vmem:[%s2041_s0 + $0x58] sm:$0xff] }
  0x85   :  { %445 = vmatprep.subr.mxu0 %v275_v16  ;;  %v115_v25 = vpop.permute.xlu1 %114 }
  0x86   :  { %v221_v24 = vpop.permute.xlu0 %220  ;;  %446 = vmatpush1.msra.mxu0 %v274_v17  ;;  %621 = vperm.xlu1 %1219, %v599_v21   ;;  %v148_v41 = vmul.f32 %v115_v25, %v52_v35  ;;  %v149_v42 = vmul.f32 %v115_v25, %v53_v36  ;;  %v44_v17 = vld [vmem:[%s2041_s0 + $0x40] sm:$0xff] }
  0x87   :  { %v248_v26 = vadd.f32 %v221_v24, %v152_v18  ;;  %v249_v28 = vadd.f32 %v221_v24, %v153_v19  ;;  %310 = vperm.xlu0 %1218, %v292_v20   ;;  %v45_v18 = vld [vmem:[%s2041_s0 + $0x48] sm:$0xff] }
  0x89   :  { %v272_v31 = vmax.f32 %v248_v26, 0.0  ;;  %v273_v32 = vmax.f32 %v249_v28, 0.0  ;;  %v110_v38 = vpop.permute.xlu1 %109  ;;  %v42_v28 = vld [vmem:[%s2041_s0 + $0x30] sm:$0xff] }
  0x8a   :  { %v216_v37 = vpop.permute.xlu0 %215  ;;  %616 = vperm.xlu1 %1219, %v598_v34   ;;  %v146_v53 = vmul.f32 %v110_v38, %v50_v47  ;;  %v147_v54 = vmul.f32 %v110_v38, %v51_v48  ;;  %v40_v38 = vld [vmem:[%s2041_s0 + $0x20] sm:$0xff]  ;;  %v38_v48 = vld [vmem:[%s2041_s0 + $0x10] sm:$0xff] }
  0x8b   :  { %v246_v39 = vadd.f32 %v216_v37, %v150_v29  ;;  %v247_v40 = vadd.f32 %v216_v37, %v151_v30  ;;  %447 = vmatprep.subr.mxu0 %v273_v32  ;;  %754 = vperm.xlu0 %1218, %v728_v33   ;;  %v43_v29 = vld [vmem:[%s2041_s0 + $0x38] sm:$0xff] }
  0x8c   :  { %448 = vmatpush1.msra.mxu0 %v272_v31 }
  0x8d   :  { %v270_v43 = vmax.f32 %v246_v39, 0.0  ;;  %v271_v44 = vmax.f32 %v247_v40, 0.0  ;;  %v105_v50 = vpop.permute.xlu1 %104  ;;  %v41_v39 = vld [vmem:[%s2041_s0 + $0x28] sm:$0xff] }
  0x8e   :  { %v211_v49 = vpop.permute.xlu0 %210  ;;  %744 = vperm.xlu1 %1219, %v726_v46   ;;  %v144_v1 = vmul.f32 %v105_v50, %v48_v59  ;;  %v145_v2 = vmul.f32 %v105_v50, %v49_v60 }
  0x8f   :  { %v244_v51 = vadd.f32 %v211_v49, %v148_v41  ;;  %v245_v52 = vadd.f32 %v211_v49, %v149_v42  ;;  %449 = vmatprep.subr.mxu0 %v271_v44  ;;  %749 = vperm.xlu0 %1218, %v727_v45   ;;  %v39_v49 = vld [vmem:[%s2041_s0 + $0x18] sm:$0xff] }
  0x90   :  { %450 = vmatpush1.msra.mxu0 %v270_v43 }
  0x91   :  { %v268_v55 = vmax.f32 %v244_v51, 0.0  ;;  %v269_v56 = vmax.f32 %v245_v52, 0.0  ;;  %v100_v62 = vpop.permute.xlu1 %99  ;;  %v37_v52 = vld [vmem:[%s2041_s0 + $0x8] sm:$0xff] }
  0x92   :  { %v206_v61 = vpop.permute.xlu0 %205  ;;  %1141 = vperm.xlu1 %1219, %v1131_v58   ;;  %v142_v13 = vmul.f32 %v100_v62, %v46_v7  ;;  %v143_v14 = vmul.f32 %v100_v62, %v47_v8  ;;  %v276_v8 = vld [vmem:[%s2043_s3] sm:$0xff] }
  0x93   :  { %v242_v63 = vadd.f32 %v206_v61, %v146_v53  ;;  %v243_v0 = vadd.f32 %v206_v61, %v147_v54  ;;  %451 = vmatprep.subr.mxu0 %v269_v56  ;;  %1136 = vperm.xlu0 %1218, %v1130_v57  }
  0x94   :  { %452 = vmatpush1.msra.mxu0 %v268_v55  ;;  %v36_v55 = vld [vmem:[%s2041_s0] sm:$0xff] }
  0x95   :  { %v266_v3 = vmax.f32 %v242_v63, 0.0  ;;  %v267_v4 = vmax.f32 %v243_v0, 0.0  ;;  %v95_v10 = vpop.permute.xlu1 %94 }
  0x96   :  { %v201_v9 = vpop.permute.xlu0 %200  ;;  %1151 = vperm.xlu1 %1219, %v1133_v6   ;;  %v140_v23 = vmul.f32 %v95_v10, %v44_v17  ;;  %v141_v24 = vmul.f32 %v95_v10, %v45_v18  ;;  %v278_v10 = vld [vmem:[%s2043_s3 + $0x10] sm:$0xff]  ;;  %v285_v17 = vld [vmem:[%s2043_s3 + $0x48] sm:$0xff] }
  0x97   :  { %v240_v11 = vadd.f32 %v201_v9, %v144_v1  ;;  %v241_v12 = vadd.f32 %v201_v9, %v145_v2  ;;  %453 = vmatprep.subr.mxu0 %v267_v4  ;;  %1146 = vperm.xlu0 %1218, %v1132_v5   ;;  %v277_v9 = vld [vmem:[%s2043_s3 + $0x8] sm:$0xff]  ;;  %v286_v18 = vld [vmem:[%s2043_s3 + $0x50] sm:$0xff] }
  0x98   :  { %454 = vmatpush1.msra.mxu0 %v266_v3 }
  0x99   :  { %v264_v15 = vmax.f32 %v240_v11, 0.0  ;;  %v265_v16 = vmax.f32 %v241_v12, 0.0  ;;  %v90_v20 = vpop.permute.xlu1 %89  ;;  %v279_v11 = vld [vmem:[%s2043_s3 + $0x18] sm:$0xff]  ;;  %v280_v12 = vld [vmem:[%s2043_s3 + $0x20] sm:$0xff] }
  0x9a   :  { %v196_v19 = vpop.permute.xlu0 %195  ;;  %v138_v34 = vmul.f32 %v90_v20, %v42_v28  ;;  %v139_v35 = vmul.f32 %v90_v20, %v43_v29  ;;  %v288_v20 = vld [vmem:[%s2043_s3 + $0x60] sm:$0xff] }
  0x9b   :  { %v238_v21 = vadd.f32 %v196_v19, %v142_v13  ;;  %v239_v22 = vadd.f32 %v196_v19, %v143_v14  ;;  %455 = vmatprep.subr.mxu0 %v265_v16  ;;  %v281_v13 = vld [vmem:[%s2043_s3 + $0x28] sm:$0xff]  ;;  %v282_v14 = vld [vmem:[%s2043_s3 + $0x30] sm:$0xff]  ;;  %v284_v16 = vld [vmem:[%s2043_s3 + $0x40] sm:$0xff] }
  0x9c   :  { %456 = vmatpush1.msra.mxu0 %v264_v15  ;;  %v283_v15 = vld [vmem:[%s2043_s3 + $0x38] sm:$0xff] }
  0x9d   :  { %v262_v25 = vmax.f32 %v238_v21, 0.0  ;;  %v263_v26 = vmax.f32 %v239_v22, 0.0  ;;  %v85_v31 = vpop.permute.xlu1 %84  ;;  %v287_v19 = vld [vmem:[%s2043_s3 + $0x58] sm:$0xff]  ;;  %v289_v21 = vld [vmem:[%s2043_s3 + $0x68] sm:$0xff]  ;;  %v290_v22 = vld [vmem:[%s2043_s3 + $0x70] sm:$0xff] }
  0x9e   :  { %v191_v30 = vpop.permute.xlu0 %190  ;;  %v136_v44 = vmul.f32 %v85_v31, %v40_v38  ;;  %v137_v45 = vmul.f32 %v85_v31, %v41_v39 }
  0x9f   :  { %v236_v32 = vadd.f32 %v191_v30, %v140_v23  ;;  %v237_v33 = vadd.f32 %v191_v30, %v141_v24  ;;  %457 = vmatprep.subr.mxu0 %v263_v26  ;;  %v291_v23 = vld [vmem:[%s2043_s3 + $0x78] sm:$0xff] }
  0xa0   :  { %458 = vmatpush1.msra.mxu0 %v262_v25 }
  0xa1   :  { %v260_v36 = vmax.f32 %v236_v32, 0.0  ;;  %v261_v37 = vmax.f32 %v237_v33, 0.0  ;;  %v80_v41 = vpop.permute.xlu1 %79 }
  0xa2   :  { %v186_v40 = vpop.permute.xlu0 %185  ;;  %v134_v56 = vmul.f32 %v80_v41, %v38_v48  ;;  %v135_v57 = vmul.f32 %v80_v41, %v39_v49 }
  0xa3   :  { %v234_v42 = vadd.f32 %v186_v40, %v138_v34  ;;  %v235_v43 = vadd.f32 %v186_v40, %v139_v35  ;;  %459 = vmatprep.subr.mxu0 %v261_v37 }
  0xa4   :  { %460 = vmatpush1.msra.mxu0 %v260_v36 }
  0xa5   :  { %v258_v46 = vmax.f32 %v234_v42, 0.0  ;;  %v259_v47 = vmax.f32 %v235_v43, 0.0  ;;  %v75_v51 = vpop.permute.xlu1 %74 }
  0xa6   :  { %v181_v50 = vpop.permute.xlu0 %180  ;;  %v133_v60 = vmul.f32 %v75_v51, %v37_v52  ;;  %v132_v61 = vmul.f32 %v75_v51, %v36_v55 }
  0xa7   :  { %v232_v53 = vadd.f32 %v181_v50, %v136_v44  ;;  %v233_v54 = vadd.f32 %v181_v50, %v137_v45  ;;  %461 = vmatprep.subr.mxu0 %v259_v47 }
  0xa8   :  { %462 = vmatpush1.msra.mxu0 %v258_v46 }
  0xa9   :  { %v256_v58 = vmax.f32 %v232_v53, 0.0  ;;  %v257_v59 = vmax.f32 %v233_v54, 0.0  ;;  %v171_v63 = vpop.permute.xlu1 %170 }
  0xaa   :  { %v176_v62 = vpop.permute.xlu0 %175  ;;  %v229_v2 = vadd.f32 %v171_v63, %v133_v60  ;;  %v228_v3 = vadd.f32 %v171_v63, %v132_v61 }
  0xab   :  { %v230_v0 = vadd.f32 %v176_v62, %v134_v56  ;;  %v231_v1 = vadd.f32 %v176_v62, %v135_v57  ;;  %463 = vmatprep.subr.mxu0 %v257_v59 }
  0xac   :  { %464 = vmatpush1.msra.mxu0 %v256_v58  ;;  %v253_v6 = vmax.f32 %v229_v2, 0.0  ;;  %v252_v7 = vmax.f32 %v228_v3, 0.0 }
  0xad   :  { %v254_v4 = vmax.f32 %v230_v0, 0.0  ;;  %v255_v5 = vmax.f32 %v231_v1, 0.0  ;;  %v1664_v26 = vpop.permute.xlu1 %380 }
  0xae   :  { %v1660_v24 = vpop.permute.xlu0 %385 }
  0xaf   :  { %465 = vmatprep.subr.mxu0 %v255_v5 }
  0xb0   :  { %466 = vmatpush1.msra.mxu0 %v254_v4 }
  0xb1   :  { %467 = vmatprep.subr.mxu0 %v253_v6  ;;  %v1668_v29 = vpop.permute.xlu1 %375 }
  0xb2   :  { %468 = vmatpush1.msra.mxu0 %v252_v7  ;;  %v1662_v25 = vpop.permute.xlu0 %691 }
  0xb3   :  { %1198 = vmatmul.mubr.msk.f32.vlgmr.msra.gmra.mxu0 %vm388_vm0, %v276_v8 }
  0xb4   :  { %507 = vmatprep.mubr.f32.mxu0 %v2047_v27 }
  0xb5   :  { %v1672_v31 = vpop.permute.xlu1 %819 }
  0xb6   :  { %v1666_v28 = vpop.permute.xlu0 %686 }
  0xb7   :  { %1199 = vmatmul.mubr.msk.f32.gmra.mxu0 %vm388_vm0, %v277_v9 }
  0xb8   :  { %513 = vmatprep.mubr.f32.mxu0 %v2047_v27 }
  0xb9   :  { %v1676_v33 = vpop.permute.xlu1 %681 }
  0xba   :  { %v1670_v30 = vpop.permute.xlu0 %370 }
  0xbb   :  { %1200 = vmatmul.mubr.msk.f32.gmra.mxu0 %vm388_vm0, %v278_v10 }
  0xbc   :  { %519 = vmatprep.mubr.f32.mxu0 %v2047_v27 }
  0xbd   :  { %v1680_v35 = vpop.permute.xlu1 %365 }
  0xbe   :  { %v1674_v32 = vpop.permute.xlu0 %814 }
  0xbf   :  { %1201 = vmatmul.mubr.msk.f32.gmra.mxu0 %vm388_vm0, %v279_v11 }
  0xc0   :  { %525 = vmatprep.mubr.f32.mxu0 %v2047_v27 }
  0xc1   :  { %v1684_v37 = vpop.permute.xlu1 %809 }
  0xc2   :  { %v1678_v34 = vpop.permute.xlu0 %676 }
  0xc3   :  { %1202 = vmatmul.mubr.msk.f32.gmra.mxu0 %vm388_vm0, %v280_v12 }
  0xc4   :  { %531 = vmatprep.mubr.f32.mxu0 %v2047_v27 }
  0xc5   :  { %v1688_v39 = vpop.permute.xlu1 %671 }
  0xc6   :  { %v1682_v36 = vpop.permute.xlu0 %360 }
  0xc7   :  { %1203 = vmatmul.mubr.msk.f32.gmra.mxu0 %vm388_vm0, %v281_v13 }
  0xc8   :  { %537 = vmatprep.mubr.f32.mxu0 %v2047_v27 }
  0xc9   :  { %v1692_v41 = vpop.permute.xlu1 %355 }
  0xca   :  { %v1686_v38 = vpop.permute.xlu0 %804 }
  0xcb   :  { %1204 = vmatmul.mubr.msk.f32.gmra.mxu0 %vm388_vm0, %v282_v14  ;;  %2069 = vst [vmem:[#allocation2_spill] sm:$0xff] %v1686_v38 }
  0xcc   :  { %543 = vmatprep.mubr.f32.mxu0 %v2047_v27 }
  0xcd   :  { %v1696_v43 = vpop.permute.xlu1 %799 }
  0xce   :  { %v1690_v40 = vpop.permute.xlu0 %666  ;;  %2071 = vst [vmem:[#allocation4_spill] sm:$0xff] %v1696_v43 }
  0xcf   :  { %1205 = vmatmul.mubr.msk.f32.gmra.mxu0 %vm388_vm0, %v283_v15  ;;  %2070 = vst [vmem:[#allocation3_spill] sm:$0xff] %v1690_v40 }
  0xd0   :  { %549 = vmatprep.mubr.f32.mxu0 %v2047_v27 }
  0xd1   :  { %v1700_v45 = vpop.permute.xlu1 %661 }
  0xd2   :  { %v1694_v42 = vpop.permute.xlu0 %350  ;;  %2073 = vst [vmem:[#allocation6_spill] sm:$0xff] %v1700_v45 }
  0xd3   :  { %1206 = vmatmul.mubr.msk.f32.gmra.mxu0 %vm388_vm0, %v284_v16 }
  0xd4   :  { %555 = vmatprep.mubr.f32.mxu0 %v2047_v27 }
  0xd5   :  { %v1704_v48 = vpop.permute.xlu1 %345 }
  0xd6   :  { %v1698_v44 = vpop.permute.xlu0 %794 }
  0xd7   :  { %1207 = vmatmul.mubr.msk.f32.gmra.mxu0 %vm388_vm0, %v285_v17  ;;  %2072 = vst [vmem:[#allocation5_spill] sm:$0xff] %v1698_v44 }
  0xd8   :  { %561 = vmatprep.mubr.f32.mxu0 %v2047_v27 }
  0xd9   :  { %v1708_v53 = vpop.permute.xlu1 %789 }
  0xda   :  { %v1702_v46 = vpop.permute.xlu0 %656  ;;  %2075 = vst [vmem:[#allocation8_spill] sm:$0xff] %v1708_v53 }
  0xdb   :  { %1208 = vmatmul.mubr.msk.f32.gmra.mxu0 %vm388_vm0, %v286_v18  ;;  %2074 = vst [vmem:[#allocation7_spill] sm:$0xff] %v1702_v46 }
  0xdc   :  { %567 = vmatprep.mubr.f32.mxu0 %v2047_v27 }
  0xdd   :  { %v1712_v58 = vpop.permute.xlu1 %651 }
  0xde   :  { %v1706_v49 = vpop.permute.xlu0 %340  ;;  %2077 = vst [vmem:[#allocation10_spill] sm:$0xff] %v1712_v58 }
  0xdf   :  { %1209 = vmatmul.mubr.msk.f32.gmra.mxu0 %vm388_vm0, %v287_v19 }
  0xe0   :  { %573 = vmatprep.mubr.f32.mxu0 %v2047_v27 }
  0xe1   :  { %v336_v63 = vpop.permute.xlu1 %335 }
  0xe2   :  { %v1710_v54 = vpop.permute.xlu0 %784 }
  0xe3   :  { %1210 = vmatmul.mubr.msk.f32.gmra.mxu0 %vm388_vm0, %v288_v20  ;;  %2076 = vst [vmem:[#allocation9_spill] sm:$0xff] %v1710_v54 }
  0xe4   :  { %579 = vmatprep.mubr.f32.mxu0 %v2047_v27 }
  0xe5   :  { %v1716_v4 = vpop.permute.xlu1 %779 }
  0xe6   :  { %v1714_v59 = vpop.permute.xlu0 %646  ;;  %2079 = vst [vmem:[#allocation12_spill] sm:$0xff] %v1716_v4 }
  0xe7   :  { %1211 = vmatmul.mubr.msk.f32.gmra.mxu0 %vm388_vm0, %v289_v21  ;;  %2078 = vst [vmem:[#allocation11_spill] sm:$0xff] %v1714_v59 }
  0xe8   :  { %585 = vmatprep.mubr.f32.mxu0 %v2047_v27 }
  0xe9   :  { %v1722_v9 = vpop.permute.xlu1 %641 }
  0xea   :  { %v331_v0 = vpop.permute.xlu0 %330  ;;  %2081 = vst [vmem:[#allocation14_spill] sm:$0xff] %v1722_v9 }
  0xeb   :  { %1212 = vmatmul.mubr.msk.f32.gmra.mxu0 %vm388_vm0, %v290_v22  ;;  %v2063_v22 = vlaneseq }
  0xec   :  { %591 = vmatprep.mubr.f32.mxu0 %v2047_v27 }
  0xed   :  { %v326_v14 = vpop.permute.xlu1 %325 }
  0xee   :  { %v1718_v5 = vpop.permute.xlu0 %774 }
  0xef   :  { %1213 = vmatmul.mubr.msk.f32.gmra.mxu0 %vm388_vm0, %v291_v23  ;;  %2080 = vst [vmem:[#allocation13_spill] sm:$0xff] %v1718_v5  ;;  %v888_v5 = vshrl.u32 %v2063_v22, 7 }
  0xf1   :  { %v1736_v19 = vpop.permute.xlu1 %769  ;;  %v893_v59 = vsub.s32 1, %v888_v5  ;;  %v889_v53 = vsub.s32 0, %v888_v5 }
  0xf2   :  { %v1724_v10 = vpop.permute.xlu0 %636  ;;  %2085 = vst [vmem:[#allocation18_spill] sm:$0xff] %v1736_v19  ;;  %v35_v19 = vld [vmem:[%s2044_s9] sm:$0x3] }
  0xf3   :  { %2082 = vst [vmem:[#allocation15_spill] sm:$0xff] %v1724_v10  ;;  %v1748_v43 = vrot.slane %v35_v19, %v893_v59  ;;  %v1750_v45 = vrot.slane %v35_v19, %v889_v53 }
  0xf5   :  { %v1741_v10 = vpop.permute.xlu1 %631  ;;  %2089 = vst [vmem:[#allocation22_spill] sm:$0xff] %v1748_v43 }
  0xf6   :  { %v321_v15 = vpop.permute.xlu0 %320  ;;  %2087 = vst [vmem:[#allocation20_spill] sm:$0xff] %v1741_v10 }
  0xfa   :  { %v1738_v20 = vpop.permute.xlu0 %764 }
  0xfb   :  { %2086 = vst [vmem:[#allocation19_spill] sm:$0xff] %v1738_v20  ;;  %v316_v20 = vpop.permute.xlu1 %315 }
  0xfe   :  { %v1743_v4 = vpop.permute.xlu0 %626 }
  0xff   :  { %2088 = vst [vmem:[#allocation21_spill] sm:$0xff] %v1743_v4 }
 0x102   :  { %v311_v44 = vpop.permute.xlu0 %310 }
 0x173   :  { %v503_v47 = vpop.f32.mrf.mxu0 }
 0x174   :  { %v1752_v22 = vadd.f32 %v503_v47, %v311_v44 }
 0x175   :  { %v505_v50 = vpop.f32.mrf.mxu0 }
 0x176   :  { %v1754_v10 = vadd.f32 %v505_v50, %v311_v44 }
 0x177   :  { %v509_v51 = vpop.f32.mrf.mxu0 }
 0x178   :  { %v1756_v4 = vadd.f32 %v509_v51, %v316_v20 }
 0x179   :  { %v511_v52 = vpop.f32.mrf.mxu0 }
 0x17b   :  { %v515_v55 = vpop.f32.mrf.mxu0 }
 0x17c   :  { %v1760_v5 = vadd.f32 %v515_v55, %v321_v15 }
 0x17d   :  { %v517_v56 = vpop.f32.mrf.mxu0 }
 0x17e   :  { %v1762_v38 = vadd.f32 %v517_v56, %v321_v15 }
 0x17f   :  { %v521_v57 = vpop.f32.mrf.mxu0 }
 0x180   :  { %v1764_v40 = vadd.f32 %v521_v57, %v326_v14 }
 0x181   :  { %v523_v60 = vpop.f32.mrf.mxu0 }
 0x182   :  { %v1767_v43 = vadd.f32 %v523_v60, %v326_v14 }
 0x183   :  { %v527_v61 = vpop.f32.mrf.mxu0 }
 0x184   :  { %v1769_v53 = vadd.f32 %v527_v61, %v331_v0 }
 0x185   :  { %v529_v62 = vpop.f32.mrf.mxu0 }
 0x186   :  { %v1773_v50 = vadd.f32 %v529_v62, %v331_v0 }
 0x187   :  { %v533_v1 = vpop.f32.mrf.mxu0 }
 0x188   :  { %v1775_v51 = vadd.f32 %v533_v1, %v336_v63 }
 0x189   :  { %v535_v2 = vpop.f32.mrf.mxu0 }
 0x18b   :  { %v539_v3 = vpop.f32.mrf.mxu0 }
 0x18d   :  { %v541_v6 = vpop.f32.mrf.mxu0 }
 0x18f   :  { %v545_v7 = vpop.f32.mrf.mxu0 }
 0x190   :  { %v546_v61 = vadd.f32 %v545_v7, %v1704_v48 }
 0x191   :  { %v1720_v8 = vpop.f32.mrf.mxu0 }
 0x193   :  { %v1726_v11 = vpop.f32.mrf.mxu0 }
 0x194   :  { %2083 = vst [vmem:[#allocation16_spill] sm:$0xff] %v1726_v11  ;;  %v1758_v11 = vadd.f32 %v511_v52, %v316_v20  ;;  %v1777_v52 = vadd.f32 %v535_v2, %v336_v63 }
 0x195   :  { %v1728_v12 = vpop.f32.mrf.mxu0 }
 0x197   :  { %v1730_v13 = vpop.f32.mrf.mxu0 }
 0x198   :  { %2084 = vst [vmem:[#allocation17_spill] sm:$0xff] %v1730_v13 }
 0x199   :  { %v1732_v16 = vpop.f32.mrf.mxu0 }
 0x19b   :  { %v1734_v17 = vpop.f32.mrf.mxu0 }
 0x19d   :  { %v565_v18 = vpop.f32.mrf.mxu0 }
 0x19f   :  { %v569_v21 = vpop.f32.mrf.mxu0  ;;  %v2090_v15 = vld [vmem:[#allocation17_spill] sm:$0xff] }
 0x1a1   :  { %v571_v23 = vpop.f32.mrf.mxu0 }
 0x1a3   :  { %v575_v27 = vpop.f32.mrf.mxu0 }
 0x1a4   :  { %v576_v62 = vadd.f32 %v575_v27, %v1670_v30 }
 0x1a5   :  { %v577_v9 = vpop.f32.mrf.mxu0 }
 0x1a6   :  { %v578_v57 = vadd.f32 %v577_v9, %v1670_v30 }
 0x1a7   :  { %v581_v54 = vpop.f32.mrf.mxu0 }
 0x1a8   :  { %v582_v55 = vadd.f32 %v581_v54, %v1668_v29  ;;  %v572_v54 = vadd.f32 %v571_v23, %v1680_v35  ;;  %v2093_v23 = vld [vmem:[#allocation16_spill] sm:$0xff] }
 0x1a9   :  { %v583_v58 = vpop.f32.mrf.mxu0 }
 0x1aa   :  { %v584_v44 = vadd.f32 %v583_v58, %v1668_v29  ;;  %v720_v27 = vmul.f32 %v1676_v33, %v582_v55 }
 0x1ab   :  { %v587_v46 = vpop.f32.mrf.mxu0 }
 0x1ac   :  { %v588_v13 = vadd.f32 %v587_v46, %v1664_v26  ;;  %v1781_v46 = vadd.f32 %v539_v3, %v1706_v49  ;;  %v721_v0 = vmul.f32 %v1676_v33, %v584_v44  ;;  %v548_v3 = vadd.f32 %v1720_v8, %v1704_v48 }
 0x1ad   :  { %v589_v59 = vpop.f32.mrf.mxu0  ;;  %v564_v48 = vadd.f32 %v1734_v17, %v1682_v36  ;;  %v718_v8 = vmul.f32 %v1678_v34, %v576_v62  ;;  %v560_v33 = vadd.f32 %v1732_v16, %v1692_v41 }
 0x1ae   :  { %v590_v47 = vadd.f32 %v589_v59, %v1664_v26  ;;  %v1787_v26 = vadd.f32 %v541_v6, %v1706_v49  ;;  %v722_v63 = vmul.f32 %v1666_v28, %v588_v13  ;;  %v566_v49 = vadd.f32 %v565_v18, %v1682_v36 }
 0x1af   :  { %v593_v56 = vpop.f32.mrf.mxu0  ;;  %v570_v6 = vadd.f32 %v569_v21, %v1680_v35  ;;  %v717_v13 = vmul.f32 %v1688_v39, %v572_v54  ;;  %v849_v14 = vadd.f32 %v1684_v37, %v721_v0  ;;  %v558_v18 = vadd.f32 %v2090_v15, %v1692_v41  ;;  %v2094_v41 = vld [vmem:[#allocation6_spill] sm:$0xff]  ;;  %v2098_v0 = vld [vmem:[#allocation5_spill] sm:$0xff] }
 0x1b0   :  { %v723_v60 = vmul.f32 %v1666_v28, %v590_v47  ;;  %v594_v58 = vadd.f32 %v593_v56, %v1660_v24  ;;  %v719_v28 = vmul.f32 %v1678_v34, %v578_v57  ;;  %v850_v35 = vadd.f32 %v1674_v32, %v722_v63  ;;  %v2091_v34 = vld [vmem:[#allocation3_spill] sm:$0xff]  ;;  %v2096_v57 = vld [vmem:[#allocation22_spill] sm:$0xff] }
 0x1b1   :  { %v595_v29 = vpop.f32.mrf.mxu0  ;;  %v848_v36 = vadd.f32 %v1684_v37, %v720_v27  ;;  %v715_v19 = vmul.f32 %v2091_v34, %v566_v49  ;;  %v552_v59 = vadd.f32 %v2093_v23, %v1694_v42  ;;  %v714_v44 = vmul.f32 %v2091_v34, %v564_v48  ;;  %v2104_v23 = vld [vmem:[#allocation12_spill] sm:$0xff] }
 0x1b2   :  { %v724_v1 = vmul.f32 %v1662_v25, %v594_v58  ;;  %v596_v2 = vadd.f32 %v595_v29, %v1660_v24  ;;  %v851_v30 = vadd.f32 %v1674_v32, %v723_v60  ;;  %v554_v24 = vadd.f32 %v1728_v12, %v1694_v42  ;;  %v2092_v32 = vld [vmem:[#allocation2_spill] sm:$0xff]  ;;  %v2097_v42 = vld [vmem:[#allocation7_spill] sm:$0xff] }
 0x1b3   :  { %v716_v12 = vmul.f32 %v1688_v39, %v570_v6  ;;  %v847_v20 = vadd.f32 %v2092_v32, %v719_v28  ;;  %v882_v47 = vmax.f32 %v850_v35, 0.0  ;;  %v713_v55 = vmul.f32 %v2094_v41, %v560_v33  ;;  %v2095_v39 = vld [vmem:[#allocation4_spill] sm:$0xff]  ;;  %v1835_v6 = vpop.permute.xlu1 %759 }
 0x1b4   :  { %v725_v7 = vmul.f32 %v1662_v25, %v596_v2  ;;  %v852_v9 = vadd.f32 %v1672_v31, %v724_v1  ;;  %v883_v21 = vmax.f32 %v851_v30, 0.0  ;;  %v845_v56 = vadd.f32 %v2095_v39, %v717_v13 }
 0x1b5   :  { %v881_v37 = vmax.f32 %v849_v14, 0.0  ;;  %v712_v58 = vmul.f32 %v2094_v41, %v558_v18  ;;  %v844_v62 = vadd.f32 %v2095_v39, %v716_v12  ;;  %v880_v63 = vmax.f32 %v848_v36, 0.0  ;;  %v2101_v18 = vld [vmem:[#allocation11_spill] sm:$0xff]  ;;  %v2102_v36 = vld [vmem:[#allocation9_spill] sm:$0xff] }
 0x1b6   :  { %v853_v25 = vadd.f32 %v1672_v31, %v725_v7  ;;  %v884_v17 = vmax.f32 %v852_v9, 0.0  ;;  %v846_v31 = vadd.f32 %v2092_v32, %v718_v8  ;;  %v711_v54 = vmul.f32 %v2097_v42, %v554_v24  ;;  %v2099_v9 = vld [vmem:[#allocation10_spill] sm:$0xff]  ;;  %v2100_v8 = vld [vmem:[#allocation8_spill] sm:$0xff]  ;;  %v2105_v39 = vld [vmem:[#allocation15_spill] sm:$0xff] }
 0x1b7   :  { %v843_v1 = vadd.f32 %v2098_v0, %v715_v19  ;;  %v879_v2 = vmax.f32 %v847_v20, 0.0  ;;  %v926_v49 = vmul.f32 %v2096_v57, %v883_v21  ;;  %v710_v27 = vmul.f32 %v2097_v42, %v552_v59  ;;  %v2103_v21 = vld [vmem:[#allocation14_spill] sm:$0xff]  ;;  %v2107_v42 = vld [vmem:[#allocation20_spill] sm:$0xff] }
 0x1b8   :  { %v885_v16 = vmax.f32 %v853_v25, 0.0  ;;  %v927_v29 = vmul.f32 %v1750_v45, %v884_v17  ;;  %v842_v28 = vadd.f32 %v2098_v0, %v714_v44  ;;  %v878_v30 = vmax.f32 %v846_v31, 0.0  ;;  %v622_v31 = vpop.permute.xlu1 %621  ;;  %v2108_v0 = vld [vmem:[#allocation18_spill] sm:$0xff] }
 0x1b9   :  { %v925_v7 = vmul.f32 %v1750_v45, %v882_v47  ;;  %v709_v48 = vmul.f32 %v2099_v9, %v548_v3  ;;  %v841_v24 = vadd.f32 %v2100_v8, %v713_v55  ;;  %v877_v35 = vmax.f32 %v845_v56, 0.0 }
 0x1ba   :  { %v928_v60 = vmul.f32 %v2096_v57, %v885_v16  ;;  %v924_v33 = vmul.f32 %v2096_v57, %v881_v37  ;;  %v708_v13 = vmul.f32 %v2099_v9, %v546_v61  ;;  %v840_v14 = vadd.f32 %v2100_v8, %v712_v58 }
 0x1bb   :  { %v876_v25 = vmax.f32 %v844_v62, 0.0  ;;  %v923_v15 = vmul.f32 %v1750_v45, %v880_v63  ;;  %v707_v12 = vmul.f32 %v2101_v18, %v1787_v26  ;;  %v839_v17 = vadd.f32 %v2102_v36, %v711_v54 }
 0x1bc   :  { %941 = vmatprep.subr.mxu1 %v928_v60  ;;  %v875_v3 = vmax.f32 %v843_v1, 0.0  ;;  %v922_v34 = vmul.f32 %v2096_v57, %v879_v2  ;;  %v706_v19 = vmul.f32 %v2101_v18, %v1781_v46  ;;  %v838_v61 = vadd.f32 %v2102_v36, %v710_v27 }
 0x1bd   :  { %942 = vmatpush1.msra.mxu1 %v927_v29  ;;  %v874_v32 = vmax.f32 %v842_v28, 0.0  ;;  %v921_v20 = vmul.f32 %v1750_v45, %v878_v30  ;;  %v705_v16 = vmul.f32 %v2103_v21, %v1777_v52  ;;  %v837_v26 = vadd.f32 %v2104_v23, %v709_v48  ;;  %v2106_v52 = vld [vmem:[#allocation13_spill] sm:$0xff] }
 0x1be   :  { %943 = vmatprep.subr.mxu1 %v926_v49  ;;  %v873_v59 = vmax.f32 %v841_v24, 0.0  ;;  %v920_v44 = vmul.f32 %v2096_v57, %v877_v35  ;;  %v704_v47 = vmul.f32 %v2103_v21, %v1775_v51  ;;  %v836_v46 = vadd.f32 %v2104_v23, %v708_v13  ;;  %v755_v49 = vpop.permute.xlu0 %754  ;;  %v617_v35 = vpop.permute.xlu1 %616 }
 0x1bf   :  { %944 = vmatpush1.msra.mxu1 %v925_v7  ;;  %v872_v41 = vmax.f32 %v840_v14, 0.0  ;;  %v919_v55 = vmul.f32 %v1750_v45, %v876_v25  ;;  %v703_v56 = vmul.f32 %v2105_v39, %v1773_v50  ;;  %v835_v37 = vadd.f32 %v2106_v52, %v707_v12  ;;  %v2109_v7 = vld [vmem:[#allocation21_spill] sm:$0xff] }
 0x1c0   :  { %945 = vmatprep.subr.mxu1 %v924_v33  ;;  %v871_v60 = vmax.f32 %v839_v17, 0.0  ;;  %v918_v58 = vmul.f32 %v2096_v57, %v875_v3  ;;  %v702_v62 = vmul.f32 %v2105_v39, %v1769_v53  ;;  %v834_v51 = vadd.f32 %v2106_v52, %v706_v19 }
 0x1c1   :  { %946 = vmatpush1.msra.mxu1 %v923_v15  ;;  %v870_v63 = vmax.f32 %v838_v61, 0.0  ;;  %v917_v29 = vmul.f32 %v1750_v45, %v874_v32  ;;  %v701_v54 = vmul.f32 %v2107_v42, %v1767_v43  ;;  %v833_v50 = vadd.f32 %v2108_v0, %v705_v16  ;;  %v2110_v43 = vld [vmem:[#allocation19_spill] sm:$0xff] }
 0x1c2   :  { %947 = vmatprep.subr.mxu1 %v922_v34  ;;  %v869_v1 = vmax.f32 %v837_v26, 0.0  ;;  %v916_v2 = vmul.f32 %v2096_v57, %v873_v59  ;;  %v700_v27 = vmul.f32 %v2107_v42, %v1764_v40  ;;  %v832_v53 = vadd.f32 %v2108_v0, %v704_v47  ;;  %v750_v61 = vpop.permute.xlu0 %749  ;;  %v745_v26 = vpop.permute.xlu1 %744  ;;  %v929_v0 = vld [vmem:[%s2045_s7] sm:$0xff] }
 0x1c3   :  { %948 = vmatpush1.msra.mxu1 %v921_v20  ;;  %v868_v28 = vmax.f32 %v836_v46, 0.0  ;;  %v915_v30 = vmul.f32 %v1750_v45, %v872_v41  ;;  %v699_v9 = vmul.f32 %v2109_v7, %v1762_v38  ;;  %v831_v48 = vadd.f32 %v2110_v43, %v703_v56 }
 0x1c4   :  { %949 = vmatprep.subr.mxu1 %v920_v44  ;;  %v867_v8 = vmax.f32 %v835_v37, 0.0  ;;  %v914_v24 = vmul.f32 %v2096_v57, %v871_v60  ;;  %v698_v33 = vmul.f32 %v2109_v7, %v1760_v5  ;;  %v830_v40 = vadd.f32 %v2110_v43, %v702_v62  ;;  %v937_v7 = vld [vmem:[%s2045_s7 + $0x40] sm:$0xff]  ;;  %v939_v43 = vld [vmem:[%s2045_s7 + $0x50] sm:$0xff] }
 0x1c5   :  { %950 = vmatpush1.msra.mxu1 %v919_v55  ;;  %v866_v13 = vmax.f32 %v834_v51, 0.0  ;;  %v913_v14 = vmul.f32 %v1750_v45, %v870_v63  ;;  %v697_v25 = vmul.f32 %v622_v31, %v1758_v11  ;;  %v829_v38 = vadd.f32 %v1835_v6, %v701_v54 }
 0x1c6   :  { %951 = vmatprep.subr.mxu1 %v918_v58  ;;  %v865_v15 = vmax.f32 %v833_v50, 0.0  ;;  %v912_v18 = vmul.f32 %v2096_v57, %v869_v1  ;;  %v696_v12 = vmul.f32 %v622_v31, %v1756_v4  ;;  %v828_v36 = vadd.f32 %v1835_v6, %v700_v27  ;;  %v930_v1 = vld [vmem:[%s2045_s7 + $0x8] sm:$0xff]  ;;  %v933_v27 = vld [vmem:[%s2045_s7 + $0x20] sm:$0xff] }
 0x1c7   :  { %952 = vmatpush1.msra.mxu1 %v917_v29  ;;  %v864_v17 = vmax.f32 %v832_v53, 0.0  ;;  %v911_v5 = vmul.f32 %v1750_v45, %v868_v28  ;;  %v695_v3 = vmul.f32 %v617_v35, %v1754_v10  ;;  %v827_v34 = vadd.f32 %v755_v49, %v699_v9  ;;  %v934_v53 = vld [vmem:[%s2045_s7 + $0x28] sm:$0xff]  ;;  %v935_v28 = vld [vmem:[%s2045_s7 + $0x30] sm:$0xff] }
 0x1c8   :  { %953 = vmatprep.subr.mxu1 %v916_v2  ;;  %v863_v19 = vmax.f32 %v831_v48, 0.0  ;;  %v910_v11 = vmul.f32 %v2096_v57, %v867_v8  ;;  %v694_v32 = vmul.f32 %v617_v35, %v1752_v22  ;;  %v826_v20 = vadd.f32 %v755_v49, %v698_v33  ;;  %v931_v2 = vld [vmem:[%s2045_s7 + $0x10] sm:$0xff]  ;;  %v932_v49 = vld [vmem:[%s2045_s7 + $0x18] sm:$0xff]  ;;  %v938_v9 = vld [vmem:[%s2045_s7 + $0x48] sm:$0xff] }
 0x1c9   :  { %954 = vmatpush1.msra.mxu1 %v915_v30  ;;  %v862_v21 = vmax.f32 %v830_v40, 0.0  ;;  %v909_v4 = vmul.f32 %v1750_v45, %v866_v13  ;;  %v825_v6 = vadd.f32 %v750_v61, %v697_v25  ;;  %v861_v16 = vmax.f32 %v829_v38, 0.0  ;;  %v936_v30 = vld [vmem:[%s2045_s7 + $0x38] sm:$0xff] }
 0x1ca   :  { %955 = vmatprep.subr.mxu1 %v914_v24  ;;  %v908_v23 = vmul.f32 %v2096_v57, %v865_v15  ;;  %v824_v10 = vadd.f32 %v750_v61, %v696_v12  ;;  %v860_v59 = vmax.f32 %v828_v36, 0.0  ;;  %v907_v44 = vmul.f32 %v1750_v45, %v864_v17  ;;  %v940_v48 = vld [vmem:[%s2045_s7 + $0x58] sm:$0xff]  ;;  %s1223_s7 = smov 127  }
 0x1cb   :  { %956 = vmatpush1.msra.mxu1 %v913_v14  ;;  %v823_v31 = vadd.f32 %v745_v26, %v695_v3  ;;  %v859_v47 = vmax.f32 %v827_v34, 0.0  ;;  %v906_v22 = vmul.f32 %v2096_v57, %v863_v19  ;;  %v822_v46 = vadd.f32 %v745_v26, %v694_v32 }
 0x1cc   :  { %957 = vmatprep.subr.mxu1 %v912_v18  ;;  %v858_v41 = vmax.f32 %v826_v20, 0.0  ;;  %v905_v55 = vmul.f32 %v1750_v45, %v862_v21  ;;  %v857_v39 = vmax.f32 %v825_v6, 0.0  ;;  %v904_v56 = vmul.f32 %v2096_v57, %v861_v16  ;;  %v1137_v6 = vpop.permute.xlu0 %1136  ;;  %v1142_v16 = vpop.permute.xlu1 %1141 }
 0x1cd   :  { %958 = vmatpush1.msra.mxu1 %v911_v5  ;;  %v856_v52 = vmax.f32 %v824_v10, 0.0  ;;  %v903_v37 = vmul.f32 %v1750_v45, %v860_v59  ;;  %v855_v60 = vmax.f32 %v823_v31, 0.0  ;;  %v902_v58 = vmul.f32 %v2096_v57, %v859_v47 }
 0x1ce   :  { %959 = vmatprep.subr.mxu1 %v910_v11  ;;  %v854_v62 = vmax.f32 %v822_v46, 0.0  ;;  %v901_v51 = vmul.f32 %v1750_v45, %v858_v41  ;;  %v900_v63 = vmul.f32 %v2096_v57, %v857_v39  ;;  %v2111_v50 = vmov 0.0  }
 0x1cf   :  { %960 = vmatpush1.msra.mxu1 %v909_v4  ;;  %v899_v29 = vmul.f32 %v1750_v45, %v856_v52  ;;  %v898_v42 = vmul.f32 %v2096_v57, %v855_v60  ;;  %v2112_v47 = vlaneseq }
 0x1d0   :  { %961 = vmatprep.subr.mxu1 %v908_v23  ;;  %v897_v54 = vmul.f32 %v1750_v45, %v854_v62  ;;  %v1147_v23 = vpop.permute.xlu0 %1146  ;;  %v1152_v26 = vpop.permute.xlu1 %1151 }
 0x1d1   :  { %962 = vmatpush1.msra.mxu1 %v907_v44 }
 0x1d2   :  { %963 = vmatprep.subr.mxu1 %v906_v22  ;;  %v1964_v22 = vand.u32 127, %v2112_v47 }
 0x1d3   :  { %964 = vmatpush1.msra.mxu1 %v905_v55 }
 0x1d4   :  { %965 = vmatprep.subr.mxu1 %v904_v56  ;;  %vm1096_vm1 = vcmp.lt.s32.totalorder %v1964_v22, 1  ;;  %vm1121_vm2 = vcmp.lt.s32.totalorder %v1964_v22, 127 }
 0x1d5   :  { %966 = vmatpush1.msra.mxu1 %v903_v37 }
 0x1d6   :  { %967 = vmatprep.subr.mxu1 %v902_v58 }
 0x1d7   :  { %968 = vmatpush1.msra.mxu1 %v901_v51 }
 0x1d8   :  { %969 = vmatprep.subr.mxu1 %v900_v63 }
 0x1d9   :  { %970 = vmatpush1.msra.mxu1 %v899_v29 }
 0x1da   :  { %971 = vmatprep.subr.mxu1 %v898_v42 }
 0x1db   :  { %972 = vmatpush1.msra.mxu1 %v897_v54 }
 0x1dc   :  { %1006 = vmatmul.mubr.f32.vlgmr.msra.gmra.mxu1 %v929_v0 }
 0x1dd   :  { %1011 = vmatprep.mubr.f32.mxu1 %v2111_v50 }
 0x1e0   :  { %1012 = vmatmul.mubr.f32.gmra.mxu1 %v930_v1 }
 0x1e1   :  { %1017 = vmatprep.mubr.f32.mxu1 %v2111_v50 }
 0x1e4   :  { %1018 = vmatmul.mubr.f32.gmra.mxu1 %v931_v2 }
 0x1e5   :  { %1023 = vmatprep.mubr.f32.mxu1 %v2111_v50 }
 0x1e8   :  { %1024 = vmatmul.mubr.f32.gmra.mxu1 %v932_v49 }
 0x1e9   :  { %1029 = vmatprep.mubr.f32.mxu1 %v2111_v50 }
 0x1ec   :  { %1030 = vmatmul.mubr.f32.gmra.mxu1 %v933_v27 }
 0x1ed   :  { %1035 = vmatprep.mubr.f32.mxu1 %v2111_v50 }
 0x1f0   :  { %1036 = vmatmul.mubr.f32.gmra.mxu1 %v934_v53 }
 0x1f1   :  { %1041 = vmatprep.mubr.f32.mxu1 %v2111_v50 }
 0x1f4   :  { %1042 = vmatmul.mubr.f32.gmra.mxu1 %v935_v28 }
 0x1f5   :  { %1047 = vmatprep.mubr.f32.mxu1 %v2111_v50 }
 0x1f8   :  { %1048 = vmatmul.mubr.f32.gmra.mxu1 %v936_v30 }
 0x1f9   :  { %1053 = vmatprep.mubr.f32.mxu1 %v2111_v50 }
 0x1fc   :  { %1054 = vmatmul.mubr.f32.gmra.mxu1 %v937_v7 }
 0x1fd   :  { %1059 = vmatprep.mubr.f32.mxu1 %v2111_v50 }
 0x200   :  { %1060 = vmatmul.mubr.f32.gmra.mxu1 %v938_v9 }
 0x201   :  { %1065 = vmatprep.mubr.f32.mxu1 %v2111_v50 }
 0x204   :  { %1066 = vmatmul.mubr.f32.gmra.mxu1 %v939_v43 }
 0x205   :  { %1071 = vmatprep.mubr.f32.mxu1 %v2111_v50 }
 0x208   :  { %1072 = vmatmul.mubr.f32.gmra.mxu1 %v940_v48 }
 0x29c   :  { %v1007_v8 = vpop.f32.mrf.mxu1 }
 0x29d   :  { %1078 = vrot.lane.b32.xlu0 %v1007_v8, %s1222_s12 }
 0x29e   :  { %v1009_v24 = vpop.f32.mrf.mxu1 }
 0x2a0   :  { %v1013_v35 = vpop.f32.mrf.mxu1 }
 0x2a1   :  { %1086 = vrot.lane.b32.xlu0 %v1009_v24, %s1222_s12  ;;  %1080 = vrot.lane.b32.xlu1 %v1013_v35, %s1222_s12 }
 0x2a2   :  { %v1015_v33 = vpop.f32.mrf.mxu1 }
 0x2a4   :  { %v1019_v40 = vpop.f32.mrf.mxu1 }
 0x2a5   :  { %1088 = vrot.lane.b32.xlu1 %v1015_v33, %s1222_s12  ;;  %1082 = vrot.lane.b32.xlu0 %v1019_v40, %s1222_s12 }
 0x2a6   :  { %v1021_v13 = vpop.f32.mrf.mxu1 }
 0x2a8   :  { %v1025_v14 = vpop.f32.mrf.mxu1 }
 0x2a9   :  { %1090 = vrot.lane.b32.xlu0 %v1021_v13, %s1222_s12  ;;  %1084 = vrot.lane.b32.xlu1 %v1025_v14, %s1222_s12 }
 0x2aa   :  { %v1027_v25 = vpop.f32.mrf.mxu1 }
 0x2ac   :  { %v1031_v38 = vpop.f32.mrf.mxu1 }
 0x2ad   :  { %1092 = vrot.lane.b32.xlu1 %v1027_v25, %s1222_s12 }
 0x2ae   :  { %v1033_v15 = vpop.f32.mrf.mxu1 }
 0x2b0   :  { %v1037_v18 = vpop.f32.mrf.mxu1 }
 0x2b2   :  { %v1039_v12 = vpop.f32.mrf.mxu1 }
 0x2b4   :  { %v1955_v36 = vpop.f32.mrf.mxu1 }
 0x2b6   :  { %v1957_v17 = vpop.f32.mrf.mxu1 }
 0x2b8   :  { %v1959_v5 = vpop.f32.mrf.mxu1 }
 0x2ba   :  { %v1961_v3 = vpop.f32.mrf.mxu1 }
 0x2bc   :  { %v1055_v34 = vpop.f32.mrf.mxu1 }
 0x2bd   :  { %1105 = vrot.lane.b32.xlu0 %v1055_v34, %s1223_s7 }
 0x2be   :  { %v1057_v19 = vpop.f32.mrf.mxu1 }
 0x2c0   :  { %v1061_v11 = vpop.f32.mrf.mxu1 }
 0x2c1   :  { %1113 = vrot.lane.b32.xlu0 %v1057_v19, %s1223_s7  ;;  %1107 = vrot.lane.b32.xlu1 %v1061_v11, %s1223_s7 }
 0x2c2   :  { %v1063_v61 = vpop.f32.mrf.mxu1 }
 0x2c4   :  { %v1067_v32 = vpop.f32.mrf.mxu1 }
 0x2c5   :  { %1115 = vrot.lane.b32.xlu1 %v1063_v61, %s1223_s7  ;;  %1109 = vrot.lane.b32.xlu0 %v1067_v32, %s1223_s7 }
 0x2c6   :  { %v1069_v20 = vpop.f32.mrf.mxu1 }
 0x2c8   :  { %v1073_v21 = vpop.f32.mrf.mxu1 }
 0x2c9   :  { %1117 = vrot.lane.b32.xlu0 %v1069_v20, %s1223_s7  ;;  %1111 = vrot.lane.b32.xlu1 %v1073_v21, %s1223_s7 }
 0x2ca   :  { %v1075_v4 = vpop.f32.mrf.mxu1 }
 0x2cd   :  { %1119 = vrot.lane.b32.xlu1 %v1075_v4, %s1223_s7 }
 0x30f   :  { %v1079_v10 = vpop.permute.xlu0 %1078 }
 0x313   :  { %v1081_v59 = vpop.permute.xlu1 %1080  ;;  %v1087_v44 = vpop.permute.xlu0 %1086 }
 0x314   :  { %v1097_v55 = vsel %vm1096_vm1, %v1079_v10, %v1087_v44  ;;  %v1101_v39 = vsel %vm1096_vm1, %v1087_v44, %v1079_v10 }
 0x315   :  { %v1154_v52 = vadd.f32 %v1137_v6, %v1101_v39  ;;  %v1155_v37 = vadd.f32 %v1137_v6, %v1097_v55 }
 0x317   :  { %v1089_v31 = vpop.permute.xlu1 %1088  ;;  %v1083_v46 = vpop.permute.xlu0 %1082  ;;  %v1162_v63 = vadd.f32 %v1154_v52, %v1031_v38  ;;  %v1163_v29 = vadd.f32 %v1155_v37, %v1033_v15 }
 0x318   :  { %v1098_v62 = vsel %vm1096_vm1, %v1081_v59, %v1089_v31  ;;  %v1102_v51 = vsel %vm1096_vm1, %v1089_v31, %v1081_v59 }
 0x319   :  { %v1156_v42 = vadd.f32 %v1142_v16, %v1102_v51  ;;  %v1157_v54 = vadd.f32 %v1142_v16, %v1098_v62 }
 0x31b   :  { %v1085_v41 = vpop.permute.xlu1 %1084  ;;  %v1091_v56 = vpop.permute.xlu0 %1090  ;;  %v1164_v48 = vadd.f32 %v1156_v42, %v1037_v18  ;;  %v1165_v8 = vadd.f32 %v1157_v54, %v1039_v12 }
 0x31c   :  { %v1099_v0 = vsel %vm1096_vm1, %v1083_v46, %v1091_v56  ;;  %v1103_v50 = vsel %vm1096_vm1, %v1091_v56, %v1083_v46 }
 0x31d   :  { %v1158_v30 = vadd.f32 %v1147_v23, %v1103_v50  ;;  %v1159_v7 = vadd.f32 %v1147_v23, %v1099_v0 }
 0x31f   :  { %v1093_v60 = vpop.permute.xlu1 %1092  ;;  %v1166_v15 = vadd.f32 %v1158_v30, %v1955_v36  ;;  %v1167_v18 = vadd.f32 %v1159_v7, %v1957_v17 }
 0x320   :  { %v1100_v33 = vsel %vm1096_vm1, %v1085_v41, %v1093_v60  ;;  %v1104_v40 = vsel %vm1096_vm1, %v1093_v60, %v1085_v41 }
 0x321   :  { %v1160_v12 = vadd.f32 %v1152_v26, %v1104_v40  ;;  %v1161_v34 = vadd.f32 %v1152_v26, %v1100_v33 }
 0x323   :  { %v1168_v16 = vadd.f32 %v1160_v12, %v1959_v5  ;;  %v1169_v23 = vadd.f32 %v1161_v34, %v1961_v3 }
 0x32f   :  { %v1106_v58 = vpop.permute.xlu0 %1105 }
 0x333   :  { %v1114_v1 = vpop.permute.xlu0 %1113  ;;  %v1108_v2 = vpop.permute.xlu1 %1107 }
 0x334   :  { %v1122_v49 = vsel %vm1121_vm2, %v1106_v58, %v1114_v1  ;;  %v1126_v27 = vsel %vm1121_vm2, %v1114_v1, %v1106_v58 }
 0x335   :  { %v1170_v53 = vadd.f32 %v1162_v63, %v1122_v49  ;;  %v1171_v28 = vadd.f32 %v1163_v29, %v1126_v27 }
 0x337   :  { %v1178_v9 = vmul.f32 %v1170_v53, %v1750_v45  ;;  %v1179_v43 = vmul.f32 %v1171_v28, %v2096_v57  ;;  %v1116_v24 = vpop.permute.xlu1 %1115  ;;  %v1110_v35 = vpop.permute.xlu0 %1109 }
 0x338   :  { %v1123_v13 = vsel %vm1121_vm2, %v1108_v2, %v1116_v24  ;;  %v1127_v14 = vsel %vm1121_vm2, %v1116_v24, %v1108_v2 }
 0x339   :  { %1186 = vst [vmem:[%s2046_s10] sm:$0xff] %v1178_v9  ;;  %1187 = vst [vmem:[%s2046_s10 + $0x8] sm:$0xff] %v1179_v43  ;;  %v1172_v25 = vadd.f32 %v1164_v48, %v1123_v13  ;;  %v1173_v38 = vadd.f32 %v1165_v8, %v1127_v14 }
 0x33b   :  { %v1180_v19 = vmul.f32 %v1172_v25, %v1750_v45  ;;  %v1181_v11 = vmul.f32 %v1173_v38, %v2096_v57  ;;  %v1118_v61 = vpop.permute.xlu0 %1117  ;;  %v1112_v32 = vpop.permute.xlu1 %1111 }
 0x33c   :  { %v1124_v20 = vsel %vm1121_vm2, %v1110_v35, %v1118_v61  ;;  %v1128_v21 = vsel %vm1121_vm2, %v1118_v61, %v1110_v35 }
 0x33d   :  { %1188 = vst [vmem:[%s2046_s10 + $0x10] sm:$0xff] %v1180_v19  ;;  %1189 = vst [vmem:[%s2046_s10 + $0x18] sm:$0xff] %v1181_v11  ;;  %v1174_v36 = vadd.f32 %v1166_v15, %v1124_v20  ;;  %v1175_v17 = vadd.f32 %v1167_v18, %v1128_v21 }
 0x33f   :  { %v1182_v4 = vmul.f32 %v1174_v36, %v1750_v45  ;;  %v1183_v6 = vmul.f32 %v1175_v17, %v2096_v57  ;;  %v1120_v26 = vpop.permute.xlu1 %1119 }
 0x340   :  { %v1125_v10 = vsel %vm1121_vm2, %v1112_v32, %v1120_v26  ;;  %v1129_v59 = vsel %vm1121_vm2, %v1120_v26, %v1112_v32 }
 0x341   :  { %1190 = vst [vmem:[%s2046_s10 + $0x20] sm:$0xff] %v1182_v4  ;;  %1191 = vst [vmem:[%s2046_s10 + $0x28] sm:$0xff] %v1183_v6  ;;  %v1176_v44 = vadd.f32 %v1168_v16, %v1125_v10  ;;  %v1177_v31 = vadd.f32 %v1169_v23, %v1129_v59 }
 0x343   :  { %v1184_v5 = vmul.f32 %v1176_v44, %v1750_v45  ;;  %v1185_v3 = vmul.f32 %v1177_v31, %v2096_v57 }
 0x345   :  { %1192 = vst [vmem:[%s2046_s10 + $0x30] sm:$0xff] %v1184_v5  ;;  %1193 = vst [vmem:[%s2046_s10 + $0x38] sm:$0xff] %v1185_v3 }

</bundles_post_ra>
